<compile_context>
chip_gen: v5e
topology: v5e:2x2
jax: 0.10.0
libtpu: 0.0.40
codegen_flags: <defaults>
</compile_context>

<pallas_src>
import functools

import jax
import jax.numpy as jnp
import numpy as np
from jax.experimental import pallas as pl
from jax.experimental.pallas import tpu as pltpu


# -----------------------------------------------------------------------------
# In-kernel helpers.
# -----------------------------------------------------------------------------
def _im2col(x, xp_ref, col_ref, base, *, H, W):
    """Write the 9 shifted 3x3 taps of `x` into col_ref rows [base, base+9*Cin).

    x:       (Cin, H*W) value (any float dtype; cast to col dtype on store)
    xp_ref:  VMEM scratch (>= Cin, H*W + 2*(W+1)).  A zero strip of W+1 lanes
             on each side of the flattened image provides the row halo, so
             every tap is a *static* lane slice (no HBM-padded input copy).
    col_ref: VMEM scratch holding the (>= 9*Cin, H*W) im2col slab (bf16).
    """
    HW = H * W
    cin = x.shape[0]
    P = W + 1                                        # flat zero-pad per side

    xp_ref[0:cin, :] = jnp.zeros((cin, xp_ref.shape[1]), xp_ref.dtype)
    xp_ref[0:cin, P:P + HW] = x.astype(xp_ref.dtype)

    # Column-validity masks.  Row-out-of-range taps already land in the zero
    # strips; only the horizontal wrap (dx = +/-1) needs masking.
    pos = jax.lax.broadcasted_iota(jnp.int32, (1, HW), 1)
    w_idx = pos % W
    left_ok = w_idx >= 1                             # valid for dx = -1
    right_ok = w_idx < (W - 1)                       # valid for dx = +1

    t = 0
    for dy in (-1, 0, 1):
        for dx in (-1, 0, 1):
            start = P + dy * W + dx                  # static offset
            s = xp_ref[0:cin, start:start + HW]      # (Cin, HW)
            if dx == -1:
                s = jnp.where(left_ok, s, jnp.zeros_like(s))
            elif dx == 1:
                s = jnp.where(right_ok, s, jnp.zeros_like(s))
            col_ref[base + t * cin:base + (t + 1) * cin, :] = s
            t += 1


def _conv_from_col(w_ref, b_ref, col_ref, *, lrelu):
    """Single MXU matmul over the im2col slab: (Cout, K) x (K, HW), K=9*Cin."""
    k = w_ref.shape[1]
    acc = jnp.dot(w_ref[...], col_ref[0:k, :],
                  preferred_element_type=jnp.float32)        # (Cout, HW) f32
    acc = acc + b_ref[...]                                   # (Cout, 1) bias
    if lrelu:
        acc = jnp.where(acc >= 0.0, acc, 0.1 * acc)          # LeakyReLU(0.1)
    return acc


# -----------------------------------------------------------------------------
# Fused kernels.
# -----------------------------------------------------------------------------
def _down_block_kernel(x_ref, w1_ref, b1_ref, w2_ref, b2_ref, o_ref,
                       xp_ref, col_ref, *, H, W):
    """UNetConvBlock: conv3x3+LeakyReLU, conv3x3+LeakyReLU (one pallas_call)."""
    _im2col(x_ref[...], xp_ref, col_ref, 0, H=H, W=W)
    h1 = _conv_from_col(w1_ref, b1_ref, col_ref, lrelu=True)
    _im2col(h1, xp_ref, col_ref, 0, H=H, W=W)
    h2 = _conv_from_col(w2_ref, b2_ref, col_ref, lrelu=True)
    o_ref[...] = h2.astype(o_ref.dtype)


def _single_conv_kernel(x_ref, w_ref, b_ref, o_ref, xp_ref, col_ref,
                        *, H, W, lrelu):
    """One conv3x3 (midconv + LeakyReLU, or the final `last` conv)."""
    _im2col(x_ref[...], xp_ref, col_ref, 0, H=H, W=W)
    y = _conv_from_col(w_ref, b_ref, col_ref, lrelu=lrelu)
    o_ref[...] = y.astype(o_ref.dtype)


def _up_block_kernel(u_ref, br_ref, wu_ref, bu_ref, w1_ref, b1_ref,
                     w2_ref, b2_ref, o_ref, xp_ref, col_ref, *, H, W):
    """UNetUpBlock minus the bilinear resize: conv-after-upsample, channel
    concat with the bridge (done implicitly in the im2col slab), then the two
    conv_block convs.  All in one pallas_call."""
    cout = wu_ref.shape[0]
    # conv after nn.Upsample (no activation in the reference module)
    _im2col(u_ref[...], xp_ref, col_ref, 0, H=H, W=W)
    u = _conv_from_col(wu_ref, bu_ref, col_ref, lrelu=False)
    # torch.cat((up, bridge), 1) + conv1: one slab, up-part rows first and
    # bridge rows after; w1 is packed at init time to match this ordering.
    _im2col(u, xp_ref, col_ref, 0, H=H, W=W)
    _im2col(br_ref[...], xp_ref, col_ref, 9 * cout, H=H, W=W)
    h1 = _conv_from_col(w1_ref, b1_ref, col_ref, lrelu=True)
    # conv2
    _im2col(h1, xp_ref, col_ref, 0, H=H, W=W)
    h2 = _conv_from_col(w2_ref, b2_ref, col_ref, lrelu=True)
    o_ref[...] = h2.astype(o_ref.dtype)


# -----------------------------------------------------------------------------
# pallas_call wrappers.
# -----------------------------------------------------------------------------
_COMPILER_PARAMS = pltpu.CompilerParams(dimension_semantics=("parallel",))


def _act_spec(C, HW):
    # One batch element per grid step; batch dim squeezed out of the kernel.
    return pl.BlockSpec((None, C, HW), lambda n: (n, 0, 0))


def _full_spec(a, b):
    # Weight / bias blocks: full array, resident across the batch grid.
    return pl.BlockSpec((a, b), lambda n: (0, 0))


def down_block(x, p):
    N, Cin, H, W = x.shape
    Cout = p["w1"].shape[0]
    HW, L = H * W, H * W + 2 * (W + 1)
    cmax = max(Cin, Cout)
    out = pl.pallas_call(
        functools.partial(_down_block_kernel, H=H, W=W),
        out_shape=jax.ShapeDtypeStruct((N, Cout, HW), jnp.bfloat16),
        grid=(N,),
        in_specs=[
            _act_spec(Cin, HW),
            _full_spec(Cout, 9 * Cin), _full_spec(Cout, 1),
            _full_spec(Cout, 9 * Cout), _full_spec(Cout, 1),
        ],
        out_specs=_act_spec(Cout, HW),
        scratch_shapes=[
            pltpu.VMEM((cmax, L), jnp.bfloat16),         # padded-row scratch
            pltpu.VMEM((9 * cmax, HW), jnp.bfloat16),    # im2col slab
        ],
        compiler_params=_COMPILER_PARAMS,
    )(x.astype(jnp.bfloat16).reshape(N, Cin, HW),
      p["w1"], p["b1"], p["w2"], p["b2"])
    return out.reshape(N, Cout, H, W)


def single_conv(x, p, *, lrelu, out_dtype=jnp.bfloat16):
    N, Cin, H, W = x.shape
    Cout = p["w"].shape[0]
    HW, L = H * W, H * W + 2 * (W + 1)
    out = pl.pallas_call(
        functools.partial(_single_conv_kernel, H=H, W=W, lrelu=lrelu),
        out_shape=jax.ShapeDtypeStruct((N, Cout, HW), out_dtype),
        grid=(N,),
        in_specs=[_act_spec(Cin, HW),
                  _full_spec(Cout, 9 * Cin), _full_spec(Cout, 1)],
        out_specs=_act_spec(Cout, HW),
        scratch_shapes=[pltpu.VMEM((Cin, L), jnp.bfloat16),
                        pltpu.VMEM((9 * Cin, HW), jnp.bfloat16)],
        compiler_params=_COMPILER_PARAMS,
    )(x.astype(jnp.bfloat16).reshape(N, Cin, HW), p["w"], p["b"])
    return out.reshape(N, Cout, H, W)


def up_block(up_in, bridge, p):
    N, Cu, H, W = up_in.shape
    Cbr = bridge.shape[1]
    Cout = p["wu"].shape[0]
    HW, L = H * W, H * W + 2 * (W + 1)
    cmax = max(Cu, Cout, Cbr)
    kmax = 9 * max(Cu, Cout + Cbr)
    out = pl.pallas_call(
        functools.partial(_up_block_kernel, H=H, W=W),
        out_shape=jax.ShapeDtypeStruct((N, Cout, HW), jnp.bfloat16),
        grid=(N,),
        in_specs=[
            _act_spec(Cu, HW), _act_spec(Cbr, HW),
            _full_spec(Cout, 9 * Cu), _full_spec(Cout, 1),
            _full_spec(Cout, 9 * (Cout + Cbr)), _full_spec(Cout, 1),
            _full_spec(Cout, 9 * Cout), _full_spec(Cout, 1),
        ],
        out_specs=_act_spec(Cout, HW),
        scratch_shapes=[pltpu.VMEM((cmax, L), jnp.bfloat16),
                        pltpu.VMEM((kmax, HW), jnp.bfloat16)],
        compiler_params=_COMPILER_PARAMS,
    )(up_in.astype(jnp.bfloat16).reshape(N, Cu, HW),
      bridge.astype(jnp.bfloat16).reshape(N, Cbr, HW),
      p["wu"], p["bu"], p["w1"], p["b1"], p["w2"], p["b2"])
    return out.reshape(N, Cout, H, W)


# -----------------------------------------------------------------------------
# Glue ops (plain JAX, NCHW): avg_pool2d(2), bilinear x2 upsample with
# PyTorch align_corners=False semantics, center crop.
# -----------------------------------------------------------------------------
def avg_pool2(x):                                    # NCHW, kernel=stride=2
    N, C, H, W = x.shape
    return x.reshape(N, C, H // 2, 2, W // 2, 2).mean(axis=(3, 5))


def bilinear_up2(x):                                 # NCHW, scale_factor=2
    N, C, H, W = x.shape

    def idx_w(in_size):
        src = (jnp.arange(2 * in_size, dtype=jnp.float32) + 0.5) / 2.0 - 0.5
        src = jnp.maximum(src, 0.0)                  # PyTorch clamps low side
        i0 = jnp.minimum(jnp.floor(src).astype(jnp.int32), in_size - 1)
        i1 = jnp.minimum(i0 + 1, in_size - 1)
        w1 = src - i0.astype(jnp.float32)
        return i0, i1, 1.0 - w1, w1

    y0, y1, wy0, wy1 = idx_w(H)
    x0, x1, wx0, wx1 = idx_w(W)
    xf = x.astype(jnp.float32)
    rows = (xf[:, :, y0, :] * wy0[None, None, :, None]
            + xf[:, :, y1, :] * wy1[None, None, :, None])     # (N, C, 2H, W)
    out = (rows[:, :, :, x0] * wx0[None, None, None, :]
           + rows[:, :, :, x1] * wx1[None, None, None, :])    # (N, C, 2H, 2W)
    return out


def center_crop(layer, target_hw):                   # NCHW
    _, _, H, W = layer.shape
    dy = (H - target_hw[0]) // 2
    dx = (W - target_hw[1]) // 2
    return layer[:, :, dy:dy + target_hw[0], dx:dx + target_hw[1]]


# -----------------------------------------------------------------------------
# Deterministic synthetic parameters (PyTorch-layout weights, pre-packed into
# the (Cout, 9*Cin) bf16 layout the kernel consumes; bias as (Cout, 1) f32).
# -----------------------------------------------------------------------------
def _conv_params(key, cin, cout):
    kw, kb = jax.random.split(key)
    bound = 1.0 / np.sqrt(cin * 9)
    w = jax.random.uniform(kw, (cout, cin, 3, 3), jnp.float32, -bound, bound)
    b = jax.random.uniform(kb, (cout,), jnp.float32, -bound, bound)
    return w, b


def _pack_w(w):
    """(Cout, Cin, 3, 3) -> (Cout, 9*Cin) bf16, K index = (kh*3+kw)*Cin + c,
    matching the in-kernel im2col row order."""
    co, ci = w.shape[0], w.shape[1]
    return jnp.transpose(w, (0, 2, 3, 1)).reshape(co, 9 * ci).astype(jnp.bfloat16)


def _pack_w_cat(w, c_first):
    """Packing for a conv whose input is cat([a, b], channel=1): the im2col
    slab holds all 9 taps of `a` first, then all 9 taps of `b`."""
    return jnp.concatenate(
        [_pack_w(w[:, :c_first]), _pack_w(w[:, c_first:])], axis=1)


def _pack_b(b):
    return b.reshape(-1, 1).astype(jnp.float32)


def init_unet_params(key, in_channels, n_classes, depth, wf):
    keys = iter(jax.random.split(key, 4 * depth + 8))
    params = {"down": [], "up": []}
    prev = in_channels
    for i in range(depth):
        out = 2 ** (wf + i)
        w1, b1 = _conv_params(next(keys), prev, out)
        w2, b2 = _conv_params(next(keys), out, out)
        params["down"].append({"w1": _pack_w(w1), "b1": _pack_b(b1),
                               "w2": _pack_w(w2), "b2": _pack_b(b2)})
        prev = out
    wm, bm = _conv_params(next(keys), prev, prev)
    params["mid"] = {"w": _pack_w(wm), "b": _pack_b(bm)}
    for i in reversed(range(depth - 1)):
        out = 2 ** (wf + i)
        wu, bu = _conv_params(next(keys), prev, out)   # conv after upsample
        w1, b1 = _conv_params(next(keys), prev, out)   # conv_block conv1 (cat)
        w2, b2 = _conv_params(next(keys), out, out)    # conv_block conv2
        params["up"].append({"wu": _pack_w(wu), "bu": _pack_b(bu),
                             "w1": _pack_w_cat(w1, out), "b1": _pack_b(b1),
                             "w2": _pack_w(w2), "b2": _pack_b(b2)})
        prev = out
    wl, bl = _conv_params(next(keys), prev, n_classes)
    params["last"] = {"w": _pack_w(wl), "b": _pack_b(bl)}
    return params


# -----------------------------------------------------------------------------
# Forward pass (mirrors UNet.forward exactly).
# -----------------------------------------------------------------------------
def unet_forward(x_nchw, params, depth):
    x = x_nchw
    blocks = []
    for i in range(depth):
        x = down_block(x, params["down"][i])
        if i != depth - 1:
            blocks.append(x)
            x = avg_pool2(x)

    x = single_conv(x, params["mid"], lrelu=True)        # midconv + leaky_relu

    for i in range(depth - 1):
        up_in = bilinear_up2(x)
        bridge = center_crop(blocks[-i - 1], up_in.shape[2:4])
        x = up_block(up_in, bridge, params["up"][i])

    return single_conv(x, params["last"], lrelu=False, out_dtype=jnp.float32)


if __name__ == "__main__":
    # UNet(in_channels=4, n_classes=2, depth=3, wf=3, padding=True),
    # input x: (2, 4, 16, 16) NCHW.
    N, C, H, W = 2, 4, 16, 16
    depth, wf, n_classes = 3, 3, 2

    x = jax.random.normal(jax.random.PRNGKey(0), (N, C, H, W), jnp.float32)
    params = init_unet_params(jax.random.PRNGKey(1), C, n_classes, depth, wf)

    fwd = jax.jit(functools.partial(unet_forward, depth=depth))
    out = fwd(x, params)
    jax.block_until_ready(out)
    assert out.shape == (N, n_classes, H, W), out.shape
    assert jnp.all(jnp.isfinite(out))
    print("KERNEL_OK")
</pallas_src>

<mosaic_0001>
module attributes {stable_mosaic.version = 11 : i64} {
  func.func @_down_block_kernel(%arg0: i32, %arg1: memref<1x4x256xbf16, #tpu.memory_space<vmem>>, %arg2: memref<8x36xbf16, #tpu.memory_space<vmem>>, %arg3: memref<8x1xf32, #tpu.memory_space<vmem>>, %arg4: memref<8x72xbf16, #tpu.memory_space<vmem>>, %arg5: memref<8x1xf32, #tpu.memory_space<vmem>>, %arg6: memref<1x8x256xbf16, #tpu.memory_space<vmem>>, %arg7: memref<8x290xbf16, #tpu.memory_space<vmem>>, %arg8: memref<72x256xbf16, #tpu.memory_space<vmem>>) attributes {dimension_semantics = [#tpu.dimension_semantics<parallel>], iteration_bounds = array<i64: 2>, scalar_prefetch = 0 : i64, scratch_operands = 2 : i64, tpu.core_type = #tpu.core_type<tc>, window_params = [{transform_indices = @transform_0, window_bounds = array<i64: 1, 4, 256>}, {pipeline_mode = #tpu.pipeline_mode<synchronous>, transform_indices = @transform_1, window_bounds = array<i64: 8, 36>}, {pipeline_mode = #tpu.pipeline_mode<synchronous>, transform_indices = @transform_2, window_bounds = array<i64: 8, 1>}, {pipeline_mode = #tpu.pipeline_mode<synchronous>, transform_indices = @transform_3, window_bounds = array<i64: 8, 72>}, {pipeline_mode = #tpu.pipeline_mode<synchronous>, transform_indices = @transform_4, window_bounds = array<i64: 8, 1>}, {transform_indices = @transform_5, window_bounds = array<i64: 1, 8, 256>}]} {
    %c0 = arith.constant 0 : index
    %c0_0 = arith.constant 0 : index
    %c0_1 = arith.constant 0 : index
    %0 = vector.load %arg1[%c0, %c0_0, %c0_1] : memref<1x4x256xbf16, #tpu.memory_space<vmem>>, vector<1x4x256xbf16>
    %1 = vector.shape_cast %0 : vector<1x4x256xbf16> to vector<4x256xbf16>
    %cst = arith.constant 0.000000e+00 : bf16
    %2 = vector.broadcast %cst : bf16 to vector<4x290xbf16>
    %c0_2 = arith.constant 0 : index
    %c0_3 = arith.constant 0 : index
    %3 = vector.load %arg7[%c0_2, %c0_3] : memref<8x290xbf16, #tpu.memory_space<vmem>>, vector<4x290xbf16>
    tpu.vector_store %arg7[%c0_2, %c0_3], %2 {strides = array<i32>} : memref<8x290xbf16, #tpu.memory_space<vmem>>, vector<4x290xbf16>,
    %c0_4 = arith.constant 0 : index
    %c17 = arith.constant 17 : index
    %4 = vector.load %arg7[%c0_4, %c17] : memref<8x290xbf16, #tpu.memory_space<vmem>>, vector<4x256xbf16>
    tpu.vector_store %arg7[%c0_4, %c17], %1 {strides = array<i32>} : memref<8x290xbf16, #tpu.memory_space<vmem>>, vector<4x256xbf16>,
    %5 = tpu.iota {dimensions = array<i32: 1>} : vector<1x256xi32>
    %c16_i32 = arith.constant 16 : i32
    %c0_i32 = arith.constant 0 : i32
    %6 = arith.cmpi eq, %c16_i32, %c0_i32 : i32
    %c1_i32 = arith.constant 1 : i32
    %7 = arith.select %6, %c1_i32, %c16_i32 : i32
    %8 = vector.broadcast %7 : i32 to vector<1x256xi32>
    %9 = arith.remsi %5, %8 : vector<1x256xi32>
    %c0_i32_5 = arith.constant 0 : i32
    %10 = vector.broadcast %c0_i32_5 : i32 to vector<1x256xi32>
    %11 = arith.cmpi ne, %9, %10 : vector<1x256xi32>
    %c0_i32_6 = arith.constant 0 : i32
    %12 = vector.broadcast %c0_i32_6 : i32 to vector<1x256xi32>
    %13 = arith.cmpi slt, %9, %12 : vector<1x256xi32>
    %c0_i32_7 = arith.constant 0 : i32
    %14 = arith.cmpi slt, %7, %c0_i32_7 : i32
    %15 = vector.broadcast %14 : i1 to vector<1x256xi1>
    %16 = vector.broadcast %15 : vector<1x256xi1> to vector<1x256xi1>
    %17 = arith.xori %13, %16 : vector<1x256xi1>
    %18 = arith.andi %17, %11 : vector<1x256xi1>
    %19 = vector.broadcast %7 : i32 to vector<1x256xi32>
    %20 = arith.addi %9, %19 : vector<1x256xi32>
    %21 = arith.select %18, %20, %9 : vector<1x256xi1>, vector<1x256xi32>
    %c1_i32_8 = arith.constant 1 : i32
    %22 = vector.broadcast %c1_i32_8 : i32 to vector<1x256xi32>
    %23 = arith.cmpi sge, %21, %22 : vector<1x256xi32>
    %c15_i32 = arith.constant 15 : i32
    %24 = vector.broadcast %c15_i32 : i32 to vector<1x256xi32>
    %25 = arith.cmpi slt, %21, %24 : vector<1x256xi32>
    %c0_9 = arith.constant 0 : index
    %c0_10 = arith.constant 0 : index
    %26 = vector.load %arg7[%c0_9, %c0_10] : memref<8x290xbf16, #tpu.memory_space<vmem>>, vector<4x256xbf16>
    %cst_11 = arith.constant 0.000000e+00 : bf16
    %27 = vector.broadcast %cst_11 : bf16 to vector<4x256xbf16>
    %28 = vector.shape_cast %23 : vector<1x256xi1> to vector<1x256xi1>
    %29 = vector.broadcast %28 : vector<1x256xi1> to vector<4x256xi1>
    %30 = arith.select %29, %26, %27 : vector<4x256xi1>, vector<4x256xbf16>
    %c0_12 = arith.constant 0 : index
    %c0_13 = arith.constant 0 : index
    %31 = vector.load %arg8[%c0_12, %c0_13] : memref<72x256xbf16, #tpu.memory_space<vmem>>, vector<4x256xbf16>
    tpu.vector_store %arg8[%c0_12, %c0_13], %30 {strides = array<i32>} : memref<72x256xbf16, #tpu.memory_space<vmem>>, vector<4x256xbf16>,
    %c0_14 = arith.constant 0 : index
    %c1 = arith.constant 1 : index
    %32 = vector.load %arg7[%c0_14, %c1] : memref<8x290xbf16, #tpu.memory_space<vmem>>, vector<4x256xbf16>
    %c4 = arith.constant 4 : index
    %c0_15 = arith.constant 0 : index
    %33 = vector.load %arg8[%c4, %c0_15] : memref<72x256xbf16, #tpu.memory_space<vmem>>, vector<4x256xbf16>
    tpu.vector_store %arg8[%c4, %c0_15], %32 {strides = array<i32>} : memref<72x256xbf16, #tpu.memory_space<vmem>>, vector<4x256xbf16>,
    %c0_16 = arith.constant 0 : index
    %c2 = arith.constant 2 : index
    %34 = vector.load %arg7[%c0_16, %c2] : memref<8x290xbf16, #tpu.memory_space<vmem>>, vector<4x256xbf16>
    %cst_17 = arith.constant 0.000000e+00 : bf16
    %35 = vector.broadcast %cst_17 : bf16 to vector<4x256xbf16>
    %36 = vector.shape_cast %25 : vector<1x256xi1> to vector<1x256xi1>
    %37 = vector.broadcast %36 : vector<1x256xi1> to vector<4x256xi1>
    %38 = arith.select %37, %34, %35 : vector<4x256xi1>, vector<4x256xbf16>
    %c8 = arith.constant 8 : index
    %c0_18 = arith.constant 0 : index
    %39 = vector.load %arg8[%c8, %c0_18] : memref<72x256xbf16, #tpu.memory_space<vmem>>, vector<4x256xbf16>
    tpu.vector_store %arg8[%c8, %c0_18], %38 {strides = array<i32>} : memref<72x256xbf16, #tpu.memory_space<vmem>>, vector<4x256xbf16>,
    %c0_19 = arith.constant 0 : index
    %c16 = arith.constant 16 : index
    %40 = vector.load %arg7[%c0_19, %c16] : memref<8x290xbf16, #tpu.memory_space<vmem>>, vector<4x256xbf16>
    %cst_20 = arith.constant 0.000000e+00 : bf16
    %41 = vector.broadcast %cst_20 : bf16 to vector<4x256xbf16>
    %42 = vector.shape_cast %23 : vector<1x256xi1> to vector<1x256xi1>
    %43 = vector.broadcast %42 : vector<1x256xi1> to vector<4x256xi1>
    %44 = arith.select %43, %40, %41 : vector<4x256xi1>, vector<4x256xbf16>
    %c12 = arith.constant 12 : index
    %c0_21 = arith.constant 0 : index
    %45 = vector.load %arg8[%c12, %c0_21] : memref<72x256xbf16, #tpu.memory_space<vmem>>, vector<4x256xbf16>
    tpu.vector_store %arg8[%c12, %c0_21], %44 {strides = array<i32>} : memref<72x256xbf16, #tpu.memory_space<vmem>>, vector<4x256xbf16>,
    %c0_22 = arith.constant 0 : index
    %c17_23 = arith.constant 17 : index
    %46 = vector.load %arg7[%c0_22, %c17_23] : memref<8x290xbf16, #tpu.memory_space<vmem>>, vector<4x256xbf16>
    %c16_24 = arith.constant 16 : index
    %c0_25 = arith.constant 0 : index
    %47 = vector.load %arg8[%c16_24, %c0_25] : memref<72x256xbf16, #tpu.memory_space<vmem>>, vector<4x256xbf16>
    tpu.vector_store %arg8[%c16_24, %c0_25], %46 {strides = array<i32>} : memref<72x256xbf16, #tpu.memory_space<vmem>>, vector<4x256xbf16>,
    %c0_26 = arith.constant 0 : index
    %c18 = arith.constant 18 : index
    %48 = vector.load %arg7[%c0_26, %c18] : memref<8x290xbf16, #tpu.memory_space<vmem>>, vector<4x256xbf16>
    %cst_27 = arith.constant 0.000000e+00 : bf16
    %49 = vector.broadcast %cst_27 : bf16 to vector<4x256xbf16>
    %50 = vector.shape_cast %25 : vector<1x256xi1> to vector<1x256xi1>
    %51 = vector.broadcast %50 : vector<1x256xi1> to vector<4x256xi1>
    %52 = arith.select %51, %48, %49 : vector<4x256xi1>, vector<4x256xbf16>
    %c20 = arith.constant 20 : index
    %c0_28 = arith.constant 0 : index
    %53 = vector.load %arg8[%c20, %c0_28] : memref<72x256xbf16, #tpu.memory_space<vmem>>, vector<4x256xbf16>
    tpu.vector_store %arg8[%c20, %c0_28], %52 {strides = array<i32>} : memref<72x256xbf16, #tpu.memory_space<vmem>>, vector<4x256xbf16>,
    %c0_29 = arith.constant 0 : index
    %c32 = arith.constant 32 : index
    %54 = vector.load %arg7[%c0_29, %c32] : memref<8x290xbf16, #tpu.memory_space<vmem>>, vector<4x256xbf16>
    %cst_30 = arith.constant 0.000000e+00 : bf16
    %55 = vector.broadcast %cst_30 : bf16 to vector<4x256xbf16>
    %56 = vector.shape_cast %23 : vector<1x256xi1> to vector<1x256xi1>
    %57 = vector.broadcast %56 : vector<1x256xi1> to vector<4x256xi1>
    %58 = arith.select %57, %54, %55 : vector<4x256xi1>, vector<4x256xbf16>
    %c24 = arith.constant 24 : index
    %c0_31 = arith.constant 0 : index
    %59 = vector.load %arg8[%c24, %c0_31] : memref<72x256xbf16, #tpu.memory_space<vmem>>, vector<4x256xbf16>
    tpu.vector_store %arg8[%c24, %c0_31], %58 {strides = array<i32>} : memref<72x256xbf16, #tpu.memory_space<vmem>>, vector<4x256xbf16>,
    %c0_32 = arith.constant 0 : index
    %c33 = arith.constant 33 : index
    %60 = vector.load %arg7[%c0_32, %c33] : memref<8x290xbf16, #tpu.memory_space<vmem>>, vector<4x256xbf16>
    %c28 = arith.constant 28 : index
    %c0_33 = arith.constant 0 : index
    %61 = vector.load %arg8[%c28, %c0_33] : memref<72x256xbf16, #tpu.memory_space<vmem>>, vector<4x256xbf16>
    tpu.vector_store %arg8[%c28, %c0_33], %60 {strides = array<i32>} : memref<72x256xbf16, #tpu.memory_space<vmem>>, vector<4x256xbf16>,
    %c0_34 = arith.constant 0 : index
    %c34 = arith.constant 34 : index
    %62 = vector.load %arg7[%c0_34, %c34] : memref<8x290xbf16, #tpu.memory_space<vmem>>, vector<4x256xbf16>
    %cst_35 = arith.constant 0.000000e+00 : bf16
    %63 = vector.broadcast %cst_35 : bf16 to vector<4x256xbf16>
    %64 = vector.shape_cast %25 : vector<1x256xi1> to vector<1x256xi1>
    %65 = vector.broadcast %64 : vector<1x256xi1> to vector<4x256xi1>
    %66 = arith.select %65, %62, %63 : vector<4x256xi1>, vector<4x256xbf16>
    %c32_36 = arith.constant 32 : index
    %c0_37 = arith.constant 0 : index
    %67 = vector.load %arg8[%c32_36, %c0_37] : memref<72x256xbf16, #tpu.memory_space<vmem>>, vector<4x256xbf16>
    tpu.vector_store %arg8[%c32_36, %c0_37], %66 {strides = array<i32>} : memref<72x256xbf16, #tpu.memory_space<vmem>>, vector<4x256xbf16>,
    %c0_38 = arith.constant 0 : index
    %c0_39 = arith.constant 0 : index
    %68 = vector.load %arg2[%c0_38, %c0_39] : memref<8x36xbf16, #tpu.memory_space<vmem>>, vector<8x36xbf16>
    %c0_40 = arith.constant 0 : index
    %c0_41 = arith.constant 0 : index
    %69 = vector.load %arg8[%c0_40, %c0_41] : memref<72x256xbf16, #tpu.memory_space<vmem>>, vector<36x256xbf16>
    %cst_42 = arith.constant dense<0.000000e+00> : vector<8x256xf32>
    %70 = tpu.matmul %68, %69, %cst_42 {dimension_numbers = #tpu.dot_dimension_numbers<[1], [0], [0], [1], [0, 0, 1, 1], [], []>} : vector<8x36xbf16>, vector<36x256xbf16>, vector<8x256xf32> -> vector<8x256xf32>
    %c0_43 = arith.constant 0 : index
    %c0_44 = arith.constant 0 : index
    %71 = vector.load %arg3[%c0_43, %c0_44] : memref<8x1xf32, #tpu.memory_space<vmem>>, vector<8x1xf32>
    %72 = vector.broadcast %71 : vector<8x1xf32> to vector<8x256xf32>
    %73 = arith.addf %70, %72 : vector<8x256xf32>
    %cst_45 = arith.constant 0.000000e+00 : f32
    %74 = vector.broadcast %cst_45 : f32 to vector<8x256xf32>
    %75 = arith.cmpf oge, %73, %74 : vector<8x256xf32>
    %cst_46 = arith.constant 1.000000e-01 : f32
    %76 = vector.broadcast %cst_46 : f32 to vector<8x256xf32>
    %77 = arith.mulf %76, %73 : vector<8x256xf32>
    %78 = arith.select %75, %73, %77 : vector<8x256xi1>, vector<8x256xf32>
    %cst_47 = arith.constant 0.000000e+00 : bf16
    %79 = vector.broadcast %cst_47 : bf16 to vector<8x290xbf16>
    %c0_48 = arith.constant 0 : index
    %c0_49 = arith.constant 0 : index
    %80 = vector.load %arg7[%c0_48, %c0_49] : memref<8x290xbf16, #tpu.memory_space<vmem>>, vector<8x290xbf16>
    tpu.vector_store %arg7[%c0_48, %c0_49], %79 {strides = array<i32>} : memref<8x290xbf16, #tpu.memory_space<vmem>>, vector<8x290xbf16>,
    %81 = arith.truncf %78 : vector<8x256xf32> to vector<8x256xbf16>
    %c0_50 = arith.constant 0 : index
    %c17_51 = arith.constant 17 : index
    %82 = vector.load %arg7[%c0_50, %c17_51] : memref<8x290xbf16, #tpu.memory_space<vmem>>, vector<8x256xbf16>
    tpu.vector_store %arg7[%c0_50, %c17_51], %81 {strides = array<i32>} : memref<8x290xbf16, #tpu.memory_space<vmem>>, vector<8x256xbf16>,
    %83 = tpu.iota {dimensions = array<i32: 1>} : vector<1x256xi32>
    %c16_i32_52 = arith.constant 16 : i32
    %c0_i32_53 = arith.constant 0 : i32
    %84 = arith.cmpi eq, %c16_i32_52, %c0_i32_53 : i32
    %c1_i32_54 = arith.constant 1 : i32
    %85 = arith.select %84, %c1_i32_54, %c16_i32_52 : i32
    %86 = vector.broadcast %85 : i32 to vector<1x256xi32>
    %87 = arith.remsi %83, %86 : vector<1x256xi32>
    %c0_i32_55 = arith.constant 0 : i32
    %88 = vector.broadcast %c0_i32_55 : i32 to vector<1x256xi32>
    %89 = arith.cmpi ne, %87, %88 : vector<1x256xi32>
    %c0_i32_56 = arith.constant 0 : i32
    %90 = vector.broadcast %c0_i32_56 : i32 to vector<1x256xi32>
    %91 = arith.cmpi slt, %87, %90 : vector<1x256xi32>
    %c0_i32_57 = arith.constant 0 : i32
    %92 = arith.cmpi slt, %85, %c0_i32_57 : i32
    %93 = vector.broadcast %92 : i1 to vector<1x256xi1>
    %94 = vector.broadcast %93 : vector<1x256xi1> to vector<1x256xi1>
    %95 = arith.xori %91, %94 : vector<1x256xi1>
    %96 = arith.andi %95, %89 : vector<1x256xi1>
    %97 = vector.broadcast %85 : i32 to vector<1x256xi32>
    %98 = arith.addi %87, %97 : vector<1x256xi32>
    %99 = arith.select %96, %98, %87 : vector<1x256xi1>, vector<1x256xi32>
    %c1_i32_58 = arith.constant 1 : i32
    %100 = vector.broadcast %c1_i32_58 : i32 to vector<1x256xi32>
    %101 = arith.cmpi sge, %99, %100 : vector<1x256xi32>
    %c15_i32_59 = arith.constant 15 : i32
    %102 = vector.broadcast %c15_i32_59 : i32 to vector<1x256xi32>
    %103 = arith.cmpi slt, %99, %102 : vector<1x256xi32>
    %c0_60 = arith.constant 0 : index
    %c0_61 = arith.constant 0 : index
    %104 = vector.load %arg7[%c0_60, %c0_61] : memref<8x290xbf16, #tpu.memory_space<vmem>>, vector<8x256xbf16>
    %cst_62 = arith.constant 0.000000e+00 : bf16
    %105 = vector.broadcast %cst_62 : bf16 to vector<8x256xbf16>
    %106 = vector.shape_cast %101 : vector<1x256xi1> to vector<1x256xi1>
    %107 = vector.broadcast %106 : vector<1x256xi1> to vector<8x256xi1>
    %108 = arith.select %107, %104, %105 : vector<8x256xi1>, vector<8x256xbf16>
    %c0_63 = arith.constant 0 : index
    %c0_64 = arith.constant 0 : index
    %109 = vector.load %arg8[%c0_63, %c0_64] : memref<72x256xbf16, #tpu.memory_space<vmem>>, vector<8x256xbf16>
    tpu.vector_store %arg8[%c0_63, %c0_64], %108 {strides = array<i32>} : memref<72x256xbf16, #tpu.memory_space<vmem>>, vector<8x256xbf16>,
    %c0_65 = arith.constant 0 : index
    %c1_66 = arith.constant 1 : index
    %110 = vector.load %arg7[%c0_65, %c1_66] : memref<8x290xbf16, #tpu.memory_space<vmem>>, vector<8x256xbf16>
    %c8_67 = arith.constant 8 : index
    %c0_68 = arith.constant 0 : index
    %111 = vector.load %arg8[%c8_67, %c0_68] : memref<72x256xbf16, #tpu.memory_space<vmem>>, vector<8x256xbf16>
    tpu.vector_store %arg8[%c8_67, %c0_68], %110 {strides = array<i32>} : memref<72x256xbf16, #tpu.memory_space<vmem>>, vector<8x256xbf16>,
    %c0_69 = arith.constant 0 : index
    %c2_70 = arith.constant 2 : index
    %112 = vector.load %arg7[%c0_69, %c2_70] : memref<8x290xbf16, #tpu.memory_space<vmem>>, vector<8x256xbf16>
    %cst_71 = arith.constant 0.000000e+00 : bf16
    %113 = vector.broadcast %cst_71 : bf16 to vector<8x256xbf16>
    %114 = vector.shape_cast %103 : vector<1x256xi1> to vector<1x256xi1>
    %115 = vector.broadcast %114 : vector<1x256xi1> to vector<8x256xi1>
    %116 = arith.select %115, %112, %113 : vector<8x256xi1>, vector<8x256xbf16>
    %c16_72 = arith.constant 16 : index
    %c0_73 = arith.constant 0 : index
    %117 = vector.load %arg8[%c16_72, %c0_73] : memref<72x256xbf16, #tpu.memory_space<vmem>>, vector<8x256xbf16>
    tpu.vector_store %arg8[%c16_72, %c0_73], %116 {strides = array<i32>} : memref<72x256xbf16, #tpu.memory_space<vmem>>, vector<8x256xbf16>,
    %c0_74 = arith.constant 0 : index
    %c16_75 = arith.constant 16 : index
    %118 = vector.load %arg7[%c0_74, %c16_75] : memref<8x290xbf16, #tpu.memory_space<vmem>>, vector<8x256xbf16>
    %cst_76 = arith.constant 0.000000e+00 : bf16
    %119 = vector.broadcast %cst_76 : bf16 to vector<8x256xbf16>
    %120 = vector.shape_cast %101 : vector<1x256xi1> to vector<1x256xi1>
    %121 = vector.broadcast %120 : vector<1x256xi1> to vector<8x256xi1>
    %122 = arith.select %121, %118, %119 : vector<8x256xi1>, vector<8x256xbf16>
    %c24_77 = arith.constant 24 : index
    %c0_78 = arith.constant 0 : index
    %123 = vector.load %arg8[%c24_77, %c0_78] : memref<72x256xbf16, #tpu.memory_space<vmem>>, vector<8x256xbf16>
    tpu.vector_store %arg8[%c24_77, %c0_78], %122 {strides = array<i32>} : memref<72x256xbf16, #tpu.memory_space<vmem>>, vector<8x256xbf16>,
    %c0_79 = arith.constant 0 : index
    %c17_80 = arith.constant 17 : index
    %124 = vector.load %arg7[%c0_79, %c17_80] : memref<8x290xbf16, #tpu.memory_space<vmem>>, vector<8x256xbf16>
    %c32_81 = arith.constant 32 : index
    %c0_82 = arith.constant 0 : index
    %125 = vector.load %arg8[%c32_81, %c0_82] : memref<72x256xbf16, #tpu.memory_space<vmem>>, vector<8x256xbf16>
    tpu.vector_store %arg8[%c32_81, %c0_82], %124 {strides = array<i32>} : memref<72x256xbf16, #tpu.memory_space<vmem>>, vector<8x256xbf16>,
    %c0_83 = arith.constant 0 : index
    %c18_84 = arith.constant 18 : index
    %126 = vector.load %arg7[%c0_83, %c18_84] : memref<8x290xbf16, #tpu.memory_space<vmem>>, vector<8x256xbf16>
    %cst_85 = arith.constant 0.000000e+00 : bf16
    %127 = vector.broadcast %cst_85 : bf16 to vector<8x256xbf16>
    %128 = vector.shape_cast %103 : vector<1x256xi1> to vector<1x256xi1>
    %129 = vector.broadcast %128 : vector<1x256xi1> to vector<8x256xi1>
    %130 = arith.select %129, %126, %127 : vector<8x256xi1>, vector<8x256xbf16>
    %c40 = arith.constant 40 : index
    %c0_86 = arith.constant 0 : index
    %131 = vector.load %arg8[%c40, %c0_86] : memref<72x256xbf16, #tpu.memory_space<vmem>>, vector<8x256xbf16>
    tpu.vector_store %arg8[%c40, %c0_86], %130 {strides = array<i32>} : memref<72x256xbf16, #tpu.memory_space<vmem>>, vector<8x256xbf16>,
    %c0_87 = arith.constant 0 : index
    %c32_88 = arith.constant 32 : index
    %132 = vector.load %arg7[%c0_87, %c32_88] : memref<8x290xbf16, #tpu.memory_space<vmem>>, vector<8x256xbf16>
    %cst_89 = arith.constant 0.000000e+00 : bf16
    %133 = vector.broadcast %cst_89 : bf16 to vector<8x256xbf16>
    %134 = vector.shape_cast %101 : vector<1x256xi1> to vector<1x256xi1>
    %135 = vector.broadcast %134 : vector<1x256xi1> to vector<8x256xi1>
    %136 = arith.select %135, %132, %133 : vector<8x256xi1>, vector<8x256xbf16>
    %c48 = arith.constant 48 : index
    %c0_90 = arith.constant 0 : index
    %137 = vector.load %arg8[%c48, %c0_90] : memref<72x256xbf16, #tpu.memory_space<vmem>>, vector<8x256xbf16>
    tpu.vector_store %arg8[%c48, %c0_90], %136 {strides = array<i32>} : memref<72x256xbf16, #tpu.memory_space<vmem>>, vector<8x256xbf16>,
    %c0_91 = arith.constant 0 : index
    %c33_92 = arith.constant 33 : index
    %138 = vector.load %arg7[%c0_91, %c33_92] : memref<8x290xbf16, #tpu.memory_space<vmem>>, vector<8x256xbf16>
    %c56 = arith.constant 56 : index
    %c0_93 = arith.constant 0 : index
    %139 = vector.load %arg8[%c56, %c0_93] : memref<72x256xbf16, #tpu.memory_space<vmem>>, vector<8x256xbf16>
    tpu.vector_store %arg8[%c56, %c0_93], %138 {strides = array<i32>} : memref<72x256xbf16, #tpu.memory_space<vmem>>, vector<8x256xbf16>,
    %c0_94 = arith.constant 0 : index
    %c34_95 = arith.constant 34 : index
    %140 = vector.load %arg7[%c0_94, %c34_95] : memref<8x290xbf16, #tpu.memory_space<vmem>>, vector<8x256xbf16>
    %cst_96 = arith.constant 0.000000e+00 : bf16
    %141 = vector.broadcast %cst_96 : bf16 to vector<8x256xbf16>
    %142 = vector.shape_cast %103 : vector<1x256xi1> to vector<1x256xi1>
    %143 = vector.broadcast %142 : vector<1x256xi1> to vector<8x256xi1>
    %144 = arith.select %143, %140, %141 : vector<8x256xi1>, vector<8x256xbf16>
    %c64 = arith.constant 64 : index
    %c0_97 = arith.constant 0 : index
    %145 = vector.load %arg8[%c64, %c0_97] : memref<72x256xbf16, #tpu.memory_space<vmem>>, vector<8x256xbf16>
    tpu.vector_store %arg8[%c64, %c0_97], %144 {strides = array<i32>} : memref<72x256xbf16, #tpu.memory_space<vmem>>, vector<8x256xbf16>,
    %c0_98 = arith.constant 0 : index
    %c0_99 = arith.constant 0 : index
    %146 = vector.load %arg4[%c0_98, %c0_99] : memref<8x72xbf16, #tpu.memory_space<vmem>>, vector<8x72xbf16>
    %c0_100 = arith.constant 0 : index
    %c0_101 = arith.constant 0 : index
    %147 = vector.load %arg8[%c0_100, %c0_101] : memref<72x256xbf16, #tpu.memory_space<vmem>>, vector<72x256xbf16>
    %cst_102 = arith.constant dense<0.000000e+00> : vector<8x256xf32>
    %148 = tpu.matmul %146, %147, %cst_102 {dimension_numbers = #tpu.dot_dimension_numbers<[1], [0], [0], [1], [0, 0, 1, 1], [], []>} : vector<8x72xbf16>, vector<72x256xbf16>, vector<8x256xf32> -> vector<8x256xf32>
    %c0_103 = arith.constant 0 : index
    %c0_104 = arith.constant 0 : index
    %149 = vector.load %arg5[%c0_103, %c0_104] : memref<8x1xf32, #tpu.memory_space<vmem>>, vector<8x1xf32>
    %150 = vector.broadcast %149 : vector<8x1xf32> to vector<8x256xf32>
    %151 = arith.addf %148, %150 : vector<8x256xf32>
    %cst_105 = arith.constant 0.000000e+00 : f32
    %152 = vector.broadcast %cst_105 : f32 to vector<8x256xf32>
    %153 = arith.cmpf oge, %151, %152 : vector<8x256xf32>
    %cst_106 = arith.constant 1.000000e-01 : f32
    %154 = vector.broadcast %cst_106 : f32 to vector<8x256xf32>
    %155 = arith.mulf %154, %151 : vector<8x256xf32>
    %156 = arith.select %153, %151, %155 : vector<8x256xi1>, vector<8x256xf32>
    %157 = arith.truncf %156 : vector<8x256xf32> to vector<8x256xbf16>
    %c0_107 = arith.constant 0 : index
    %c0_108 = arith.constant 0 : index
    %c0_109 = arith.constant 0 : index
    %158 = vector.load %arg6[%c0_107, %c0_108, %c0_109] : memref<1x8x256xbf16, #tpu.memory_space<vmem>>, vector<1x8x256xbf16>
    %159 = vector.shape_cast %158 : vector<1x8x256xbf16> to vector<8x256xbf16>
    %160 = vector.shape_cast %157 : vector<8x256xbf16> to vector<1x8x256xbf16>
    tpu.vector_store %arg6[%c0_107, %c0_108, %c0_109], %160 {strides = array<i32>} : memref<1x8x256xbf16, #tpu.memory_space<vmem>>, vector<1x8x256xbf16>,
    return
  }
  func.func @transform_0(%arg0: i32) -> (i32, i32, i32) {
    %c0_i32 = arith.constant 0 : i32
    %c0_i32_0 = arith.constant 0 : i32
    %c0_i32_1 = arith.constant 0 : i32
    return %arg0, %c0_i32, %c0_i32_0 : i32, i32, i32
  }
  func.func @transform_1(%arg0: i32) -> (i32, i32) {
    %c0_i32 = arith.constant 0 : i32
    %c0_i32_0 = arith.constant 0 : i32
    %c0_i32_1 = arith.constant 0 : i32
    return %c0_i32, %c0_i32_0 : i32, i32
  }
  func.func @transform_2(%arg0: i32) -> (i32, i32) {
    %c0_i32 = arith.constant 0 : i32
    %c0_i32_0 = arith.constant 0 : i32
    %c0_i32_1 = arith.constant 0 : i32
    return %c0_i32, %c0_i32_0 : i32, i32
  }
  func.func @transform_3(%arg0: i32) -> (i32, i32) {
    %c0_i32 = arith.constant 0 : i32
    %c0_i32_0 = arith.constant 0 : i32
    %c0_i32_1 = arith.constant 0 : i32
    return %c0_i32, %c0_i32_0 : i32, i32
  }
  func.func @transform_4(%arg0: i32) -> (i32, i32) {
    %c0_i32 = arith.constant 0 : i32
    %c0_i32_0 = arith.constant 0 : i32
    %c0_i32_1 = arith.constant 0 : i32
    return %c0_i32, %c0_i32_0 : i32, i32
  }
  func.func @transform_5(%arg0: i32) -> (i32, i32, i32) {
    %c0_i32 = arith.constant 0 : i32
    %c0_i32_0 = arith.constant 0 : i32
    %c0_i32_1 = arith.constant 0 : i32
    return %arg0, %c0_i32, %c0_i32_0 : i32, i32, i32
  }
}

module attributes {stable_mosaic.version = 11 : i64} {
  func.func @_down_block_kernel(%arg0: i32, %arg1: memref<1x8x64xbf16, #tpu.memory_space<vmem>>, %arg2: memref<16x72xbf16, #tpu.memory_space<vmem>>, %arg3: memref<16x1xf32, #tpu.memory_space<vmem>>, %arg4: memref<16x144xbf16, #tpu.memory_space<vmem>>, %arg5: memref<16x1xf32, #tpu.memory_space<vmem>>, %arg6: memref<1x16x64xbf16, #tpu.memory_space<vmem>>, %arg7: memref<16x82xbf16, #tpu.memory_space<vmem>>, %arg8: memref<144x64xbf16, #tpu.memory_space<vmem>>) attributes {dimension_semantics = [#tpu.dimension_semantics<parallel>], iteration_bounds = array<i64: 2>, scalar_prefetch = 0 : i64, scratch_operands = 2 : i64, tpu.core_type = #tpu.core_type<tc>, window_params = [{transform_indices = @transform_0, window_bounds = array<i64: 1, 8, 64>}, {pipeline_mode = #tpu.pipeline_mode<synchronous>, transform_indices = @transform_1, window_bounds = array<i64: 16, 72>}, {pipeline_mode = #tpu.pipeline_mode<synchronous>, transform_indices = @transform_2, window_bounds = array<i64: 16, 1>}, {pipeline_mode = #tpu.pipeline_mode<synchronous>, transform_indices = @transform_3, window_bounds = array<i64: 16, 144>}, {pipeline_mode = #tpu.pipeline_mode<synchronous>, transform_indices = @transform_4, window_bounds = array<i64: 16, 1>}, {transform_indices = @transform_5, window_bounds = array<i64: 1, 16, 64>}]} {
    %c0 = arith.constant 0 : index
    %c0_0 = arith.constant 0 : index
    %c0_1 = arith.constant 0 : index
    %0 = vector.load %arg1[%c0, %c0_0, %c0_1] : memref<1x8x64xbf16, #tpu.memory_space<vmem>>, vector<1x8x64xbf16>
    %1 = vector.shape_cast %0 : vector<1x8x64xbf16> to vector<8x64xbf16>
    %cst = arith.constant 0.000000e+00 : bf16
    %2 = vector.broadcast %cst : bf16 to vector<8x82xbf16>
    %c0_2 = arith.constant 0 : index
    %c0_3 = arith.constant 0 : index
    %3 = vector.load %arg7[%c0_2, %c0_3] : memref<16x82xbf16, #tpu.memory_space<vmem>>, vector<8x82xbf16>
    tpu.vector_store %arg7[%c0_2, %c0_3], %2 {strides = array<i32>} : memref<16x82xbf16, #tpu.memory_space<vmem>>, vector<8x82xbf16>,
    %c0_4 = arith.constant 0 : index
    %c9 = arith.constant 9 : index
    %4 = vector.load %arg7[%c0_4, %c9] : memref<16x82xbf16, #tpu.memory_space<vmem>>, vector<8x64xbf16>
    tpu.vector_store %arg7[%c0_4, %c9], %1 {strides = array<i32>} : memref<16x82xbf16, #tpu.memory_space<vmem>>, vector<8x64xbf16>,
    %5 = tpu.iota {dimensions = array<i32: 1>} : vector<1x64xi32>
    %c8_i32 = arith.constant 8 : i32
    %c0_i32 = arith.constant 0 : i32
    %6 = arith.cmpi eq, %c8_i32, %c0_i32 : i32
    %c1_i32 = arith.constant 1 : i32
    %7 = arith.select %6, %c1_i32, %c8_i32 : i32
    %8 = vector.broadcast %7 : i32 to vector<1x64xi32>
    %9 = arith.remsi %5, %8 : vector<1x64xi32>
    %c0_i32_5 = arith.constant 0 : i32
    %10 = vector.broadcast %c0_i32_5 : i32 to vector<1x64xi32>
    %11 = arith.cmpi ne, %9, %10 : vector<1x64xi32>
    %c0_i32_6 = arith.constant 0 : i32
    %12 = vector.broadcast %c0_i32_6 : i32 to vector<1x64xi32>
    %13 = arith.cmpi slt, %9, %12 : vector<1x64xi32>
    %c0_i32_7 = arith.constant 0 : i32
    %14 = arith.cmpi slt, %7, %c0_i32_7 : i32
    %15 = vector.broadcast %14 : i1 to vector<1x64xi1>
    %16 = vector.broadcast %15 : vector<1x64xi1> to vector<1x64xi1>
    %17 = arith.xori %13, %16 : vector<1x64xi1>
    %18 = arith.andi %17, %11 : vector<1x64xi1>
    %19 = vector.broadcast %7 : i32 to vector<1x64xi32>
    %20 = arith.addi %9, %19 : vector<1x64xi32>
    %21 = arith.select %18, %20, %9 : vector<1x64xi1>, vector<1x64xi32>
    %c1_i32_8 = arith.constant 1 : i32
    %22 = vector.broadcast %c1_i32_8 : i32 to vector<1x64xi32>
    %23 = arith.cmpi sge, %21, %22 : vector<1x64xi32>
    %c7_i32 = arith.constant 7 : i32
    %24 = vector.broadcast %c7_i32 : i32 to vector<1x64xi32>
    %25 = arith.cmpi slt, %21, %24 : vector<1x64xi32>
    %c0_9 = arith.constant 0 : index
    %c0_10 = arith.constant 0 : index
    %26 = vector.load %arg7[%c0_9, %c0_10] : memref<16x82xbf16, #tpu.memory_space<vmem>>, vector<8x64xbf16>
    %cst_11 = arith.constant 0.000000e+00 : bf16
    %27 = vector.broadcast %cst_11 : bf16 to vector<8x64xbf16>
    %28 = vector.shape_cast %23 : vector<1x64xi1> to vector<1x64xi1>
    %29 = vector.broadcast %28 : vector<1x64xi1> to vector<8x64xi1>
    %30 = arith.select %29, %26, %27 : vector<8x64xi1>, vector<8x64xbf16>
    %c0_12 = arith.constant 0 : index
    %c0_13 = arith.constant 0 : index
    %31 = vector.load %arg8[%c0_12, %c0_13] : memref<144x64xbf16, #tpu.memory_space<vmem>>, vector<8x64xbf16>
    tpu.vector_store %arg8[%c0_12, %c0_13], %30 {strides = array<i32>} : memref<144x64xbf16, #tpu.memory_space<vmem>>, vector<8x64xbf16>,
    %c0_14 = arith.constant 0 : index
    %c1 = arith.constant 1 : index
    %32 = vector.load %arg7[%c0_14, %c1] : memref<16x82xbf16, #tpu.memory_space<vmem>>, vector<8x64xbf16>
    %c8 = arith.constant 8 : index
    %c0_15 = arith.constant 0 : index
    %33 = vector.load %arg8[%c8, %c0_15] : memref<144x64xbf16, #tpu.memory_space<vmem>>, vector<8x64xbf16>
    tpu.vector_store %arg8[%c8, %c0_15], %32 {strides = array<i32>} : memref<144x64xbf16, #tpu.memory_space<vmem>>, vector<8x64xbf16>,
    %c0_16 = arith.constant 0 : index
    %c2 = arith.constant 2 : index
    %34 = vector.load %arg7[%c0_16, %c2] : memref<16x82xbf16, #tpu.memory_space<vmem>>, vector<8x64xbf16>
    %cst_17 = arith.constant 0.000000e+00 : bf16
    %35 = vector.broadcast %cst_17 : bf16 to vector<8x64xbf16>
    %36 = vector.shape_cast %25 : vector<1x64xi1> to vector<1x64xi1>
    %37 = vector.broadcast %36 : vector<1x64xi1> to vector<8x64xi1>
    %38 = arith.select %37, %34, %35 : vector<8x64xi1>, vector<8x64xbf16>
    %c16 = arith.constant 16 : index
    %c0_18 = arith.constant 0 : index
    %39 = vector.load %arg8[%c16, %c0_18] : memref<144x64xbf16, #tpu.memory_space<vmem>>, vector<8x64xbf16>
    tpu.vector_store %arg8[%c16, %c0_18], %38 {strides = array<i32>} : memref<144x64xbf16, #tpu.memory_space<vmem>>, vector<8x64xbf16>,
    %c0_19 = arith.constant 0 : index
    %c8_20 = arith.constant 8 : index
    %40 = vector.load %arg7[%c0_19, %c8_20] : memref<16x82xbf16, #tpu.memory_space<vmem>>, vector<8x64xbf16>
    %cst_21 = arith.constant 0.000000e+00 : bf16
    %41 = vector.broadcast %cst_21 : bf16 to vector<8x64xbf16>
    %42 = vector.shape_cast %23 : vector<1x64xi1> to vector<1x64xi1>
    %43 = vector.broadcast %42 : vector<1x64xi1> to vector<8x64xi1>
    %44 = arith.select %43, %40, %41 : vector<8x64xi1>, vector<8x64xbf16>
    %c24 = arith.constant 24 : index
    %c0_22 = arith.constant 0 : index
    %45 = vector.load %arg8[%c24, %c0_22] : memref<144x64xbf16, #tpu.memory_space<vmem>>, vector<8x64xbf16>
    tpu.vector_store %arg8[%c24, %c0_22], %44 {strides = array<i32>} : memref<144x64xbf16, #tpu.memory_space<vmem>>, vector<8x64xbf16>,
    %c0_23 = arith.constant 0 : index
    %c9_24 = arith.constant 9 : index
    %46 = vector.load %arg7[%c0_23, %c9_24] : memref<16x82xbf16, #tpu.memory_space<vmem>>, vector<8x64xbf16>
    %c32 = arith.constant 32 : index
    %c0_25 = arith.constant 0 : index
    %47 = vector.load %arg8[%c32, %c0_25] : memref<144x64xbf16, #tpu.memory_space<vmem>>, vector<8x64xbf16>
    tpu.vector_store %arg8[%c32, %c0_25], %46 {strides = array<i32>} : memref<144x64xbf16, #tpu.memory_space<vmem>>, vector<8x64xbf16>,
    %c0_26 = arith.constant 0 : index
    %c10 = arith.constant 10 : index
    %48 = vector.load %arg7[%c0_26, %c10] : memref<16x82xbf16, #tpu.memory_space<vmem>>, vector<8x64xbf16>
    %cst_27 = arith.constant 0.000000e+00 : bf16
    %49 = vector.broadcast %cst_27 : bf16 to vector<8x64xbf16>
    %50 = vector.shape_cast %25 : vector<1x64xi1> to vector<1x64xi1>
    %51 = vector.broadcast %50 : vector<1x64xi1> to vector<8x64xi1>
    %52 = arith.select %51, %48, %49 : vector<8x64xi1>, vector<8x64xbf16>
    %c40 = arith.constant 40 : index
    %c0_28 = arith.constant 0 : index
    %53 = vector.load %arg8[%c40, %c0_28] : memref<144x64xbf16, #tpu.memory_space<vmem>>, vector<8x64xbf16>
    tpu.vector_store %arg8[%c40, %c0_28], %52 {strides = array<i32>} : memref<144x64xbf16, #tpu.memory_space<vmem>>, vector<8x64xbf16>,
    %c0_29 = arith.constant 0 : index
    %c16_30 = arith.constant 16 : index
    %54 = vector.load %arg7[%c0_29, %c16_30] : memref<16x82xbf16, #tpu.memory_space<vmem>>, vector<8x64xbf16>
    %cst_31 = arith.constant 0.000000e+00 : bf16
    %55 = vector.broadcast %cst_31 : bf16 to vector<8x64xbf16>
    %56 = vector.shape_cast %23 : vector<1x64xi1> to vector<1x64xi1>
    %57 = vector.broadcast %56 : vector<1x64xi1> to vector<8x64xi1>
    %58 = arith.select %57, %54, %55 : vector<8x64xi1>, vector<8x64xbf16>
    %c48 = arith.constant 48 : index
    %c0_32 = arith.constant 0 : index
    %59 = vector.load %arg8[%c48, %c0_32] : memref<144x64xbf16, #tpu.memory_space<vmem>>, vector<8x64xbf16>
    tpu.vector_store %arg8[%c48, %c0_32], %58 {strides = array<i32>} : memref<144x64xbf16, #tpu.memory_space<vmem>>, vector<8x64xbf16>,
    %c0_33 = arith.constant 0 : index
    %c17 = arith.constant 17 : index
    %60 = vector.load %arg7[%c0_33, %c17] : memref<16x82xbf16, #tpu.memory_space<vmem>>, vector<8x64xbf16>
    %c56 = arith.constant 56 : index
    %c0_34 = arith.constant 0 : index
    %61 = vector.load %arg8[%c56, %c0_34] : memref<144x64xbf16, #tpu.memory_space<vmem>>, vector<8x64xbf16>
    tpu.vector_store %arg8[%c56, %c0_34], %60 {strides = array<i32>} : memref<144x64xbf16, #tpu.memory_space<vmem>>, vector<8x64xbf16>,
    %c0_35 = arith.constant 0 : index
    %c18 = arith.constant 18 : index
    %62 = vector.load %arg7[%c0_35, %c18] : memref<16x82xbf16, #tpu.memory_space<vmem>>, vector<8x64xbf16>
    %cst_36 = arith.constant 0.000000e+00 : bf16
    %63 = vector.broadcast %cst_36 : bf16 to vector<8x64xbf16>
    %64 = vector.shape_cast %25 : vector<1x64xi1> to vector<1x64xi1>
    %65 = vector.broadcast %64 : vector<1x64xi1> to vector<8x64xi1>
    %66 = arith.select %65, %62, %63 : vector<8x64xi1>, vector<8x64xbf16>
    %c64 = arith.constant 64 : index
    %c0_37 = arith.constant 0 : index
    %67 = vector.load %arg8[%c64, %c0_37] : memref<144x64xbf16, #tpu.memory_space<vmem>>, vector<8x64xbf16>
    tpu.vector_store %arg8[%c64, %c0_37], %66 {strides = array<i32>} : memref<144x64xbf16, #tpu.memory_space<vmem>>, vector<8x64xbf16>,
    %c0_38 = arith.constant 0 : index
    %c0_39 = arith.constant 0 : index
    %68 = vector.load %arg2[%c0_38, %c0_39] : memref<16x72xbf16, #tpu.memory_space<vmem>>, vector<16x72xbf16>
    %c0_40 = arith.constant 0 : index
    %c0_41 = arith.constant 0 : index
    %69 = vector.load %arg8[%c0_40, %c0_41] : memref<144x64xbf16, #tpu.memory_space<vmem>>, vector<72x64xbf16>
    %cst_42 = arith.constant dense<0.000000e+00> : vector<16x64xf32>
    %70 = tpu.matmul %68, %69, %cst_42 {dimension_numbers = #tpu.dot_dimension_numbers<[1], [0], [0], [1], [0, 0, 1, 1], [], []>} : vector<16x72xbf16>, vector<72x64xbf16>, vector<16x64xf32> -> vector<16x64xf32>
    %c0_43 = arith.constant 0 : index
    %c0_44 = arith.constant 0 : index
    %71 = vector.load %arg3[%c0_43, %c0_44] : memref<16x1xf32, #tpu.memory_space<vmem>>, vector<16x1xf32>
    %72 = vector.broadcast %71 : vector<16x1xf32> to vector<16x64xf32>
    %73 = arith.addf %70, %72 : vector<16x64xf32>
    %cst_45 = arith.constant 0.000000e+00 : f32
    %74 = vector.broadcast %cst_45 : f32 to vector<16x64xf32>
    %75 = arith.cmpf oge, %73, %74 : vector<16x64xf32>
    %cst_46 = arith.constant 1.000000e-01 : f32
    %76 = vector.broadcast %cst_46 : f32 to vector<16x64xf32>
    %77 = arith.mulf %76, %73 : vector<16x64xf32>
    %78 = arith.select %75, %73, %77 : vector<16x64xi1>, vector<16x64xf32>
    %cst_47 = arith.constant 0.000000e+00 : bf16
    %79 = vector.broadcast %cst_47 : bf16 to vector<16x82xbf16>
    %c0_48 = arith.constant 0 : index
    %c0_49 = arith.constant 0 : index
    %80 = vector.load %arg7[%c0_48, %c0_49] : memref<16x82xbf16, #tpu.memory_space<vmem>>, vector<16x82xbf16>
    tpu.vector_store %arg7[%c0_48, %c0_49], %79 {strides = array<i32>} : memref<16x82xbf16, #tpu.memory_space<vmem>>, vector<16x82xbf16>,
    %81 = arith.truncf %78 : vector<16x64xf32> to vector<16x64xbf16>
    %c0_50 = arith.constant 0 : index
    %c9_51 = arith.constant 9 : index
    %82 = vector.load %arg7[%c0_50, %c9_51] : memref<16x82xbf16, #tpu.memory_space<vmem>>, vector<16x64xbf16>
    tpu.vector_store %arg7[%c0_50, %c9_51], %81 {strides = array<i32>} : memref<16x82xbf16, #tpu.memory_space<vmem>>, vector<16x64xbf16>,
    %83 = tpu.iota {dimensions = array<i32: 1>} : vector<1x64xi32>
    %c8_i32_52 = arith.constant 8 : i32
    %c0_i32_53 = arith.constant 0 : i32
    %84 = arith.cmpi eq, %c8_i32_52, %c0_i32_53 : i32
    %c1_i32_54 = arith.constant 1 : i32
    %85 = arith.select %84, %c1_i32_54, %c8_i32_52 : i32
    %86 = vector.broadcast %85 : i32 to vector<1x64xi32>
    %87 = arith.remsi %83, %86 : vector<1x64xi32>
    %c0_i32_55 = arith.constant 0 : i32
    %88 = vector.broadcast %c0_i32_55 : i32 to vector<1x64xi32>
    %89 = arith.cmpi ne, %87, %88 : vector<1x64xi32>
    %c0_i32_56 = arith.constant 0 : i32
    %90 = vector.broadcast %c0_i32_56 : i32 to vector<1x64xi32>
    %91 = arith.cmpi slt, %87, %90 : vector<1x64xi32>
    %c0_i32_57 = arith.constant 0 : i32
    %92 = arith.cmpi slt, %85, %c0_i32_57 : i32
    %93 = vector.broadcast %92 : i1 to vector<1x64xi1>
    %94 = vector.broadcast %93 : vector<1x64xi1> to vector<1x64xi1>
    %95 = arith.xori %91, %94 : vector<1x64xi1>
    %96 = arith.andi %95, %89 : vector<1x64xi1>
    %97 = vector.broadcast %85 : i32 to vector<1x64xi32>
    %98 = arith.addi %87, %97 : vector<1x64xi32>
    %99 = arith.select %96, %98, %87 : vector<1x64xi1>, vector<1x64xi32>
    %c1_i32_58 = arith.constant 1 : i32
    %100 = vector.broadcast %c1_i32_58 : i32 to vector<1x64xi32>
    %101 = arith.cmpi sge, %99, %100 : vector<1x64xi32>
    %c7_i32_59 = arith.constant 7 : i32
    %102 = vector.broadcast %c7_i32_59 : i32 to vector<1x64xi32>
    %103 = arith.cmpi slt, %99, %102 : vector<1x64xi32>
    %c0_60 = arith.constant 0 : index
    %c0_61 = arith.constant 0 : index
    %104 = vector.load %arg7[%c0_60, %c0_61] : memref<16x82xbf16, #tpu.memory_space<vmem>>, vector<16x64xbf16>
    %cst_62 = arith.constant 0.000000e+00 : bf16
    %105 = vector.broadcast %cst_62 : bf16 to vector<16x64xbf16>
    %106 = vector.shape_cast %101 : vector<1x64xi1> to vector<1x64xi1>
    %107 = vector.broadcast %106 : vector<1x64xi1> to vector<16x64xi1>
    %108 = arith.select %107, %104, %105 : vector<16x64xi1>, vector<16x64xbf16>
    %c0_63 = arith.constant 0 : index
    %c0_64 = arith.constant 0 : index
    %109 = vector.load %arg8[%c0_63, %c0_64] : memref<144x64xbf16, #tpu.memory_space<vmem>>, vector<16x64xbf16>
    tpu.vector_store %arg8[%c0_63, %c0_64], %108 {strides = array<i32>} : memref<144x64xbf16, #tpu.memory_space<vmem>>, vector<16x64xbf16>,
    %c0_65 = arith.constant 0 : index
    %c1_66 = arith.constant 1 : index
    %110 = vector.load %arg7[%c0_65, %c1_66] : memref<16x82xbf16, #tpu.memory_space<vmem>>, vector<16x64xbf16>
    %c16_67 = arith.constant 16 : index
    %c0_68 = arith.constant 0 : index
    %111 = vector.load %arg8[%c16_67, %c0_68] : memref<144x64xbf16, #tpu.memory_space<vmem>>, vector<16x64xbf16>
    tpu.vector_store %arg8[%c16_67, %c0_68], %110 {strides = array<i32>} : memref<144x64xbf16, #tpu.memory_space<vmem>>, vector<16x64xbf16>,
    %c0_69 = arith.constant 0 : index
    %c2_70 = arith.constant 2 : index
    %112 = vector.load %arg7[%c0_69, %c2_70] : memref<16x82xbf16, #tpu.memory_space<vmem>>, vector<16x64xbf16>
    %cst_71 = arith.constant 0.000000e+00 : bf16
    %113 = vector.broadcast %cst_71 : bf16 to vector<16x64xbf16>
    %114 = vector.shape_cast %103 : vector<1x64xi1> to vector<1x64xi1>
    %115 = vector.broadcast %114 : vector<1x64xi1> to vector<16x64xi1>
    %116 = arith.select %115, %112, %113 : vector<16x64xi1>, vector<16x64xbf16>
    %c32_72 = arith.constant 32 : index
    %c0_73 = arith.constant 0 : index
    %117 = vector.load %arg8[%c32_72, %c0_73] : memref<144x64xbf16, #tpu.memory_space<vmem>>, vector<16x64xbf16>
    tpu.vector_store %arg8[%c32_72, %c0_73], %116 {strides = array<i32>} : memref<144x64xbf16, #tpu.memory_space<vmem>>, vector<16x64xbf16>,
    %c0_74 = arith.constant 0 : index
    %c8_75 = arith.constant 8 : index
    %118 = vector.load %arg7[%c0_74, %c8_75] : memref<16x82xbf16, #tpu.memory_space<vmem>>, vector<16x64xbf16>
    %cst_76 = arith.constant 0.000000e+00 : bf16
    %119 = vector.broadcast %cst_76 : bf16 to vector<16x64xbf16>
    %120 = vector.shape_cast %101 : vector<1x64xi1> to vector<1x64xi1>
    %121 = vector.broadcast %120 : vector<1x64xi1> to vector<16x64xi1>
    %122 = arith.select %121, %118, %119 : vector<16x64xi1>, vector<16x64xbf16>
    %c48_77 = arith.constant 48 : index
    %c0_78 = arith.constant 0 : index
    %123 = vector.load %arg8[%c48_77, %c0_78] : memref<144x64xbf16, #tpu.memory_space<vmem>>, vector<16x64xbf16>
    tpu.vector_store %arg8[%c48_77, %c0_78], %122 {strides = array<i32>} : memref<144x64xbf16, #tpu.memory_space<vmem>>, vector<16x64xbf16>,
    %c0_79 = arith.constant 0 : index
    %c9_80 = arith.constant 9 : index
    %124 = vector.load %arg7[%c0_79, %c9_80] : memref<16x82xbf16, #tpu.memory_space<vmem>>, vector<16x64xbf16>
    %c64_81 = arith.constant 64 : index
    %c0_82 = arith.constant 0 : index
    %125 = vector.load %arg8[%c64_81, %c0_82] : memref<144x64xbf16, #tpu.memory_space<vmem>>, vector<16x64xbf16>
    tpu.vector_store %arg8[%c64_81, %c0_82], %124 {strides = array<i32>} : memref<144x64xbf16, #tpu.memory_space<vmem>>, vector<16x64xbf16>,
    %c0_83 = arith.constant 0 : index
    %c10_84 = arith.constant 10 : index
    %126 = vector.load %arg7[%c0_83, %c10_84] : memref<16x82xbf16, #tpu.memory_space<vmem>>, vector<16x64xbf16>
    %cst_85 = arith.constant 0.000000e+00 : bf16
    %127 = vector.broadcast %cst_85 : bf16 to vector<16x64xbf16>
    %128 = vector.shape_cast %103 : vector<1x64xi1> to vector<1x64xi1>
    %129 = vector.broadcast %128 : vector<1x64xi1> to vector<16x64xi1>
    %130 = arith.select %129, %126, %127 : vector<16x64xi1>, vector<16x64xbf16>
    %c80 = arith.constant 80 : index
    %c0_86 = arith.constant 0 : index
    %131 = vector.load %arg8[%c80, %c0_86] : memref<144x64xbf16, #tpu.memory_space<vmem>>, vector<16x64xbf16>
    tpu.vector_store %arg8[%c80, %c0_86], %130 {strides = array<i32>} : memref<144x64xbf16, #tpu.memory_space<vmem>>, vector<16x64xbf16>,
    %c0_87 = arith.constant 0 : index
    %c16_88 = arith.constant 16 : index
    %132 = vector.load %arg7[%c0_87, %c16_88] : memref<16x82xbf16, #tpu.memory_space<vmem>>, vector<16x64xbf16>
    %cst_89 = arith.constant 0.000000e+00 : bf16
    %133 = vector.broadcast %cst_89 : bf16 to vector<16x64xbf16>
    %134 = vector.shape_cast %101 : vector<1x64xi1> to vector<1x64xi1>
    %135 = vector.broadcast %134 : vector<1x64xi1> to vector<16x64xi1>
    %136 = arith.select %135, %132, %133 : vector<16x64xi1>, vector<16x64xbf16>
    %c96 = arith.constant 96 : index
    %c0_90 = arith.constant 0 : index
    %137 = vector.load %arg8[%c96, %c0_90] : memref<144x64xbf16, #tpu.memory_space<vmem>>, vector<16x64xbf16>
    tpu.vector_store %arg8[%c96, %c0_90], %136 {strides = array<i32>} : memref<144x64xbf16, #tpu.memory_space<vmem>>, vector<16x64xbf16>,
    %c0_91 = arith.constant 0 : index
    %c17_92 = arith.constant 17 : index
    %138 = vector.load %arg7[%c0_91, %c17_92] : memref<16x82xbf16, #tpu.memory_space<vmem>>, vector<16x64xbf16>
    %c112 = arith.constant 112 : index
    %c0_93 = arith.constant 0 : index
    %139 = vector.load %arg8[%c112, %c0_93] : memref<144x64xbf16, #tpu.memory_space<vmem>>, vector<16x64xbf16>
    tpu.vector_store %arg8[%c112, %c0_93], %138 {strides = array<i32>} : memref<144x64xbf16, #tpu.memory_space<vmem>>, vector<16x64xbf16>,
    %c0_94 = arith.constant 0 : index
    %c18_95 = arith.constant 18 : index
    %140 = vector.load %arg7[%c0_94, %c18_95] : memref<16x82xbf16, #tpu.memory_space<vmem>>, vector<16x64xbf16>
    %cst_96 = arith.constant 0.000000e+00 : bf16
    %141 = vector.broadcast %cst_96 : bf16 to vector<16x64xbf16>
    %142 = vector.shape_cast %103 : vector<1x64xi1> to vector<1x64xi1>
    %143 = vector.broadcast %142 : vector<1x64xi1> to vector<16x64xi1>
    %144 = arith.select %143, %140, %141 : vector<16x64xi1>, vector<16x64xbf16>
    %c128 = arith.constant 128 : index
    %c0_97 = arith.constant 0 : index
    %145 = vector.load %arg8[%c128, %c0_97] : memref<144x64xbf16, #tpu.memory_space<vmem>>, vector<16x64xbf16>
    tpu.vector_store %arg8[%c128, %c0_97], %144 {strides = array<i32>} : memref<144x64xbf16, #tpu.memory_space<vmem>>, vector<16x64xbf16>,
    %c0_98 = arith.constant 0 : index
    %c0_99 = arith.constant 0 : index
    %146 = vector.load %arg4[%c0_98, %c0_99] : memref<16x144xbf16, #tpu.memory_space<vmem>>, vector<16x144xbf16>
    %c0_100 = arith.constant 0 : index
    %c0_101 = arith.constant 0 : index
    %147 = vector.load %arg8[%c0_100, %c0_101] : memref<144x64xbf16, #tpu.memory_space<vmem>>, vector<144x64xbf16>
    %cst_102 = arith.constant dense<0.000000e+00> : vector<16x64xf32>
    %148 = tpu.matmul %146, %147, %cst_102 {dimension_numbers = #tpu.dot_dimension_numbers<[1], [0], [0], [1], [0, 0, 1, 1], [], []>} : vector<16x144xbf16>, vector<144x64xbf16>, vector<16x64xf32> -> vector<16x64xf32>
    %c0_103 = arith.constant 0 : index
    %c0_104 = arith.constant 0 : index
    %149 = vector.load %arg5[%c0_103, %c0_104] : memref<16x1xf32, #tpu.memory_space<vmem>>, vector<16x1xf32>
    %150 = vector.broadcast %149 : vector<16x1xf32> to vector<16x64xf32>
    %151 = arith.addf %148, %150 : vector<16x64xf32>
    %cst_105 = arith.constant 0.000000e+00 : f32
    %152 = vector.broadcast %cst_105 : f32 to vector<16x64xf32>
    %153 = arith.cmpf oge, %151, %152 : vector<16x64xf32>
    %cst_106 = arith.constant 1.000000e-01 : f32
    %154 = vector.broadcast %cst_106 : f32 to vector<16x64xf32>
    %155 = arith.mulf %154, %151 : vector<16x64xf32>
    %156 = arith.select %153, %151, %155 : vector<16x64xi1>, vector<16x64xf32>
    %157 = arith.truncf %156 : vector<16x64xf32> to vector<16x64xbf16>
    %c0_107 = arith.constant 0 : index
    %c0_108 = arith.constant 0 : index
    %c0_109 = arith.constant 0 : index
    %158 = vector.load %arg6[%c0_107, %c0_108, %c0_109] : memref<1x16x64xbf16, #tpu.memory_space<vmem>>, vector<1x16x64xbf16>
    %159 = vector.shape_cast %158 : vector<1x16x64xbf16> to vector<16x64xbf16>
    %160 = vector.shape_cast %157 : vector<16x64xbf16> to vector<1x16x64xbf16>
    tpu.vector_store %arg6[%c0_107, %c0_108, %c0_109], %160 {strides = array<i32>} : memref<1x16x64xbf16, #tpu.memory_space<vmem>>, vector<1x16x64xbf16>,
    return
  }
  func.func @transform_0(%arg0: i32) -> (i32, i32, i32) {
    %c0_i32 = arith.constant 0 : i32
    %c0_i32_0 = arith.constant 0 : i32
    %c0_i32_1 = arith.constant 0 : i32
    return %arg0, %c0_i32, %c0_i32_0 : i32, i32, i32
  }
  func.func @transform_1(%arg0: i32) -> (i32, i32) {
    %c0_i32 = arith.constant 0 : i32
    %c0_i32_0 = arith.constant 0 : i32
    %c0_i32_1 = arith.constant 0 : i32
    return %c0_i32, %c0_i32_0 : i32, i32
  }
  func.func @transform_2(%arg0: i32) -> (i32, i32) {
    %c0_i32 = arith.constant 0 : i32
    %c0_i32_0 = arith.constant 0 : i32
    %c0_i32_1 = arith.constant 0 : i32
    return %c0_i32, %c0_i32_0 : i32, i32
  }
  func.func @transform_3(%arg0: i32) -> (i32, i32) {
    %c0_i32 = arith.constant 0 : i32
    %c0_i32_0 = arith.constant 0 : i32
    %c0_i32_1 = arith.constant 0 : i32
    return %c0_i32, %c0_i32_0 : i32, i32
  }
  func.func @transform_4(%arg0: i32) -> (i32, i32) {
    %c0_i32 = arith.constant 0 : i32
    %c0_i32_0 = arith.constant 0 : i32
    %c0_i32_1 = arith.constant 0 : i32
    return %c0_i32, %c0_i32_0 : i32, i32
  }
  func.func @transform_5(%arg0: i32) -> (i32, i32, i32) {
    %c0_i32 = arith.constant 0 : i32
    %c0_i32_0 = arith.constant 0 : i32
    %c0_i32_1 = arith.constant 0 : i32
    return %arg0, %c0_i32, %c0_i32_0 : i32, i32, i32
  }
}

module attributes {stable_mosaic.version = 11 : i64} {
  func.func @_down_block_kernel(%arg0: i32, %arg1: memref<1x16x16xbf16, #tpu.memory_space<vmem>>, %arg2: memref<32x144xbf16, #tpu.memory_space<vmem>>, %arg3: memref<32x1xf32, #tpu.memory_space<vmem>>, %arg4: memref<32x288xbf16, #tpu.memory_space<vmem>>, %arg5: memref<32x1xf32, #tpu.memory_space<vmem>>, %arg6: memref<1x32x16xbf16, #tpu.memory_space<vmem>>, %arg7: memref<32x26xbf16, #tpu.memory_space<vmem>>, %arg8: memref<288x16xbf16, #tpu.memory_space<vmem>>) attributes {dimension_semantics = [#tpu.dimension_semantics<parallel>], iteration_bounds = array<i64: 2>, scalar_prefetch = 0 : i64, scratch_operands = 2 : i64, tpu.core_type = #tpu.core_type<tc>, window_params = [{transform_indices = @transform_0, window_bounds = array<i64: 1, 16, 16>}, {pipeline_mode = #tpu.pipeline_mode<synchronous>, transform_indices = @transform_1, window_bounds = array<i64: 32, 144>}, {pipeline_mode = #tpu.pipeline_mode<synchronous>, transform_indices = @transform_2, window_bounds = array<i64: 32, 1>}, {pipeline_mode = #tpu.pipeline_mode<synchronous>, transform_indices = @transform_3, window_bounds = array<i64: 32, 288>}, {pipeline_mode = #tpu.pipeline_mode<synchronous>, transform_indices = @transform_4, window_bounds = array<i64: 32, 1>}, {transform_indices = @transform_5, window_bounds = array<i64: 1, 32, 16>}]} {
    %c0 = arith.constant 0 : index
    %c0_0 = arith.constant 0 : index
    %c0_1 = arith.constant 0 : index
    %0 = vector.load %arg1[%c0, %c0_0, %c0_1] : memref<1x16x16xbf16, #tpu.memory_space<vmem>>, vector<1x16x16xbf16>
    %1 = vector.shape_cast %0 : vector<1x16x16xbf16> to vector<16x16xbf16>
    %cst = arith.constant 0.000000e+00 : bf16
    %2 = vector.broadcast %cst : bf16 to vector<16x26xbf16>
    %c0_2 = arith.constant 0 : index
    %c0_3 = arith.constant 0 : index
    %3 = vector.load %arg7[%c0_2, %c0_3] : memref<32x26xbf16, #tpu.memory_space<vmem>>, vector<16x26xbf16>
    tpu.vector_store %arg7[%c0_2, %c0_3], %2 {strides = array<i32>} : memref<32x26xbf16, #tpu.memory_space<vmem>>, vector<16x26xbf16>,
    %c0_4 = arith.constant 0 : index
    %c5 = arith.constant 5 : index
    %4 = vector.load %arg7[%c0_4, %c5] : memref<32x26xbf16, #tpu.memory_space<vmem>>, vector<16x16xbf16>
    tpu.vector_store %arg7[%c0_4, %c5], %1 {strides = array<i32>} : memref<32x26xbf16, #tpu.memory_space<vmem>>, vector<16x16xbf16>,
    %5 = tpu.iota {dimensions = array<i32: 1>} : vector<1x16xi32>
    %c4_i32 = arith.constant 4 : i32
    %c0_i32 = arith.constant 0 : i32
    %6 = arith.cmpi eq, %c4_i32, %c0_i32 : i32
    %c1_i32 = arith.constant 1 : i32
    %7 = arith.select %6, %c1_i32, %c4_i32 : i32
    %8 = vector.broadcast %7 : i32 to vector<1x16xi32>
    %9 = arith.remsi %5, %8 : vector<1x16xi32>
    %c0_i32_5 = arith.constant 0 : i32
    %10 = vector.broadcast %c0_i32_5 : i32 to vector<1x16xi32>
    %11 = arith.cmpi ne, %9, %10 : vector<1x16xi32>
    %c0_i32_6 = arith.constant 0 : i32
    %12 = vector.broadcast %c0_i32_6 : i32 to vector<1x16xi32>
    %13 = arith.cmpi slt, %9, %12 : vector<1x16xi32>
    %c0_i32_7 = arith.constant 0 : i32
    %14 = arith.cmpi slt, %7, %c0_i32_7 : i32
    %15 = vector.broadcast %14 : i1 to vector<1x16xi1>
    %16 = vector.broadcast %15 : vector<1x16xi1> to vector<1x16xi1>
    %17 = arith.xori %13, %16 : vector<1x16xi1>
    %18 = arith.andi %17, %11 : vector<1x16xi1>
    %19 = vector.broadcast %7 : i32 to vector<1x16xi32>
    %20 = arith.addi %9, %19 : vector<1x16xi32>
    %21 = arith.select %18, %20, %9 : vector<1x16xi1>, vector<1x16xi32>
    %c1_i32_8 = arith.constant 1 : i32
    %22 = vector.broadcast %c1_i32_8 : i32 to vector<1x16xi32>
    %23 = arith.cmpi sge, %21, %22 : vector<1x16xi32>
    %c3_i32 = arith.constant 3 : i32
    %24 = vector.broadcast %c3_i32 : i32 to vector<1x16xi32>
    %25 = arith.cmpi slt, %21, %24 : vector<1x16xi32>
    %c0_9 = arith.constant 0 : index
    %c0_10 = arith.constant 0 : index
    %26 = vector.load %arg7[%c0_9, %c0_10] : memref<32x26xbf16, #tpu.memory_space<vmem>>, vector<16x16xbf16>
    %cst_11 = arith.constant 0.000000e+00 : bf16
    %27 = vector.broadcast %cst_11 : bf16 to vector<16x16xbf16>
    %28 = vector.shape_cast %23 : vector<1x16xi1> to vector<1x16xi1>
    %29 = vector.broadcast %28 : vector<1x16xi1> to vector<16x16xi1>
    %30 = arith.select %29, %26, %27 : vector<16x16xi1>, vector<16x16xbf16>
    %c0_12 = arith.constant 0 : index
    %c0_13 = arith.constant 0 : index
    %31 = vector.load %arg8[%c0_12, %c0_13] : memref<288x16xbf16, #tpu.memory_space<vmem>>, vector<16x16xbf16>
    tpu.vector_store %arg8[%c0_12, %c0_13], %30 {strides = array<i32>} : memref<288x16xbf16, #tpu.memory_space<vmem>>, vector<16x16xbf16>,
    %c0_14 = arith.constant 0 : index
    %c1 = arith.constant 1 : index
    %32 = vector.load %arg7[%c0_14, %c1] : memref<32x26xbf16, #tpu.memory_space<vmem>>, vector<16x16xbf16>
    %c16 = arith.constant 16 : index
    %c0_15 = arith.constant 0 : index
    %33 = vector.load %arg8[%c16, %c0_15] : memref<288x16xbf16, #tpu.memory_space<vmem>>, vector<16x16xbf16>
    tpu.vector_store %arg8[%c16, %c0_15], %32 {strides = array<i32>} : memref<288x16xbf16, #tpu.memory_space<vmem>>, vector<16x16xbf16>,
    %c0_16 = arith.constant 0 : index
    %c2 = arith.constant 2 : index
    %34 = vector.load %arg7[%c0_16, %c2] : memref<32x26xbf16, #tpu.memory_space<vmem>>, vector<16x16xbf16>
    %cst_17 = arith.constant 0.000000e+00 : bf16
    %35 = vector.broadcast %cst_17 : bf16 to vector<16x16xbf16>
    %36 = vector.shape_cast %25 : vector<1x16xi1> to vector<1x16xi1>
    %37 = vector.broadcast %36 : vector<1x16xi1> to vector<16x16xi1>
    %38 = arith.select %37, %34, %35 : vector<16x16xi1>, vector<16x16xbf16>
    %c32 = arith.constant 32 : index
    %c0_18 = arith.constant 0 : index
    %39 = vector.load %arg8[%c32, %c0_18] : memref<288x16xbf16, #tpu.memory_space<vmem>>, vector<16x16xbf16>
    tpu.vector_store %arg8[%c32, %c0_18], %38 {strides = array<i32>} : memref<288x16xbf16, #tpu.memory_space<vmem>>, vector<16x16xbf16>,
    %c0_19 = arith.constant 0 : index
    %c4 = arith.constant 4 : index
    %40 = vector.load %arg7[%c0_19, %c4] : memref<32x26xbf16, #tpu.memory_space<vmem>>, vector<16x16xbf16>
    %cst_20 = arith.constant 0.000000e+00 : bf16
    %41 = vector.broadcast %cst_20 : bf16 to vector<16x16xbf16>
    %42 = vector.shape_cast %23 : vector<1x16xi1> to vector<1x16xi1>
    %43 = vector.broadcast %42 : vector<1x16xi1> to vector<16x16xi1>
    %44 = arith.select %43, %40, %41 : vector<16x16xi1>, vector<16x16xbf16>
    %c48 = arith.constant 48 : index
    %c0_21 = arith.constant 0 : index
    %45 = vector.load %arg8[%c48, %c0_21] : memref<288x16xbf16, #tpu.memory_space<vmem>>, vector<16x16xbf16>
    tpu.vector_store %arg8[%c48, %c0_21], %44 {strides = array<i32>} : memref<288x16xbf16, #tpu.memory_space<vmem>>, vector<16x16xbf16>,
    %c0_22 = arith.constant 0 : index
    %c5_23 = arith.constant 5 : index
    %46 = vector.load %arg7[%c0_22, %c5_23] : memref<32x26xbf16, #tpu.memory_space<vmem>>, vector<16x16xbf16>
    %c64 = arith.constant 64 : index
    %c0_24 = arith.constant 0 : index
    %47 = vector.load %arg8[%c64, %c0_24] : memref<288x16xbf16, #tpu.memory_space<vmem>>, vector<16x16xbf16>
    tpu.vector_store %arg8[%c64, %c0_24], %46 {strides = array<i32>} : memref<288x16xbf16, #tpu.memory_space<vmem>>, vector<16x16xbf16>,
    %c0_25 = arith.constant 0 : index
    %c6 = arith.constant 6 : index
    %48 = vector.load %arg7[%c0_25, %c6] : memref<32x26xbf16, #tpu.memory_space<vmem>>, vector<16x16xbf16>
    %cst_26 = arith.constant 0.000000e+00 : bf16
    %49 = vector.broadcast %cst_26 : bf16 to vector<16x16xbf16>
    %50 = vector.shape_cast %25 : vector<1x16xi1> to vector<1x16xi1>
    %51 = vector.broadcast %50 : vector<1x16xi1> to vector<16x16xi1>
    %52 = arith.select %51, %48, %49 : vector<16x16xi1>, vector<16x16xbf16>
    %c80 = arith.constant 80 : index
    %c0_27 = arith.constant 0 : index
    %53 = vector.load %arg8[%c80, %c0_27] : memref<288x16xbf16, #tpu.memory_space<vmem>>, vector<16x16xbf16>
    tpu.vector_store %arg8[%c80, %c0_27], %52 {strides = array<i32>} : memref<288x16xbf16, #tpu.memory_space<vmem>>, vector<16x16xbf16>,
    %c0_28 = arith.constant 0 : index
    %c8 = arith.constant 8 : index
    %54 = vector.load %arg7[%c0_28, %c8] : memref<32x26xbf16, #tpu.memory_space<vmem>>, vector<16x16xbf16>
    %cst_29 = arith.constant 0.000000e+00 : bf16
    %55 = vector.broadcast %cst_29 : bf16 to vector<16x16xbf16>
    %56 = vector.shape_cast %23 : vector<1x16xi1> to vector<1x16xi1>
    %57 = vector.broadcast %56 : vector<1x16xi1> to vector<16x16xi1>
    %58 = arith.select %57, %54, %55 : vector<16x16xi1>, vector<16x16xbf16>
    %c96 = arith.constant 96 : index
    %c0_30 = arith.constant 0 : index
    %59 = vector.load %arg8[%c96, %c0_30] : memref<288x16xbf16, #tpu.memory_space<vmem>>, vector<16x16xbf16>
    tpu.vector_store %arg8[%c96, %c0_30], %58 {strides = array<i32>} : memref<288x16xbf16, #tpu.memory_space<vmem>>, vector<16x16xbf16>,
    %c0_31 = arith.constant 0 : index
    %c9 = arith.constant 9 : index
    %60 = vector.load %arg7[%c0_31, %c9] : memref<32x26xbf16, #tpu.memory_space<vmem>>, vector<16x16xbf16>
    %c112 = arith.constant 112 : index
    %c0_32 = arith.constant 0 : index
    %61 = vector.load %arg8[%c112, %c0_32] : memref<288x16xbf16, #tpu.memory_space<vmem>>, vector<16x16xbf16>
    tpu.vector_store %arg8[%c112, %c0_32], %60 {strides = array<i32>} : memref<288x16xbf16, #tpu.memory_space<vmem>>, vector<16x16xbf16>,
    %c0_33 = arith.constant 0 : index
    %c10 = arith.constant 10 : index
    %62 = vector.load %arg7[%c0_33, %c10] : memref<32x26xbf16, #tpu.memory_space<vmem>>, vector<16x16xbf16>
    %cst_34 = arith.constant 0.000000e+00 : bf16
    %63 = vector.broadcast %cst_34 : bf16 to vector<16x16xbf16>
    %64 = vector.shape_cast %25 : vector<1x16xi1> to vector<1x16xi1>
    %65 = vector.broadcast %64 : vector<1x16xi1> to vector<16x16xi1>
    %66 = arith.select %65, %62, %63 : vector<16x16xi1>, vector<16x16xbf16>
    %c128 = arith.constant 128 : index
    %c0_35 = arith.constant 0 : index
    %67 = vector.load %arg8[%c128, %c0_35] : memref<288x16xbf16, #tpu.memory_space<vmem>>, vector<16x16xbf16>
    tpu.vector_store %arg8[%c128, %c0_35], %66 {strides = array<i32>} : memref<288x16xbf16, #tpu.memory_space<vmem>>, vector<16x16xbf16>,
    %c0_36 = arith.constant 0 : index
    %c0_37 = arith.constant 0 : index
    %68 = vector.load %arg2[%c0_36, %c0_37] : memref<32x144xbf16, #tpu.memory_space<vmem>>, vector<32x144xbf16>
    %c0_38 = arith.constant 0 : index
    %c0_39 = arith.constant 0 : index
    %69 = vector.load %arg8[%c0_38, %c0_39] : memref<288x16xbf16, #tpu.memory_space<vmem>>, vector<144x16xbf16>
    %cst_40 = arith.constant dense<0.000000e+00> : vector<32x16xf32>
    %70 = tpu.matmul %68, %69, %cst_40 {dimension_numbers = #tpu.dot_dimension_numbers<[1], [0], [0], [1], [0, 0, 1, 1], [], []>} : vector<32x144xbf16>, vector<144x16xbf16>, vector<32x16xf32> -> vector<32x16xf32>
    %c0_41 = arith.constant 0 : index
    %c0_42 = arith.constant 0 : index
    %71 = vector.load %arg3[%c0_41, %c0_42] : memref<32x1xf32, #tpu.memory_space<vmem>>, vector<32x1xf32>
    %72 = vector.broadcast %71 : vector<32x1xf32> to vector<32x16xf32>
    %73 = arith.addf %70, %72 : vector<32x16xf32>
    %cst_43 = arith.constant 0.000000e+00 : f32
    %74 = vector.broadcast %cst_43 : f32 to vector<32x16xf32>
    %75 = arith.cmpf oge, %73, %74 : vector<32x16xf32>
    %cst_44 = arith.constant 1.000000e-01 : f32
    %76 = vector.broadcast %cst_44 : f32 to vector<32x16xf32>
    %77 = arith.mulf %76, %73 : vector<32x16xf32>
    %78 = arith.select %75, %73, %77 : vector<32x16xi1>, vector<32x16xf32>
    %cst_45 = arith.constant 0.000000e+00 : bf16
    %79 = vector.broadcast %cst_45 : bf16 to vector<32x26xbf16>
    %c0_46 = arith.constant 0 : index
    %c0_47 = arith.constant 0 : index
    %80 = vector.load %arg7[%c0_46, %c0_47] : memref<32x26xbf16, #tpu.memory_space<vmem>>, vector<32x26xbf16>
    tpu.vector_store %arg7[%c0_46, %c0_47], %79 {strides = array<i32>} : memref<32x26xbf16, #tpu.memory_space<vmem>>, vector<32x26xbf16>,
    %81 = arith.truncf %78 : vector<32x16xf32> to vector<32x16xbf16>
    %c0_48 = arith.constant 0 : index
    %c5_49 = arith.constant 5 : index
    %82 = vector.load %arg7[%c0_48, %c5_49] : memref<32x26xbf16, #tpu.memory_space<vmem>>, vector<32x16xbf16>
    tpu.vector_store %arg7[%c0_48, %c5_49], %81 {strides = array<i32>} : memref<32x26xbf16, #tpu.memory_space<vmem>>, vector<32x16xbf16>,
    %83 = tpu.iota {dimensions = array<i32: 1>} : vector<1x16xi32>
    %c4_i32_50 = arith.constant 4 : i32
    %c0_i32_51 = arith.constant 0 : i32
    %84 = arith.cmpi eq, %c4_i32_50, %c0_i32_51 : i32
    %c1_i32_52 = arith.constant 1 : i32
    %85 = arith.select %84, %c1_i32_52, %c4_i32_50 : i32
    %86 = vector.broadcast %85 : i32 to vector<1x16xi32>
    %87 = arith.remsi %83, %86 : vector<1x16xi32>
    %c0_i32_53 = arith.constant 0 : i32
    %88 = vector.broadcast %c0_i32_53 : i32 to vector<1x16xi32>
    %89 = arith.cmpi ne, %87, %88 : vector<1x16xi32>
    %c0_i32_54 = arith.constant 0 : i32
    %90 = vector.broadcast %c0_i32_54 : i32 to vector<1x16xi32>
    %91 = arith.cmpi slt, %87, %90 : vector<1x16xi32>
    %c0_i32_55 = arith.constant 0 : i32
    %92 = arith.cmpi slt, %85, %c0_i32_55 : i32
    %93 = vector.broadcast %92 : i1 to vector<1x16xi1>
    %94 = vector.broadcast %93 : vector<1x16xi1> to vector<1x16xi1>
    %95 = arith.xori %91, %94 : vector<1x16xi1>
    %96 = arith.andi %95, %89 : vector<1x16xi1>
    %97 = vector.broadcast %85 : i32 to vector<1x16xi32>
    %98 = arith.addi %87, %97 : vector<1x16xi32>
    %99 = arith.select %96, %98, %87 : vector<1x16xi1>, vector<1x16xi32>
    %c1_i32_56 = arith.constant 1 : i32
    %100 = vector.broadcast %c1_i32_56 : i32 to vector<1x16xi32>
    %101 = arith.cmpi sge, %99, %100 : vector<1x16xi32>
    %c3_i32_57 = arith.constant 3 : i32
    %102 = vector.broadcast %c3_i32_57 : i32 to vector<1x16xi32>
    %103 = arith.cmpi slt, %99, %102 : vector<1x16xi32>
    %c0_58 = arith.constant 0 : index
    %c0_59 = arith.constant 0 : index
    %104 = vector.load %arg7[%c0_58, %c0_59] : memref<32x26xbf16, #tpu.memory_space<vmem>>, vector<32x16xbf16>
    %cst_60 = arith.constant 0.000000e+00 : bf16
    %105 = vector.broadcast %cst_60 : bf16 to vector<32x16xbf16>
    %106 = vector.shape_cast %101 : vector<1x16xi1> to vector<1x16xi1>
    %107 = vector.broadcast %106 : vector<1x16xi1> to vector<32x16xi1>
    %108 = arith.select %107, %104, %105 : vector<32x16xi1>, vector<32x16xbf16>
    %c0_61 = arith.constant 0 : index
    %c0_62 = arith.constant 0 : index
    %109 = vector.load %arg8[%c0_61, %c0_62] : memref<288x16xbf16, #tpu.memory_space<vmem>>, vector<32x16xbf16>
    tpu.vector_store %arg8[%c0_61, %c0_62], %108 {strides = array<i32>} : memref<288x16xbf16, #tpu.memory_space<vmem>>, vector<32x16xbf16>,
    %c0_63 = arith.constant 0 : index
    %c1_64 = arith.constant 1 : index
    %110 = vector.load %arg7[%c0_63, %c1_64] : memref<32x26xbf16, #tpu.memory_space<vmem>>, vector<32x16xbf16>
    %c32_65 = arith.constant 32 : index
    %c0_66 = arith.constant 0 : index
    %111 = vector.load %arg8[%c32_65, %c0_66] : memref<288x16xbf16, #tpu.memory_space<vmem>>, vector<32x16xbf16>
    tpu.vector_store %arg8[%c32_65, %c0_66], %110 {strides = array<i32>} : memref<288x16xbf16, #tpu.memory_space<vmem>>, vector<32x16xbf16>,
    %c0_67 = arith.constant 0 : index
    %c2_68 = arith.constant 2 : index
    %112 = vector.load %arg7[%c0_67, %c2_68] : memref<32x26xbf16, #tpu.memory_space<vmem>>, vector<32x16xbf16>
    %cst_69 = arith.constant 0.000000e+00 : bf16
    %113 = vector.broadcast %cst_69 : bf16 to vector<32x16xbf16>
    %114 = vector.shape_cast %103 : vector<1x16xi1> to vector<1x16xi1>
    %115 = vector.broadcast %114 : vector<1x16xi1> to vector<32x16xi1>
    %116 = arith.select %115, %112, %113 : vector<32x16xi1>, vector<32x16xbf16>
    %c64_70 = arith.constant 64 : index
    %c0_71 = arith.constant 0 : index
    %117 = vector.load %arg8[%c64_70, %c0_71] : memref<288x16xbf16, #tpu.memory_space<vmem>>, vector<32x16xbf16>
    tpu.vector_store %arg8[%c64_70, %c0_71], %116 {strides = array<i32>} : memref<288x16xbf16, #tpu.memory_space<vmem>>, vector<32x16xbf16>,
    %c0_72 = arith.constant 0 : index
    %c4_73 = arith.constant 4 : index
    %118 = vector.load %arg7[%c0_72, %c4_73] : memref<32x26xbf16, #tpu.memory_space<vmem>>, vector<32x16xbf16>
    %cst_74 = arith.constant 0.000000e+00 : bf16
    %119 = vector.broadcast %cst_74 : bf16 to vector<32x16xbf16>
    %120 = vector.shape_cast %101 : vector<1x16xi1> to vector<1x16xi1>
    %121 = vector.broadcast %120 : vector<1x16xi1> to vector<32x16xi1>
    %122 = arith.select %121, %118, %119 : vector<32x16xi1>, vector<32x16xbf16>
    %c96_75 = arith.constant 96 : index
    %c0_76 = arith.constant 0 : index
    %123 = vector.load %arg8[%c96_75, %c0_76] : memref<288x16xbf16, #tpu.memory_space<vmem>>, vector<32x16xbf16>
    tpu.vector_store %arg8[%c96_75, %c0_76], %122 {strides = array<i32>} : memref<288x16xbf16, #tpu.memory_space<vmem>>, vector<32x16xbf16>,
    %c0_77 = arith.constant 0 : index
    %c5_78 = arith.constant 5 : index
    %124 = vector.load %arg7[%c0_77, %c5_78] : memref<32x26xbf16, #tpu.memory_space<vmem>>, vector<32x16xbf16>
    %c128_79 = arith.constant 128 : index
    %c0_80 = arith.constant 0 : index
    %125 = vector.load %arg8[%c128_79, %c0_80] : memref<288x16xbf16, #tpu.memory_space<vmem>>, vector<32x16xbf16>
    tpu.vector_store %arg8[%c128_79, %c0_80], %124 {strides = array<i32>} : memref<288x16xbf16, #tpu.memory_space<vmem>>, vector<32x16xbf16>,
    %c0_81 = arith.constant 0 : index
    %c6_82 = arith.constant 6 : index
    %126 = vector.load %arg7[%c0_81, %c6_82] : memref<32x26xbf16, #tpu.memory_space<vmem>>, vector<32x16xbf16>
    %cst_83 = arith.constant 0.000000e+00 : bf16
    %127 = vector.broadcast %cst_83 : bf16 to vector<32x16xbf16>
    %128 = vector.shape_cast %103 : vector<1x16xi1> to vector<1x16xi1>
    %129 = vector.broadcast %128 : vector<1x16xi1> to vector<32x16xi1>
    %130 = arith.select %129, %126, %127 : vector<32x16xi1>, vector<32x16xbf16>
    %c160 = arith.constant 160 : index
    %c0_84 = arith.constant 0 : index
    %131 = vector.load %arg8[%c160, %c0_84] : memref<288x16xbf16, #tpu.memory_space<vmem>>, vector<32x16xbf16>
    tpu.vector_store %arg8[%c160, %c0_84], %130 {strides = array<i32>} : memref<288x16xbf16, #tpu.memory_space<vmem>>, vector<32x16xbf16>,
    %c0_85 = arith.constant 0 : index
    %c8_86 = arith.constant 8 : index
    %132 = vector.load %arg7[%c0_85, %c8_86] : memref<32x26xbf16, #tpu.memory_space<vmem>>, vector<32x16xbf16>
    %cst_87 = arith.constant 0.000000e+00 : bf16
    %133 = vector.broadcast %cst_87 : bf16 to vector<32x16xbf16>
    %134 = vector.shape_cast %101 : vector<1x16xi1> to vector<1x16xi1>
    %135 = vector.broadcast %134 : vector<1x16xi1> to vector<32x16xi1>
    %136 = arith.select %135, %132, %133 : vector<32x16xi1>, vector<32x16xbf16>
    %c192 = arith.constant 192 : index
    %c0_88 = arith.constant 0 : index
    %137 = vector.load %arg8[%c192, %c0_88] : memref<288x16xbf16, #tpu.memory_space<vmem>>, vector<32x16xbf16>
    tpu.vector_store %arg8[%c192, %c0_88], %136 {strides = array<i32>} : memref<288x16xbf16, #tpu.memory_space<vmem>>, vector<32x16xbf16>,
    %c0_89 = arith.constant 0 : index
    %c9_90 = arith.constant 9 : index
    %138 = vector.load %arg7[%c0_89, %c9_90] : memref<32x26xbf16, #tpu.memory_space<vmem>>, vector<32x16xbf16>
    %c224 = arith.constant 224 : index
    %c0_91 = arith.constant 0 : index
    %139 = vector.load %arg8[%c224, %c0_91] : memref<288x16xbf16, #tpu.memory_space<vmem>>, vector<32x16xbf16>
    tpu.vector_store %arg8[%c224, %c0_91], %138 {strides = array<i32>} : memref<288x16xbf16, #tpu.memory_space<vmem>>, vector<32x16xbf16>,
    %c0_92 = arith.constant 0 : index
    %c10_93 = arith.constant 10 : index
    %140 = vector.load %arg7[%c0_92, %c10_93] : memref<32x26xbf16, #tpu.memory_space<vmem>>, vector<32x16xbf16>
    %cst_94 = arith.constant 0.000000e+00 : bf16
    %141 = vector.broadcast %cst_94 : bf16 to vector<32x16xbf16>
    %142 = vector.shape_cast %103 : vector<1x16xi1> to vector<1x16xi1>
    %143 = vector.broadcast %142 : vector<1x16xi1> to vector<32x16xi1>
    %144 = arith.select %143, %140, %141 : vector<32x16xi1>, vector<32x16xbf16>
    %c256 = arith.constant 256 : index
    %c0_95 = arith.constant 0 : index
    %145 = vector.load %arg8[%c256, %c0_95] : memref<288x16xbf16, #tpu.memory_space<vmem>>, vector<32x16xbf16>
    tpu.vector_store %arg8[%c256, %c0_95], %144 {strides = array<i32>} : memref<288x16xbf16, #tpu.memory_space<vmem>>, vector<32x16xbf16>,
    %c0_96 = arith.constant 0 : index
    %c0_97 = arith.constant 0 : index
    %146 = vector.load %arg4[%c0_96, %c0_97] : memref<32x288xbf16, #tpu.memory_space<vmem>>, vector<32x288xbf16>
    %c0_98 = arith.constant 0 : index
    %c0_99 = arith.constant 0 : index
    %147 = vector.load %arg8[%c0_98, %c0_99] : memref<288x16xbf16, #tpu.memory_space<vmem>>, vector<288x16xbf16>
    %cst_100 = arith.constant dense<0.000000e+00> : vector<32x16xf32>
    %148 = tpu.matmul %146, %147, %cst_100 {dimension_numbers = #tpu.dot_dimension_numbers<[1], [0], [0], [1], [0, 0, 1, 1], [], []>} : vector<32x288xbf16>, vector<288x16xbf16>, vector<32x16xf32> -> vector<32x16xf32>
    %c0_101 = arith.constant 0 : index
    %c0_102 = arith.constant 0 : index
    %149 = vector.load %arg5[%c0_101, %c0_102] : memref<32x1xf32, #tpu.memory_space<vmem>>, vector<32x1xf32>
    %150 = vector.broadcast %149 : vector<32x1xf32> to vector<32x16xf32>
    %151 = arith.addf %148, %150 : vector<32x16xf32>
    %cst_103 = arith.constant 0.000000e+00 : f32
    %152 = vector.broadcast %cst_103 : f32 to vector<32x16xf32>
    %153 = arith.cmpf oge, %151, %152 : vector<32x16xf32>
    %cst_104 = arith.constant 1.000000e-01 : f32
    %154 = vector.broadcast %cst_104 : f32 to vector<32x16xf32>
    %155 = arith.mulf %154, %151 : vector<32x16xf32>
    %156 = arith.select %153, %151, %155 : vector<32x16xi1>, vector<32x16xf32>
    %157 = arith.truncf %156 : vector<32x16xf32> to vector<32x16xbf16>
    %c0_105 = arith.constant 0 : index
    %c0_106 = arith.constant 0 : index
    %c0_107 = arith.constant 0 : index
    %158 = vector.load %arg6[%c0_105, %c0_106, %c0_107] : memref<1x32x16xbf16, #tpu.memory_space<vmem>>, vector<1x32x16xbf16>
    %159 = vector.shape_cast %158 : vector<1x32x16xbf16> to vector<32x16xbf16>
    %160 = vector.shape_cast %157 : vector<32x16xbf16> to vector<1x32x16xbf16>
    tpu.vector_store %arg6[%c0_105, %c0_106, %c0_107], %160 {strides = array<i32>} : memref<1x32x16xbf16, #tpu.memory_space<vmem>>, vector<1x32x16xbf16>,
    return
  }
  func.func @transform_0(%arg0: i32) -> (i32, i32, i32) {
    %c0_i32 = arith.constant 0 : i32
    %c0_i32_0 = arith.constant 0 : i32
    %c0_i32_1 = arith.constant 0 : i32
    return %arg0, %c0_i32, %c0_i32_0 : i32, i32, i32
  }
  func.func @transform_1(%arg0: i32) -> (i32, i32) {
    %c0_i32 = arith.constant 0 : i32
    %c0_i32_0 = arith.constant 0 : i32
    %c0_i32_1 = arith.constant 0 : i32
    return %c0_i32, %c0_i32_0 : i32, i32
  }
  func.func @transform_2(%arg0: i32) -> (i32, i32) {
    %c0_i32 = arith.constant 0 : i32
    %c0_i32_0 = arith.constant 0 : i32
    %c0_i32_1 = arith.constant 0 : i32
    return %c0_i32, %c0_i32_0 : i32, i32
  }
  func.func @transform_3(%arg0: i32) -> (i32, i32) {
    %c0_i32 = arith.constant 0 : i32
    %c0_i32_0 = arith.constant 0 : i32
    %c0_i32_1 = arith.constant 0 : i32
    return %c0_i32, %c0_i32_0 : i32, i32
  }
  func.func @transform_4(%arg0: i32) -> (i32, i32) {
    %c0_i32 = arith.constant 0 : i32
    %c0_i32_0 = arith.constant 0 : i32
    %c0_i32_1 = arith.constant 0 : i32
    return %c0_i32, %c0_i32_0 : i32, i32
  }
  func.func @transform_5(%arg0: i32) -> (i32, i32, i32) {
    %c0_i32 = arith.constant 0 : i32
    %c0_i32_0 = arith.constant 0 : i32
    %c0_i32_1 = arith.constant 0 : i32
    return %arg0, %c0_i32, %c0_i32_0 : i32, i32, i32
  }
}

module attributes {stable_mosaic.version = 11 : i64} {
  func.func @_single_conv_kernel(%arg0: i32, %arg1: memref<1x32x16xbf16, #tpu.memory_space<vmem>>, %arg2: memref<32x288xbf16, #tpu.memory_space<vmem>>, %arg3: memref<32x1xf32, #tpu.memory_space<vmem>>, %arg4: memref<1x32x16xbf16, #tpu.memory_space<vmem>>, %arg5: memref<32x26xbf16, #tpu.memory_space<vmem>>, %arg6: memref<288x16xbf16, #tpu.memory_space<vmem>>) attributes {dimension_semantics = [#tpu.dimension_semantics<parallel>], iteration_bounds = array<i64: 2>, scalar_prefetch = 0 : i64, scratch_operands = 2 : i64, tpu.core_type = #tpu.core_type<tc>, window_params = [{transform_indices = @transform_0, window_bounds = array<i64: 1, 32, 16>}, {pipeline_mode = #tpu.pipeline_mode<synchronous>, transform_indices = @transform_1, window_bounds = array<i64: 32, 288>}, {pipeline_mode = #tpu.pipeline_mode<synchronous>, transform_indices = @transform_2, window_bounds = array<i64: 32, 1>}, {transform_indices = @transform_3, window_bounds = array<i64: 1, 32, 16>}]} {
    %c0 = arith.constant 0 : index
    %c0_0 = arith.constant 0 : index
    %c0_1 = arith.constant 0 : index
    %0 = vector.load %arg1[%c0, %c0_0, %c0_1] : memref<1x32x16xbf16, #tpu.memory_space<vmem>>, vector<1x32x16xbf16>
    %1 = vector.shape_cast %0 : vector<1x32x16xbf16> to vector<32x16xbf16>
    %cst = arith.constant 0.000000e+00 : bf16
    %2 = vector.broadcast %cst : bf16 to vector<32x26xbf16>
    %c0_2 = arith.constant 0 : index
    %c0_3 = arith.constant 0 : index
    %3 = vector.load %arg5[%c0_2, %c0_3] : memref<32x26xbf16, #tpu.memory_space<vmem>>, vector<32x26xbf16>
    tpu.vector_store %arg5[%c0_2, %c0_3], %2 {strides = array<i32>} : memref<32x26xbf16, #tpu.memory_space<vmem>>, vector<32x26xbf16>,
    %c0_4 = arith.constant 0 : index
    %c5 = arith.constant 5 : index
    %4 = vector.load %arg5[%c0_4, %c5] : memref<32x26xbf16, #tpu.memory_space<vmem>>, vector<32x16xbf16>
    tpu.vector_store %arg5[%c0_4, %c5], %1 {strides = array<i32>} : memref<32x26xbf16, #tpu.memory_space<vmem>>, vector<32x16xbf16>,
    %5 = tpu.iota {dimensions = array<i32: 1>} : vector<1x16xi32>
    %c4_i32 = arith.constant 4 : i32
    %c0_i32 = arith.constant 0 : i32
    %6 = arith.cmpi eq, %c4_i32, %c0_i32 : i32
    %c1_i32 = arith.constant 1 : i32
    %7 = arith.select %6, %c1_i32, %c4_i32 : i32
    %8 = vector.broadcast %7 : i32 to vector<1x16xi32>
    %9 = arith.remsi %5, %8 : vector<1x16xi32>
    %c0_i32_5 = arith.constant 0 : i32
    %10 = vector.broadcast %c0_i32_5 : i32 to vector<1x16xi32>
    %11 = arith.cmpi ne, %9, %10 : vector<1x16xi32>
    %c0_i32_6 = arith.constant 0 : i32
    %12 = vector.broadcast %c0_i32_6 : i32 to vector<1x16xi32>
    %13 = arith.cmpi slt, %9, %12 : vector<1x16xi32>
    %c0_i32_7 = arith.constant 0 : i32
    %14 = arith.cmpi slt, %7, %c0_i32_7 : i32
    %15 = vector.broadcast %14 : i1 to vector<1x16xi1>
    %16 = vector.broadcast %15 : vector<1x16xi1> to vector<1x16xi1>
    %17 = arith.xori %13, %16 : vector<1x16xi1>
    %18 = arith.andi %17, %11 : vector<1x16xi1>
    %19 = vector.broadcast %7 : i32 to vector<1x16xi32>
    %20 = arith.addi %9, %19 : vector<1x16xi32>
    %21 = arith.select %18, %20, %9 : vector<1x16xi1>, vector<1x16xi32>
    %c1_i32_8 = arith.constant 1 : i32
    %22 = vector.broadcast %c1_i32_8 : i32 to vector<1x16xi32>
    %23 = arith.cmpi sge, %21, %22 : vector<1x16xi32>
    %c3_i32 = arith.constant 3 : i32
    %24 = vector.broadcast %c3_i32 : i32 to vector<1x16xi32>
    %25 = arith.cmpi slt, %21, %24 : vector<1x16xi32>
    %c0_9 = arith.constant 0 : index
    %c0_10 = arith.constant 0 : index
    %26 = vector.load %arg5[%c0_9, %c0_10] : memref<32x26xbf16, #tpu.memory_space<vmem>>, vector<32x16xbf16>
    %cst_11 = arith.constant 0.000000e+00 : bf16
    %27 = vector.broadcast %cst_11 : bf16 to vector<32x16xbf16>
    %28 = vector.shape_cast %23 : vector<1x16xi1> to vector<1x16xi1>
    %29 = vector.broadcast %28 : vector<1x16xi1> to vector<32x16xi1>
    %30 = arith.select %29, %26, %27 : vector<32x16xi1>, vector<32x16xbf16>
    %c0_12 = arith.constant 0 : index
    %c0_13 = arith.constant 0 : index
    %31 = vector.load %arg6[%c0_12, %c0_13] : memref<288x16xbf16, #tpu.memory_space<vmem>>, vector<32x16xbf16>
    tpu.vector_store %arg6[%c0_12, %c0_13], %30 {strides = array<i32>} : memref<288x16xbf16, #tpu.memory_space<vmem>>, vector<32x16xbf16>,
    %c0_14 = arith.constant 0 : index
    %c1 = arith.constant 1 : index
    %32 = vector.load %arg5[%c0_14, %c1] : memref<32x26xbf16, #tpu.memory_space<vmem>>, vector<32x16xbf16>
    %c32 = arith.constant 32 : index
    %c0_15 = arith.constant 0 : index
    %33 = vector.load %arg6[%c32, %c0_15] : memref<288x16xbf16, #tpu.memory_space<vmem>>, vector<32x16xbf16>
    tpu.vector_store %arg6[%c32, %c0_15], %32 {strides = array<i32>} : memref<288x16xbf16, #tpu.memory_space<vmem>>, vector<32x16xbf16>,
    %c0_16 = arith.constant 0 : index
    %c2 = arith.constant 2 : index
    %34 = vector.load %arg5[%c0_16, %c2] : memref<32x26xbf16, #tpu.memory_space<vmem>>, vector<32x16xbf16>
    %cst_17 = arith.constant 0.000000e+00 : bf16
    %35 = vector.broadcast %cst_17 : bf16 to vector<32x16xbf16>
    %36 = vector.shape_cast %25 : vector<1x16xi1> to vector<1x16xi1>
    %37 = vector.broadcast %36 : vector<1x16xi1> to vector<32x16xi1>
    %38 = arith.select %37, %34, %35 : vector<32x16xi1>, vector<32x16xbf16>
    %c64 = arith.constant 64 : index
    %c0_18 = arith.constant 0 : index
    %39 = vector.load %arg6[%c64, %c0_18] : memref<288x16xbf16, #tpu.memory_space<vmem>>, vector<32x16xbf16>
    tpu.vector_store %arg6[%c64, %c0_18], %38 {strides = array<i32>} : memref<288x16xbf16, #tpu.memory_space<vmem>>, vector<32x16xbf16>,
    %c0_19 = arith.constant 0 : index
    %c4 = arith.constant 4 : index
    %40 = vector.load %arg5[%c0_19, %c4] : memref<32x26xbf16, #tpu.memory_space<vmem>>, vector<32x16xbf16>
    %cst_20 = arith.constant 0.000000e+00 : bf16
    %41 = vector.broadcast %cst_20 : bf16 to vector<32x16xbf16>
    %42 = vector.shape_cast %23 : vector<1x16xi1> to vector<1x16xi1>
    %43 = vector.broadcast %42 : vector<1x16xi1> to vector<32x16xi1>
    %44 = arith.select %43, %40, %41 : vector<32x16xi1>, vector<32x16xbf16>
    %c96 = arith.constant 96 : index
    %c0_21 = arith.constant 0 : index
    %45 = vector.load %arg6[%c96, %c0_21] : memref<288x16xbf16, #tpu.memory_space<vmem>>, vector<32x16xbf16>
    tpu.vector_store %arg6[%c96, %c0_21], %44 {strides = array<i32>} : memref<288x16xbf16, #tpu.memory_space<vmem>>, vector<32x16xbf16>,
    %c0_22 = arith.constant 0 : index
    %c5_23 = arith.constant 5 : index
    %46 = vector.load %arg5[%c0_22, %c5_23] : memref<32x26xbf16, #tpu.memory_space<vmem>>, vector<32x16xbf16>
    %c128 = arith.constant 128 : index
    %c0_24 = arith.constant 0 : index
    %47 = vector.load %arg6[%c128, %c0_24] : memref<288x16xbf16, #tpu.memory_space<vmem>>, vector<32x16xbf16>
    tpu.vector_store %arg6[%c128, %c0_24], %46 {strides = array<i32>} : memref<288x16xbf16, #tpu.memory_space<vmem>>, vector<32x16xbf16>,
    %c0_25 = arith.constant 0 : index
    %c6 = arith.constant 6 : index
    %48 = vector.load %arg5[%c0_25, %c6] : memref<32x26xbf16, #tpu.memory_space<vmem>>, vector<32x16xbf16>
    %cst_26 = arith.constant 0.000000e+00 : bf16
    %49 = vector.broadcast %cst_26 : bf16 to vector<32x16xbf16>
    %50 = vector.shape_cast %25 : vector<1x16xi1> to vector<1x16xi1>
    %51 = vector.broadcast %50 : vector<1x16xi1> to vector<32x16xi1>
    %52 = arith.select %51, %48, %49 : vector<32x16xi1>, vector<32x16xbf16>
    %c160 = arith.constant 160 : index
    %c0_27 = arith.constant 0 : index
    %53 = vector.load %arg6[%c160, %c0_27] : memref<288x16xbf16, #tpu.memory_space<vmem>>, vector<32x16xbf16>
    tpu.vector_store %arg6[%c160, %c0_27], %52 {strides = array<i32>} : memref<288x16xbf16, #tpu.memory_space<vmem>>, vector<32x16xbf16>,
    %c0_28 = arith.constant 0 : index
    %c8 = arith.constant 8 : index
    %54 = vector.load %arg5[%c0_28, %c8] : memref<32x26xbf16, #tpu.memory_space<vmem>>, vector<32x16xbf16>
    %cst_29 = arith.constant 0.000000e+00 : bf16
    %55 = vector.broadcast %cst_29 : bf16 to vector<32x16xbf16>
    %56 = vector.shape_cast %23 : vector<1x16xi1> to vector<1x16xi1>
    %57 = vector.broadcast %56 : vector<1x16xi1> to vector<32x16xi1>
    %58 = arith.select %57, %54, %55 : vector<32x16xi1>, vector<32x16xbf16>
    %c192 = arith.constant 192 : index
    %c0_30 = arith.constant 0 : index
    %59 = vector.load %arg6[%c192, %c0_30] : memref<288x16xbf16, #tpu.memory_space<vmem>>, vector<32x16xbf16>
    tpu.vector_store %arg6[%c192, %c0_30], %58 {strides = array<i32>} : memref<288x16xbf16, #tpu.memory_space<vmem>>, vector<32x16xbf16>,
    %c0_31 = arith.constant 0 : index
    %c9 = arith.constant 9 : index
    %60 = vector.load %arg5[%c0_31, %c9] : memref<32x26xbf16, #tpu.memory_space<vmem>>, vector<32x16xbf16>
    %c224 = arith.constant 224 : index
    %c0_32 = arith.constant 0 : index
    %61 = vector.load %arg6[%c224, %c0_32] : memref<288x16xbf16, #tpu.memory_space<vmem>>, vector<32x16xbf16>
    tpu.vector_store %arg6[%c224, %c0_32], %60 {strides = array<i32>} : memref<288x16xbf16, #tpu.memory_space<vmem>>, vector<32x16xbf16>,
    %c0_33 = arith.constant 0 : index
    %c10 = arith.constant 10 : index
    %62 = vector.load %arg5[%c0_33, %c10] : memref<32x26xbf16, #tpu.memory_space<vmem>>, vector<32x16xbf16>
    %cst_34 = arith.constant 0.000000e+00 : bf16
    %63 = vector.broadcast %cst_34 : bf16 to vector<32x16xbf16>
    %64 = vector.shape_cast %25 : vector<1x16xi1> to vector<1x16xi1>
    %65 = vector.broadcast %64 : vector<1x16xi1> to vector<32x16xi1>
    %66 = arith.select %65, %62, %63 : vector<32x16xi1>, vector<32x16xbf16>
    %c256 = arith.constant 256 : index
    %c0_35 = arith.constant 0 : index
    %67 = vector.load %arg6[%c256, %c0_35] : memref<288x16xbf16, #tpu.memory_space<vmem>>, vector<32x16xbf16>
    tpu.vector_store %arg6[%c256, %c0_35], %66 {strides = array<i32>} : memref<288x16xbf16, #tpu.memory_space<vmem>>, vector<32x16xbf16>,
    %c0_36 = arith.constant 0 : index
    %c0_37 = arith.constant 0 : index
    %68 = vector.load %arg2[%c0_36, %c0_37] : memref<32x288xbf16, #tpu.memory_space<vmem>>, vector<32x288xbf16>
    %c0_38 = arith.constant 0 : index
    %c0_39 = arith.constant 0 : index
    %69 = vector.load %arg6[%c0_38, %c0_39] : memref<288x16xbf16, #tpu.memory_space<vmem>>, vector<288x16xbf16>
    %cst_40 = arith.constant dense<0.000000e+00> : vector<32x16xf32>
    %70 = tpu.matmul %68, %69, %cst_40 {dimension_numbers = #tpu.dot_dimension_numbers<[1], [0], [0], [1], [0, 0, 1, 1], [], []>} : vector<32x288xbf16>, vector<288x16xbf16>, vector<32x16xf32> -> vector<32x16xf32>
    %c0_41 = arith.constant 0 : index
    %c0_42 = arith.constant 0 : index
    %71 = vector.load %arg3[%c0_41, %c0_42] : memref<32x1xf32, #tpu.memory_space<vmem>>, vector<32x1xf32>
    %72 = vector.broadcast %71 : vector<32x1xf32> to vector<32x16xf32>
    %73 = arith.addf %70, %72 : vector<32x16xf32>
    %cst_43 = arith.constant 0.000000e+00 : f32
    %74 = vector.broadcast %cst_43 : f32 to vector<32x16xf32>
    %75 = arith.cmpf oge, %73, %74 : vector<32x16xf32>
    %cst_44 = arith.constant 1.000000e-01 : f32
    %76 = vector.broadcast %cst_44 : f32 to vector<32x16xf32>
    %77 = arith.mulf %76, %73 : vector<32x16xf32>
    %78 = arith.select %75, %73, %77 : vector<32x16xi1>, vector<32x16xf32>
    %79 = arith.truncf %78 : vector<32x16xf32> to vector<32x16xbf16>
    %c0_45 = arith.constant 0 : index
    %c0_46 = arith.constant 0 : index
    %c0_47 = arith.constant 0 : index
    %80 = vector.load %arg4[%c0_45, %c0_46, %c0_47] : memref<1x32x16xbf16, #tpu.memory_space<vmem>>, vector<1x32x16xbf16>
    %81 = vector.shape_cast %80 : vector<1x32x16xbf16> to vector<32x16xbf16>
    %82 = vector.shape_cast %79 : vector<32x16xbf16> to vector<1x32x16xbf16>
    tpu.vector_store %arg4[%c0_45, %c0_46, %c0_47], %82 {strides = array<i32>} : memref<1x32x16xbf16, #tpu.memory_space<vmem>>, vector<1x32x16xbf16>,
    return
  }
  func.func @transform_0(%arg0: i32) -> (i32, i32, i32) {
    %c0_i32 = arith.constant 0 : i32
    %c0_i32_0 = arith.constant 0 : i32
    %c0_i32_1 = arith.constant 0 : i32
    return %arg0, %c0_i32, %c0_i32_0 : i32, i32, i32
  }
  func.func @transform_1(%arg0: i32) -> (i32, i32) {
    %c0_i32 = arith.constant 0 : i32
    %c0_i32_0 = arith.constant 0 : i32
    %c0_i32_1 = arith.constant 0 : i32
    return %c0_i32, %c0_i32_0 : i32, i32
  }
  func.func @transform_2(%arg0: i32) -> (i32, i32) {
    %c0_i32 = arith.constant 0 : i32
    %c0_i32_0 = arith.constant 0 : i32
    %c0_i32_1 = arith.constant 0 : i32
    return %c0_i32, %c0_i32_0 : i32, i32
  }
  func.func @transform_3(%arg0: i32) -> (i32, i32, i32) {
    %c0_i32 = arith.constant 0 : i32
    %c0_i32_0 = arith.constant 0 : i32
    %c0_i32_1 = arith.constant 0 : i32
    return %arg0, %c0_i32, %c0_i32_0 : i32, i32, i32
  }
}

module attributes {stable_mosaic.version = 11 : i64} {
  func.func @_up_block_kernel(%arg0: i32, %arg1: memref<1x32x64xbf16, #tpu.memory_space<vmem>>, %arg2: memref<1x16x64xbf16, #tpu.memory_space<vmem>>, %arg3: memref<16x288xbf16, #tpu.memory_space<vmem>>, %arg4: memref<16x1xf32, #tpu.memory_space<vmem>>, %arg5: memref<16x288xbf16, #tpu.memory_space<vmem>>, %arg6: memref<16x1xf32, #tpu.memory_space<vmem>>, %arg7: memref<16x144xbf16, #tpu.memory_space<vmem>>, %arg8: memref<16x1xf32, #tpu.memory_space<vmem>>, %arg9: memref<1x16x64xbf16, #tpu.memory_space<vmem>>, %arg10: memref<32x82xbf16, #tpu.memory_space<vmem>>, %arg11: memref<288x64xbf16, #tpu.memory_space<vmem>>) attributes {dimension_semantics = [#tpu.dimension_semantics<parallel>], iteration_bounds = array<i64: 2>, scalar_prefetch = 0 : i64, scratch_operands = 2 : i64, tpu.core_type = #tpu.core_type<tc>, window_params = [{transform_indices = @transform_0, window_bounds = array<i64: 1, 32, 64>}, {transform_indices = @transform_1, window_bounds = array<i64: 1, 16, 64>}, {pipeline_mode = #tpu.pipeline_mode<synchronous>, transform_indices = @transform_2, window_bounds = array<i64: 16, 288>}, {pipeline_mode = #tpu.pipeline_mode<synchronous>, transform_indices = @transform_3, window_bounds = array<i64: 16, 1>}, {pipeline_mode = #tpu.pipeline_mode<synchronous>, transform_indices = @transform_4, window_bounds = array<i64: 16, 288>}, {pipeline_mode = #tpu.pipeline_mode<synchronous>, transform_indices = @transform_5, window_bounds = array<i64: 16, 1>}, {pipeline_mode = #tpu.pipeline_mode<synchronous>, transform_indices = @transform_6, window_bounds = array<i64: 16, 144>}, {pipeline_mode = #tpu.pipeline_mode<synchronous>, transform_indices = @transform_7, window_bounds = array<i64: 16, 1>}, {transform_indices = @transform_8, window_bounds = array<i64: 1, 16, 64>}]} {
    %c0 = arith.constant 0 : index
    %c0_0 = arith.constant 0 : index
    %c0_1 = arith.constant 0 : index
    %0 = vector.load %arg1[%c0, %c0_0, %c0_1] : memref<1x32x64xbf16, #tpu.memory_space<vmem>>, vector<1x32x64xbf16>
    %1 = vector.shape_cast %0 : vector<1x32x64xbf16> to vector<32x64xbf16>
    %cst = arith.constant 0.000000e+00 : bf16
    %2 = vector.broadcast %cst : bf16 to vector<32x82xbf16>
    %c0_2 = arith.constant 0 : index
    %c0_3 = arith.constant 0 : index
    %3 = vector.load %arg10[%c0_2, %c0_3] : memref<32x82xbf16, #tpu.memory_space<vmem>>, vector<32x82xbf16>
    tpu.vector_store %arg10[%c0_2, %c0_3], %2 {strides = array<i32>} : memref<32x82xbf16, #tpu.memory_space<vmem>>, vector<32x82xbf16>,
    %c0_4 = arith.constant 0 : index
    %c9 = arith.constant 9 : index
    %4 = vector.load %arg10[%c0_4, %c9] : memref<32x82xbf16, #tpu.memory_space<vmem>>, vector<32x64xbf16>
    tpu.vector_store %arg10[%c0_4, %c9], %1 {strides = array<i32>} : memref<32x82xbf16, #tpu.memory_space<vmem>>, vector<32x64xbf16>,
    %5 = tpu.iota {dimensions = array<i32: 1>} : vector<1x64xi32>
    %c8_i32 = arith.constant 8 : i32
    %c0_i32 = arith.constant 0 : i32
    %6 = arith.cmpi eq, %c8_i32, %c0_i32 : i32
    %c1_i32 = arith.constant 1 : i32
    %7 = arith.select %6, %c1_i32, %c8_i32 : i32
    %8 = vector.broadcast %7 : i32 to vector<1x64xi32>
    %9 = arith.remsi %5, %8 : vector<1x64xi32>
    %c0_i32_5 = arith.constant 0 : i32
    %10 = vector.broadcast %c0_i32_5 : i32 to vector<1x64xi32>
    %11 = arith.cmpi ne, %9, %10 : vector<1x64xi32>
    %c0_i32_6 = arith.constant 0 : i32
    %12 = vector.broadcast %c0_i32_6 : i32 to vector<1x64xi32>
    %13 = arith.cmpi slt, %9, %12 : vector<1x64xi32>
    %c0_i32_7 = arith.constant 0 : i32
    %14 = arith.cmpi slt, %7, %c0_i32_7 : i32
    %15 = vector.broadcast %14 : i1 to vector<1x64xi1>
    %16 = vector.broadcast %15 : vector<1x64xi1> to vector<1x64xi1>
    %17 = arith.xori %13, %16 : vector<1x64xi1>
    %18 = arith.andi %17, %11 : vector<1x64xi1>
    %19 = vector.broadcast %7 : i32 to vector<1x64xi32>
    %20 = arith.addi %9, %19 : vector<1x64xi32>
    %21 = arith.select %18, %20, %9 : vector<1x64xi1>, vector<1x64xi32>
    %c1_i32_8 = arith.constant 1 : i32
    %22 = vector.broadcast %c1_i32_8 : i32 to vector<1x64xi32>
    %23 = arith.cmpi sge, %21, %22 : vector<1x64xi32>
    %c7_i32 = arith.constant 7 : i32
    %24 = vector.broadcast %c7_i32 : i32 to vector<1x64xi32>
    %25 = arith.cmpi slt, %21, %24 : vector<1x64xi32>
    %c0_9 = arith.constant 0 : index
    %c0_10 = arith.constant 0 : index
    %26 = vector.load %arg10[%c0_9, %c0_10] : memref<32x82xbf16, #tpu.memory_space<vmem>>, vector<32x64xbf16>
    %cst_11 = arith.constant 0.000000e+00 : bf16
    %27 = vector.broadcast %cst_11 : bf16 to vector<32x64xbf16>
    %28 = vector.shape_cast %23 : vector<1x64xi1> to vector<1x64xi1>
    %29 = vector.broadcast %28 : vector<1x64xi1> to vector<32x64xi1>
    %30 = arith.select %29, %26, %27 : vector<32x64xi1>, vector<32x64xbf16>
    %c0_12 = arith.constant 0 : index
    %c0_13 = arith.constant 0 : index
    %31 = vector.load %arg11[%c0_12, %c0_13] : memref<288x64xbf16, #tpu.memory_space<vmem>>, vector<32x64xbf16>
    tpu.vector_store %arg11[%c0_12, %c0_13], %30 {strides = array<i32>} : memref<288x64xbf16, #tpu.memory_space<vmem>>, vector<32x64xbf16>,
    %c0_14 = arith.constant 0 : index
    %c1 = arith.constant 1 : index
    %32 = vector.load %arg10[%c0_14, %c1] : memref<32x82xbf16, #tpu.memory_space<vmem>>, vector<32x64xbf16>
    %c32 = arith.constant 32 : index
    %c0_15 = arith.constant 0 : index
    %33 = vector.load %arg11[%c32, %c0_15] : memref<288x64xbf16, #tpu.memory_space<vmem>>, vector<32x64xbf16>
    tpu.vector_store %arg11[%c32, %c0_15], %32 {strides = array<i32>} : memref<288x64xbf16, #tpu.memory_space<vmem>>, vector<32x64xbf16>,
    %c0_16 = arith.constant 0 : index
    %c2 = arith.constant 2 : index
    %34 = vector.load %arg10[%c0_16, %c2] : memref<32x82xbf16, #tpu.memory_space<vmem>>, vector<32x64xbf16>
    %cst_17 = arith.constant 0.000000e+00 : bf16
    %35 = vector.broadcast %cst_17 : bf16 to vector<32x64xbf16>
    %36 = vector.shape_cast %25 : vector<1x64xi1> to vector<1x64xi1>
    %37 = vector.broadcast %36 : vector<1x64xi1> to vector<32x64xi1>
    %38 = arith.select %37, %34, %35 : vector<32x64xi1>, vector<32x64xbf16>
    %c64 = arith.constant 64 : index
    %c0_18 = arith.constant 0 : index
    %39 = vector.load %arg11[%c64, %c0_18] : memref<288x64xbf16, #tpu.memory_space<vmem>>, vector<32x64xbf16>
    tpu.vector_store %arg11[%c64, %c0_18], %38 {strides = array<i32>} : memref<288x64xbf16, #tpu.memory_space<vmem>>, vector<32x64xbf16>,
    %c0_19 = arith.constant 0 : index
    %c8 = arith.constant 8 : index
    %40 = vector.load %arg10[%c0_19, %c8] : memref<32x82xbf16, #tpu.memory_space<vmem>>, vector<32x64xbf16>
    %cst_20 = arith.constant 0.000000e+00 : bf16
    %41 = vector.broadcast %cst_20 : bf16 to vector<32x64xbf16>
    %42 = vector.shape_cast %23 : vector<1x64xi1> to vector<1x64xi1>
    %43 = vector.broadcast %42 : vector<1x64xi1> to vector<32x64xi1>
    %44 = arith.select %43, %40, %41 : vector<32x64xi1>, vector<32x64xbf16>
    %c96 = arith.constant 96 : index
    %c0_21 = arith.constant 0 : index
    %45 = vector.load %arg11[%c96, %c0_21] : memref<288x64xbf16, #tpu.memory_space<vmem>>, vector<32x64xbf16>
    tpu.vector_store %arg11[%c96, %c0_21], %44 {strides = array<i32>} : memref<288x64xbf16, #tpu.memory_space<vmem>>, vector<32x64xbf16>,
    %c0_22 = arith.constant 0 : index
    %c9_23 = arith.constant 9 : index
    %46 = vector.load %arg10[%c0_22, %c9_23] : memref<32x82xbf16, #tpu.memory_space<vmem>>, vector<32x64xbf16>
    %c128 = arith.constant 128 : index
    %c0_24 = arith.constant 0 : index
    %47 = vector.load %arg11[%c128, %c0_24] : memref<288x64xbf16, #tpu.memory_space<vmem>>, vector<32x64xbf16>
    tpu.vector_store %arg11[%c128, %c0_24], %46 {strides = array<i32>} : memref<288x64xbf16, #tpu.memory_space<vmem>>, vector<32x64xbf16>,
    %c0_25 = arith.constant 0 : index
    %c10 = arith.constant 10 : index
    %48 = vector.load %arg10[%c0_25, %c10] : memref<32x82xbf16, #tpu.memory_space<vmem>>, vector<32x64xbf16>
    %cst_26 = arith.constant 0.000000e+00 : bf16
    %49 = vector.broadcast %cst_26 : bf16 to vector<32x64xbf16>
    %50 = vector.shape_cast %25 : vector<1x64xi1> to vector<1x64xi1>
    %51 = vector.broadcast %50 : vector<1x64xi1> to vector<32x64xi1>
    %52 = arith.select %51, %48, %49 : vector<32x64xi1>, vector<32x64xbf16>
    %c160 = arith.constant 160 : index
    %c0_27 = arith.constant 0 : index
    %53 = vector.load %arg11[%c160, %c0_27] : memref<288x64xbf16, #tpu.memory_space<vmem>>, vector<32x64xbf16>
    tpu.vector_store %arg11[%c160, %c0_27], %52 {strides = array<i32>} : memref<288x64xbf16, #tpu.memory_space<vmem>>, vector<32x64xbf16>,
    %c0_28 = arith.constant 0 : index
    %c16 = arith.constant 16 : index
    %54 = vector.load %arg10[%c0_28, %c16] : memref<32x82xbf16, #tpu.memory_space<vmem>>, vector<32x64xbf16>
    %cst_29 = arith.constant 0.000000e+00 : bf16
    %55 = vector.broadcast %cst_29 : bf16 to vector<32x64xbf16>
    %56 = vector.shape_cast %23 : vector<1x64xi1> to vector<1x64xi1>
    %57 = vector.broadcast %56 : vector<1x64xi1> to vector<32x64xi1>
    %58 = arith.select %57, %54, %55 : vector<32x64xi1>, vector<32x64xbf16>
    %c192 = arith.constant 192 : index
    %c0_30 = arith.constant 0 : index
    %59 = vector.load %arg11[%c192, %c0_30] : memref<288x64xbf16, #tpu.memory_space<vmem>>, vector<32x64xbf16>
    tpu.vector_store %arg11[%c192, %c0_30], %58 {strides = array<i32>} : memref<288x64xbf16, #tpu.memory_space<vmem>>, vector<32x64xbf16>,
    %c0_31 = arith.constant 0 : index
    %c17 = arith.constant 17 : index
    %60 = vector.load %arg10[%c0_31, %c17] : memref<32x82xbf16, #tpu.memory_space<vmem>>, vector<32x64xbf16>
    %c224 = arith.constant 224 : index
    %c0_32 = arith.constant 0 : index
    %61 = vector.load %arg11[%c224, %c0_32] : memref<288x64xbf16, #tpu.memory_space<vmem>>, vector<32x64xbf16>
    tpu.vector_store %arg11[%c224, %c0_32], %60 {strides = array<i32>} : memref<288x64xbf16, #tpu.memory_space<vmem>>, vector<32x64xbf16>,
    %c0_33 = arith.constant 0 : index
    %c18 = arith.constant 18 : index
    %62 = vector.load %arg10[%c0_33, %c18] : memref<32x82xbf16, #tpu.memory_space<vmem>>, vector<32x64xbf16>
    %cst_34 = arith.constant 0.000000e+00 : bf16
    %63 = vector.broadcast %cst_34 : bf16 to vector<32x64xbf16>
    %64 = vector.shape_cast %25 : vector<1x64xi1> to vector<1x64xi1>
    %65 = vector.broadcast %64 : vector<1x64xi1> to vector<32x64xi1>
    %66 = arith.select %65, %62, %63 : vector<32x64xi1>, vector<32x64xbf16>
    %c256 = arith.constant 256 : index
    %c0_35 = arith.constant 0 : index
    %67 = vector.load %arg11[%c256, %c0_35] : memref<288x64xbf16, #tpu.memory_space<vmem>>, vector<32x64xbf16>
    tpu.vector_store %arg11[%c256, %c0_35], %66 {strides = array<i32>} : memref<288x64xbf16, #tpu.memory_space<vmem>>, vector<32x64xbf16>,
    %c0_36 = arith.constant 0 : index
    %c0_37 = arith.constant 0 : index
    %68 = vector.load %arg3[%c0_36, %c0_37] : memref<16x288xbf16, #tpu.memory_space<vmem>>, vector<16x288xbf16>
    %c0_38 = arith.constant 0 : index
    %c0_39 = arith.constant 0 : index
    %69 = vector.load %arg11[%c0_38, %c0_39] : memref<288x64xbf16, #tpu.memory_space<vmem>>, vector<288x64xbf16>
    %cst_40 = arith.constant dense<0.000000e+00> : vector<16x64xf32>
    %70 = tpu.matmul %68, %69, %cst_40 {dimension_numbers = #tpu.dot_dimension_numbers<[1], [0], [0], [1], [0, 0, 1, 1], [], []>} : vector<16x288xbf16>, vector<288x64xbf16>, vector<16x64xf32> -> vector<16x64xf32>
    %c0_41 = arith.constant 0 : index
    %c0_42 = arith.constant 0 : index
    %71 = vector.load %arg4[%c0_41, %c0_42] : memref<16x1xf32, #tpu.memory_space<vmem>>, vector<16x1xf32>
    %72 = vector.broadcast %71 : vector<16x1xf32> to vector<16x64xf32>
    %73 = arith.addf %70, %72 : vector<16x64xf32>
    %cst_43 = arith.constant 0.000000e+00 : bf16
    %74 = vector.broadcast %cst_43 : bf16 to vector<16x82xbf16>
    %c0_44 = arith.constant 0 : index
    %c0_45 = arith.constant 0 : index
    %75 = vector.load %arg10[%c0_44, %c0_45] : memref<32x82xbf16, #tpu.memory_space<vmem>>, vector<16x82xbf16>
    tpu.vector_store %arg10[%c0_44, %c0_45], %74 {strides = array<i32>} : memref<32x82xbf16, #tpu.memory_space<vmem>>, vector<16x82xbf16>,
    %76 = arith.truncf %73 : vector<16x64xf32> to vector<16x64xbf16>
    %c0_46 = arith.constant 0 : index
    %c9_47 = arith.constant 9 : index
    %77 = vector.load %arg10[%c0_46, %c9_47] : memref<32x82xbf16, #tpu.memory_space<vmem>>, vector<16x64xbf16>
    tpu.vector_store %arg10[%c0_46, %c9_47], %76 {strides = array<i32>} : memref<32x82xbf16, #tpu.memory_space<vmem>>, vector<16x64xbf16>,
    %78 = tpu.iota {dimensions = array<i32: 1>} : vector<1x64xi32>
    %c8_i32_48 = arith.constant 8 : i32
    %c0_i32_49 = arith.constant 0 : i32
    %79 = arith.cmpi eq, %c8_i32_48, %c0_i32_49 : i32
    %c1_i32_50 = arith.constant 1 : i32
    %80 = arith.select %79, %c1_i32_50, %c8_i32_48 : i32
    %81 = vector.broadcast %80 : i32 to vector<1x64xi32>
    %82 = arith.remsi %78, %81 : vector<1x64xi32>
    %c0_i32_51 = arith.constant 0 : i32
    %83 = vector.broadcast %c0_i32_51 : i32 to vector<1x64xi32>
    %84 = arith.cmpi ne, %82, %83 : vector<1x64xi32>
    %c0_i32_52 = arith.constant 0 : i32
    %85 = vector.broadcast %c0_i32_52 : i32 to vector<1x64xi32>
    %86 = arith.cmpi slt, %82, %85 : vector<1x64xi32>
    %c0_i32_53 = arith.constant 0 : i32
    %87 = arith.cmpi slt, %80, %c0_i32_53 : i32
    %88 = vector.broadcast %87 : i1 to vector<1x64xi1>
    %89 = vector.broadcast %88 : vector<1x64xi1> to vector<1x64xi1>
    %90 = arith.xori %86, %89 : vector<1x64xi1>
    %91 = arith.andi %90, %84 : vector<1x64xi1>
    %92 = vector.broadcast %80 : i32 to vector<1x64xi32>
    %93 = arith.addi %82, %92 : vector<1x64xi32>
    %94 = arith.select %91, %93, %82 : vector<1x64xi1>, vector<1x64xi32>
    %c1_i32_54 = arith.constant 1 : i32
    %95 = vector.broadcast %c1_i32_54 : i32 to vector<1x64xi32>
    %96 = arith.cmpi sge, %94, %95 : vector<1x64xi32>
    %c7_i32_55 = arith.constant 7 : i32
    %97 = vector.broadcast %c7_i32_55 : i32 to vector<1x64xi32>
    %98 = arith.cmpi slt, %94, %97 : vector<1x64xi32>
    %c0_56 = arith.constant 0 : index
    %c0_57 = arith.constant 0 : index
    %99 = vector.load %arg10[%c0_56, %c0_57] : memref<32x82xbf16, #tpu.memory_space<vmem>>, vector<16x64xbf16>
    %cst_58 = arith.constant 0.000000e+00 : bf16
    %100 = vector.broadcast %cst_58 : bf16 to vector<16x64xbf16>
    %101 = vector.shape_cast %96 : vector<1x64xi1> to vector<1x64xi1>
    %102 = vector.broadcast %101 : vector<1x64xi1> to vector<16x64xi1>
    %103 = arith.select %102, %99, %100 : vector<16x64xi1>, vector<16x64xbf16>
    %c0_59 = arith.constant 0 : index
    %c0_60 = arith.constant 0 : index
    %104 = vector.load %arg11[%c0_59, %c0_60] : memref<288x64xbf16, #tpu.memory_space<vmem>>, vector<16x64xbf16>
    tpu.vector_store %arg11[%c0_59, %c0_60], %103 {strides = array<i32>} : memref<288x64xbf16, #tpu.memory_space<vmem>>, vector<16x64xbf16>,
    %c0_61 = arith.constant 0 : index
    %c1_62 = arith.constant 1 : index
    %105 = vector.load %arg10[%c0_61, %c1_62] : memref<32x82xbf16, #tpu.memory_space<vmem>>, vector<16x64xbf16>
    %c16_63 = arith.constant 16 : index
    %c0_64 = arith.constant 0 : index
    %106 = vector.load %arg11[%c16_63, %c0_64] : memref<288x64xbf16, #tpu.memory_space<vmem>>, vector<16x64xbf16>
    tpu.vector_store %arg11[%c16_63, %c0_64], %105 {strides = array<i32>} : memref<288x64xbf16, #tpu.memory_space<vmem>>, vector<16x64xbf16>,
    %c0_65 = arith.constant 0 : index
    %c2_66 = arith.constant 2 : index
    %107 = vector.load %arg10[%c0_65, %c2_66] : memref<32x82xbf16, #tpu.memory_space<vmem>>, vector<16x64xbf16>
    %cst_67 = arith.constant 0.000000e+00 : bf16
    %108 = vector.broadcast %cst_67 : bf16 to vector<16x64xbf16>
    %109 = vector.shape_cast %98 : vector<1x64xi1> to vector<1x64xi1>
    %110 = vector.broadcast %109 : vector<1x64xi1> to vector<16x64xi1>
    %111 = arith.select %110, %107, %108 : vector<16x64xi1>, vector<16x64xbf16>
    %c32_68 = arith.constant 32 : index
    %c0_69 = arith.constant 0 : index
    %112 = vector.load %arg11[%c32_68, %c0_69] : memref<288x64xbf16, #tpu.memory_space<vmem>>, vector<16x64xbf16>
    tpu.vector_store %arg11[%c32_68, %c0_69], %111 {strides = array<i32>} : memref<288x64xbf16, #tpu.memory_space<vmem>>, vector<16x64xbf16>,
    %c0_70 = arith.constant 0 : index
    %c8_71 = arith.constant 8 : index
    %113 = vector.load %arg10[%c0_70, %c8_71] : memref<32x82xbf16, #tpu.memory_space<vmem>>, vector<16x64xbf16>
    %cst_72 = arith.constant 0.000000e+00 : bf16
    %114 = vector.broadcast %cst_72 : bf16 to vector<16x64xbf16>
    %115 = vector.shape_cast %96 : vector<1x64xi1> to vector<1x64xi1>
    %116 = vector.broadcast %115 : vector<1x64xi1> to vector<16x64xi1>
    %117 = arith.select %116, %113, %114 : vector<16x64xi1>, vector<16x64xbf16>
    %c48 = arith.constant 48 : index
    %c0_73 = arith.constant 0 : index
    %118 = vector.load %arg11[%c48, %c0_73] : memref<288x64xbf16, #tpu.memory_space<vmem>>, vector<16x64xbf16>
    tpu.vector_store %arg11[%c48, %c0_73], %117 {strides = array<i32>} : memref<288x64xbf16, #tpu.memory_space<vmem>>, vector<16x64xbf16>,
    %c0_74 = arith.constant 0 : index
    %c9_75 = arith.constant 9 : index
    %119 = vector.load %arg10[%c0_74, %c9_75] : memref<32x82xbf16, #tpu.memory_space<vmem>>, vector<16x64xbf16>
    %c64_76 = arith.constant 64 : index
    %c0_77 = arith.constant 0 : index
    %120 = vector.load %arg11[%c64_76, %c0_77] : memref<288x64xbf16, #tpu.memory_space<vmem>>, vector<16x64xbf16>
    tpu.vector_store %arg11[%c64_76, %c0_77], %119 {strides = array<i32>} : memref<288x64xbf16, #tpu.memory_space<vmem>>, vector<16x64xbf16>,
    %c0_78 = arith.constant 0 : index
    %c10_79 = arith.constant 10 : index
    %121 = vector.load %arg10[%c0_78, %c10_79] : memref<32x82xbf16, #tpu.memory_space<vmem>>, vector<16x64xbf16>
    %cst_80 = arith.constant 0.000000e+00 : bf16
    %122 = vector.broadcast %cst_80 : bf16 to vector<16x64xbf16>
    %123 = vector.shape_cast %98 : vector<1x64xi1> to vector<1x64xi1>
    %124 = vector.broadcast %123 : vector<1x64xi1> to vector<16x64xi1>
    %125 = arith.select %124, %121, %122 : vector<16x64xi1>, vector<16x64xbf16>
    %c80 = arith.constant 80 : index
    %c0_81 = arith.constant 0 : index
    %126 = vector.load %arg11[%c80, %c0_81] : memref<288x64xbf16, #tpu.memory_space<vmem>>, vector<16x64xbf16>
    tpu.vector_store %arg11[%c80, %c0_81], %125 {strides = array<i32>} : memref<288x64xbf16, #tpu.memory_space<vmem>>, vector<16x64xbf16>,
    %c0_82 = arith.constant 0 : index
    %c16_83 = arith.constant 16 : index
    %127 = vector.load %arg10[%c0_82, %c16_83] : memref<32x82xbf16, #tpu.memory_space<vmem>>, vector<16x64xbf16>
    %cst_84 = arith.constant 0.000000e+00 : bf16
    %128 = vector.broadcast %cst_84 : bf16 to vector<16x64xbf16>
    %129 = vector.shape_cast %96 : vector<1x64xi1> to vector<1x64xi1>
    %130 = vector.broadcast %129 : vector<1x64xi1> to vector<16x64xi1>
    %131 = arith.select %130, %127, %128 : vector<16x64xi1>, vector<16x64xbf16>
    %c96_85 = arith.constant 96 : index
    %c0_86 = arith.constant 0 : index
    %132 = vector.load %arg11[%c96_85, %c0_86] : memref<288x64xbf16, #tpu.memory_space<vmem>>, vector<16x64xbf16>
    tpu.vector_store %arg11[%c96_85, %c0_86], %131 {strides = array<i32>} : memref<288x64xbf16, #tpu.memory_space<vmem>>, vector<16x64xbf16>,
    %c0_87 = arith.constant 0 : index
    %c17_88 = arith.constant 17 : index
    %133 = vector.load %arg10[%c0_87, %c17_88] : memref<32x82xbf16, #tpu.memory_space<vmem>>, vector<16x64xbf16>
    %c112 = arith.constant 112 : index
    %c0_89 = arith.constant 0 : index
    %134 = vector.load %arg11[%c112, %c0_89] : memref<288x64xbf16, #tpu.memory_space<vmem>>, vector<16x64xbf16>
    tpu.vector_store %arg11[%c112, %c0_89], %133 {strides = array<i32>} : memref<288x64xbf16, #tpu.memory_space<vmem>>, vector<16x64xbf16>,
    %c0_90 = arith.constant 0 : index
    %c18_91 = arith.constant 18 : index
    %135 = vector.load %arg10[%c0_90, %c18_91] : memref<32x82xbf16, #tpu.memory_space<vmem>>, vector<16x64xbf16>
    %cst_92 = arith.constant 0.000000e+00 : bf16
    %136 = vector.broadcast %cst_92 : bf16 to vector<16x64xbf16>
    %137 = vector.shape_cast %98 : vector<1x64xi1> to vector<1x64xi1>
    %138 = vector.broadcast %137 : vector<1x64xi1> to vector<16x64xi1>
    %139 = arith.select %138, %135, %136 : vector<16x64xi1>, vector<16x64xbf16>
    %c128_93 = arith.constant 128 : index
    %c0_94 = arith.constant 0 : index
    %140 = vector.load %arg11[%c128_93, %c0_94] : memref<288x64xbf16, #tpu.memory_space<vmem>>, vector<16x64xbf16>
    tpu.vector_store %arg11[%c128_93, %c0_94], %139 {strides = array<i32>} : memref<288x64xbf16, #tpu.memory_space<vmem>>, vector<16x64xbf16>,
    %c0_95 = arith.constant 0 : index
    %c0_96 = arith.constant 0 : index
    %c0_97 = arith.constant 0 : index
    %141 = vector.load %arg2[%c0_95, %c0_96, %c0_97] : memref<1x16x64xbf16, #tpu.memory_space<vmem>>, vector<1x16x64xbf16>
    %142 = vector.shape_cast %141 : vector<1x16x64xbf16> to vector<16x64xbf16>
    %cst_98 = arith.constant 0.000000e+00 : bf16
    %143 = vector.broadcast %cst_98 : bf16 to vector<16x82xbf16>
    %c0_99 = arith.constant 0 : index
    %c0_100 = arith.constant 0 : index
    %144 = vector.load %arg10[%c0_99, %c0_100] : memref<32x82xbf16, #tpu.memory_space<vmem>>, vector<16x82xbf16>
    tpu.vector_store %arg10[%c0_99, %c0_100], %143 {strides = array<i32>} : memref<32x82xbf16, #tpu.memory_space<vmem>>, vector<16x82xbf16>,
    %c0_101 = arith.constant 0 : index
    %c9_102 = arith.constant 9 : index
    %145 = vector.load %arg10[%c0_101, %c9_102] : memref<32x82xbf16, #tpu.memory_space<vmem>>, vector<16x64xbf16>
    tpu.vector_store %arg10[%c0_101, %c9_102], %142 {strides = array<i32>} : memref<32x82xbf16, #tpu.memory_space<vmem>>, vector<16x64xbf16>,
    %146 = tpu.iota {dimensions = array<i32: 1>} : vector<1x64xi32>
    %c8_i32_103 = arith.constant 8 : i32
    %c0_i32_104 = arith.constant 0 : i32
    %147 = arith.cmpi eq, %c8_i32_103, %c0_i32_104 : i32
    %c1_i32_105 = arith.constant 1 : i32
    %148 = arith.select %147, %c1_i32_105, %c8_i32_103 : i32
    %149 = vector.broadcast %148 : i32 to vector<1x64xi32>
    %150 = arith.remsi %146, %149 : vector<1x64xi32>
    %c0_i32_106 = arith.constant 0 : i32
    %151 = vector.broadcast %c0_i32_106 : i32 to vector<1x64xi32>
    %152 = arith.cmpi ne, %150, %151 : vector<1x64xi32>
    %c0_i32_107 = arith.constant 0 : i32
    %153 = vector.broadcast %c0_i32_107 : i32 to vector<1x64xi32>
    %154 = arith.cmpi slt, %150, %153 : vector<1x64xi32>
    %c0_i32_108 = arith.constant 0 : i32
    %155 = arith.cmpi slt, %148, %c0_i32_108 : i32
    %156 = vector.broadcast %155 : i1 to vector<1x64xi1>
    %157 = vector.broadcast %156 : vector<1x64xi1> to vector<1x64xi1>
    %158 = arith.xori %154, %157 : vector<1x64xi1>
    %159 = arith.andi %158, %152 : vector<1x64xi1>
    %160 = vector.broadcast %148 : i32 to vector<1x64xi32>
    %161 = arith.addi %150, %160 : vector<1x64xi32>
    %162 = arith.select %159, %161, %150 : vector<1x64xi1>, vector<1x64xi32>
    %c1_i32_109 = arith.constant 1 : i32
    %163 = vector.broadcast %c1_i32_109 : i32 to vector<1x64xi32>
    %164 = arith.cmpi sge, %162, %163 : vector<1x64xi32>
    %c7_i32_110 = arith.constant 7 : i32
    %165 = vector.broadcast %c7_i32_110 : i32 to vector<1x64xi32>
    %166 = arith.cmpi slt, %162, %165 : vector<1x64xi32>
    %c0_111 = arith.constant 0 : index
    %c0_112 = arith.constant 0 : index
    %167 = vector.load %arg10[%c0_111, %c0_112] : memref<32x82xbf16, #tpu.memory_space<vmem>>, vector<16x64xbf16>
    %cst_113 = arith.constant 0.000000e+00 : bf16
    %168 = vector.broadcast %cst_113 : bf16 to vector<16x64xbf16>
    %169 = vector.shape_cast %164 : vector<1x64xi1> to vector<1x64xi1>
    %170 = vector.broadcast %169 : vector<1x64xi1> to vector<16x64xi1>
    %171 = arith.select %170, %167, %168 : vector<16x64xi1>, vector<16x64xbf16>
    %c144 = arith.constant 144 : index
    %c0_114 = arith.constant 0 : index
    %172 = vector.load %arg11[%c144, %c0_114] : memref<288x64xbf16, #tpu.memory_space<vmem>>, vector<16x64xbf16>
    tpu.vector_store %arg11[%c144, %c0_114], %171 {strides = array<i32>} : memref<288x64xbf16, #tpu.memory_space<vmem>>, vector<16x64xbf16>,
    %c0_115 = arith.constant 0 : index
    %c1_116 = arith.constant 1 : index
    %173 = vector.load %arg10[%c0_115, %c1_116] : memref<32x82xbf16, #tpu.memory_space<vmem>>, vector<16x64xbf16>
    %c160_117 = arith.constant 160 : index
    %c0_118 = arith.constant 0 : index
    %174 = vector.load %arg11[%c160_117, %c0_118] : memref<288x64xbf16, #tpu.memory_space<vmem>>, vector<16x64xbf16>
    tpu.vector_store %arg11[%c160_117, %c0_118], %173 {strides = array<i32>} : memref<288x64xbf16, #tpu.memory_space<vmem>>, vector<16x64xbf16>,
    %c0_119 = arith.constant 0 : index
    %c2_120 = arith.constant 2 : index
    %175 = vector.load %arg10[%c0_119, %c2_120] : memref<32x82xbf16, #tpu.memory_space<vmem>>, vector<16x64xbf16>
    %cst_121 = arith.constant 0.000000e+00 : bf16
    %176 = vector.broadcast %cst_121 : bf16 to vector<16x64xbf16>
    %177 = vector.shape_cast %166 : vector<1x64xi1> to vector<1x64xi1>
    %178 = vector.broadcast %177 : vector<1x64xi1> to vector<16x64xi1>
    %179 = arith.select %178, %175, %176 : vector<16x64xi1>, vector<16x64xbf16>
    %c176 = arith.constant 176 : index
    %c0_122 = arith.constant 0 : index
    %180 = vector.load %arg11[%c176, %c0_122] : memref<288x64xbf16, #tpu.memory_space<vmem>>, vector<16x64xbf16>
    tpu.vector_store %arg11[%c176, %c0_122], %179 {strides = array<i32>} : memref<288x64xbf16, #tpu.memory_space<vmem>>, vector<16x64xbf16>,
    %c0_123 = arith.constant 0 : index
    %c8_124 = arith.constant 8 : index
    %181 = vector.load %arg10[%c0_123, %c8_124] : memref<32x82xbf16, #tpu.memory_space<vmem>>, vector<16x64xbf16>
    %cst_125 = arith.constant 0.000000e+00 : bf16
    %182 = vector.broadcast %cst_125 : bf16 to vector<16x64xbf16>
    %183 = vector.shape_cast %164 : vector<1x64xi1> to vector<1x64xi1>
    %184 = vector.broadcast %183 : vector<1x64xi1> to vector<16x64xi1>
    %185 = arith.select %184, %181, %182 : vector<16x64xi1>, vector<16x64xbf16>
    %c192_126 = arith.constant 192 : index
    %c0_127 = arith.constant 0 : index
    %186 = vector.load %arg11[%c192_126, %c0_127] : memref<288x64xbf16, #tpu.memory_space<vmem>>, vector<16x64xbf16>
    tpu.vector_store %arg11[%c192_126, %c0_127], %185 {strides = array<i32>} : memref<288x64xbf16, #tpu.memory_space<vmem>>, vector<16x64xbf16>,
    %c0_128 = arith.constant 0 : index
    %c9_129 = arith.constant 9 : index
    %187 = vector.load %arg10[%c0_128, %c9_129] : memref<32x82xbf16, #tpu.memory_space<vmem>>, vector<16x64xbf16>
    %c208 = arith.constant 208 : index
    %c0_130 = arith.constant 0 : index
    %188 = vector.load %arg11[%c208, %c0_130] : memref<288x64xbf16, #tpu.memory_space<vmem>>, vector<16x64xbf16>
    tpu.vector_store %arg11[%c208, %c0_130], %187 {strides = array<i32>} : memref<288x64xbf16, #tpu.memory_space<vmem>>, vector<16x64xbf16>,
    %c0_131 = arith.constant 0 : index
    %c10_132 = arith.constant 10 : index
    %189 = vector.load %arg10[%c0_131, %c10_132] : memref<32x82xbf16, #tpu.memory_space<vmem>>, vector<16x64xbf16>
    %cst_133 = arith.constant 0.000000e+00 : bf16
    %190 = vector.broadcast %cst_133 : bf16 to vector<16x64xbf16>
    %191 = vector.shape_cast %166 : vector<1x64xi1> to vector<1x64xi1>
    %192 = vector.broadcast %191 : vector<1x64xi1> to vector<16x64xi1>
    %193 = arith.select %192, %189, %190 : vector<16x64xi1>, vector<16x64xbf16>
    %c224_134 = arith.constant 224 : index
    %c0_135 = arith.constant 0 : index
    %194 = vector.load %arg11[%c224_134, %c0_135] : memref<288x64xbf16, #tpu.memory_space<vmem>>, vector<16x64xbf16>
    tpu.vector_store %arg11[%c224_134, %c0_135], %193 {strides = array<i32>} : memref<288x64xbf16, #tpu.memory_space<vmem>>, vector<16x64xbf16>,
    %c0_136 = arith.constant 0 : index
    %c16_137 = arith.constant 16 : index
    %195 = vector.load %arg10[%c0_136, %c16_137] : memref<32x82xbf16, #tpu.memory_space<vmem>>, vector<16x64xbf16>
    %cst_138 = arith.constant 0.000000e+00 : bf16
    %196 = vector.broadcast %cst_138 : bf16 to vector<16x64xbf16>
    %197 = vector.shape_cast %164 : vector<1x64xi1> to vector<1x64xi1>
    %198 = vector.broadcast %197 : vector<1x64xi1> to vector<16x64xi1>
    %199 = arith.select %198, %195, %196 : vector<16x64xi1>, vector<16x64xbf16>
    %c240 = arith.constant 240 : index
    %c0_139 = arith.constant 0 : index
    %200 = vector.load %arg11[%c240, %c0_139] : memref<288x64xbf16, #tpu.memory_space<vmem>>, vector<16x64xbf16>
    tpu.vector_store %arg11[%c240, %c0_139], %199 {strides = array<i32>} : memref<288x64xbf16, #tpu.memory_space<vmem>>, vector<16x64xbf16>,
    %c0_140 = arith.constant 0 : index
    %c17_141 = arith.constant 17 : index
    %201 = vector.load %arg10[%c0_140, %c17_141] : memref<32x82xbf16, #tpu.memory_space<vmem>>, vector<16x64xbf16>
    %c256_142 = arith.constant 256 : index
    %c0_143 = arith.constant 0 : index
    %202 = vector.load %arg11[%c256_142, %c0_143] : memref<288x64xbf16, #tpu.memory_space<vmem>>, vector<16x64xbf16>
    tpu.vector_store %arg11[%c256_142, %c0_143], %201 {strides = array<i32>} : memref<288x64xbf16, #tpu.memory_space<vmem>>, vector<16x64xbf16>,
    %c0_144 = arith.constant 0 : index
    %c18_145 = arith.constant 18 : index
    %203 = vector.load %arg10[%c0_144, %c18_145] : memref<32x82xbf16, #tpu.memory_space<vmem>>, vector<16x64xbf16>
    %cst_146 = arith.constant 0.000000e+00 : bf16
    %204 = vector.broadcast %cst_146 : bf16 to vector<16x64xbf16>
    %205 = vector.shape_cast %166 : vector<1x64xi1> to vector<1x64xi1>
    %206 = vector.broadcast %205 : vector<1x64xi1> to vector<16x64xi1>
    %207 = arith.select %206, %203, %204 : vector<16x64xi1>, vector<16x64xbf16>
    %c272 = arith.constant 272 : index
    %c0_147 = arith.constant 0 : index
    %208 = vector.load %arg11[%c272, %c0_147] : memref<288x64xbf16, #tpu.memory_space<vmem>>, vector<16x64xbf16>
    tpu.vector_store %arg11[%c272, %c0_147], %207 {strides = array<i32>} : memref<288x64xbf16, #tpu.memory_space<vmem>>, vector<16x64xbf16>,
    %c0_148 = arith.constant 0 : index
    %c0_149 = arith.constant 0 : index
    %209 = vector.load %arg5[%c0_148, %c0_149] : memref<16x288xbf16, #tpu.memory_space<vmem>>, vector<16x288xbf16>
    %c0_150 = arith.constant 0 : index
    %c0_151 = arith.constant 0 : index
    %210 = vector.load %arg11[%c0_150, %c0_151] : memref<288x64xbf16, #tpu.memory_space<vmem>>, vector<288x64xbf16>
    %cst_152 = arith.constant dense<0.000000e+00> : vector<16x64xf32>
    %211 = tpu.matmul %209, %210, %cst_152 {dimension_numbers = #tpu.dot_dimension_numbers<[1], [0], [0], [1], [0, 0, 1, 1], [], []>} : vector<16x288xbf16>, vector<288x64xbf16>, vector<16x64xf32> -> vector<16x64xf32>
    %c0_153 = arith.constant 0 : index
    %c0_154 = arith.constant 0 : index
    %212 = vector.load %arg6[%c0_153, %c0_154] : memref<16x1xf32, #tpu.memory_space<vmem>>, vector<16x1xf32>
    %213 = vector.broadcast %212 : vector<16x1xf32> to vector<16x64xf32>
    %214 = arith.addf %211, %213 : vector<16x64xf32>
    %cst_155 = arith.constant 0.000000e+00 : f32
    %215 = vector.broadcast %cst_155 : f32 to vector<16x64xf32>
    %216 = arith.cmpf oge, %214, %215 : vector<16x64xf32>
    %cst_156 = arith.constant 1.000000e-01 : f32
    %217 = vector.broadcast %cst_156 : f32 to vector<16x64xf32>
    %218 = arith.mulf %217, %214 : vector<16x64xf32>
    %219 = arith.select %216, %214, %218 : vector<16x64xi1>, vector<16x64xf32>
    %cst_157 = arith.constant 0.000000e+00 : bf16
    %220 = vector.broadcast %cst_157 : bf16 to vector<16x82xbf16>
    %c0_158 = arith.constant 0 : index
    %c0_159 = arith.constant 0 : index
    %221 = vector.load %arg10[%c0_158, %c0_159] : memref<32x82xbf16, #tpu.memory_space<vmem>>, vector<16x82xbf16>
    tpu.vector_store %arg10[%c0_158, %c0_159], %220 {strides = array<i32>} : memref<32x82xbf16, #tpu.memory_space<vmem>>, vector<16x82xbf16>,
    %222 = arith.truncf %219 : vector<16x64xf32> to vector<16x64xbf16>
    %c0_160 = arith.constant 0 : index
    %c9_161 = arith.constant 9 : index
    %223 = vector.load %arg10[%c0_160, %c9_161] : memref<32x82xbf16, #tpu.memory_space<vmem>>, vector<16x64xbf16>
    tpu.vector_store %arg10[%c0_160, %c9_161], %222 {strides = array<i32>} : memref<32x82xbf16, #tpu.memory_space<vmem>>, vector<16x64xbf16>,
    %224 = tpu.iota {dimensions = array<i32: 1>} : vector<1x64xi32>
    %c8_i32_162 = arith.constant 8 : i32
    %c0_i32_163 = arith.constant 0 : i32
    %225 = arith.cmpi eq, %c8_i32_162, %c0_i32_163 : i32
    %c1_i32_164 = arith.constant 1 : i32
    %226 = arith.select %225, %c1_i32_164, %c8_i32_162 : i32
    %227 = vector.broadcast %226 : i32 to vector<1x64xi32>
    %228 = arith.remsi %224, %227 : vector<1x64xi32>
    %c0_i32_165 = arith.constant 0 : i32
    %229 = vector.broadcast %c0_i32_165 : i32 to vector<1x64xi32>
    %230 = arith.cmpi ne, %228, %229 : vector<1x64xi32>
    %c0_i32_166 = arith.constant 0 : i32
    %231 = vector.broadcast %c0_i32_166 : i32 to vector<1x64xi32>
    %232 = arith.cmpi slt, %228, %231 : vector<1x64xi32>
    %c0_i32_167 = arith.constant 0 : i32
    %233 = arith.cmpi slt, %226, %c0_i32_167 : i32
    %234 = vector.broadcast %233 : i1 to vector<1x64xi1>
    %235 = vector.broadcast %234 : vector<1x64xi1> to vector<1x64xi1>
    %236 = arith.xori %232, %235 : vector<1x64xi1>
    %237 = arith.andi %236, %230 : vector<1x64xi1>
    %238 = vector.broadcast %226 : i32 to vector<1x64xi32>
    %239 = arith.addi %228, %238 : vector<1x64xi32>
    %240 = arith.select %237, %239, %228 : vector<1x64xi1>, vector<1x64xi32>
    %c1_i32_168 = arith.constant 1 : i32
    %241 = vector.broadcast %c1_i32_168 : i32 to vector<1x64xi32>
    %242 = arith.cmpi sge, %240, %241 : vector<1x64xi32>
    %c7_i32_169 = arith.constant 7 : i32
    %243 = vector.broadcast %c7_i32_169 : i32 to vector<1x64xi32>
    %244 = arith.cmpi slt, %240, %243 : vector<1x64xi32>
    %c0_170 = arith.constant 0 : index
    %c0_171 = arith.constant 0 : index
    %245 = vector.load %arg10[%c0_170, %c0_171] : memref<32x82xbf16, #tpu.memory_space<vmem>>, vector<16x64xbf16>
    %cst_172 = arith.constant 0.000000e+00 : bf16
    %246 = vector.broadcast %cst_172 : bf16 to vector<16x64xbf16>
    %247 = vector.shape_cast %242 : vector<1x64xi1> to vector<1x64xi1>
    %248 = vector.broadcast %247 : vector<1x64xi1> to vector<16x64xi1>
    %249 = arith.select %248, %245, %246 : vector<16x64xi1>, vector<16x64xbf16>
    %c0_173 = arith.constant 0 : index
    %c0_174 = arith.constant 0 : index
    %250 = vector.load %arg11[%c0_173, %c0_174] : memref<288x64xbf16, #tpu.memory_space<vmem>>, vector<16x64xbf16>
    tpu.vector_store %arg11[%c0_173, %c0_174], %249 {strides = array<i32>} : memref<288x64xbf16, #tpu.memory_space<vmem>>, vector<16x64xbf16>,
    %c0_175 = arith.constant 0 : index
    %c1_176 = arith.constant 1 : index
    %251 = vector.load %arg10[%c0_175, %c1_176] : memref<32x82xbf16, #tpu.memory_space<vmem>>, vector<16x64xbf16>
    %c16_177 = arith.constant 16 : index
    %c0_178 = arith.constant 0 : index
    %252 = vector.load %arg11[%c16_177, %c0_178] : memref<288x64xbf16, #tpu.memory_space<vmem>>, vector<16x64xbf16>
    tpu.vector_store %arg11[%c16_177, %c0_178], %251 {strides = array<i32>} : memref<288x64xbf16, #tpu.memory_space<vmem>>, vector<16x64xbf16>,
    %c0_179 = arith.constant 0 : index
    %c2_180 = arith.constant 2 : index
    %253 = vector.load %arg10[%c0_179, %c2_180] : memref<32x82xbf16, #tpu.memory_space<vmem>>, vector<16x64xbf16>
    %cst_181 = arith.constant 0.000000e+00 : bf16
    %254 = vector.broadcast %cst_181 : bf16 to vector<16x64xbf16>
    %255 = vector.shape_cast %244 : vector<1x64xi1> to vector<1x64xi1>
    %256 = vector.broadcast %255 : vector<1x64xi1> to vector<16x64xi1>
    %257 = arith.select %256, %253, %254 : vector<16x64xi1>, vector<16x64xbf16>
    %c32_182 = arith.constant 32 : index
    %c0_183 = arith.constant 0 : index
    %258 = vector.load %arg11[%c32_182, %c0_183] : memref<288x64xbf16, #tpu.memory_space<vmem>>, vector<16x64xbf16>
    tpu.vector_store %arg11[%c32_182, %c0_183], %257 {strides = array<i32>} : memref<288x64xbf16, #tpu.memory_space<vmem>>, vector<16x64xbf16>,
    %c0_184 = arith.constant 0 : index
    %c8_185 = arith.constant 8 : index
    %259 = vector.load %arg10[%c0_184, %c8_185] : memref<32x82xbf16, #tpu.memory_space<vmem>>, vector<16x64xbf16>
    %cst_186 = arith.constant 0.000000e+00 : bf16
    %260 = vector.broadcast %cst_186 : bf16 to vector<16x64xbf16>
    %261 = vector.shape_cast %242 : vector<1x64xi1> to vector<1x64xi1>
    %262 = vector.broadcast %261 : vector<1x64xi1> to vector<16x64xi1>
    %263 = arith.select %262, %259, %260 : vector<16x64xi1>, vector<16x64xbf16>
    %c48_187 = arith.constant 48 : index
    %c0_188 = arith.constant 0 : index
    %264 = vector.load %arg11[%c48_187, %c0_188] : memref<288x64xbf16, #tpu.memory_space<vmem>>, vector<16x64xbf16>
    tpu.vector_store %arg11[%c48_187, %c0_188], %263 {strides = array<i32>} : memref<288x64xbf16, #tpu.memory_space<vmem>>, vector<16x64xbf16>,
    %c0_189 = arith.constant 0 : index
    %c9_190 = arith.constant 9 : index
    %265 = vector.load %arg10[%c0_189, %c9_190] : memref<32x82xbf16, #tpu.memory_space<vmem>>, vector<16x64xbf16>
    %c64_191 = arith.constant 64 : index
    %c0_192 = arith.constant 0 : index
    %266 = vector.load %arg11[%c64_191, %c0_192] : memref<288x64xbf16, #tpu.memory_space<vmem>>, vector<16x64xbf16>
    tpu.vector_store %arg11[%c64_191, %c0_192], %265 {strides = array<i32>} : memref<288x64xbf16, #tpu.memory_space<vmem>>, vector<16x64xbf16>,
    %c0_193 = arith.constant 0 : index
    %c10_194 = arith.constant 10 : index
    %267 = vector.load %arg10[%c0_193, %c10_194] : memref<32x82xbf16, #tpu.memory_space<vmem>>, vector<16x64xbf16>
    %cst_195 = arith.constant 0.000000e+00 : bf16
    %268 = vector.broadcast %cst_195 : bf16 to vector<16x64xbf16>
    %269 = vector.shape_cast %244 : vector<1x64xi1> to vector<1x64xi1>
    %270 = vector.broadcast %269 : vector<1x64xi1> to vector<16x64xi1>
    %271 = arith.select %270, %267, %268 : vector<16x64xi1>, vector<16x64xbf16>
    %c80_196 = arith.constant 80 : index
    %c0_197 = arith.constant 0 : index
    %272 = vector.load %arg11[%c80_196, %c0_197] : memref<288x64xbf16, #tpu.memory_space<vmem>>, vector<16x64xbf16>
    tpu.vector_store %arg11[%c80_196, %c0_197], %271 {strides = array<i32>} : memref<288x64xbf16, #tpu.memory_space<vmem>>, vector<16x64xbf16>,
    %c0_198 = arith.constant 0 : index
    %c16_199 = arith.constant 16 : index
    %273 = vector.load %arg10[%c0_198, %c16_199] : memref<32x82xbf16, #tpu.memory_space<vmem>>, vector<16x64xbf16>
    %cst_200 = arith.constant 0.000000e+00 : bf16
    %274 = vector.broadcast %cst_200 : bf16 to vector<16x64xbf16>
    %275 = vector.shape_cast %242 : vector<1x64xi1> to vector<1x64xi1>
    %276 = vector.broadcast %275 : vector<1x64xi1> to vector<16x64xi1>
    %277 = arith.select %276, %273, %274 : vector<16x64xi1>, vector<16x64xbf16>
    %c96_201 = arith.constant 96 : index
    %c0_202 = arith.constant 0 : index
    %278 = vector.load %arg11[%c96_201, %c0_202] : memref<288x64xbf16, #tpu.memory_space<vmem>>, vector<16x64xbf16>
    tpu.vector_store %arg11[%c96_201, %c0_202], %277 {strides = array<i32>} : memref<288x64xbf16, #tpu.memory_space<vmem>>, vector<16x64xbf16>,
    %c0_203 = arith.constant 0 : index
    %c17_204 = arith.constant 17 : index
    %279 = vector.load %arg10[%c0_203, %c17_204] : memref<32x82xbf16, #tpu.memory_space<vmem>>, vector<16x64xbf16>
    %c112_205 = arith.constant 112 : index
    %c0_206 = arith.constant 0 : index
    %280 = vector.load %arg11[%c112_205, %c0_206] : memref<288x64xbf16, #tpu.memory_space<vmem>>, vector<16x64xbf16>
    tpu.vector_store %arg11[%c112_205, %c0_206], %279 {strides = array<i32>} : memref<288x64xbf16, #tpu.memory_space<vmem>>, vector<16x64xbf16>,
    %c0_207 = arith.constant 0 : index
    %c18_208 = arith.constant 18 : index
    %281 = vector.load %arg10[%c0_207, %c18_208] : memref<32x82xbf16, #tpu.memory_space<vmem>>, vector<16x64xbf16>
    %cst_209 = arith.constant 0.000000e+00 : bf16
    %282 = vector.broadcast %cst_209 : bf16 to vector<16x64xbf16>
    %283 = vector.shape_cast %244 : vector<1x64xi1> to vector<1x64xi1>
    %284 = vector.broadcast %283 : vector<1x64xi1> to vector<16x64xi1>
    %285 = arith.select %284, %281, %282 : vector<16x64xi1>, vector<16x64xbf16>
    %c128_210 = arith.constant 128 : index
    %c0_211 = arith.constant 0 : index
    %286 = vector.load %arg11[%c128_210, %c0_211] : memref<288x64xbf16, #tpu.memory_space<vmem>>, vector<16x64xbf16>
    tpu.vector_store %arg11[%c128_210, %c0_211], %285 {strides = array<i32>} : memref<288x64xbf16, #tpu.memory_space<vmem>>, vector<16x64xbf16>,
    %c0_212 = arith.constant 0 : index
    %c0_213 = arith.constant 0 : index
    %287 = vector.load %arg7[%c0_212, %c0_213] : memref<16x144xbf16, #tpu.memory_space<vmem>>, vector<16x144xbf16>
    %c0_214 = arith.constant 0 : index
    %c0_215 = arith.constant 0 : index
    %288 = vector.load %arg11[%c0_214, %c0_215] : memref<288x64xbf16, #tpu.memory_space<vmem>>, vector<144x64xbf16>
    %cst_216 = arith.constant dense<0.000000e+00> : vector<16x64xf32>
    %289 = tpu.matmul %287, %288, %cst_216 {dimension_numbers = #tpu.dot_dimension_numbers<[1], [0], [0], [1], [0, 0, 1, 1], [], []>} : vector<16x144xbf16>, vector<144x64xbf16>, vector<16x64xf32> -> vector<16x64xf32>
    %c0_217 = arith.constant 0 : index
    %c0_218 = arith.constant 0 : index
    %290 = vector.load %arg8[%c0_217, %c0_218] : memref<16x1xf32, #tpu.memory_space<vmem>>, vector<16x1xf32>
    %291 = vector.broadcast %290 : vector<16x1xf32> to vector<16x64xf32>
    %292 = arith.addf %289, %291 : vector<16x64xf32>
    %cst_219 = arith.constant 0.000000e+00 : f32
    %293 = vector.broadcast %cst_219 : f32 to vector<16x64xf32>
    %294 = arith.cmpf oge, %292, %293 : vector<16x64xf32>
    %cst_220 = arith.constant 1.000000e-01 : f32
    %295 = vector.broadcast %cst_220 : f32 to vector<16x64xf32>
    %296 = arith.mulf %295, %292 : vector<16x64xf32>
    %297 = arith.select %294, %292, %296 : vector<16x64xi1>, vector<16x64xf32>
    %298 = arith.truncf %297 : vector<16x64xf32> to vector<16x64xbf16>
    %c0_221 = arith.constant 0 : index
    %c0_222 = arith.constant 0 : index
    %c0_223 = arith.constant 0 : index
    %299 = vector.load %arg9[%c0_221, %c0_222, %c0_223] : memref<1x16x64xbf16, #tpu.memory_space<vmem>>, vector<1x16x64xbf16>
    %300 = vector.shape_cast %299 : vector<1x16x64xbf16> to vector<16x64xbf16>
    %301 = vector.shape_cast %298 : vector<16x64xbf16> to vector<1x16x64xbf16>
    tpu.vector_store %arg9[%c0_221, %c0_222, %c0_223], %301 {strides = array<i32>} : memref<1x16x64xbf16, #tpu.memory_space<vmem>>, vector<1x16x64xbf16>,
    return
  }
  func.func @transform_0(%arg0: i32) -> (i32, i32, i32) {
    %c0_i32 = arith.constant 0 : i32
    %c0_i32_0 = arith.constant 0 : i32
    %c0_i32_1 = arith.constant 0 : i32
    return %arg0, %c0_i32, %c0_i32_0 : i32, i32, i32
  }
  func.func @transform_1(%arg0: i32) -> (i32, i32, i32) {
    %c0_i32 = arith.constant 0 : i32
    %c0_i32_0 = arith.constant 0 : i32
    %c0_i32_1 = arith.constant 0 : i32
    return %arg0, %c0_i32, %c0_i32_0 : i32, i32, i32
  }
  func.func @transform_2(%arg0: i32) -> (i32, i32) {
    %c0_i32 = arith.constant 0 : i32
    %c0_i32_0 = arith.constant 0 : i32
    %c0_i32_1 = arith.constant 0 : i32
    return %c0_i32, %c0_i32_0 : i32, i32
  }
  func.func @transform_3(%arg0: i32) -> (i32, i32) {
    %c0_i32 = arith.constant 0 : i32
    %c0_i32_0 = arith.constant 0 : i32
    %c0_i32_1 = arith.constant 0 : i32
    return %c0_i32, %c0_i32_0 : i32, i32
  }
  func.func @transform_4(%arg0: i32) -> (i32, i32) {
    %c0_i32 = arith.constant 0 : i32
    %c0_i32_0 = arith.constant 0 : i32
    %c0_i32_1 = arith.constant 0 : i32
    return %c0_i32, %c0_i32_0 : i32, i32
  }
  func.func @transform_5(%arg0: i32) -> (i32, i32) {
    %c0_i32 = arith.constant 0 : i32
    %c0_i32_0 = arith.constant 0 : i32
    %c0_i32_1 = arith.constant 0 : i32
    return %c0_i32, %c0_i32_0 : i32, i32
  }
  func.func @transform_6(%arg0: i32) -> (i32, i32) {
    %c0_i32 = arith.constant 0 : i32
    %c0_i32_0 = arith.constant 0 : i32
    %c0_i32_1 = arith.constant 0 : i32
    return %c0_i32, %c0_i32_0 : i32, i32
  }
  func.func @transform_7(%arg0: i32) -> (i32, i32) {
    %c0_i32 = arith.constant 0 : i32
    %c0_i32_0 = arith.constant 0 : i32
    %c0_i32_1 = arith.constant 0 : i32
    return %c0_i32, %c0_i32_0 : i32, i32
  }
  func.func @transform_8(%arg0: i32) -> (i32, i32, i32) {
    %c0_i32 = arith.constant 0 : i32
    %c0_i32_0 = arith.constant 0 : i32
    %c0_i32_1 = arith.constant 0 : i32
    return %arg0, %c0_i32, %c0_i32_0 : i32, i32, i32
  }
}

module attributes {stable_mosaic.version = 11 : i64} {
  func.func @_up_block_kernel(%arg0: i32, %arg1: memref<1x16x256xbf16, #tpu.memory_space<vmem>>, %arg2: memref<1x8x256xbf16, #tpu.memory_space<vmem>>, %arg3: memref<8x144xbf16, #tpu.memory_space<vmem>>, %arg4: memref<8x1xf32, #tpu.memory_space<vmem>>, %arg5: memref<8x144xbf16, #tpu.memory_space<vmem>>, %arg6: memref<8x1xf32, #tpu.memory_space<vmem>>, %arg7: memref<8x72xbf16, #tpu.memory_space<vmem>>, %arg8: memref<8x1xf32, #tpu.memory_space<vmem>>, %arg9: memref<1x8x256xbf16, #tpu.memory_space<vmem>>, %arg10: memref<16x290xbf16, #tpu.memory_space<vmem>>, %arg11: memref<144x256xbf16, #tpu.memory_space<vmem>>) attributes {dimension_semantics = [#tpu.dimension_semantics<parallel>], iteration_bounds = array<i64: 2>, scalar_prefetch = 0 : i64, scratch_operands = 2 : i64, tpu.core_type = #tpu.core_type<tc>, window_params = [{transform_indices = @transform_0, window_bounds = array<i64: 1, 16, 256>}, {transform_indices = @transform_1, window_bounds = array<i64: 1, 8, 256>}, {pipeline_mode = #tpu.pipeline_mode<synchronous>, transform_indices = @transform_2, window_bounds = array<i64: 8, 144>}, {pipeline_mode = #tpu.pipeline_mode<synchronous>, transform_indices = @transform_3, window_bounds = array<i64: 8, 1>}, {pipeline_mode = #tpu.pipeline_mode<synchronous>, transform_indices = @transform_4, window_bounds = array<i64: 8, 144>}, {pipeline_mode = #tpu.pipeline_mode<synchronous>, transform_indices = @transform_5, window_bounds = array<i64: 8, 1>}, {pipeline_mode = #tpu.pipeline_mode<synchronous>, transform_indices = @transform_6, window_bounds = array<i64: 8, 72>}, {pipeline_mode = #tpu.pipeline_mode<synchronous>, transform_indices = @transform_7, window_bounds = array<i64: 8, 1>}, {transform_indices = @transform_8, window_bounds = array<i64: 1, 8, 256>}]} {
    %c0 = arith.constant 0 : index
    %c0_0 = arith.constant 0 : index
    %c0_1 = arith.constant 0 : index
    %0 = vector.load %arg1[%c0, %c0_0, %c0_1] : memref<1x16x256xbf16, #tpu.memory_space<vmem>>, vector<1x16x256xbf16>
    %1 = vector.shape_cast %0 : vector<1x16x256xbf16> to vector<16x256xbf16>
    %cst = arith.constant 0.000000e+00 : bf16
    %2 = vector.broadcast %cst : bf16 to vector<16x290xbf16>
    %c0_2 = arith.constant 0 : index
    %c0_3 = arith.constant 0 : index
    %3 = vector.load %arg10[%c0_2, %c0_3] : memref<16x290xbf16, #tpu.memory_space<vmem>>, vector<16x290xbf16>
    tpu.vector_store %arg10[%c0_2, %c0_3], %2 {strides = array<i32>} : memref<16x290xbf16, #tpu.memory_space<vmem>>, vector<16x290xbf16>,
    %c0_4 = arith.constant 0 : index
    %c17 = arith.constant 17 : index
    %4 = vector.load %arg10[%c0_4, %c17] : memref<16x290xbf16, #tpu.memory_space<vmem>>, vector<16x256xbf16>
    tpu.vector_store %arg10[%c0_4, %c17], %1 {strides = array<i32>} : memref<16x290xbf16, #tpu.memory_space<vmem>>, vector<16x256xbf16>,
    %5 = tpu.iota {dimensions = array<i32: 1>} : vector<1x256xi32>
    %c16_i32 = arith.constant 16 : i32
    %c0_i32 = arith.constant 0 : i32
    %6 = arith.cmpi eq, %c16_i32, %c0_i32 : i32
    %c1_i32 = arith.constant 1 : i32
    %7 = arith.select %6, %c1_i32, %c16_i32 : i32
    %8 = vector.broadcast %7 : i32 to vector<1x256xi32>
    %9 = arith.remsi %5, %8 : vector<1x256xi32>
    %c0_i32_5 = arith.constant 0 : i32
    %10 = vector.broadcast %c0_i32_5 : i32 to vector<1x256xi32>
    %11 = arith.cmpi ne, %9, %10 : vector<1x256xi32>
    %c0_i32_6 = arith.constant 0 : i32
    %12 = vector.broadcast %c0_i32_6 : i32 to vector<1x256xi32>
    %13 = arith.cmpi slt, %9, %12 : vector<1x256xi32>
    %c0_i32_7 = arith.constant 0 : i32
    %14 = arith.cmpi slt, %7, %c0_i32_7 : i32
    %15 = vector.broadcast %14 : i1 to vector<1x256xi1>
    %16 = vector.broadcast %15 : vector<1x256xi1> to vector<1x256xi1>
    %17 = arith.xori %13, %16 : vector<1x256xi1>
    %18 = arith.andi %17, %11 : vector<1x256xi1>
    %19 = vector.broadcast %7 : i32 to vector<1x256xi32>
    %20 = arith.addi %9, %19 : vector<1x256xi32>
    %21 = arith.select %18, %20, %9 : vector<1x256xi1>, vector<1x256xi32>
    %c1_i32_8 = arith.constant 1 : i32
    %22 = vector.broadcast %c1_i32_8 : i32 to vector<1x256xi32>
    %23 = arith.cmpi sge, %21, %22 : vector<1x256xi32>
    %c15_i32 = arith.constant 15 : i32
    %24 = vector.broadcast %c15_i32 : i32 to vector<1x256xi32>
    %25 = arith.cmpi slt, %21, %24 : vector<1x256xi32>
    %c0_9 = arith.constant 0 : index
    %c0_10 = arith.constant 0 : index
    %26 = vector.load %arg10[%c0_9, %c0_10] : memref<16x290xbf16, #tpu.memory_space<vmem>>, vector<16x256xbf16>
    %cst_11 = arith.constant 0.000000e+00 : bf16
    %27 = vector.broadcast %cst_11 : bf16 to vector<16x256xbf16>
    %28 = vector.shape_cast %23 : vector<1x256xi1> to vector<1x256xi1>
    %29 = vector.broadcast %28 : vector<1x256xi1> to vector<16x256xi1>
    %30 = arith.select %29, %26, %27 : vector<16x256xi1>, vector<16x256xbf16>
    %c0_12 = arith.constant 0 : index
    %c0_13 = arith.constant 0 : index
    %31 = vector.load %arg11[%c0_12, %c0_13] : memref<144x256xbf16, #tpu.memory_space<vmem>>, vector<16x256xbf16>
    tpu.vector_store %arg11[%c0_12, %c0_13], %30 {strides = array<i32>} : memref<144x256xbf16, #tpu.memory_space<vmem>>, vector<16x256xbf16>,
    %c0_14 = arith.constant 0 : index
    %c1 = arith.constant 1 : index
    %32 = vector.load %arg10[%c0_14, %c1] : memref<16x290xbf16, #tpu.memory_space<vmem>>, vector<16x256xbf16>
    %c16 = arith.constant 16 : index
    %c0_15 = arith.constant 0 : index
    %33 = vector.load %arg11[%c16, %c0_15] : memref<144x256xbf16, #tpu.memory_space<vmem>>, vector<16x256xbf16>
    tpu.vector_store %arg11[%c16, %c0_15], %32 {strides = array<i32>} : memref<144x256xbf16, #tpu.memory_space<vmem>>, vector<16x256xbf16>,
    %c0_16 = arith.constant 0 : index
    %c2 = arith.constant 2 : index
    %34 = vector.load %arg10[%c0_16, %c2] : memref<16x290xbf16, #tpu.memory_space<vmem>>, vector<16x256xbf16>
    %cst_17 = arith.constant 0.000000e+00 : bf16
    %35 = vector.broadcast %cst_17 : bf16 to vector<16x256xbf16>
    %36 = vector.shape_cast %25 : vector<1x256xi1> to vector<1x256xi1>
    %37 = vector.broadcast %36 : vector<1x256xi1> to vector<16x256xi1>
    %38 = arith.select %37, %34, %35 : vector<16x256xi1>, vector<16x256xbf16>
    %c32 = arith.constant 32 : index
    %c0_18 = arith.constant 0 : index
    %39 = vector.load %arg11[%c32, %c0_18] : memref<144x256xbf16, #tpu.memory_space<vmem>>, vector<16x256xbf16>
    tpu.vector_store %arg11[%c32, %c0_18], %38 {strides = array<i32>} : memref<144x256xbf16, #tpu.memory_space<vmem>>, vector<16x256xbf16>,
    %c0_19 = arith.constant 0 : index
    %c16_20 = arith.constant 16 : index
    %40 = vector.load %arg10[%c0_19, %c16_20] : memref<16x290xbf16, #tpu.memory_space<vmem>>, vector<16x256xbf16>
    %cst_21 = arith.constant 0.000000e+00 : bf16
    %41 = vector.broadcast %cst_21 : bf16 to vector<16x256xbf16>
    %42 = vector.shape_cast %23 : vector<1x256xi1> to vector<1x256xi1>
    %43 = vector.broadcast %42 : vector<1x256xi1> to vector<16x256xi1>
    %44 = arith.select %43, %40, %41 : vector<16x256xi1>, vector<16x256xbf16>
    %c48 = arith.constant 48 : index
    %c0_22 = arith.constant 0 : index
    %45 = vector.load %arg11[%c48, %c0_22] : memref<144x256xbf16, #tpu.memory_space<vmem>>, vector<16x256xbf16>
    tpu.vector_store %arg11[%c48, %c0_22], %44 {strides = array<i32>} : memref<144x256xbf16, #tpu.memory_space<vmem>>, vector<16x256xbf16>,
    %c0_23 = arith.constant 0 : index
    %c17_24 = arith.constant 17 : index
    %46 = vector.load %arg10[%c0_23, %c17_24] : memref<16x290xbf16, #tpu.memory_space<vmem>>, vector<16x256xbf16>
    %c64 = arith.constant 64 : index
    %c0_25 = arith.constant 0 : index
    %47 = vector.load %arg11[%c64, %c0_25] : memref<144x256xbf16, #tpu.memory_space<vmem>>, vector<16x256xbf16>
    tpu.vector_store %arg11[%c64, %c0_25], %46 {strides = array<i32>} : memref<144x256xbf16, #tpu.memory_space<vmem>>, vector<16x256xbf16>,
    %c0_26 = arith.constant 0 : index
    %c18 = arith.constant 18 : index
    %48 = vector.load %arg10[%c0_26, %c18] : memref<16x290xbf16, #tpu.memory_space<vmem>>, vector<16x256xbf16>
    %cst_27 = arith.constant 0.000000e+00 : bf16
    %49 = vector.broadcast %cst_27 : bf16 to vector<16x256xbf16>
    %50 = vector.shape_cast %25 : vector<1x256xi1> to vector<1x256xi1>
    %51 = vector.broadcast %50 : vector<1x256xi1> to vector<16x256xi1>
    %52 = arith.select %51, %48, %49 : vector<16x256xi1>, vector<16x256xbf16>
    %c80 = arith.constant 80 : index
    %c0_28 = arith.constant 0 : index
    %53 = vector.load %arg11[%c80, %c0_28] : memref<144x256xbf16, #tpu.memory_space<vmem>>, vector<16x256xbf16>
    tpu.vector_store %arg11[%c80, %c0_28], %52 {strides = array<i32>} : memref<144x256xbf16, #tpu.memory_space<vmem>>, vector<16x256xbf16>,
    %c0_29 = arith.constant 0 : index
    %c32_30 = arith.constant 32 : index
    %54 = vector.load %arg10[%c0_29, %c32_30] : memref<16x290xbf16, #tpu.memory_space<vmem>>, vector<16x256xbf16>
    %cst_31 = arith.constant 0.000000e+00 : bf16
    %55 = vector.broadcast %cst_31 : bf16 to vector<16x256xbf16>
    %56 = vector.shape_cast %23 : vector<1x256xi1> to vector<1x256xi1>
    %57 = vector.broadcast %56 : vector<1x256xi1> to vector<16x256xi1>
    %58 = arith.select %57, %54, %55 : vector<16x256xi1>, vector<16x256xbf16>
    %c96 = arith.constant 96 : index
    %c0_32 = arith.constant 0 : index
    %59 = vector.load %arg11[%c96, %c0_32] : memref<144x256xbf16, #tpu.memory_space<vmem>>, vector<16x256xbf16>
    tpu.vector_store %arg11[%c96, %c0_32], %58 {strides = array<i32>} : memref<144x256xbf16, #tpu.memory_space<vmem>>, vector<16x256xbf16>,
    %c0_33 = arith.constant 0 : index
    %c33 = arith.constant 33 : index
    %60 = vector.load %arg10[%c0_33, %c33] : memref<16x290xbf16, #tpu.memory_space<vmem>>, vector<16x256xbf16>
    %c112 = arith.constant 112 : index
    %c0_34 = arith.constant 0 : index
    %61 = vector.load %arg11[%c112, %c0_34] : memref<144x256xbf16, #tpu.memory_space<vmem>>, vector<16x256xbf16>
    tpu.vector_store %arg11[%c112, %c0_34], %60 {strides = array<i32>} : memref<144x256xbf16, #tpu.memory_space<vmem>>, vector<16x256xbf16>,
    %c0_35 = arith.constant 0 : index
    %c34 = arith.constant 34 : index
    %62 = vector.load %arg10[%c0_35, %c34] : memref<16x290xbf16, #tpu.memory_space<vmem>>, vector<16x256xbf16>
    %cst_36 = arith.constant 0.000000e+00 : bf16
    %63 = vector.broadcast %cst_36 : bf16 to vector<16x256xbf16>
    %64 = vector.shape_cast %25 : vector<1x256xi1> to vector<1x256xi1>
    %65 = vector.broadcast %64 : vector<1x256xi1> to vector<16x256xi1>
    %66 = arith.select %65, %62, %63 : vector<16x256xi1>, vector<16x256xbf16>
    %c128 = arith.constant 128 : index
    %c0_37 = arith.constant 0 : index
    %67 = vector.load %arg11[%c128, %c0_37] : memref<144x256xbf16, #tpu.memory_space<vmem>>, vector<16x256xbf16>
    tpu.vector_store %arg11[%c128, %c0_37], %66 {strides = array<i32>} : memref<144x256xbf16, #tpu.memory_space<vmem>>, vector<16x256xbf16>,
    %c0_38 = arith.constant 0 : index
    %c0_39 = arith.constant 0 : index
    %68 = vector.load %arg3[%c0_38, %c0_39] : memref<8x144xbf16, #tpu.memory_space<vmem>>, vector<8x144xbf16>
    %c0_40 = arith.constant 0 : index
    %c0_41 = arith.constant 0 : index
    %69 = vector.load %arg11[%c0_40, %c0_41] : memref<144x256xbf16, #tpu.memory_space<vmem>>, vector<144x256xbf16>
    %cst_42 = arith.constant dense<0.000000e+00> : vector<8x256xf32>
    %70 = tpu.matmul %68, %69, %cst_42 {dimension_numbers = #tpu.dot_dimension_numbers<[1], [0], [0], [1], [0, 0, 1, 1], [], []>} : vector<8x144xbf16>, vector<144x256xbf16>, vector<8x256xf32> -> vector<8x256xf32>
    %c0_43 = arith.constant 0 : index
    %c0_44 = arith.constant 0 : index
    %71 = vector.load %arg4[%c0_43, %c0_44] : memref<8x1xf32, #tpu.memory_space<vmem>>, vector<8x1xf32>
    %72 = vector.broadcast %71 : vector<8x1xf32> to vector<8x256xf32>
    %73 = arith.addf %70, %72 : vector<8x256xf32>
    %cst_45 = arith.constant 0.000000e+00 : bf16
    %74 = vector.broadcast %cst_45 : bf16 to vector<8x290xbf16>
    %c0_46 = arith.constant 0 : index
    %c0_47 = arith.constant 0 : index
    %75 = vector.load %arg10[%c0_46, %c0_47] : memref<16x290xbf16, #tpu.memory_space<vmem>>, vector<8x290xbf16>
    tpu.vector_store %arg10[%c0_46, %c0_47], %74 {strides = array<i32>} : memref<16x290xbf16, #tpu.memory_space<vmem>>, vector<8x290xbf16>,
    %76 = arith.truncf %73 : vector<8x256xf32> to vector<8x256xbf16>
    %c0_48 = arith.constant 0 : index
    %c17_49 = arith.constant 17 : index
    %77 = vector.load %arg10[%c0_48, %c17_49] : memref<16x290xbf16, #tpu.memory_space<vmem>>, vector<8x256xbf16>
    tpu.vector_store %arg10[%c0_48, %c17_49], %76 {strides = array<i32>} : memref<16x290xbf16, #tpu.memory_space<vmem>>, vector<8x256xbf16>,
    %78 = tpu.iota {dimensions = array<i32: 1>} : vector<1x256xi32>
    %c16_i32_50 = arith.constant 16 : i32
    %c0_i32_51 = arith.constant 0 : i32
    %79 = arith.cmpi eq, %c16_i32_50, %c0_i32_51 : i32
    %c1_i32_52 = arith.constant 1 : i32
    %80 = arith.select %79, %c1_i32_52, %c16_i32_50 : i32
    %81 = vector.broadcast %80 : i32 to vector<1x256xi32>
    %82 = arith.remsi %78, %81 : vector<1x256xi32>
    %c0_i32_53 = arith.constant 0 : i32
    %83 = vector.broadcast %c0_i32_53 : i32 to vector<1x256xi32>
    %84 = arith.cmpi ne, %82, %83 : vector<1x256xi32>
    %c0_i32_54 = arith.constant 0 : i32
    %85 = vector.broadcast %c0_i32_54 : i32 to vector<1x256xi32>
    %86 = arith.cmpi slt, %82, %85 : vector<1x256xi32>
    %c0_i32_55 = arith.constant 0 : i32
    %87 = arith.cmpi slt, %80, %c0_i32_55 : i32
    %88 = vector.broadcast %87 : i1 to vector<1x256xi1>
    %89 = vector.broadcast %88 : vector<1x256xi1> to vector<1x256xi1>
    %90 = arith.xori %86, %89 : vector<1x256xi1>
    %91 = arith.andi %90, %84 : vector<1x256xi1>
    %92 = vector.broadcast %80 : i32 to vector<1x256xi32>
    %93 = arith.addi %82, %92 : vector<1x256xi32>
    %94 = arith.select %91, %93, %82 : vector<1x256xi1>, vector<1x256xi32>
    %c1_i32_56 = arith.constant 1 : i32
    %95 = vector.broadcast %c1_i32_56 : i32 to vector<1x256xi32>
    %96 = arith.cmpi sge, %94, %95 : vector<1x256xi32>
    %c15_i32_57 = arith.constant 15 : i32
    %97 = vector.broadcast %c15_i32_57 : i32 to vector<1x256xi32>
    %98 = arith.cmpi slt, %94, %97 : vector<1x256xi32>
    %c0_58 = arith.constant 0 : index
    %c0_59 = arith.constant 0 : index
    %99 = vector.load %arg10[%c0_58, %c0_59] : memref<16x290xbf16, #tpu.memory_space<vmem>>, vector<8x256xbf16>
    %cst_60 = arith.constant 0.000000e+00 : bf16
    %100 = vector.broadcast %cst_60 : bf16 to vector<8x256xbf16>
    %101 = vector.shape_cast %96 : vector<1x256xi1> to vector<1x256xi1>
    %102 = vector.broadcast %101 : vector<1x256xi1> to vector<8x256xi1>
    %103 = arith.select %102, %99, %100 : vector<8x256xi1>, vector<8x256xbf16>
    %c0_61 = arith.constant 0 : index
    %c0_62 = arith.constant 0 : index
    %104 = vector.load %arg11[%c0_61, %c0_62] : memref<144x256xbf16, #tpu.memory_space<vmem>>, vector<8x256xbf16>
    tpu.vector_store %arg11[%c0_61, %c0_62], %103 {strides = array<i32>} : memref<144x256xbf16, #tpu.memory_space<vmem>>, vector<8x256xbf16>,
    %c0_63 = arith.constant 0 : index
    %c1_64 = arith.constant 1 : index
    %105 = vector.load %arg10[%c0_63, %c1_64] : memref<16x290xbf16, #tpu.memory_space<vmem>>, vector<8x256xbf16>
    %c8 = arith.constant 8 : index
    %c0_65 = arith.constant 0 : index
    %106 = vector.load %arg11[%c8, %c0_65] : memref<144x256xbf16, #tpu.memory_space<vmem>>, vector<8x256xbf16>
    tpu.vector_store %arg11[%c8, %c0_65], %105 {strides = array<i32>} : memref<144x256xbf16, #tpu.memory_space<vmem>>, vector<8x256xbf16>,
    %c0_66 = arith.constant 0 : index
    %c2_67 = arith.constant 2 : index
    %107 = vector.load %arg10[%c0_66, %c2_67] : memref<16x290xbf16, #tpu.memory_space<vmem>>, vector<8x256xbf16>
    %cst_68 = arith.constant 0.000000e+00 : bf16
    %108 = vector.broadcast %cst_68 : bf16 to vector<8x256xbf16>
    %109 = vector.shape_cast %98 : vector<1x256xi1> to vector<1x256xi1>
    %110 = vector.broadcast %109 : vector<1x256xi1> to vector<8x256xi1>
    %111 = arith.select %110, %107, %108 : vector<8x256xi1>, vector<8x256xbf16>
    %c16_69 = arith.constant 16 : index
    %c0_70 = arith.constant 0 : index
    %112 = vector.load %arg11[%c16_69, %c0_70] : memref<144x256xbf16, #tpu.memory_space<vmem>>, vector<8x256xbf16>
    tpu.vector_store %arg11[%c16_69, %c0_70], %111 {strides = array<i32>} : memref<144x256xbf16, #tpu.memory_space<vmem>>, vector<8x256xbf16>,
    %c0_71 = arith.constant 0 : index
    %c16_72 = arith.constant 16 : index
    %113 = vector.load %arg10[%c0_71, %c16_72] : memref<16x290xbf16, #tpu.memory_space<vmem>>, vector<8x256xbf16>
    %cst_73 = arith.constant 0.000000e+00 : bf16
    %114 = vector.broadcast %cst_73 : bf16 to vector<8x256xbf16>
    %115 = vector.shape_cast %96 : vector<1x256xi1> to vector<1x256xi1>
    %116 = vector.broadcast %115 : vector<1x256xi1> to vector<8x256xi1>
    %117 = arith.select %116, %113, %114 : vector<8x256xi1>, vector<8x256xbf16>
    %c24 = arith.constant 24 : index
    %c0_74 = arith.constant 0 : index
    %118 = vector.load %arg11[%c24, %c0_74] : memref<144x256xbf16, #tpu.memory_space<vmem>>, vector<8x256xbf16>
    tpu.vector_store %arg11[%c24, %c0_74], %117 {strides = array<i32>} : memref<144x256xbf16, #tpu.memory_space<vmem>>, vector<8x256xbf16>,
    %c0_75 = arith.constant 0 : index
    %c17_76 = arith.constant 17 : index
    %119 = vector.load %arg10[%c0_75, %c17_76] : memref<16x290xbf16, #tpu.memory_space<vmem>>, vector<8x256xbf16>
    %c32_77 = arith.constant 32 : index
    %c0_78 = arith.constant 0 : index
    %120 = vector.load %arg11[%c32_77, %c0_78] : memref<144x256xbf16, #tpu.memory_space<vmem>>, vector<8x256xbf16>
    tpu.vector_store %arg11[%c32_77, %c0_78], %119 {strides = array<i32>} : memref<144x256xbf16, #tpu.memory_space<vmem>>, vector<8x256xbf16>,
    %c0_79 = arith.constant 0 : index
    %c18_80 = arith.constant 18 : index
    %121 = vector.load %arg10[%c0_79, %c18_80] : memref<16x290xbf16, #tpu.memory_space<vmem>>, vector<8x256xbf16>
    %cst_81 = arith.constant 0.000000e+00 : bf16
    %122 = vector.broadcast %cst_81 : bf16 to vector<8x256xbf16>
    %123 = vector.shape_cast %98 : vector<1x256xi1> to vector<1x256xi1>
    %124 = vector.broadcast %123 : vector<1x256xi1> to vector<8x256xi1>
    %125 = arith.select %124, %121, %122 : vector<8x256xi1>, vector<8x256xbf16>
    %c40 = arith.constant 40 : index
    %c0_82 = arith.constant 0 : index
    %126 = vector.load %arg11[%c40, %c0_82] : memref<144x256xbf16, #tpu.memory_space<vmem>>, vector<8x256xbf16>
    tpu.vector_store %arg11[%c40, %c0_82], %125 {strides = array<i32>} : memref<144x256xbf16, #tpu.memory_space<vmem>>, vector<8x256xbf16>,
    %c0_83 = arith.constant 0 : index
    %c32_84 = arith.constant 32 : index
    %127 = vector.load %arg10[%c0_83, %c32_84] : memref<16x290xbf16, #tpu.memory_space<vmem>>, vector<8x256xbf16>
    %cst_85 = arith.constant 0.000000e+00 : bf16
    %128 = vector.broadcast %cst_85 : bf16 to vector<8x256xbf16>
    %129 = vector.shape_cast %96 : vector<1x256xi1> to vector<1x256xi1>
    %130 = vector.broadcast %129 : vector<1x256xi1> to vector<8x256xi1>
    %131 = arith.select %130, %127, %128 : vector<8x256xi1>, vector<8x256xbf16>
    %c48_86 = arith.constant 48 : index
    %c0_87 = arith.constant 0 : index
    %132 = vector.load %arg11[%c48_86, %c0_87] : memref<144x256xbf16, #tpu.memory_space<vmem>>, vector<8x256xbf16>
    tpu.vector_store %arg11[%c48_86, %c0_87], %131 {strides = array<i32>} : memref<144x256xbf16, #tpu.memory_space<vmem>>, vector<8x256xbf16>,
    %c0_88 = arith.constant 0 : index
    %c33_89 = arith.constant 33 : index
    %133 = vector.load %arg10[%c0_88, %c33_89] : memref<16x290xbf16, #tpu.memory_space<vmem>>, vector<8x256xbf16>
    %c56 = arith.constant 56 : index
    %c0_90 = arith.constant 0 : index
    %134 = vector.load %arg11[%c56, %c0_90] : memref<144x256xbf16, #tpu.memory_space<vmem>>, vector<8x256xbf16>
    tpu.vector_store %arg11[%c56, %c0_90], %133 {strides = array<i32>} : memref<144x256xbf16, #tpu.memory_space<vmem>>, vector<8x256xbf16>,
    %c0_91 = arith.constant 0 : index
    %c34_92 = arith.constant 34 : index
    %135 = vector.load %arg10[%c0_91, %c34_92] : memref<16x290xbf16, #tpu.memory_space<vmem>>, vector<8x256xbf16>
    %cst_93 = arith.constant 0.000000e+00 : bf16
    %136 = vector.broadcast %cst_93 : bf16 to vector<8x256xbf16>
    %137 = vector.shape_cast %98 : vector<1x256xi1> to vector<1x256xi1>
    %138 = vector.broadcast %137 : vector<1x256xi1> to vector<8x256xi1>
    %139 = arith.select %138, %135, %136 : vector<8x256xi1>, vector<8x256xbf16>
    %c64_94 = arith.constant 64 : index
    %c0_95 = arith.constant 0 : index
    %140 = vector.load %arg11[%c64_94, %c0_95] : memref<144x256xbf16, #tpu.memory_space<vmem>>, vector<8x256xbf16>
    tpu.vector_store %arg11[%c64_94, %c0_95], %139 {strides = array<i32>} : memref<144x256xbf16, #tpu.memory_space<vmem>>, vector<8x256xbf16>,
    %c0_96 = arith.constant 0 : index
    %c0_97 = arith.constant 0 : index
    %c0_98 = arith.constant 0 : index
    %141 = vector.load %arg2[%c0_96, %c0_97, %c0_98] : memref<1x8x256xbf16, #tpu.memory_space<vmem>>, vector<1x8x256xbf16>
    %142 = vector.shape_cast %141 : vector<1x8x256xbf16> to vector<8x256xbf16>
    %cst_99 = arith.constant 0.000000e+00 : bf16
    %143 = vector.broadcast %cst_99 : bf16 to vector<8x290xbf16>
    %c0_100 = arith.constant 0 : index
    %c0_101 = arith.constant 0 : index
    %144 = vector.load %arg10[%c0_100, %c0_101] : memref<16x290xbf16, #tpu.memory_space<vmem>>, vector<8x290xbf16>
    tpu.vector_store %arg10[%c0_100, %c0_101], %143 {strides = array<i32>} : memref<16x290xbf16, #tpu.memory_space<vmem>>, vector<8x290xbf16>,
    %c0_102 = arith.constant 0 : index
    %c17_103 = arith.constant 17 : index
    %145 = vector.load %arg10[%c0_102, %c17_103] : memref<16x290xbf16, #tpu.memory_space<vmem>>, vector<8x256xbf16>
    tpu.vector_store %arg10[%c0_102, %c17_103], %142 {strides = array<i32>} : memref<16x290xbf16, #tpu.memory_space<vmem>>, vector<8x256xbf16>,
    %146 = tpu.iota {dimensions = array<i32: 1>} : vector<1x256xi32>
    %c16_i32_104 = arith.constant 16 : i32
    %c0_i32_105 = arith.constant 0 : i32
    %147 = arith.cmpi eq, %c16_i32_104, %c0_i32_105 : i32
    %c1_i32_106 = arith.constant 1 : i32
    %148 = arith.select %147, %c1_i32_106, %c16_i32_104 : i32
    %149 = vector.broadcast %148 : i32 to vector<1x256xi32>
    %150 = arith.remsi %146, %149 : vector<1x256xi32>
    %c0_i32_107 = arith.constant 0 : i32
    %151 = vector.broadcast %c0_i32_107 : i32 to vector<1x256xi32>
    %152 = arith.cmpi ne, %150, %151 : vector<1x256xi32>
    %c0_i32_108 = arith.constant 0 : i32
    %153 = vector.broadcast %c0_i32_108 : i32 to vector<1x256xi32>
    %154 = arith.cmpi slt, %150, %153 : vector<1x256xi32>
    %c0_i32_109 = arith.constant 0 : i32
    %155 = arith.cmpi slt, %148, %c0_i32_109 : i32
    %156 = vector.broadcast %155 : i1 to vector<1x256xi1>
    %157 = vector.broadcast %156 : vector<1x256xi1> to vector<1x256xi1>
    %158 = arith.xori %154, %157 : vector<1x256xi1>
    %159 = arith.andi %158, %152 : vector<1x256xi1>
    %160 = vector.broadcast %148 : i32 to vector<1x256xi32>
    %161 = arith.addi %150, %160 : vector<1x256xi32>
    %162 = arith.select %159, %161, %150 : vector<1x256xi1>, vector<1x256xi32>
    %c1_i32_110 = arith.constant 1 : i32
    %163 = vector.broadcast %c1_i32_110 : i32 to vector<1x256xi32>
    %164 = arith.cmpi sge, %162, %163 : vector<1x256xi32>
    %c15_i32_111 = arith.constant 15 : i32
    %165 = vector.broadcast %c15_i32_111 : i32 to vector<1x256xi32>
    %166 = arith.cmpi slt, %162, %165 : vector<1x256xi32>
    %c0_112 = arith.constant 0 : index
    %c0_113 = arith.constant 0 : index
    %167 = vector.load %arg10[%c0_112, %c0_113] : memref<16x290xbf16, #tpu.memory_space<vmem>>, vector<8x256xbf16>
    %cst_114 = arith.constant 0.000000e+00 : bf16
    %168 = vector.broadcast %cst_114 : bf16 to vector<8x256xbf16>
    %169 = vector.shape_cast %164 : vector<1x256xi1> to vector<1x256xi1>
    %170 = vector.broadcast %169 : vector<1x256xi1> to vector<8x256xi1>
    %171 = arith.select %170, %167, %168 : vector<8x256xi1>, vector<8x256xbf16>
    %c72 = arith.constant 72 : index
    %c0_115 = arith.constant 0 : index
    %172 = vector.load %arg11[%c72, %c0_115] : memref<144x256xbf16, #tpu.memory_space<vmem>>, vector<8x256xbf16>
    tpu.vector_store %arg11[%c72, %c0_115], %171 {strides = array<i32>} : memref<144x256xbf16, #tpu.memory_space<vmem>>, vector<8x256xbf16>,
    %c0_116 = arith.constant 0 : index
    %c1_117 = arith.constant 1 : index
    %173 = vector.load %arg10[%c0_116, %c1_117] : memref<16x290xbf16, #tpu.memory_space<vmem>>, vector<8x256xbf16>
    %c80_118 = arith.constant 80 : index
    %c0_119 = arith.constant 0 : index
    %174 = vector.load %arg11[%c80_118, %c0_119] : memref<144x256xbf16, #tpu.memory_space<vmem>>, vector<8x256xbf16>
    tpu.vector_store %arg11[%c80_118, %c0_119], %173 {strides = array<i32>} : memref<144x256xbf16, #tpu.memory_space<vmem>>, vector<8x256xbf16>,
    %c0_120 = arith.constant 0 : index
    %c2_121 = arith.constant 2 : index
    %175 = vector.load %arg10[%c0_120, %c2_121] : memref<16x290xbf16, #tpu.memory_space<vmem>>, vector<8x256xbf16>
    %cst_122 = arith.constant 0.000000e+00 : bf16
    %176 = vector.broadcast %cst_122 : bf16 to vector<8x256xbf16>
    %177 = vector.shape_cast %166 : vector<1x256xi1> to vector<1x256xi1>
    %178 = vector.broadcast %177 : vector<1x256xi1> to vector<8x256xi1>
    %179 = arith.select %178, %175, %176 : vector<8x256xi1>, vector<8x256xbf16>
    %c88 = arith.constant 88 : index
    %c0_123 = arith.constant 0 : index
    %180 = vector.load %arg11[%c88, %c0_123] : memref<144x256xbf16, #tpu.memory_space<vmem>>, vector<8x256xbf16>
    tpu.vector_store %arg11[%c88, %c0_123], %179 {strides = array<i32>} : memref<144x256xbf16, #tpu.memory_space<vmem>>, vector<8x256xbf16>,
    %c0_124 = arith.constant 0 : index
    %c16_125 = arith.constant 16 : index
    %181 = vector.load %arg10[%c0_124, %c16_125] : memref<16x290xbf16, #tpu.memory_space<vmem>>, vector<8x256xbf16>
    %cst_126 = arith.constant 0.000000e+00 : bf16
    %182 = vector.broadcast %cst_126 : bf16 to vector<8x256xbf16>
    %183 = vector.shape_cast %164 : vector<1x256xi1> to vector<1x256xi1>
    %184 = vector.broadcast %183 : vector<1x256xi1> to vector<8x256xi1>
    %185 = arith.select %184, %181, %182 : vector<8x256xi1>, vector<8x256xbf16>
    %c96_127 = arith.constant 96 : index
    %c0_128 = arith.constant 0 : index
    %186 = vector.load %arg11[%c96_127, %c0_128] : memref<144x256xbf16, #tpu.memory_space<vmem>>, vector<8x256xbf16>
    tpu.vector_store %arg11[%c96_127, %c0_128], %185 {strides = array<i32>} : memref<144x256xbf16, #tpu.memory_space<vmem>>, vector<8x256xbf16>,
    %c0_129 = arith.constant 0 : index
    %c17_130 = arith.constant 17 : index
    %187 = vector.load %arg10[%c0_129, %c17_130] : memref<16x290xbf16, #tpu.memory_space<vmem>>, vector<8x256xbf16>
    %c104 = arith.constant 104 : index
    %c0_131 = arith.constant 0 : index
    %188 = vector.load %arg11[%c104, %c0_131] : memref<144x256xbf16, #tpu.memory_space<vmem>>, vector<8x256xbf16>
    tpu.vector_store %arg11[%c104, %c0_131], %187 {strides = array<i32>} : memref<144x256xbf16, #tpu.memory_space<vmem>>, vector<8x256xbf16>,
    %c0_132 = arith.constant 0 : index
    %c18_133 = arith.constant 18 : index
    %189 = vector.load %arg10[%c0_132, %c18_133] : memref<16x290xbf16, #tpu.memory_space<vmem>>, vector<8x256xbf16>
    %cst_134 = arith.constant 0.000000e+00 : bf16
    %190 = vector.broadcast %cst_134 : bf16 to vector<8x256xbf16>
    %191 = vector.shape_cast %166 : vector<1x256xi1> to vector<1x256xi1>
    %192 = vector.broadcast %191 : vector<1x256xi1> to vector<8x256xi1>
    %193 = arith.select %192, %189, %190 : vector<8x256xi1>, vector<8x256xbf16>
    %c112_135 = arith.constant 112 : index
    %c0_136 = arith.constant 0 : index
    %194 = vector.load %arg11[%c112_135, %c0_136] : memref<144x256xbf16, #tpu.memory_space<vmem>>, vector<8x256xbf16>
    tpu.vector_store %arg11[%c112_135, %c0_136], %193 {strides = array<i32>} : memref<144x256xbf16, #tpu.memory_space<vmem>>, vector<8x256xbf16>,
    %c0_137 = arith.constant 0 : index
    %c32_138 = arith.constant 32 : index
    %195 = vector.load %arg10[%c0_137, %c32_138] : memref<16x290xbf16, #tpu.memory_space<vmem>>, vector<8x256xbf16>
    %cst_139 = arith.constant 0.000000e+00 : bf16
    %196 = vector.broadcast %cst_139 : bf16 to vector<8x256xbf16>
    %197 = vector.shape_cast %164 : vector<1x256xi1> to vector<1x256xi1>
    %198 = vector.broadcast %197 : vector<1x256xi1> to vector<8x256xi1>
    %199 = arith.select %198, %195, %196 : vector<8x256xi1>, vector<8x256xbf16>
    %c120 = arith.constant 120 : index
    %c0_140 = arith.constant 0 : index
    %200 = vector.load %arg11[%c120, %c0_140] : memref<144x256xbf16, #tpu.memory_space<vmem>>, vector<8x256xbf16>
    tpu.vector_store %arg11[%c120, %c0_140], %199 {strides = array<i32>} : memref<144x256xbf16, #tpu.memory_space<vmem>>, vector<8x256xbf16>,
    %c0_141 = arith.constant 0 : index
    %c33_142 = arith.constant 33 : index
    %201 = vector.load %arg10[%c0_141, %c33_142] : memref<16x290xbf16, #tpu.memory_space<vmem>>, vector<8x256xbf16>
    %c128_143 = arith.constant 128 : index
    %c0_144 = arith.constant 0 : index
    %202 = vector.load %arg11[%c128_143, %c0_144] : memref<144x256xbf16, #tpu.memory_space<vmem>>, vector<8x256xbf16>
    tpu.vector_store %arg11[%c128_143, %c0_144], %201 {strides = array<i32>} : memref<144x256xbf16, #tpu.memory_space<vmem>>, vector<8x256xbf16>,
    %c0_145 = arith.constant 0 : index
    %c34_146 = arith.constant 34 : index
    %203 = vector.load %arg10[%c0_145, %c34_146] : memref<16x290xbf16, #tpu.memory_space<vmem>>, vector<8x256xbf16>
    %cst_147 = arith.constant 0.000000e+00 : bf16
    %204 = vector.broadcast %cst_147 : bf16 to vector<8x256xbf16>
    %205 = vector.shape_cast %166 : vector<1x256xi1> to vector<1x256xi1>
    %206 = vector.broadcast %205 : vector<1x256xi1> to vector<8x256xi1>
    %207 = arith.select %206, %203, %204 : vector<8x256xi1>, vector<8x256xbf16>
    %c136 = arith.constant 136 : index
    %c0_148 = arith.constant 0 : index
    %208 = vector.load %arg11[%c136, %c0_148] : memref<144x256xbf16, #tpu.memory_space<vmem>>, vector<8x256xbf16>
    tpu.vector_store %arg11[%c136, %c0_148], %207 {strides = array<i32>} : memref<144x256xbf16, #tpu.memory_space<vmem>>, vector<8x256xbf16>,
    %c0_149 = arith.constant 0 : index
    %c0_150 = arith.constant 0 : index
    %209 = vector.load %arg5[%c0_149, %c0_150] : memref<8x144xbf16, #tpu.memory_space<vmem>>, vector<8x144xbf16>
    %c0_151 = arith.constant 0 : index
    %c0_152 = arith.constant 0 : index
    %210 = vector.load %arg11[%c0_151, %c0_152] : memref<144x256xbf16, #tpu.memory_space<vmem>>, vector<144x256xbf16>
    %cst_153 = arith.constant dense<0.000000e+00> : vector<8x256xf32>
    %211 = tpu.matmul %209, %210, %cst_153 {dimension_numbers = #tpu.dot_dimension_numbers<[1], [0], [0], [1], [0, 0, 1, 1], [], []>} : vector<8x144xbf16>, vector<144x256xbf16>, vector<8x256xf32> -> vector<8x256xf32>
    %c0_154 = arith.constant 0 : index
    %c0_155 = arith.constant 0 : index
    %212 = vector.load %arg6[%c0_154, %c0_155] : memref<8x1xf32, #tpu.memory_space<vmem>>, vector<8x1xf32>
    %213 = vector.broadcast %212 : vector<8x1xf32> to vector<8x256xf32>
    %214 = arith.addf %211, %213 : vector<8x256xf32>
    %cst_156 = arith.constant 0.000000e+00 : f32
    %215 = vector.broadcast %cst_156 : f32 to vector<8x256xf32>
    %216 = arith.cmpf oge, %214, %215 : vector<8x256xf32>
    %cst_157 = arith.constant 1.000000e-01 : f32
    %217 = vector.broadcast %cst_157 : f32 to vector<8x256xf32>
    %218 = arith.mulf %217, %214 : vector<8x256xf32>
    %219 = arith.select %216, %214, %218 : vector<8x256xi1>, vector<8x256xf32>
    %cst_158 = arith.constant 0.000000e+00 : bf16
    %220 = vector.broadcast %cst_158 : bf16 to vector<8x290xbf16>
    %c0_159 = arith.constant 0 : index
    %c0_160 = arith.constant 0 : index
    %221 = vector.load %arg10[%c0_159, %c0_160] : memref<16x290xbf16, #tpu.memory_space<vmem>>, vector<8x290xbf16>
    tpu.vector_store %arg10[%c0_159, %c0_160], %220 {strides = array<i32>} : memref<16x290xbf16, #tpu.memory_space<vmem>>, vector<8x290xbf16>,
    %222 = arith.truncf %219 : vector<8x256xf32> to vector<8x256xbf16>
    %c0_161 = arith.constant 0 : index
    %c17_162 = arith.constant 17 : index
    %223 = vector.load %arg10[%c0_161, %c17_162] : memref<16x290xbf16, #tpu.memory_space<vmem>>, vector<8x256xbf16>
    tpu.vector_store %arg10[%c0_161, %c17_162], %222 {strides = array<i32>} : memref<16x290xbf16, #tpu.memory_space<vmem>>, vector<8x256xbf16>,
    %224 = tpu.iota {dimensions = array<i32: 1>} : vector<1x256xi32>
    %c16_i32_163 = arith.constant 16 : i32
    %c0_i32_164 = arith.constant 0 : i32
    %225 = arith.cmpi eq, %c16_i32_163, %c0_i32_164 : i32
    %c1_i32_165 = arith.constant 1 : i32
    %226 = arith.select %225, %c1_i32_165, %c16_i32_163 : i32
    %227 = vector.broadcast %226 : i32 to vector<1x256xi32>
    %228 = arith.remsi %224, %227 : vector<1x256xi32>
    %c0_i32_166 = arith.constant 0 : i32
    %229 = vector.broadcast %c0_i32_166 : i32 to vector<1x256xi32>
    %230 = arith.cmpi ne, %228, %229 : vector<1x256xi32>
    %c0_i32_167 = arith.constant 0 : i32
    %231 = vector.broadcast %c0_i32_167 : i32 to vector<1x256xi32>
    %232 = arith.cmpi slt, %228, %231 : vector<1x256xi32>
    %c0_i32_168 = arith.constant 0 : i32
    %233 = arith.cmpi slt, %226, %c0_i32_168 : i32
    %234 = vector.broadcast %233 : i1 to vector<1x256xi1>
    %235 = vector.broadcast %234 : vector<1x256xi1> to vector<1x256xi1>
    %236 = arith.xori %232, %235 : vector<1x256xi1>
    %237 = arith.andi %236, %230 : vector<1x256xi1>
    %238 = vector.broadcast %226 : i32 to vector<1x256xi32>
    %239 = arith.addi %228, %238 : vector<1x256xi32>
    %240 = arith.select %237, %239, %228 : vector<1x256xi1>, vector<1x256xi32>
    %c1_i32_169 = arith.constant 1 : i32
    %241 = vector.broadcast %c1_i32_169 : i32 to vector<1x256xi32>
    %242 = arith.cmpi sge, %240, %241 : vector<1x256xi32>
    %c15_i32_170 = arith.constant 15 : i32
    %243 = vector.broadcast %c15_i32_170 : i32 to vector<1x256xi32>
    %244 = arith.cmpi slt, %240, %243 : vector<1x256xi32>
    %c0_171 = arith.constant 0 : index
    %c0_172 = arith.constant 0 : index
    %245 = vector.load %arg10[%c0_171, %c0_172] : memref<16x290xbf16, #tpu.memory_space<vmem>>, vector<8x256xbf16>
    %cst_173 = arith.constant 0.000000e+00 : bf16
    %246 = vector.broadcast %cst_173 : bf16 to vector<8x256xbf16>
    %247 = vector.shape_cast %242 : vector<1x256xi1> to vector<1x256xi1>
    %248 = vector.broadcast %247 : vector<1x256xi1> to vector<8x256xi1>
    %249 = arith.select %248, %245, %246 : vector<8x256xi1>, vector<8x256xbf16>
    %c0_174 = arith.constant 0 : index
    %c0_175 = arith.constant 0 : index
    %250 = vector.load %arg11[%c0_174, %c0_175] : memref<144x256xbf16, #tpu.memory_space<vmem>>, vector<8x256xbf16>
    tpu.vector_store %arg11[%c0_174, %c0_175], %249 {strides = array<i32>} : memref<144x256xbf16, #tpu.memory_space<vmem>>, vector<8x256xbf16>,
    %c0_176 = arith.constant 0 : index
    %c1_177 = arith.constant 1 : index
    %251 = vector.load %arg10[%c0_176, %c1_177] : memref<16x290xbf16, #tpu.memory_space<vmem>>, vector<8x256xbf16>
    %c8_178 = arith.constant 8 : index
    %c0_179 = arith.constant 0 : index
    %252 = vector.load %arg11[%c8_178, %c0_179] : memref<144x256xbf16, #tpu.memory_space<vmem>>, vector<8x256xbf16>
    tpu.vector_store %arg11[%c8_178, %c0_179], %251 {strides = array<i32>} : memref<144x256xbf16, #tpu.memory_space<vmem>>, vector<8x256xbf16>,
    %c0_180 = arith.constant 0 : index
    %c2_181 = arith.constant 2 : index
    %253 = vector.load %arg10[%c0_180, %c2_181] : memref<16x290xbf16, #tpu.memory_space<vmem>>, vector<8x256xbf16>
    %cst_182 = arith.constant 0.000000e+00 : bf16
    %254 = vector.broadcast %cst_182 : bf16 to vector<8x256xbf16>
    %255 = vector.shape_cast %244 : vector<1x256xi1> to vector<1x256xi1>
    %256 = vector.broadcast %255 : vector<1x256xi1> to vector<8x256xi1>
    %257 = arith.select %256, %253, %254 : vector<8x256xi1>, vector<8x256xbf16>
    %c16_183 = arith.constant 16 : index
    %c0_184 = arith.constant 0 : index
    %258 = vector.load %arg11[%c16_183, %c0_184] : memref<144x256xbf16, #tpu.memory_space<vmem>>, vector<8x256xbf16>
    tpu.vector_store %arg11[%c16_183, %c0_184], %257 {strides = array<i32>} : memref<144x256xbf16, #tpu.memory_space<vmem>>, vector<8x256xbf16>,
    %c0_185 = arith.constant 0 : index
    %c16_186 = arith.constant 16 : index
    %259 = vector.load %arg10[%c0_185, %c16_186] : memref<16x290xbf16, #tpu.memory_space<vmem>>, vector<8x256xbf16>
    %cst_187 = arith.constant 0.000000e+00 : bf16
    %260 = vector.broadcast %cst_187 : bf16 to vector<8x256xbf16>
    %261 = vector.shape_cast %242 : vector<1x256xi1> to vector<1x256xi1>
    %262 = vector.broadcast %261 : vector<1x256xi1> to vector<8x256xi1>
    %263 = arith.select %262, %259, %260 : vector<8x256xi1>, vector<8x256xbf16>
    %c24_188 = arith.constant 24 : index
    %c0_189 = arith.constant 0 : index
    %264 = vector.load %arg11[%c24_188, %c0_189] : memref<144x256xbf16, #tpu.memory_space<vmem>>, vector<8x256xbf16>
    tpu.vector_store %arg11[%c24_188, %c0_189], %263 {strides = array<i32>} : memref<144x256xbf16, #tpu.memory_space<vmem>>, vector<8x256xbf16>,
    %c0_190 = arith.constant 0 : index
    %c17_191 = arith.constant 17 : index
    %265 = vector.load %arg10[%c0_190, %c17_191] : memref<16x290xbf16, #tpu.memory_space<vmem>>, vector<8x256xbf16>
    %c32_192 = arith.constant 32 : index
    %c0_193 = arith.constant 0 : index
    %266 = vector.load %arg11[%c32_192, %c0_193] : memref<144x256xbf16, #tpu.memory_space<vmem>>, vector<8x256xbf16>
    tpu.vector_store %arg11[%c32_192, %c0_193], %265 {strides = array<i32>} : memref<144x256xbf16, #tpu.memory_space<vmem>>, vector<8x256xbf16>,
    %c0_194 = arith.constant 0 : index
    %c18_195 = arith.constant 18 : index
    %267 = vector.load %arg10[%c0_194, %c18_195] : memref<16x290xbf16, #tpu.memory_space<vmem>>, vector<8x256xbf16>
    %cst_196 = arith.constant 0.000000e+00 : bf16
    %268 = vector.broadcast %cst_196 : bf16 to vector<8x256xbf16>
    %269 = vector.shape_cast %244 : vector<1x256xi1> to vector<1x256xi1>
    %270 = vector.broadcast %269 : vector<1x256xi1> to vector<8x256xi1>
    %271 = arith.select %270, %267, %268 : vector<8x256xi1>, vector<8x256xbf16>
    %c40_197 = arith.constant 40 : index
    %c0_198 = arith.constant 0 : index
    %272 = vector.load %arg11[%c40_197, %c0_198] : memref<144x256xbf16, #tpu.memory_space<vmem>>, vector<8x256xbf16>
    tpu.vector_store %arg11[%c40_197, %c0_198], %271 {strides = array<i32>} : memref<144x256xbf16, #tpu.memory_space<vmem>>, vector<8x256xbf16>,
    %c0_199 = arith.constant 0 : index
    %c32_200 = arith.constant 32 : index
    %273 = vector.load %arg10[%c0_199, %c32_200] : memref<16x290xbf16, #tpu.memory_space<vmem>>, vector<8x256xbf16>
    %cst_201 = arith.constant 0.000000e+00 : bf16
    %274 = vector.broadcast %cst_201 : bf16 to vector<8x256xbf16>
    %275 = vector.shape_cast %242 : vector<1x256xi1> to vector<1x256xi1>
    %276 = vector.broadcast %275 : vector<1x256xi1> to vector<8x256xi1>
    %277 = arith.select %276, %273, %274 : vector<8x256xi1>, vector<8x256xbf16>
    %c48_202 = arith.constant 48 : index
    %c0_203 = arith.constant 0 : index
    %278 = vector.load %arg11[%c48_202, %c0_203] : memref<144x256xbf16, #tpu.memory_space<vmem>>, vector<8x256xbf16>
    tpu.vector_store %arg11[%c48_202, %c0_203], %277 {strides = array<i32>} : memref<144x256xbf16, #tpu.memory_space<vmem>>, vector<8x256xbf16>,
    %c0_204 = arith.constant 0 : index
    %c33_205 = arith.constant 33 : index
    %279 = vector.load %arg10[%c0_204, %c33_205] : memref<16x290xbf16, #tpu.memory_space<vmem>>, vector<8x256xbf16>
    %c56_206 = arith.constant 56 : index
    %c0_207 = arith.constant 0 : index
    %280 = vector.load %arg11[%c56_206, %c0_207] : memref<144x256xbf16, #tpu.memory_space<vmem>>, vector<8x256xbf16>
    tpu.vector_store %arg11[%c56_206, %c0_207], %279 {strides = array<i32>} : memref<144x256xbf16, #tpu.memory_space<vmem>>, vector<8x256xbf16>,
    %c0_208 = arith.constant 0 : index
    %c34_209 = arith.constant 34 : index
    %281 = vector.load %arg10[%c0_208, %c34_209] : memref<16x290xbf16, #tpu.memory_space<vmem>>, vector<8x256xbf16>
    %cst_210 = arith.constant 0.000000e+00 : bf16
    %282 = vector.broadcast %cst_210 : bf16 to vector<8x256xbf16>
    %283 = vector.shape_cast %244 : vector<1x256xi1> to vector<1x256xi1>
    %284 = vector.broadcast %283 : vector<1x256xi1> to vector<8x256xi1>
    %285 = arith.select %284, %281, %282 : vector<8x256xi1>, vector<8x256xbf16>
    %c64_211 = arith.constant 64 : index
    %c0_212 = arith.constant 0 : index
    %286 = vector.load %arg11[%c64_211, %c0_212] : memref<144x256xbf16, #tpu.memory_space<vmem>>, vector<8x256xbf16>
    tpu.vector_store %arg11[%c64_211, %c0_212], %285 {strides = array<i32>} : memref<144x256xbf16, #tpu.memory_space<vmem>>, vector<8x256xbf16>,
    %c0_213 = arith.constant 0 : index
    %c0_214 = arith.constant 0 : index
    %287 = vector.load %arg7[%c0_213, %c0_214] : memref<8x72xbf16, #tpu.memory_space<vmem>>, vector<8x72xbf16>
    %c0_215 = arith.constant 0 : index
    %c0_216 = arith.constant 0 : index
    %288 = vector.load %arg11[%c0_215, %c0_216] : memref<144x256xbf16, #tpu.memory_space<vmem>>, vector<72x256xbf16>
    %cst_217 = arith.constant dense<0.000000e+00> : vector<8x256xf32>
    %289 = tpu.matmul %287, %288, %cst_217 {dimension_numbers = #tpu.dot_dimension_numbers<[1], [0], [0], [1], [0, 0, 1, 1], [], []>} : vector<8x72xbf16>, vector<72x256xbf16>, vector<8x256xf32> -> vector<8x256xf32>
    %c0_218 = arith.constant 0 : index
    %c0_219 = arith.constant 0 : index
    %290 = vector.load %arg8[%c0_218, %c0_219] : memref<8x1xf32, #tpu.memory_space<vmem>>, vector<8x1xf32>
    %291 = vector.broadcast %290 : vector<8x1xf32> to vector<8x256xf32>
    %292 = arith.addf %289, %291 : vector<8x256xf32>
    %cst_220 = arith.constant 0.000000e+00 : f32
    %293 = vector.broadcast %cst_220 : f32 to vector<8x256xf32>
    %294 = arith.cmpf oge, %292, %293 : vector<8x256xf32>
    %cst_221 = arith.constant 1.000000e-01 : f32
    %295 = vector.broadcast %cst_221 : f32 to vector<8x256xf32>
    %296 = arith.mulf %295, %292 : vector<8x256xf32>
    %297 = arith.select %294, %292, %296 : vector<8x256xi1>, vector<8x256xf32>
    %298 = arith.truncf %297 : vector<8x256xf32> to vector<8x256xbf16>
    %c0_222 = arith.constant 0 : index
    %c0_223 = arith.constant 0 : index
    %c0_224 = arith.constant 0 : index
    %299 = vector.load %arg9[%c0_222, %c0_223, %c0_224] : memref<1x8x256xbf16, #tpu.memory_space<vmem>>, vector<1x8x256xbf16>
    %300 = vector.shape_cast %299 : vector<1x8x256xbf16> to vector<8x256xbf16>
    %301 = vector.shape_cast %298 : vector<8x256xbf16> to vector<1x8x256xbf16>
    tpu.vector_store %arg9[%c0_222, %c0_223, %c0_224], %301 {strides = array<i32>} : memref<1x8x256xbf16, #tpu.memory_space<vmem>>, vector<1x8x256xbf16>,
    return
  }
  func.func @transform_0(%arg0: i32) -> (i32, i32, i32) {
    %c0_i32 = arith.constant 0 : i32
    %c0_i32_0 = arith.constant 0 : i32
    %c0_i32_1 = arith.constant 0 : i32
    return %arg0, %c0_i32, %c0_i32_0 : i32, i32, i32
  }
  func.func @transform_1(%arg0: i32) -> (i32, i32, i32) {
    %c0_i32 = arith.constant 0 : i32
    %c0_i32_0 = arith.constant 0 : i32
    %c0_i32_1 = arith.constant 0 : i32
    return %arg0, %c0_i32, %c0_i32_0 : i32, i32, i32
  }
  func.func @transform_2(%arg0: i32) -> (i32, i32) {
    %c0_i32 = arith.constant 0 : i32
    %c0_i32_0 = arith.constant 0 : i32
    %c0_i32_1 = arith.constant 0 : i32
    return %c0_i32, %c0_i32_0 : i32, i32
  }
  func.func @transform_3(%arg0: i32) -> (i32, i32) {
    %c0_i32 = arith.constant 0 : i32
    %c0_i32_0 = arith.constant 0 : i32
    %c0_i32_1 = arith.constant 0 : i32
    return %c0_i32, %c0_i32_0 : i32, i32
  }
  func.func @transform_4(%arg0: i32) -> (i32, i32) {
    %c0_i32 = arith.constant 0 : i32
    %c0_i32_0 = arith.constant 0 : i32
    %c0_i32_1 = arith.constant 0 : i32
    return %c0_i32, %c0_i32_0 : i32, i32
  }
  func.func @transform_5(%arg0: i32) -> (i32, i32) {
    %c0_i32 = arith.constant 0 : i32
    %c0_i32_0 = arith.constant 0 : i32
    %c0_i32_1 = arith.constant 0 : i32
    return %c0_i32, %c0_i32_0 : i32, i32
  }
  func.func @transform_6(%arg0: i32) -> (i32, i32) {
    %c0_i32 = arith.constant 0 : i32
    %c0_i32_0 = arith.constant 0 : i32
    %c0_i32_1 = arith.constant 0 : i32
    return %c0_i32, %c0_i32_0 : i32, i32
  }
  func.func @transform_7(%arg0: i32) -> (i32, i32) {
    %c0_i32 = arith.constant 0 : i32
    %c0_i32_0 = arith.constant 0 : i32
    %c0_i32_1 = arith.constant 0 : i32
    return %c0_i32, %c0_i32_0 : i32, i32
  }
  func.func @transform_8(%arg0: i32) -> (i32, i32, i32) {
    %c0_i32 = arith.constant 0 : i32
    %c0_i32_0 = arith.constant 0 : i32
    %c0_i32_1 = arith.constant 0 : i32
    return %arg0, %c0_i32, %c0_i32_0 : i32, i32, i32
  }
}

module attributes {stable_mosaic.version = 11 : i64} {
  func.func @_single_conv_kernel(%arg0: i32, %arg1: memref<1x8x256xbf16, #tpu.memory_space<vmem>>, %arg2: memref<2x72xbf16, #tpu.memory_space<vmem>>, %arg3: memref<2x1xf32, #tpu.memory_space<vmem>>, %arg4: memref<1x2x256xf32, #tpu.memory_space<vmem>>, %arg5: memref<8x290xbf16, #tpu.memory_space<vmem>>, %arg6: memref<72x256xbf16, #tpu.memory_space<vmem>>) attributes {dimension_semantics = [#tpu.dimension_semantics<parallel>], iteration_bounds = array<i64: 2>, scalar_prefetch = 0 : i64, scratch_operands = 2 : i64, tpu.core_type = #tpu.core_type<tc>, window_params = [{transform_indices = @transform_0, window_bounds = array<i64: 1, 8, 256>}, {pipeline_mode = #tpu.pipeline_mode<synchronous>, transform_indices = @transform_1, window_bounds = array<i64: 2, 72>}, {pipeline_mode = #tpu.pipeline_mode<synchronous>, transform_indices = @transform_2, window_bounds = array<i64: 2, 1>}, {transform_indices = @transform_3, window_bounds = array<i64: 1, 2, 256>}]} {
    %c0 = arith.constant 0 : index
    %c0_0 = arith.constant 0 : index
    %c0_1 = arith.constant 0 : index
    %0 = vector.load %arg1[%c0, %c0_0, %c0_1] : memref<1x8x256xbf16, #tpu.memory_space<vmem>>, vector<1x8x256xbf16>
    %1 = vector.shape_cast %0 : vector<1x8x256xbf16> to vector<8x256xbf16>
    %cst = arith.constant 0.000000e+00 : bf16
    %2 = vector.broadcast %cst : bf16 to vector<8x290xbf16>
    %c0_2 = arith.constant 0 : index
    %c0_3 = arith.constant 0 : index
    %3 = vector.load %arg5[%c0_2, %c0_3] : memref<8x290xbf16, #tpu.memory_space<vmem>>, vector<8x290xbf16>
    tpu.vector_store %arg5[%c0_2, %c0_3], %2 {strides = array<i32>} : memref<8x290xbf16, #tpu.memory_space<vmem>>, vector<8x290xbf16>,
    %c0_4 = arith.constant 0 : index
    %c17 = arith.constant 17 : index
    %4 = vector.load %arg5[%c0_4, %c17] : memref<8x290xbf16, #tpu.memory_space<vmem>>, vector<8x256xbf16>
    tpu.vector_store %arg5[%c0_4, %c17], %1 {strides = array<i32>} : memref<8x290xbf16, #tpu.memory_space<vmem>>, vector<8x256xbf16>,
    %5 = tpu.iota {dimensions = array<i32: 1>} : vector<1x256xi32>
    %c16_i32 = arith.constant 16 : i32
    %c0_i32 = arith.constant 0 : i32
    %6 = arith.cmpi eq, %c16_i32, %c0_i32 : i32
    %c1_i32 = arith.constant 1 : i32
    %7 = arith.select %6, %c1_i32, %c16_i32 : i32
    %8 = vector.broadcast %7 : i32 to vector<1x256xi32>
    %9 = arith.remsi %5, %8 : vector<1x256xi32>
    %c0_i32_5 = arith.constant 0 : i32
    %10 = vector.broadcast %c0_i32_5 : i32 to vector<1x256xi32>
    %11 = arith.cmpi ne, %9, %10 : vector<1x256xi32>
    %c0_i32_6 = arith.constant 0 : i32
    %12 = vector.broadcast %c0_i32_6 : i32 to vector<1x256xi32>
    %13 = arith.cmpi slt, %9, %12 : vector<1x256xi32>
    %c0_i32_7 = arith.constant 0 : i32
    %14 = arith.cmpi slt, %7, %c0_i32_7 : i32
    %15 = vector.broadcast %14 : i1 to vector<1x256xi1>
    %16 = vector.broadcast %15 : vector<1x256xi1> to vector<1x256xi1>
    %17 = arith.xori %13, %16 : vector<1x256xi1>
    %18 = arith.andi %17, %11 : vector<1x256xi1>
    %19 = vector.broadcast %7 : i32 to vector<1x256xi32>
    %20 = arith.addi %9, %19 : vector<1x256xi32>
    %21 = arith.select %18, %20, %9 : vector<1x256xi1>, vector<1x256xi32>
    %c1_i32_8 = arith.constant 1 : i32
    %22 = vector.broadcast %c1_i32_8 : i32 to vector<1x256xi32>
    %23 = arith.cmpi sge, %21, %22 : vector<1x256xi32>
    %c15_i32 = arith.constant 15 : i32
    %24 = vector.broadcast %c15_i32 : i32 to vector<1x256xi32>
    %25 = arith.cmpi slt, %21, %24 : vector<1x256xi32>
    %c0_9 = arith.constant 0 : index
    %c0_10 = arith.constant 0 : index
    %26 = vector.load %arg5[%c0_9, %c0_10] : memref<8x290xbf16, #tpu.memory_space<vmem>>, vector<8x256xbf16>
    %cst_11 = arith.constant 0.000000e+00 : bf16
    %27 = vector.broadcast %cst_11 : bf16 to vector<8x256xbf16>
    %28 = vector.shape_cast %23 : vector<1x256xi1> to vector<1x256xi1>
    %29 = vector.broadcast %28 : vector<1x256xi1> to vector<8x256xi1>
    %30 = arith.select %29, %26, %27 : vector<8x256xi1>, vector<8x256xbf16>
    %c0_12 = arith.constant 0 : index
    %c0_13 = arith.constant 0 : index
    %31 = vector.load %arg6[%c0_12, %c0_13] : memref<72x256xbf16, #tpu.memory_space<vmem>>, vector<8x256xbf16>
    tpu.vector_store %arg6[%c0_12, %c0_13], %30 {strides = array<i32>} : memref<72x256xbf16, #tpu.memory_space<vmem>>, vector<8x256xbf16>,
    %c0_14 = arith.constant 0 : index
    %c1 = arith.constant 1 : index
    %32 = vector.load %arg5[%c0_14, %c1] : memref<8x290xbf16, #tpu.memory_space<vmem>>, vector<8x256xbf16>
    %c8 = arith.constant 8 : index
    %c0_15 = arith.constant 0 : index
    %33 = vector.load %arg6[%c8, %c0_15] : memref<72x256xbf16, #tpu.memory_space<vmem>>, vector<8x256xbf16>
    tpu.vector_store %arg6[%c8, %c0_15], %32 {strides = array<i32>} : memref<72x256xbf16, #tpu.memory_space<vmem>>, vector<8x256xbf16>,
    %c0_16 = arith.constant 0 : index
    %c2 = arith.constant 2 : index
    %34 = vector.load %arg5[%c0_16, %c2] : memref<8x290xbf16, #tpu.memory_space<vmem>>, vector<8x256xbf16>
    %cst_17 = arith.constant 0.000000e+00 : bf16
    %35 = vector.broadcast %cst_17 : bf16 to vector<8x256xbf16>
    %36 = vector.shape_cast %25 : vector<1x256xi1> to vector<1x256xi1>
    %37 = vector.broadcast %36 : vector<1x256xi1> to vector<8x256xi1>
    %38 = arith.select %37, %34, %35 : vector<8x256xi1>, vector<8x256xbf16>
    %c16 = arith.constant 16 : index
    %c0_18 = arith.constant 0 : index
    %39 = vector.load %arg6[%c16, %c0_18] : memref<72x256xbf16, #tpu.memory_space<vmem>>, vector<8x256xbf16>
    tpu.vector_store %arg6[%c16, %c0_18], %38 {strides = array<i32>} : memref<72x256xbf16, #tpu.memory_space<vmem>>, vector<8x256xbf16>,
    %c0_19 = arith.constant 0 : index
    %c16_20 = arith.constant 16 : index
    %40 = vector.load %arg5[%c0_19, %c16_20] : memref<8x290xbf16, #tpu.memory_space<vmem>>, vector<8x256xbf16>
    %cst_21 = arith.constant 0.000000e+00 : bf16
    %41 = vector.broadcast %cst_21 : bf16 to vector<8x256xbf16>
    %42 = vector.shape_cast %23 : vector<1x256xi1> to vector<1x256xi1>
    %43 = vector.broadcast %42 : vector<1x256xi1> to vector<8x256xi1>
    %44 = arith.select %43, %40, %41 : vector<8x256xi1>, vector<8x256xbf16>
    %c24 = arith.constant 24 : index
    %c0_22 = arith.constant 0 : index
    %45 = vector.load %arg6[%c24, %c0_22] : memref<72x256xbf16, #tpu.memory_space<vmem>>, vector<8x256xbf16>
    tpu.vector_store %arg6[%c24, %c0_22], %44 {strides = array<i32>} : memref<72x256xbf16, #tpu.memory_space<vmem>>, vector<8x256xbf16>,
    %c0_23 = arith.constant 0 : index
    %c17_24 = arith.constant 17 : index
    %46 = vector.load %arg5[%c0_23, %c17_24] : memref<8x290xbf16, #tpu.memory_space<vmem>>, vector<8x256xbf16>
    %c32 = arith.constant 32 : index
    %c0_25 = arith.constant 0 : index
    %47 = vector.load %arg6[%c32, %c0_25] : memref<72x256xbf16, #tpu.memory_space<vmem>>, vector<8x256xbf16>
    tpu.vector_store %arg6[%c32, %c0_25], %46 {strides = array<i32>} : memref<72x256xbf16, #tpu.memory_space<vmem>>, vector<8x256xbf16>,
    %c0_26 = arith.constant 0 : index
    %c18 = arith.constant 18 : index
    %48 = vector.load %arg5[%c0_26, %c18] : memref<8x290xbf16, #tpu.memory_space<vmem>>, vector<8x256xbf16>
    %cst_27 = arith.constant 0.000000e+00 : bf16
    %49 = vector.broadcast %cst_27 : bf16 to vector<8x256xbf16>
    %50 = vector.shape_cast %25 : vector<1x256xi1> to vector<1x256xi1>
    %51 = vector.broadcast %50 : vector<1x256xi1> to vector<8x256xi1>
    %52 = arith.select %51, %48, %49 : vector<8x256xi1>, vector<8x256xbf16>
    %c40 = arith.constant 40 : index
    %c0_28 = arith.constant 0 : index
    %53 = vector.load %arg6[%c40, %c0_28] : memref<72x256xbf16, #tpu.memory_space<vmem>>, vector<8x256xbf16>
    tpu.vector_store %arg6[%c40, %c0_28], %52 {strides = array<i32>} : memref<72x256xbf16, #tpu.memory_space<vmem>>, vector<8x256xbf16>,
    %c0_29 = arith.constant 0 : index
    %c32_30 = arith.constant 32 : index
    %54 = vector.load %arg5[%c0_29, %c32_30] : memref<8x290xbf16, #tpu.memory_space<vmem>>, vector<8x256xbf16>
    %cst_31 = arith.constant 0.000000e+00 : bf16
    %55 = vector.broadcast %cst_31 : bf16 to vector<8x256xbf16>
    %56 = vector.shape_cast %23 : vector<1x256xi1> to vector<1x256xi1>
    %57 = vector.broadcast %56 : vector<1x256xi1> to vector<8x256xi1>
    %58 = arith.select %57, %54, %55 : vector<8x256xi1>, vector<8x256xbf16>
    %c48 = arith.constant 48 : index
    %c0_32 = arith.constant 0 : index
    %59 = vector.load %arg6[%c48, %c0_32] : memref<72x256xbf16, #tpu.memory_space<vmem>>, vector<8x256xbf16>
    tpu.vector_store %arg6[%c48, %c0_32], %58 {strides = array<i32>} : memref<72x256xbf16, #tpu.memory_space<vmem>>, vector<8x256xbf16>,
    %c0_33 = arith.constant 0 : index
    %c33 = arith.constant 33 : index
    %60 = vector.load %arg5[%c0_33, %c33] : memref<8x290xbf16, #tpu.memory_space<vmem>>, vector<8x256xbf16>
    %c56 = arith.constant 56 : index
    %c0_34 = arith.constant 0 : index
    %61 = vector.load %arg6[%c56, %c0_34] : memref<72x256xbf16, #tpu.memory_space<vmem>>, vector<8x256xbf16>
    tpu.vector_store %arg6[%c56, %c0_34], %60 {strides = array<i32>} : memref<72x256xbf16, #tpu.memory_space<vmem>>, vector<8x256xbf16>,
    %c0_35 = arith.constant 0 : index
    %c34 = arith.constant 34 : index
    %62 = vector.load %arg5[%c0_35, %c34] : memref<8x290xbf16, #tpu.memory_space<vmem>>, vector<8x256xbf16>
    %cst_36 = arith.constant 0.000000e+00 : bf16
    %63 = vector.broadcast %cst_36 : bf16 to vector<8x256xbf16>
    %64 = vector.shape_cast %25 : vector<1x256xi1> to vector<1x256xi1>
    %65 = vector.broadcast %64 : vector<1x256xi1> to vector<8x256xi1>
    %66 = arith.select %65, %62, %63 : vector<8x256xi1>, vector<8x256xbf16>
    %c64 = arith.constant 64 : index
    %c0_37 = arith.constant 0 : index
    %67 = vector.load %arg6[%c64, %c0_37] : memref<72x256xbf16, #tpu.memory_space<vmem>>, vector<8x256xbf16>
    tpu.vector_store %arg6[%c64, %c0_37], %66 {strides = array<i32>} : memref<72x256xbf16, #tpu.memory_space<vmem>>, vector<8x256xbf16>,
    %c0_38 = arith.constant 0 : index
    %c0_39 = arith.constant 0 : index
    %68 = vector.load %arg2[%c0_38, %c0_39] : memref<2x72xbf16, #tpu.memory_space<vmem>>, vector<2x72xbf16>
    %c0_40 = arith.constant 0 : index
    %c0_41 = arith.constant 0 : index
    %69 = vector.load %arg6[%c0_40, %c0_41] : memref<72x256xbf16, #tpu.memory_space<vmem>>, vector<72x256xbf16>
    %cst_42 = arith.constant dense<0.000000e+00> : vector<2x256xf32>
    %70 = tpu.matmul %68, %69, %cst_42 {dimension_numbers = #tpu.dot_dimension_numbers<[1], [0], [0], [1], [0, 0, 1, 1], [], []>} : vector<2x72xbf16>, vector<72x256xbf16>, vector<2x256xf32> -> vector<2x256xf32>
    %c0_43 = arith.constant 0 : index
    %c0_44 = arith.constant 0 : index
    %71 = vector.load %arg3[%c0_43, %c0_44] : memref<2x1xf32, #tpu.memory_space<vmem>>, vector<2x1xf32>
    %72 = vector.broadcast %71 : vector<2x1xf32> to vector<2x256xf32>
    %73 = arith.addf %70, %72 : vector<2x256xf32>
    %c0_45 = arith.constant 0 : index
    %c0_46 = arith.constant 0 : index
    %c0_47 = arith.constant 0 : index
    %74 = vector.load %arg4[%c0_45, %c0_46, %c0_47] : memref<1x2x256xf32, #tpu.memory_space<vmem>>, vector<1x2x256xf32>
    %75 = vector.shape_cast %74 : vector<1x2x256xf32> to vector<2x256xf32>
    %76 = vector.shape_cast %73 : vector<2x256xf32> to vector<1x2x256xf32>
    tpu.vector_store %arg4[%c0_45, %c0_46, %c0_47], %76 {strides = array<i32>} : memref<1x2x256xf32, #tpu.memory_space<vmem>>, vector<1x2x256xf32>,
    return
  }
  func.func @transform_0(%arg0: i32) -> (i32, i32, i32) {
    %c0_i32 = arith.constant 0 : i32
    %c0_i32_0 = arith.constant 0 : i32
    %c0_i32_1 = arith.constant 0 : i32
    return %arg0, %c0_i32, %c0_i32_0 : i32, i32, i32
  }
  func.func @transform_1(%arg0: i32) -> (i32, i32) {
    %c0_i32 = arith.constant 0 : i32
    %c0_i32_0 = arith.constant 0 : i32
    %c0_i32_1 = arith.constant 0 : i32
    return %c0_i32, %c0_i32_0 : i32, i32
  }
  func.func @transform_2(%arg0: i32) -> (i32, i32) {
    %c0_i32 = arith.constant 0 : i32
    %c0_i32_0 = arith.constant 0 : i32
    %c0_i32_1 = arith.constant 0 : i32
    return %c0_i32, %c0_i32_0 : i32, i32
  }
  func.func @transform_3(%arg0: i32) -> (i32, i32, i32) {
    %c0_i32 = arith.constant 0 : i32
    %c0_i32_0 = arith.constant 0 : i32
    %c0_i32_1 = arith.constant 0 : i32
    return %arg0, %c0_i32, %c0_i32_0 : i32, i32, i32
  }
}

</mosaic_0001>

<bundles_post_ra>
// kernel: unet_forward.7
= control target key start
LH: loop header
LB: loop body
LE: loop exit
PB: predicated region body
PF: predicated region fallthrough
CT: control target
= control target key end

     0   :  { %s1067_s18 = smov 0   ;;  %s1452_s0 = inlined_call_operand.vmem [shape: bf16[2,4,256], index: 0, kind: input, shape index: {}]   ;;  %s1453_s1 = inlined_call_operand.vmem [shape: bf16[8,36], index: 1, kind: input, shape index: {}]   ;;  %s1454_s2 = inlined_call_operand.vmem [shape: f32[8,1], index: 2, kind: input, shape index: {}]   ;;  %s1455_s3 = inlined_call_operand.vmem [shape: bf16[8,72], index: 3, kind: input, shape index: {}]   ;;  %s1456_s4 = inlined_call_operand.vmem [shape: f32[8,1], index: 4, kind: input, shape index: {}]   ;;  %s1457_s5 = inlined_call_operand.vmem [shape: bf16[2,8,256], index: 5, kind: output, shape index: {}]  }
   0x1 LB: > { %s912_s19 = sadd.s32 4294967295, %s1020_s18   ;;  %p916_p0 = scmp.ge.s32.totalorder %s1020_s18, 1  ;;  %s1020_s18 = sphi %s1067_s18, %s15_s18  }
   0x2   : > { %p187_p1 = scmp.lt.s32.totalorder %s1020_s18, 3 }
   0x4   : > { %p188_p2 = pnand %p916_p0, %p187_p1 }
   0x5   : > { %p215_p3 = scmp.lt.s32.totalorder (!%p188_p2), %s912_s19, 1  ;;  %s1023_s24 = smov (!%p188_p2), 18  }
   0x6   : > { %191 = sbr.rel (%p188_p2) target bundleno = 869 (0x365), region = 40  ;;  %s1024_s25 = smov (!%p188_p2), 16  }
   0x7   : > { %s1025_s26 = smov (!%p188_p2), 17   ;;  %s1026_s27 = smov (!%p188_p2), 32  }
   0x8   : > { %s1027_s28 = smov (!%p188_p2), 2   ;;  %s1028_s29 = smov (!%p188_p2), 34  }
   0x9   : > { %s1029_s30 = smov (!%p188_p2), 111   ;;  %s1030_s6 = smov (!%p188_p2), 94  }
   0xa   : > { %s1031_s7 = smov (!%p188_p2), 127   ;;  %s1032_s8 = smov (!%p188_p2), 96  }
   0xb   : > { %v249_v0 = vlaneseq  ;;  %v1022_v1 = vmov 0   ;;  %s1574_s19 = smov (!%p215_p3, %s912_s19), 1  ;;  %vm230_vm6 = vcmask 271360   ;;  %vm243_vm7 = vcmask 1041544   ;;  %s1033_s9 = smov 110  }
   0xc   : > { %229 = vst [vmem:[#allocation2] sm:$0x33] %v1022_v1  ;;  %1012 = vset.pattern.permute.xlu1 %v1022_v1  ;;  %1013 = vset.pattern.permute.xlu0 %v1022_v1  ;;  %s975_s20 = sshll.u32 %s1574_s19, 2  ;;  %vm244_vm8 = vcmask 1045508   ;;  %vm1460_vm9 = vcmask 138240   ;;  %vm247_vm10 = vcmask 132096   ;;  %v1101_v20 = vunpack.c.l.b16 %v1022_v1 }
   0xd   : > { %v250_v2 = vand.u32 127, %v249_v0  ;;  %s219_s23 = scalar_lea.vmem %s1452_s0, %s975_s20  ;;  %231 = vst.msk [vmem:[#allocation2 + $0x8] sm:$0x3] %vm230_vm6, %v1022_v1  ;;  %vm245_vm11 = vmor %vm244_vm8, %vm243_vm7  ;;  %vm498_vm12 = vcmask 277504   ;;  %vm445_vm13 = vcmask 261120   ;;  %v1104_v21 = vunpack.c.h.b16 %v1022_v1  ;;  %s1034_s10 = smov 95  }
   0xe   : > { %v228_v6 = vld [vmem:[%s219_s23] sm:$0xf]  ;;  %v1495_v40 = vmov 0  ;;  %v1497_v41 = vmov 0  ;;  %v1499_v46 = vmov 0  ;;  %v1501_v47 = vmov 0 }
   0xf   : > { %v251_v3 = vadd.s32 128, %v250_v2  ;;  %v256_v4 = vand.u32 15, %v250_v2  ;;  %233 = vst [vmem:[#allocation1] ss:$2 sm:$0xff] %v228_v6  ;;  %vm610_vm7 = vcmask 273408   ;;  %s1035_s11 = smov 126  }
  0x10   : > { %s1036_s12 = smov 112   ;;  %s976_s23 = sshll.u32 %s1574_s19, 3 }
  0x11   : > { %v263_v5 = vand.u32 15, %v251_v3  ;;  %vm278_vm0 = vcmp.lt.s32.totalorder %v256_v4, 15  ;;  %vm276_vm1 = vcmp.ge.s32.totalorder %v256_v4, 1 }
  0x13   : > { %vm279_vm2 = vcmp.lt.s32.totalorder %v263_v5, 15  ;;  %vm277_vm3 = vcmp.ge.s32.totalorder %v263_v5, 1 }
  0x14   : > { %vm312_vm4 = vmpackc.low %vm279_vm2, %vm278_vm0 }
  0x15   : > { %v313_v7 = vsel %vm312_vm4, 65537, %v1022_v1  ;;  %vm1085_vm5 = vmpackc.low %vm277_vm3, %vm276_vm1 }
  0x16   : > { %404 = vrot.lane.b32.xlu1 %v313_v7, %s1023_s24  ;;  %v350_v9 = vsel %vm1085_vm5, 65537, %v1022_v1  ;;  %v234_v10 = vld.sshfl [vmem:[#allocation1] sm:$0xff pattern:$0x75643120] }
  0x17   : > { %351 = vrot.lane.b32.xlu2 %v350_v9, %s1024_s25  ;;  %236 = vrot.lane.b32.xlu0 %v234_v10, %s1025_s26 }
  0x1e   : > { %442 = vrot.lane.b32.xlu1 %v350_v9, %s1026_s27 }
  0x1f   : > { %314 = vrot.lane.b32.xlu2 %v313_v7, %s1027_s28  ;;  %495 = vrot.lane.b32.xlu0 %v313_v7, %s1028_s29 }
  0x71   : > { %v352_v29 = vpop.permute.xlu2 %351 }
  0x79   : > { %v315_v4 = vpop.permute.xlu2 %314 }
  0x88   : > { %v1094_v11 = vpop.permute.xlu1 %404 }
  0x89   : > { %v237_v12 = vpop.permute.xlu0 %236  ;;  %v1098_v16 = vrot.slane %v1094_v11, 4 }
  0x8a   : > { %v238_v13 = vrot.slane %v237_v12, 4 }
  0x8b   : > { %v416_v22 = vunpack.c.l.b16 %v1098_v16  ;;  %v417_v24 = vunpack.c.h.b16 %v1098_v16 }
  0x8c   : > { %v240_v14 = vsel %vm1460_vm9, %v238_v13, %v237_v12  ;;  %248 = vst.msk [vmem:[#allocation2 + $0x8] sm:$0x3] %vm247_vm10, %v238_v13 }
  0x8d   : > { %246 = vst.msk [vmem:[#allocation2] sm:$0x33] %vm245_vm11, %v240_v14  ;;  %vm1144_vm4 = vcmp.ne.s32.totalorder %v416_v22, %v1101_v20  ;;  %vm1149_vm6 = vcmp.ne.s32.totalorder %v417_v24, %v1104_v21  ;;  %vm407_vm11 = vcmask 146432   ;;  %v1515_v24 = vmov 0 }
  0x8e   : > { %v1500_v46 = vsel %vm1144_vm4, 4294967295, %v1499_v46  ;;  %v1502_v47 = vsel %vm1149_vm6, 4294967295, %v1501_v47  ;;  %v408_v3 = vsel %vm407_vm11, %v1098_v16, %v1094_v11  ;;  %v316_v11 = vrot.slane %v315_v4, 4 }
  0x8f   : > { %v409_v9 = vunpack.c.l.b16 %v408_v3  ;;  %v410_v10 = vunpack.c.h.b16 %v408_v3  ;;  %vm317_vm11 = vcmask 15360   ;;  %v1511_v16 = vmov 0 }
  0x90   : > { %v443_v15 = vpop.permute.xlu1 %442 }
  0x91   : > { %v444_v17 = vrot.slane %v443_v15, 4  ;;  %v496_v18 = vpop.permute.xlu0 %495 }
  0x92   : > { %v497_v19 = vrot.slane %v496_v18, 4 }
  0x93   : > { %v388_v23 = vld [vmem:[#allocation2 + $0x8] sm:$0x3]  ;;  %v446_v30 = vsel %vm445_vm13, %v444_v17, %v443_v15  ;;  %v454_v37 = vunpack.c.l.b16 %v444_v17  ;;  %v455_v38 = vunpack.c.h.b16 %v444_v17  ;;  %v1513_v17 = vmov 0 }
  0x94   : > { %v499_v25 = vsel %vm498_vm12, %v497_v19, %v496_v18  ;;  %393 = vrot.lane.b32.xlu0 %v388_v23, %s1029_s30  ;;  %v387_v26 = vld [vmem:[#allocation2] sm:$0x33]  ;;  %v507_v27 = vunpack.c.l.b16 %v497_v19  ;;  %v508_v28 = vunpack.c.h.b16 %v497_v19  ;;  %v289_v33 = vld [vmem:[#allocation2 + $0x8] sm:$0x3]  ;;  %v447_v49 = vunpack.c.l.b16 %v446_v30  ;;  %vm1461_vm12 = vmpackc.low %vm1149_vm6, %vm1144_vm4 }
  0x95   : > { %v500_v31 = vunpack.c.l.b16 %v499_v25  ;;  %v501_v32 = vunpack.c.h.b16 %v499_v25  ;;  %391 = vrot.lane.b32.xlu2 %v387_v26, %s1029_s30  ;;  %v280_v34 = vld [vmem:[#allocation2] sm:$0x33]  ;;  %v494_v39 = vld [vmem:[#allocation2 + $0x8] sm:$0x3]  ;;  %v293_v44 = vrot.slane %v289_v33, 6  ;;  %v448_v50 = vunpack.c.h.b16 %v446_v30 }
  0x96   : > { %vm1111_vm14 = vcmp.ne.s32.totalorder %v507_v27, %v1101_v20  ;;  %vm1116_vm15 = vcmp.ne.s32.totalorder %v508_v28, %v1104_v21  ;;  %v493_v43 = vld [vmem:[#allocation2] sm:$0x33]  ;;  %v441_v51 = vld [vmem:[#allocation2 + $0x8] sm:$0x3]  ;;  %v286_v55 = vsel %vm1085_vm5, %v280_v34, 0  ;;  %vm1157_vm8 = vcmp.ne.s32.totalorder %v454_v37, %v1101_v20 }
  0x97   : > { %vm1459_vm0 = vmpackc.low %vm1116_vm15, %vm1111_vm14  ;;  %vm1125_vm1 = vcmp.ne.s32.totalorder %v500_v31, %v1101_v20  ;;  %vm1130_vm2 = vcmp.ne.s32.totalorder %v501_v32, %v1104_v21  ;;  %v440_v45 = vld [vmem:[#allocation2] sm:$0x33]  ;;  %v403_v52 = vld [vmem:[#allocation2 + $0x8] sm:$0x3]  ;;  %vm1162_vm10 = vcmp.ne.s32.totalorder %v455_v38, %v1104_v21  ;;  %287 = vst [vmem:[#allocation3] sm:$0x33] %v286_v55  ;;  %v318_v18 = vsel %vm317_vm11, %v316_v11, %v315_v4 }
  0x98   : > { %v1496_v40 = vsel %vm1125_vm1, 4294967295, %v1495_v40  ;;  %v1498_v41 = vsel %vm1130_vm2, 4294967295, %v1497_v41  ;;  %v515_v42 = vsel %vm1459_vm0, %v494_v39, 0  ;;  %vm1458_vm3 = vmpackc.low %vm1130_vm2, %vm1125_vm1  ;;  %v288_v48 = vld [vmem:[#allocation2] sm:$0x33]  ;;  %vm1195_vm0 = vcmp.ne.s32.totalorder %v448_v50, %v1104_v21 }
  0x99   : > { %520 = vrot.lane.b32.xlu1 %v515_v42, %s1030_s6  ;;  %v477_v53 = vld [vmem:[#allocation2 + $0x8] sm:$0x3]  ;;  %v476_v54 = vld [vmem:[#allocation2] sm:$0x33]  ;;  %v514_v61 = vsel %vm1458_vm3, %v493_v43, 0  ;;  %vm1463_vm13 = vmpackc.low %vm1162_vm10, %vm1157_vm8  ;;  %vm1190_vm3 = vcmp.ne.s32.totalorder %v447_v49, %v1101_v20  ;;  %v424_v6 = vsel %vm1461_vm12, %v403_v52, 0  ;;  %vm1229_vm12 = vcmp.ne.s32.totalorder %v410_v10, %v1104_v21 }
  0x9a   : > { %v402_v58 = vld [vmem:[#allocation2] sm:$0x33]  ;;  %v1174_v62 = vld [vmem:[#allocation2 + $0x8] sm:$0x3]  ;;  %v462_v5 = vsel %vm1463_vm13, %v441_v51, 0  ;;  %vm1462_vm9 = vmpackc.low %vm1195_vm0, %vm1190_vm3  ;;  %v428_v13 = vrot.slane %v424_v6, 6  ;;  %v319_v22 = vunpack.c.l.b16 %v318_v18  ;;  %v320_v23 = vunpack.c.h.b16 %v318_v18 }
  0x9b   : > { %v1166_v59 = vld [vmem:[#allocation2] sm:$0x33]  ;;  %v1176_v63 = vld [vmem:[#allocation2 + $0x8] sm:$0x3]  ;;  %v461_v12 = vsel %vm1462_vm9, %v440_v45, 0  ;;  %v1514_v17 = vsel %vm1229_vm12, 4294967295, %v1513_v17  ;;  %v326_v33 = vunpack.c.l.b16 %v316_v11  ;;  %v327_v34 = vunpack.c.h.b16 %v316_v11 }
  0x9c   : > { %v348_v60 = vld [vmem:[#allocation2] sm:$0x33]  ;;  %518 = vrot.lane.b32.xlu0 %v514_v61, %s1030_s6  ;;  %611 = vst.msk [vmem:[#allocation2 + $0x8] sm:$0xf] %vm610_vm7, %v1022_v1  ;;  %vm354_vm7 = vcmask 130048   ;;  %v292_v19 = vrot.slane %v288_v48, 6  ;;  %vm1256_vm11 = vcmp.ne.s32.totalorder %v319_v22, %v1101_v20  ;;  %vm1261_vm6 = vcmp.ne.s32.totalorder %v320_v23, %v1104_v21 }
  0x9d   : > { %609 = vst [vmem:[#allocation2] sm:$0xff] %v1022_v1  ;;  %296 = vrot.lane.b32.xlu2 %v293_v44, %s1031_s7  ;;  %v353_v1 = vrot.slane %v352_v29, 4  ;;  %v1517_v25 = vmov 0  ;;  %v481_v26 = vrot.slane %v477_v53, 6  ;;  %v480_v27 = vrot.slane %v476_v54, 6 }
  0x9e   : > { %v1519_v31 = vmov 0  ;;  %v1521_v32 = vmov 0  ;;  %v1523_v39 = vmov 0  ;;  %v1525_v42 = vmov 0 }
  0x9f   : > { %v355_v7 = vsel %vm354_vm7, %v353_v1, %v352_v29  ;;  %vm1224_vm7 = vcmp.ne.s32.totalorder %v409_v9, %v1101_v20  ;;  %v363_v29 = vunpack.c.l.b16 %v353_v1  ;;  %v364_v30 = vunpack.c.h.b16 %v353_v1 }
  0xa0   : > { %v356_v14 = vunpack.c.l.b16 %v355_v7  ;;  %v357_v15 = vunpack.c.h.b16 %v355_v7  ;;  %v1512_v16 = vsel %vm1224_vm7, 4294967295, %v1511_v16  ;;  %vm1467_vm9 = vmpackc.low %vm1229_vm12, %vm1224_vm7  ;;  %v1520_v31 = vsel %vm1256_vm11, 4294967295, %v1519_v31 }
  0xa1   : > { %467 = vrot.lane.b32.xlu1 %v462_v5, %s1032_s8  ;;  %v423_v28 = vsel %vm1467_vm9, %v402_v58, 0  ;;  %v1522_v32 = vsel %vm1261_vm6, 4294967295, %v1521_v32  ;;  %vm1280_vm12 = vcmp.ne.s32.totalorder %v363_v29, %v1101_v20  ;;  %vm1285_vm1 = vcmp.ne.s32.totalorder %v364_v30, %v1104_v21 }
  0xa2   : > { %vm1239_vm13 = vcmp.ne.s32.totalorder %v356_v14, %v1101_v20  ;;  %vm1244_vm4 = vcmp.ne.s32.totalorder %v357_v15, %v1104_v21  ;;  %v427_v37 = vrot.slane %v423_v28, 6  ;;  %v1524_v39 = vsel %vm1280_vm12, 4294967295, %v1523_v39 }
  0xa3   : > { %v1516_v24 = vsel %vm1239_vm13, 4294967295, %v1515_v24  ;;  %v1518_v25 = vsel %vm1244_vm4, 4294967295, %v1517_v25  ;;  %vm1471_vm7 = vmpackc.low %vm1244_vm4, %vm1239_vm13  ;;  %v1526_v42 = vsel %vm1285_vm1, 4294967295, %v1525_v42  ;;  %vm1290_vm9 = vcmp.ne.s32.totalorder %v326_v33, %v1101_v20 }
  0xa4   : > { %465 = vrot.lane.b32.xlu0 %v461_v12, %s1032_s8  ;;  %v370_v38 = vsel %vm1471_vm7, %v348_v60, 0  ;;  %vm1295_vm13 = vcmp.ne.s32.totalorder %v327_v34, %v1104_v21  ;;  %vm1531_vm7 = vmpackc.low %vm1261_vm6, %vm1256_vm11  ;;  %vm1477_vm11 = vcmask 908288   ;;  %vm1532_vm6 = vcmask 138240  }
  0xa5   : > { %431 = vrot.lane.b32.xlu2 %v428_v13, %s1033_s9  ;;  %v333_v45 = vsel %vm1531_vm7, %v1166_v59, 0  ;;  %v374_v48 = vrot.slane %v370_v38, 6  ;;  %vm1475_vm4 = vmpackc.low %vm1285_vm1, %vm1280_vm12  ;;  %vm1486_vm7 = vcmask 1043456   ;;  %vm1485_vm12 = vcmask 777216  }
  0xa6   : > { %vm1476_vm2 = vmpackc.low %vm1295_vm13, %vm1290_vm9  ;;  %v371_v20 = vsel %vm1475_vm4, %v1176_v63, 0  ;;  %vm1478_vm4 = vcmask 769024  }
  0xa7   : > { %v334_v21 = vsel %vm1476_vm2, %v1174_v62, 0  ;;  %v375_v49 = vrot.slane %v371_v20, 6  ;;  %vm1480_vm2 = vcmask 785408  }
  0xa9   : > { %294 = vrot.lane.b32.xlu1 %v292_v19, %s1031_s7 }
  0xac   : > { %484 = vrot.lane.b32.xlu0 %v481_v26, %s1034_s10 }
  0xad   : > { %482 = vrot.lane.b32.xlu2 %v480_v27, %s1034_s10 }
  0xb1   : > { %429 = vrot.lane.b32.xlu1 %v427_v37, %s1033_s9  ;;  %v535_v37 = vld [vmem:[%s1454_s2] sm:$0xff] }
  0xb4   : > { %337 = vrot.lane.b32.xlu0 %v333_v45, %s1035_s11 }
  0xb5   : > { %376 = vrot.lane.b32.xlu2 %v374_v48, %s1036_s12 }
  0xb9   : > { %339 = vrot.lane.b32.xlu1 %v334_v21, %s1035_s11 }
  0xbc   : > { %378 = vrot.lane.b32.xlu0 %v375_v49, %s1036_s12 }
  0xc1   : > { %538 = vperm.xlu1 %1012, %v535_v37  }
  0xef   : > { %v392_v50 = vpop.permute.xlu2 %391 }
  0xf0   : > { %v395_v52 = vrot.slane %v392_v50, 4 }
  0xf7   : > { %v297_v53 = vpop.permute.xlu2 %296 }
  0xf8   : > { %v299_v18 = vrot.slane %v297_v53, 4 }
  0xff   : > { %v432_v63 = vpop.permute.xlu2 %431 }
 0x100   : > { %v434_v20 = vrot.slane %v432_v63, 4 }
 0x106   : > { %v394_v51 = vpop.permute.xlu0 %393 }
 0x107   : > { %v396_v54 = vrot.slane %v394_v51, 4  ;;  %v483_v12 = vpop.permute.xlu2 %482 }
 0x108   : > { %v486_v26 = vrot.slane %v483_v12, 4 }
 0x109   : > { %v397_v55 = vsel %vm1486_vm7, %v395_v52, %v396_v54 }
 0x10a   : > { %v399_v58 = vsel %vm1477_vm11, %v392_v50, %v397_v55  ;;  %vm1481_vm11 = vcmask 1039360  }
 0x10b   : > { %401 = vst [vmem:[#allocation3 + $0x10] sm:$0x33] %v399_v58  ;;  %v521_v59 = vpop.permute.xlu1 %520 }
 0x10c   : > { %v523_v61 = vrot.slane %v521_v59, 4 }
 0x10e   : > { %v519_v60 = vpop.permute.xlu0 %518 }
 0x10f   : > { %v522_v62 = vrot.slane %v519_v60, 4  ;;  %v377_v52 = vpop.permute.xlu2 %376 }
 0x110   : > { %v380_v58 = vrot.slane %v377_v52, 4 }
 0x111   : > { %v524_v1 = vsel %vm1486_vm7, %v522_v62, %v523_v61 }
 0x112   : > { %v526_v3 = vsel %vm1478_vm4, %v519_v60, %v524_v1  ;;  %vm570_vm4 = vcmask 1041408  }
 0x113   : > { %528 = vst [vmem:[#allocation3 + $0x20] sm:$0x33] %v526_v3  ;;  %v468_v4 = vpop.permute.xlu1 %467 }
 0x114   : > { %v470_v6 = vrot.slane %v468_v4, 4 }
 0x116   : > { %v466_v5 = vpop.permute.xlu0 %465 }
 0x117   : > { %v469_v7 = vrot.slane %v466_v5, 4 }
 0x119   : > { %v471_v9 = vsel %vm1486_vm7, %v469_v7, %v470_v6 }
 0x11a   : > { %v473_v10 = vsel %vm1480_vm2, %v466_v5, %v471_v9  ;;  %v534_v11 = vld [vmem:[#allocation3 + $0x20] sm:$0x33]  ;;  %vm1482_vm2 = vcmask 900096  }
 0x11b   : > { %475 = vst [vmem:[#allocation3 + $0x18] sm:$0x33] %v473_v10  ;;  %v295_v13 = vpop.permute.xlu1 %294  ;;  %v554_v14 = vunpack.c.l.b16 %v534_v11  ;;  %v555_v15 = vunpack.c.h.b16 %v534_v11 }
 0x11c   : > { %v298_v19 = vrot.slane %v295_v13, 4 }
 0x11d   : > { %v560_v22 = vpack.c.b16 %v554_v14, %v554_v14  ;;  %v561_v23 = vpack.c.b16 %v555_v15, %v555_v15 }
 0x11e   : > { %v301_v27 = vsel %vm1486_vm7, %v298_v19, %v299_v18  ;;  %v485_v28 = vpop.permute.xlu0 %484  ;;  %v529_v18 = vld [vmem:[%s1453_s1] sm:$0xf] }
 0x11f   : > { %v303_v29 = vsel %vm1481_vm11, %v295_v13, %v301_v27  ;;  %v487_v30 = vrot.slane %v485_v28, 4  ;;  %v572_v33 = vsel %vm570_vm4, %v560_v22, 0  ;;  %v575_v34 = vsel %vm570_vm4, %v561_v23, 0 }
 0x120   : > { %305 = vst [vmem:[#allocation3] sm:$0xcc] %v303_v29  ;;  %582 = vmatpush.bf16.msra.mxu0 %v572_v33  ;;  %595 = vmatpush.bf16.msra.mxu1 %v575_v34  ;;  %vm1484_vm4 = vcmask 1031168   ;;  %vm1483_vm11 = vcmask 916480  }
 0x121   : > { %v488_v38 = vsel %vm1486_vm7, %v486_v26, %v487_v30 }
 0x122   : > { %v490_v45 = vsel %vm1485_vm12, %v483_v12, %v488_v38  ;;  %vm620_vm12 = vcmask 1043592  }
 0x123   : > { %492 = vst [vmem:[#allocation3 + $0x18] sm:$0xcc] %v490_v45  ;;  %v430_v48 = vpop.permute.xlu1 %429 }
 0x124   : > { %v433_v21 = vrot.slane %v430_v48, 4 }
 0x126   : > { %v435_v49 = vsel %vm1486_vm7, %v433_v21, %v434_v20  ;;  %v338_v50 = vpop.permute.xlu0 %337 }
 0x127   : > { %v437_v51 = vsel %vm1482_vm2, %v430_v48, %v435_v49  ;;  %v341_v54 = vrot.slane %v338_v50, 4  ;;  %v923_v10 = vld [vmem:[#allocation3] sm:$0xf]  ;;  %v977_v12 = vld [vmem:[#allocation3 + $0x4] sm:$0xf]  ;;  %vm566_vm2 = vcmask 293888  }
 0x128   : > { %439 = vst [vmem:[#allocation3 + $0x10] sm:$0xcc] %v437_v51 }
 0x12a   : > { %v980_v61 = vld [vmem:[#allocation3 + $0x14] sm:$0xf0]  ;;  %v933_v62 = vld [vmem:[#allocation3 + $0x18] sm:$0xf0] }
 0x12b   : > { %v340_v53 = vpop.permute.xlu1 %339 }
 0x12c   : > { %v342_v55 = vrot.slane %v340_v53, 4 }
 0x12e   : > { %v343_v59 = vsel %vm1486_vm7, %v341_v54, %v342_v55  ;;  %v379_v60 = vpop.permute.xlu0 %378 }
 0x12f   : > { %v345_v63 = vsel %vm1484_vm4, %v338_v50, %v343_v59  ;;  %v381_v1 = vrot.slane %v379_v60, 4  ;;  %v931_v3 = vld [vmem:[#allocation3 + $0x10] sm:$0xf]  ;;  %v979_v4 = vld [vmem:[#allocation3 + $0x14] sm:$0xf] }
 0x130   : > { %347 = vst [vmem:[#allocation3 + $0x8] sm:$0x33] %v345_v63  ;;  %v932_v5 = vor.u32 %v980_v61, %v931_v3  ;;  %v936_v6 = vor.u32 %v979_v4, %v933_v62 }
 0x131   : > { %v382_v7 = vsel %vm1486_vm7, %v380_v58, %v381_v1  ;;  %vm621_vm7 = vcmask 1047556  }
 0x132   : > { %v384_v9 = vsel %vm1483_vm11, %v377_v52, %v382_v7  ;;  %583 = vmatpush.bf16.msra.mxu0 %v932_v5  ;;  %596 = vmatpush.bf16.msra.mxu1 %v936_v6  ;;  %vm622_vm1 = vmor %vm621_vm7, %vm620_vm12  ;;  %vm1546_vm7 = vnez %v1502_v47  ;;  %v761_v47 = vld [vmem:[%s1456_s4] sm:$0xff] }
 0x133   : > { %386 = vst [vmem:[#allocation3 + $0x8] sm:$0xcc] %v384_v9  ;;  %v539_v19 = vpop.permute.xlu1 %538 }
 0x13a   : > { %v978_v11 = vld [vmem:[#allocation3 + $0x4] sm:$0xf0]  ;;  %v925_v13 = vld [vmem:[#allocation3 + $0x8] sm:$0xf0] }
 0x13b   : > { %v924_v14 = vor.u32 %v978_v11, %v923_v10  ;;  %v928_v15 = vor.u32 %v977_v12, %v925_v13 }
 0x13d   : > { %584 = vmatpush.bf16.msra.mxu0 %v924_v14  ;;  %597 = vmatpush.bf16.msra.mxu1 %v928_v15 }
 0x140   : > { %937 = vmatmul.msk.bf16.vlgmr.msra.gmra.mxu0 %vm566_vm2, %v529_v18  ;;  %938 = vmatmul.msk.bf16.vlgmr.msra.gmra.mxu1 %vm566_vm2, %v529_v18  ;;  %vm624_vm2 = vcmask 134144  }
 0x1bd   : > { %v586_v22 = vpop.f32.mrf.mxu0  ;;  %v599_v23 = vpop.f32.mrf.mxu1 }
 0x1be   : > { %v587_v26 = vadd.f32 %v586_v22, %v539_v19  ;;  %v600_v27 = vadd.f32 %v599_v23, %v539_v19 }
 0x1c0   : > { %vm603_vm11 = vcmp.ge.f32.partialorder %v587_v26, 0.0  ;;  %v605_v28 = vmul.f32 0.1, %v587_v26  ;;  %vm604_vm4 = vcmp.ge.f32.partialorder %v600_v27, 0.0  ;;  %v606_v29 = vmul.f32 0.1, %v600_v27 }
 0x1c2   : > { %v607_v30 = vsel %vm603_vm11, %v587_v26, %v605_v28  ;;  %v608_v33 = vsel %vm604_vm4, %v600_v27, %v606_v29  ;;  %vm1533_vm11 = vmpackc.low %vm1162_vm10, %vm1157_vm8  ;;  %vm1540_vm8 = vnez %v1514_v17  ;;  %vm1541_vm10 = vnez %v1512_v16 }
 0x1c3   : > { %v612_v34 = vpack.c.bf16 %v608_v33, %v607_v30  ;;  %vm1542_vm12 = vmpackc.low %vm1540_vm8, %vm1541_vm10  ;;  %vm1547_vm4 = vnez %v1500_v46  ;;  %vm1556_vm8 = vcmask 785408  }
 0x1c5   : > { %v588_v37 = vpop.f32.mrf.mxu0  ;;  %v601_v38 = vpop.f32.mrf.mxu1  ;;  %614 = vrot.lane.b32.xlu2 %v612_v34, %s1025_s26  ;;  %s224_s26 = scalar_lea.vmem %s1457_s5, %s976_s23 }
 0x21f   : > { %v615_v45 = vpop.permute.xlu2 %614 }
 0x220   : > { %v616_v48 = vrot.slane %v615_v45, 4 }
 0x222   : > { %v617_v20 = vsel %vm1532_vm6, %v616_v48, %v615_v45  ;;  %625 = vst.msk [vmem:[#allocation2 + $0x8] sm:$0xf] %vm624_vm2, %v616_v48  ;;  %vm1535_vm6 = vmpackc.low %vm1295_vm13, %vm1290_vm9  ;;  %vm1538_vm9 = vnez %v1496_v40 }
 0x223   : > { %623 = vst.msk [vmem:[#allocation2] sm:$0xff] %vm622_vm1, %v617_v20  ;;  %vm1534_vm1 = vmpackc.low %vm1116_vm15, %vm1111_vm14  ;;  %vm1537_vm14 = vnez %v1498_v41 }
 0x224   : > { %vm1539_vm15 = vmpackc.low %vm1537_vm14, %vm1538_vm9  ;;  %vm1553_vm14 = vnez %v1516_v24 }
 0x225   : > { %vm1548_vm2 = vmpackc.low %vm1546_vm7, %vm1547_vm4  ;;  %vm1562_vm7 = vcmask 769024  }
 0x229   : > { %v722_v21 = vld [vmem:[#allocation2 + $0x8] sm:$0xf] }
 0x22a   : > { %v676_v49 = vld [vmem:[#allocation2 + $0x8] sm:$0xf]  ;;  %727 = vrot.lane.b32.xlu2 %v722_v21, %s1034_s10  ;;  %v675_v52 = vld [vmem:[#allocation2] sm:$0xff] }
 0x22b   : > { %v706_v50 = vld [vmem:[#allocation2 + $0x8] sm:$0xf]  ;;  %681 = vrot.lane.b32.xlu1 %v676_v49, %s1029_s30  ;;  %v627_v53 = vsel %vm1085_vm5, %v675_v52, 0  ;;  %vm1536_vm5 = vmpackc.low %vm1195_vm0, %vm1190_vm3  ;;  %v737_v35 = vsel %vm1539_vm15, %v675_v52, 0  ;;  %v691_v57 = vsel %vm1542_vm12, %v675_v52, 0  ;;  %vm1543_vm0 = vnez %v1522_v32 }
 0x22c   : > { %v708_v51 = vsel %vm1533_vm11, %v706_v50, 0  ;;  %v736_v54 = vld [vmem:[#allocation2 + $0x8] sm:$0xf]  ;;  %628 = vst [vmem:[#allocation3] sm:$0xff] %v627_v53  ;;  %v707_v8 = vsel %vm1536_vm5, %v675_v52, 0  ;;  %vm1544_vm3 = vnez %v1520_v31  ;;  %vm1549_vm11 = vnez %v1526_v42 }
 0x22d   : > { %713 = vrot.lane.b32.xlu0 %v708_v51, %s1032_s8  ;;  %v644_v55 = vld [vmem:[#allocation2 + $0x8] sm:$0xf]  ;;  %v738_v58 = vsel %vm1534_vm1, %v736_v54, 0  ;;  %vm1545_vm13 = vmpackc.low %vm1543_vm0, %vm1544_vm3  ;;  %vm1550_vm1 = vnez %v1524_v39  ;;  %vm1552_vm5 = vnez %v1518_v25  ;;  %vm1555_vm15 = vcmask 1043456  }
 0x22e   : > { %v646_v56 = vsel %vm1535_vm6, %v644_v55, 0  ;;  %v690_v36 = vld [vmem:[#allocation2 + $0x8] sm:$0xf]  ;;  %v645_v0 = vsel %vm1545_vm13, %v675_v52, 0  ;;  %vm1551_vm6 = vmpackc.low %vm1549_vm11, %vm1550_vm1  ;;  %vm1558_vm12 = vcmask 908288   ;;  %vm1560_vm3 = vcmask 777216  }
 0x22f   : > { %v692_v40 = vsel %vm1548_vm2, %v690_v36, 0  ;;  %v660_v41 = vld [vmem:[#allocation2 + $0x8] sm:$0xf]  ;;  %vm1554_vm9 = vmpackc.low %vm1552_vm5, %vm1553_vm14  ;;  %vm1566_vm1 = vcmask 1031168   ;;  %vm1568_vm5 = vcmask 900096  }
 0x230   : > { %v662_v2 = vsel %vm1551_vm6, %v660_v41, 0  ;;  %v661_v46 = vsel %vm1554_vm9, %v675_v52, 0  ;;  %v630_v16 = vld [vmem:[#allocation2 + $0x8] sm:$0xf]  ;;  %vm1557_vm10 = vmmov %vm1555_vm15  ;;  %vm1570_vm9 = vcmask 916480  }
 0x231   : > { %vm1559_vm0 = vmmov %vm1557_vm10 }
 0x232   : > { %651 = vrot.lane.b32.xlu2 %v646_v56, %s1035_s11  ;;  %vm1561_vm13 = vmmov %vm1559_vm0 }
 0x233   : > { %743 = vrot.lane.b32.xlu1 %v738_v58, %s1030_s6  ;;  %vm1563_vm4 = vmmov %vm1559_vm0 }
 0x234   : > { %vm1564_vm2 = vmmov %vm1559_vm0 }
 0x235   : > { %679 = vrot.lane.b32.xlu0 %v675_v52, %s1029_s30  ;;  %vm1565_vm11 = vmmov %vm1559_vm0 }
 0x236   : > { %vm1567_vm6 = vmmov %vm1559_vm0 }
 0x237   : > { %vm1569_vm14 = vmmov %vm1559_vm0 }
 0x23a   : > { %711 = vrot.lane.b32.xlu2 %v707_v8, %s1032_s8 }
 0x23b   : > { %725 = vrot.lane.b32.xlu1 %v675_v52, %s1034_s10 }
 0x23d   : > { %741 = vrot.lane.b32.xlu0 %v737_v35, %s1030_s6 }
 0x242   : > { %695 = vrot.lane.b32.xlu2 %v691_v57, %s1033_s9 }
 0x243   : > { %649 = vrot.lane.b32.xlu1 %v645_v0, %s1035_s11 }
 0x245   : > { %697 = vrot.lane.b32.xlu0 %v692_v40, %s1033_s9 }
 0x24a   : > { %633 = vrot.lane.b32.xlu2 %v675_v52, %s1031_s7 }
 0x24b   : > { %667 = vrot.lane.b32.xlu1 %v662_v2, %s1036_s12 }
 0x24d   : > { %665 = vrot.lane.b32.xlu0 %v661_v46, %s1036_s12 }
 0x253   : > { %764 = vperm.xlu1 %1012, %v761_v47  }
 0x255   : > { %635 = vrot.lane.b32.xlu0 %v630_v16, %s1031_s7 }
 0x284   : > { %v728_v17 = vpop.permute.xlu2 %727 }
 0x285   : > { %v730_v4 = vrot.slane %v728_v17, 4 }
 0x28c   : > { %v652_v31 = vpop.permute.xlu2 %651 }
 0x28d   : > { %v654_v26 = vrot.slane %v652_v31, 4 }
 0x294   : > { %v712_v32 = vpop.permute.xlu2 %711 }
 0x295   : > { %v715_v25 = vrot.slane %v712_v32, 4 }
 0x29c   : > { %v696_v18 = vpop.permute.xlu2 %695 }
 0x29d   : > { %v682_v39 = vpop.permute.xlu1 %681  ;;  %v699_v29 = vrot.slane %v696_v18, 4 }
 0x29e   : > { %v684_v61 = vrot.slane %v682_v39, 4 }
 0x29f   : > { %v714_v42 = vpop.permute.xlu0 %713 }
 0x2a0   : > { %v716_v43 = vrot.slane %v714_v42, 4 }
 0x2a2   : > { %v717_v24 = vsel %vm1555_vm15, %v715_v25, %v716_v43  ;;  %vm1571_vm15 = vmmov %vm1559_vm0 }
 0x2a3   : > { %v718_v44 = vsel %vm1556_vm8, %v712_v32, %v717_v24  ;;  %vm1572_vm8 = vcmask 1039360  }
 0x2a4   : > { %720 = vst [vmem:[#allocation3 + $0x30] sm:$0xff] %v718_v44  ;;  %v634_v2 = vpop.permute.xlu2 %633  ;;  %v941_v44 = vld [vmem:[#allocation3] sm:$0xf] }
 0x2a5   : > { %v744_v59 = vpop.permute.xlu1 %743  ;;  %v637_v47 = vrot.slane %v634_v2, 4 }
 0x2a6   : > { %v746_v7 = vrot.slane %v744_v59, 4 }
 0x2a7   : > { %v680_v60 = vpop.permute.xlu0 %679 }
 0x2a8   : > { %v683_v62 = vrot.slane %v680_v60, 4 }
 0x2aa   : > { %v685_v63 = vsel %vm1557_vm10, %v683_v62, %v684_v61  ;;  %vm812_vm10 = vcmask 588800  }
 0x2ab   : > { %v686_v1 = vsel %vm1558_vm12, %v680_v60, %v685_v63  ;;  %v965_v38 = vld [vmem:[#allocation3 + $0x30] sm:$0xf]  ;;  %v987_v21 = vld [vmem:[#allocation3 + $0x34] sm:$0xf]  ;;  %v981_v60 = vld [vmem:[#allocation3 + $0x4] sm:$0xf] }
 0x2ac   : > { %688 = vst [vmem:[#allocation3 + $0x20] sm:$0xff] %v686_v1  ;;  %v751_v1 = vld [vmem:[%s1455_s3] sm:$0xf] }
 0x2ad   : > { %v726_v3 = vpop.permute.xlu1 %725 }
 0x2ae   : > { %v729_v5 = vrot.slane %v726_v3, 4 }
 0x2af   : > { %v742_v6 = vpop.permute.xlu0 %741 }
 0x2b0   : > { %v745_v9 = vrot.slane %v742_v6, 4  ;;  %v731_v10 = vsel %vm1559_vm0, %v729_v5, %v730_v4 }
 0x2b1   : > { %v732_v11 = vsel %vm1560_vm3, %v726_v3, %v731_v10 }
 0x2b2   : > { %v747_v12 = vsel %vm1561_vm13, %v745_v9, %v746_v7  ;;  %734 = vst [vmem:[#allocation3 + $0x38] sm:$0xff] %v732_v11 }
 0x2b3   : > { %v748_v13 = vsel %vm1562_vm7, %v742_v6, %v747_v12  ;;  %v957_v8 = vld [vmem:[#allocation3 + $0x20] sm:$0xf]  ;;  %v985_v57 = vld [vmem:[#allocation3 + $0x24] sm:$0xf] }
 0x2b4   : > { %v792_v14 = vunpack.c.l.b16 %v748_v13  ;;  %v793_v15 = vunpack.c.h.b16 %v748_v13 }
 0x2b5   : > { %v650_v19 = vpop.permute.xlu1 %649 }
 0x2b6   : > { %v802_v22 = vpack.c.b16 %v792_v14, %v792_v14  ;;  %v803_v23 = vpack.c.b16 %v793_v15, %v793_v15  ;;  %v653_v27 = vrot.slane %v650_v19, 4 }
 0x2b7   : > { %v698_v28 = vpop.permute.xlu0 %697 }
 0x2b8   : > { %v700_v30 = vrot.slane %v698_v28, 4  ;;  %v818_v33 = vsel %vm1563_vm4, %v802_v22, 0  ;;  %v821_v34 = vsel %vm1564_vm2, %v803_v23, 0  ;;  %v655_v37 = vsel %vm1565_vm11, %v653_v27, %v654_v26 }
 0x2b9   : > { %826 = vmatpush.bf16.msra.mxu2 %v818_v33  ;;  %839 = vmatpush.bf16.msra.mxu3 %v821_v34  ;;  %v656_v45 = vsel %vm1566_vm1, %v650_v19, %v655_v37  ;;  %v988_v20 = vld [vmem:[#allocation3 + $0x34] sm:$0xf0]  ;;  %v967_v49 = vld [vmem:[#allocation3 + $0x38] sm:$0xf0] }
 0x2ba   : > { %v701_v48 = vsel %vm1567_vm6, %v699_v29, %v700_v30  ;;  %658 = vst [vmem:[#allocation3 + $0x10] sm:$0xff] %v656_v45  ;;  %v966_v51 = vor.u32 %v988_v20, %v965_v38  ;;  %v970_v52 = vor.u32 %v987_v21, %v967_v49 }
 0x2bb   : > { %v702_v50 = vsel %vm1568_vm5, %v696_v18, %v701_v48 }
 0x2bc   : > { %704 = vst [vmem:[#allocation3 + $0x28] sm:$0xff] %v702_v50 }
 0x2bd   : > { %827 = vmatpush.bf16.msra.mxu2 %v966_v51  ;;  %840 = vmatpush.bf16.msra.mxu3 %v970_v52  ;;  %v668_v53 = vpop.permute.xlu1 %667 }
 0x2be   : > { %v670_v54 = vrot.slane %v668_v53, 4 }
 0x2bf   : > { %v666_v55 = vpop.permute.xlu0 %665 }
 0x2c0   : > { %v669_v58 = vrot.slane %v666_v55, 4 }
 0x2c1   : > { %v949_v31 = vld [vmem:[#allocation3 + $0x10] sm:$0xf]  ;;  %v983_v42 = vld [vmem:[#allocation3 + $0x14] sm:$0xf] }
 0x2c2   : > { %v671_v56 = vsel %vm1569_vm14, %v669_v58, %v670_v54 }
 0x2c3   : > { %v672_v35 = vsel %vm1570_vm9, %v666_v55, %v671_v56  ;;  %v986_v36 = vld [vmem:[#allocation3 + $0x24] sm:$0xf0]  ;;  %v959_v0 = vld [vmem:[#allocation3 + $0x28] sm:$0xf0] }
 0x2c4   : > { %674 = vst [vmem:[#allocation3 + $0x18] sm:$0xff] %v672_v35  ;;  %v958_v40 = vor.u32 %v986_v36, %v957_v8  ;;  %v962_v41 = vor.u32 %v985_v57, %v959_v0 }
 0x2c5   : > { %v765_v3 = vpop.permute.xlu1 %764 }
 0x2c6   : > { %828 = vmatpush.bf16.msra.mxu2 %v958_v40  ;;  %841 = vmatpush.bf16.msra.mxu3 %v962_v41 }
 0x2c7   : > { %v636_v46 = vpop.permute.xlu0 %635 }
 0x2c8   : > { %v638_v16 = vrot.slane %v636_v46, 4 }
 0x2ca   : > { %v639_v17 = vsel %vm1571_vm15, %v637_v47, %v638_v16 }
 0x2cb   : > { %v640_v32 = vsel %vm1572_vm8, %v634_v2, %v639_v17  ;;  %v984_v39 = vld [vmem:[#allocation3 + $0x14] sm:$0xf0]  ;;  %v951_v25 = vld [vmem:[#allocation3 + $0x18] sm:$0xf0] }
 0x2cc   : > { %642 = vst [vmem:[#allocation3 + $0x8] sm:$0xff] %v640_v32  ;;  %v950_v43 = vor.u32 %v984_v39, %v949_v31  ;;  %v954_v24 = vor.u32 %v983_v42, %v951_v25 }
 0x2ce   : > { %829 = vmatpush.bf16.msra.mxu2 %v950_v43  ;;  %842 = vmatpush.bf16.msra.mxu3 %v954_v24 }
 0x2d3   : > { %v982_v59 = vld [vmem:[#allocation3 + $0x4] sm:$0xf0]  ;;  %v943_v61 = vld [vmem:[#allocation3 + $0x8] sm:$0xf0] }
 0x2d4   : > { %v942_v62 = vor.u32 %v982_v59, %v941_v44  ;;  %v946_v63 = vor.u32 %v981_v60, %v943_v61 }
 0x2d6   : > { %830 = vmatpush.bf16.msra.mxu2 %v942_v62  ;;  %843 = vmatpush.bf16.msra.mxu3 %v946_v63 }
 0x2d9   : > { %971 = vmatmul.msk.bf16.vlgmr.msra.gmra.mxu2 %vm812_vm10, %v751_v1  ;;  %972 = vmatmul.msk.bf16.vlgmr.msra.gmra.mxu3 %vm812_vm10, %v751_v1 }
 0x35c   : > { %v832_v4 = vpop.f32.mrf.mxu2  ;;  %v845_v5 = vpop.f32.mrf.mxu3 }
 0x35d   : > { %v833_v6 = vadd.f32 %v832_v4, %v765_v3  ;;  %v846_v7 = vadd.f32 %v845_v5, %v765_v3 }
 0x35f   : > { %vm849_vm12 = vcmp.ge.f32.partialorder %v833_v6, 0.0  ;;  %v851_v9 = vmul.f32 0.1, %v833_v6  ;;  %vm850_vm0 = vcmp.ge.f32.partialorder %v846_v7, 0.0  ;;  %v852_v10 = vmul.f32 0.1, %v846_v7 }
 0x361   : > { %v853_v11 = vsel %vm849_vm12, %v833_v6, %v851_v9  ;;  %v854_v12 = vsel %vm850_vm0, %v846_v7, %v852_v10 }
 0x362   : > { %v855_v13 = vpack.c.bf16 %v854_v12, %v853_v11 }
 0x364   : > { %856 = vst [vmem:[%s224_s26] sm:$0xff] %v855_v13  ;;  %v834_v14 = vpop.f32.mrf.mxu2  ;;  %v847_v15 = vpop.f32.mrf.mxu3 }
 0x365 PF: > { %s15_s18 = sadd.s32 1, %s1020_s18  }
 0x366   : > { %p12_p4 = scmp.ge.s32.totalorder %s15_s18, 4  }
 0x368   :  { %14 = sbr.rel (!%p12_p4) target bundleno = 1 (0x1), region = 70 }

// kernel: unet_forward.8
= control target key start
LH: loop header
LB: loop body
LE: loop exit
PB: predicated region body
PF: predicated region fallthrough
CT: control target
= control target key end

     0   :  { %s932_s18 = smov 0   ;;  %s1125_s0 = inlined_call_operand.vmem [shape: bf16[2,8,64], index: 0, kind: input, shape index: {}]   ;;  %s1126_s1 = inlined_call_operand.vmem [shape: bf16[16,72], index: 1, kind: input, shape index: {}]   ;;  %s1127_s2 = inlined_call_operand.vmem [shape: f32[16,1], index: 2, kind: input, shape index: {}]   ;;  %s1128_s3 = inlined_call_operand.vmem [shape: bf16[16,144], index: 3, kind: input, shape index: {}]   ;;  %s1129_s4 = inlined_call_operand.vmem [shape: f32[16,1], index: 4, kind: input, shape index: {}]   ;;  %s1130_s5 = inlined_call_operand.vmem [shape: bf16[2,16,64], index: 5, kind: output, shape index: {}]  }
   0x1 LB: > { %s761_s19 = sadd.s32 4294967295, %s885_s18   ;;  %p765_p0 = scmp.ge.s32.totalorder %s885_s18, 1  ;;  %s885_s18 = sphi %s932_s18, %s15_s18  }
   0x2   : > { %p186_p1 = scmp.lt.s32.totalorder %s885_s18, 3 }
   0x4   : > { %p187_p2 = pnand %p765_p0, %p186_p1 }
   0x5   : > { %p213_p3 = scmp.lt.s32.totalorder (!%p187_p2), %s761_s19, 1  ;;  %s888_s24 = smov (!%p187_p2), 9  }
   0x6   : > { %190 = sbr.rel (%p187_p2) target bundleno = 860 (0x35c), region = 40  ;;  %s889_s25 = smov (!%p187_p2), 16  }
   0x7   : > { %s890_s26 = smov (!%p187_p2), 2   ;;  %s891_s27 = smov (!%p187_p2), 18  }
   0x8   : > { %s892_s28 = smov (!%p187_p2), 10   ;;  %s893_s29 = smov (!%p187_p2), 8  }
   0x9   : > { %s894_s30 = smov (!%p187_p2), 111   ;;  %s895_s6 = smov (!%p187_p2), 112  }
   0xa   : > { %s896_s7 = smov (!%p187_p2), 110   ;;  %s897_s8 = smov (!%p187_p2), 126  }
   0xb   : > { %v234_v0 = vlaneseq  ;;  %v887_v1 = vmov 0   ;;  %s1148_s19 = smov (!%p213_p3, %s761_s19), 1  ;;  %vm226_vm4 = vcmask 666624   ;;  %vm232_vm5 = vcmask 592968   ;;  %s898_s9 = smov 118   ;;  %v372_v52 = vld [vmem:[%s1127_s2 + $0x8] sm:$0xff] }
   0xc   : > { %878 = vset.pattern.permute.xlu0 %v887_v1  ;;  %877 = vset.pattern.permute.xlu2 %v887_v1  ;;  %s766_s20 = sshll.u32 %s1148_s19, 2  ;;  %227 = vst.msk [vmem:[#allocation2] sm:$0xf] %vm226_vm4, %v887_v1  ;;  %v272_v9 = vunpack.c.l.b16 %v887_v1  ;;  %v273_v10 = vunpack.c.h.b16 %v887_v1  ;;  %vm255_vm9 = vcmask 519168   ;;  %s899_s10 = smov 119   ;;  %v371_v53 = vld [vmem:[%s1127_s2] sm:$0xff] }
   0xd   : > { %v235_v2 = vand.u32 127, %v234_v0  ;;  %s216_s23 = scalar_lea.vmem %s1125_s0, %s766_s20  ;;  %444 = vst.msk [vmem:[#allocation2 + $0x4] sm:$0xf] %vm226_vm4, %v887_v1  ;;  %s900_s11 = smov 127   ;;  %v589_v46 = vld [vmem:[%s1129_s4] sm:$0xff] }
   0xe   : > { %v225_v4 = vld [vmem:[%s216_s23] sm:$0xf]  ;;  %s901_s12 = smov 120  }
   0xf   : > { %v240_v3 = vand.u32 7, %v235_v2  ;;  %229 = vrot.lane.b32.xlu0 %v225_v4, %s888_s24  ;;  %v838_v2 = vld [vmem:[%s1126_s1] sm:$0xff] }
  0x11   : > { %vm248_vm0 = vcmp.ge.s32.totalorder %v240_v3, 1  ;;  %vm249_vm1 = vcmp.lt.s32.totalorder %v240_v3, 7 }
  0x12   : > { %vm949_vm2 = vmpackc.low %vm248_vm0, %vm248_vm0 }
  0x13   : > { %v284_v6 = vsel %vm949_vm2, 65537, %v887_v1  ;;  %vm266_vm3 = vmpackc.low %vm249_vm1, %vm249_vm1 }
  0x14   : > { %323 = vrot.lane.b32.xlu1 %v284_v6, %s889_s25  ;;  %v267_v7 = vsel %vm266_vm3, 65537, %v887_v1 }
  0x15   : > { %268 = vrot.lane.b32.xlu2 %v267_v7, %s890_s26 }
  0x17   : > { %345 = vrot.lane.b32.xlu0 %v267_v7, %s891_s27 }
  0x1c   : > { %307 = vrot.lane.b32.xlu1 %v267_v7, %s892_s28 }
  0x1d   : > { %285 = vrot.lane.b32.xlu2 %v284_v6, %s893_s29 }
  0x6f   : > { %v269_v14 = vpop.permute.xlu2 %268 }
  0x70   : > { %v270_v15 = vunpack.c.l.b16 %v269_v14  ;;  %v271_v16 = vunpack.c.h.b16 %v269_v14 }
  0x72   : > { %vm973_vm10 = vcmp.ne.s32.totalorder %v270_v15, %v272_v9  ;;  %vm977_vm11 = vcmp.ne.s32.totalorder %v271_v16, %v273_v10 }
  0x73   : > { %vm995_vm1 = vmpackc.low %vm977_vm11, %vm973_vm10  ;;  %vm419_vm10 = vcmask 1043456   ;;  %vm415_vm11 = vcmask 588800  }
  0x77   : > { %v286_v41 = vpop.permute.xlu2 %285 }
  0x78   : > { %v287_v44 = vunpack.c.l.b16 %v286_v41  ;;  %v288_v45 = vunpack.c.h.b16 %v286_v41 }
  0x81   : > { %v230_v8 = vpop.permute.xlu0 %229 }
  0x82   : > { %233 = vst.msk [vmem:[#allocation2] sm:$0xf] %vm232_vm5, %v230_v8 }
  0x86   : > { %v324_v11 = vpop.permute.xlu1 %323 }
  0x87   : > { %v325_v12 = vunpack.c.l.b16 %v324_v11  ;;  %v326_v13 = vunpack.c.h.b16 %v324_v11 }
  0x89   : > { %vm329_vm6 = vcmp.ne.s32.totalorder %v325_v12, %v272_v9  ;;  %vm330_vm7 = vcmp.ne.s32.totalorder %v326_v13, %v273_v10  ;;  %v250_v18 = vld [vmem:[#allocation2] sm:$0xf]  ;;  %v346_v19 = vpop.permute.xlu0 %345 }
  0x8a   : > { %vm964_vm8 = vmpackc.low %vm330_vm7, %vm329_vm6  ;;  %v338_v20 = vld [vmem:[#allocation2] sm:$0xf]  ;;  %v347_v22 = vunpack.c.l.b16 %v346_v19  ;;  %v348_v23 = vunpack.c.h.b16 %v346_v19  ;;  %v254_v26 = vsel %vm949_vm2, %v250_v18, 0  ;;  %vm292_vm6 = vcmp.ne.s32.totalorder %v288_v45, %v273_v10 }
  0x8b   : > { %v322_v21 = vld [vmem:[#allocation2] sm:$0xf]  ;;  %340 = vrot.lane.b32.xlu2 %v338_v20, %s894_s30  ;;  %256 = vst.msk [vmem:[#allocation3] sm:$0xf] %vm255_vm9, %v254_v26 }
  0x8c   : > { %v332_v24 = vsel %vm964_vm8, %v322_v21, 0  ;;  %v344_v25 = vld [vmem:[#allocation2] sm:$0xf]  ;;  %vm351_vm12 = vcmp.ne.s32.totalorder %v347_v22, %v272_v9  ;;  %vm352_vm13 = vcmp.ne.s32.totalorder %v348_v23, %v273_v10 }
  0x8d   : > { %334 = vrot.lane.b32.xlu1 %v332_v24, %s895_s6  ;;  %v263_v30 = vld [vmem:[#allocation2] sm:$0xf]  ;;  %vm983_vm14 = vmpackc.low %vm352_vm13, %vm351_vm12 }
  0x8e   : > { %v308_v29 = vpop.permute.xlu1 %307  ;;  %v306_v31 = vld [vmem:[#allocation2] sm:$0xf]  ;;  %v354_v38 = vsel %vm983_vm14, %v344_v25, 0  ;;  %v277_v42 = vsel %vm995_vm1, %v263_v30, 0 }
  0x8f   : > { %v300_v32 = vld [vmem:[#allocation2] sm:$0xf]  ;;  %v309_v33 = vunpack.c.l.b16 %v308_v29  ;;  %v310_v34 = vunpack.c.h.b16 %v308_v29  ;;  %356 = vrot.lane.b32.xlu0 %v354_v38, %s896_s7 }
  0x90   : > { %v257_v35 = vld [vmem:[#allocation2] sm:$0xf] }
  0x91   : > { %v283_v36 = vld [vmem:[#allocation2] sm:$0xf]  ;;  %vm313_vm15 = vcmp.ne.s32.totalorder %v309_v33, %v272_v9  ;;  %vm314_vm0 = vcmp.ne.s32.totalorder %v310_v34, %v273_v10 }
  0x92   : > { %443 = vst.msk [vmem:[#allocation2] sm:$0xf] %vm226_vm4, %v887_v1  ;;  %vm1000_vm3 = vmpackc.low %vm314_vm0, %vm313_vm15  ;;  %vm291_vm4 = vcmp.ne.s32.totalorder %v287_v44, %v272_v9 }
  0x93   : > { %279 = vrot.lane.b32.xlu2 %v277_v42, %s897_s8  ;;  %v316_v43 = vsel %vm1000_vm3, %v306_v31, 0  ;;  %vm1012_vm7 = vmpackc.low %vm292_vm6, %vm291_vm4 }
  0x94   : > { %v294_v47 = vsel %vm1012_vm7, %v283_v36, 0 }
  0x95   : > { %318 = vrot.lane.b32.xlu1 %v316_v43, %s898_s9 }
  0x97   : > { %302 = vrot.lane.b32.xlu0 %v300_v32, %s899_s10 }
  0x9b   : > { %375 = vperm.xlu2 %877, %v371_v53  }
  0x9d   : > { %259 = vrot.lane.b32.xlu1 %v257_v35, %s900_s11 }
  0x9f   : > { %296 = vrot.lane.b32.xlu0 %v294_v47, %s901_s12 }
  0xa7   : > { %380 = vperm.xlu0 %878, %v372_v52  }
  0xe5   : > { %v341_v48 = vpop.permute.xlu2 %340 }
  0xe6   : > { %343 = vst.msk [vmem:[#allocation3 + $0x1c] sm:$0xf] %vm255_vm9, %v341_v48  ;;  %v590_v48 = vld [vmem:[%s1129_s4 + $0x8] sm:$0xff] }
  0xed   : > { %v280_v49 = vpop.permute.xlu2 %279 }
  0xee   : > { %282 = vst.msk [vmem:[#allocation3 + $0x8] sm:$0xf] %vm255_vm9, %v280_v49 }
  0xf5   : > { %v376_v3 = vpop.permute.xlu2 %375 }
  0xff   : > { %v335_v50 = vpop.permute.xlu1 %334 }
 0x100   : > { %337 = vst.msk [vmem:[#allocation3 + $0x18] sm:$0xf] %vm255_vm9, %v335_v50 }
 0x101   : > { %v357_v51 = vpop.permute.xlu0 %356 }
 0x102   : > { %359 = vst.msk [vmem:[#allocation3 + $0x20] sm:$0xf] %vm255_vm9, %v357_v51 }
 0x107   : > { %v319_v54 = vpop.permute.xlu1 %318  ;;  %v842_v62 = vld [vmem:[#allocation3 + $0x18] sm:$0xff] }
 0x108   : > { %321 = vst.msk [vmem:[#allocation3 + $0x14] sm:$0xf] %vm255_vm9, %v319_v54 }
 0x109   : > { %v303_v55 = vpop.permute.xlu0 %302  ;;  %v370_v56 = vld [vmem:[#allocation3 + $0x20] sm:$0xf] }
 0x10a   : > { %305 = vst.msk [vmem:[#allocation3 + $0x10] sm:$0xf] %vm255_vm9, %v303_v55  ;;  %v405_v57 = vunpack.c.l.b16 %v370_v56 }
 0x10c   : > { %v410_v58 = vpack.c.b16 %v405_v57, %v405_v57 }
 0x10e   : > { %v421_v60 = vsel %vm419_vm10, %v410_v58, 0 }
 0x10f   : > { %v260_v59 = vpop.permute.xlu1 %259  ;;  %426 = vmatpush.bf16.msra.mxu0 %v421_v60 }
 0x110   : > { %262 = vst.msk [vmem:[#allocation3 + $0x4] sm:$0xf] %vm255_vm9, %v260_v59 }
 0x111   : > { %v297_v61 = vpop.permute.xlu0 %296  ;;  %v841_v63 = vld [vmem:[#allocation3 + $0x10] sm:$0xff] }
 0x112   : > { %299 = vst.msk [vmem:[#allocation3 + $0xc] sm:$0xf] %vm255_vm9, %v297_v61 }
 0x113   : > { %427 = vmatpush.bf16.msra.mxu0 %v842_v62 }
 0x117   : > { %428 = vmatpush.bf16.msra.mxu0 %v841_v63  ;;  %v839_v1 = vld [vmem:[#allocation3] sm:$0xff] }
 0x119   : > { %v840_v0 = vld [vmem:[#allocation3 + $0x8] sm:$0xff]  ;;  %v381_v10 = vpop.permute.xlu0 %380 }
 0x11b   : > { %429 = vmatpush.bf16.msra.mxu0 %v840_v0 }
 0x11f   : > { %430 = vmatpush.bf16.msra.mxu0 %v839_v1 }
 0x122   : > { %789 = vmatmul.msk.bf16.vlgmr.msra.gmra.mxu0 %vm415_vm11, %v838_v2 }
 0x19f   : > { %v432_v4 = vpop.f32.mrf.mxu0 }
 0x1a0   : > { %v433_v6 = vadd.f32 %v432_v4, %v376_v3 }
 0x1a2   : > { %vm437_vm12 = vcmp.ge.f32.partialorder %v433_v6, 0.0  ;;  %v439_v7 = vmul.f32 0.1, %v433_v6 }
 0x1a4   : > { %v441_v8 = vsel %vm437_vm12, %v433_v6, %v439_v7 }
 0x1a5   : > { %v445_v9 = vpack.c.bf16 %v441_v8, %v441_v8  ;;  %v843_v8 = vld [vmem:[%s1128_s3 + $0x4] sm:$0xf] }
 0x1a7   : > { %v434_v11 = vpop.f32.mrf.mxu0  ;;  %449 = vrot.lane.b32.xlu1 %v445_v9, %s888_s24  ;;  %v794_v9 = vld [vmem:[%s1128_s3 + $0x8] sm:$0xf0] }
 0x1a8   : > { %v435_v12 = vadd.f32 %v434_v11, %v381_v10 }
 0x1aa   : > { %vm438_vm13 = vcmp.ge.f32.partialorder %v435_v12, 0.0  ;;  %v440_v13 = vmul.f32 0.1, %v435_v12 }
 0x1ac   : > { %v442_v14 = vsel %vm438_vm13, %v435_v12, %v440_v13  ;;  %v797_v12 = vor.u32 %v843_v8, %v794_v9  ;;  %v792_v13 = vld [vmem:[%s1128_s3] sm:$0xf] }
 0x1ad   : > { %v446_v15 = vpack.c.bf16 %v442_v14, %v442_v14  ;;  %v844_v14 = vld [vmem:[%s1128_s3 + $0x4] sm:$0xf0] }
 0x1af   : > { %451 = vrot.lane.b32.xlu2 %v446_v15, %s888_s24 }
 0x209   : > { %v452_v16 = vpop.permute.xlu2 %451 }
 0x20a   : > { %456 = vst.msk [vmem:[#allocation2 + $0x4] sm:$0xf] %vm232_vm5, %v452_v16  ;;  %v793_v16 = vor.u32 %v844_v14, %v792_v13 }
 0x211   : > { %v458_v18 = vld [vmem:[#allocation2 + $0x4] sm:$0xf] }
 0x212   : > { %v460_v19 = vsel %vm949_vm2, %v458_v18, 0  ;;  %v544_v31 = vld [vmem:[#allocation2 + $0x4] sm:$0xf] }
 0x213   : > { %462 = vst.msk [vmem:[#allocation3 + $0x4] sm:$0xf] %vm255_vm9, %v460_v19  ;;  %v530_v32 = vld [vmem:[#allocation2 + $0x4] sm:$0xf] }
 0x214   : > { %v516_v33 = vld [vmem:[#allocation2 + $0x4] sm:$0xf]  ;;  %v532_v5 = vsel %vm964_vm8, %v530_v32, 0 }
 0x215   : > { %v518_v34 = vsel %vm1000_vm3, %v516_v33, 0  ;;  %v504_v35 = vld [vmem:[#allocation2 + $0x4] sm:$0xf] }
 0x216   : > { %v476_v38 = vld [vmem:[#allocation2 + $0x4] sm:$0xf] }
 0x217   : > { %v478_v17 = vsel %vm995_vm1, %v476_v38, 0  ;;  %v490_v40 = vld [vmem:[#allocation2 + $0x4] sm:$0xf] }
 0x218   : > { %v492_v44 = vsel %vm1012_vm7, %v490_v40, 0  ;;  %v464_v47 = vld [vmem:[#allocation2 + $0x4] sm:$0xf] }
 0x219   : > { %v450_v20 = vpop.permute.xlu1 %449  ;;  %v556_v39 = vld [vmem:[#allocation2 + $0x4] sm:$0xf] }
 0x21a   : > { %455 = vst.msk [vmem:[#allocation2] sm:$0xf] %vm232_vm5, %v450_v20  ;;  %v558_v49 = vsel %vm983_vm14, %v556_v39, 0 }
 0x221   : > { %v543_v21 = vld [vmem:[#allocation2] sm:$0xf] }
 0x222   : > { %v529_v22 = vld [vmem:[#allocation2] sm:$0xf]  ;;  %547 = vrot.lane.b32.xlu1 %v543_v21, %s894_s30 }
 0x223   : > { %v515_v23 = vld [vmem:[#allocation2] sm:$0xf]  ;;  %v531_v24 = vsel %vm964_vm8, %v529_v22, 0 }
 0x224   : > { %v517_v25 = vsel %vm1000_vm3, %v515_v23, 0  ;;  %535 = vrot.lane.b32.xlu0 %v531_v24, %s895_s6  ;;  %v457_v26 = vld [vmem:[#allocation2] sm:$0xf] }
 0x225   : > { %521 = vrot.lane.b32.xlu2 %v517_v25, %s898_s9  ;;  %v459_v27 = vsel %vm949_vm2, %v457_v26, 0  ;;  %v489_v28 = vld [vmem:[#allocation2] sm:$0xf]  ;;  %vm664_vm2 = vcmask 130048  }
 0x226   : > { %461 = vst.msk [vmem:[#allocation3] sm:$0xf] %vm255_vm9, %v459_v27  ;;  %v503_v29 = vld [vmem:[#allocation2] sm:$0xf]  ;;  %v491_v30 = vsel %vm1012_vm7, %v489_v28, 0 }
 0x227   : > { %v475_v36 = vld [vmem:[#allocation2] sm:$0xf] }
 0x228   : > { %v463_v41 = vld [vmem:[#allocation2] sm:$0xf]  ;;  %v477_v42 = vsel %vm995_vm1, %v475_v36, 0 }
 0x229   : > { %v555_v43 = vld [vmem:[#allocation2] sm:$0xf] }
 0x22a   : > { %507 = vrot.lane.b32.xlu1 %v503_v29, %s899_s10  ;;  %v557_v45 = vsel %vm983_vm14, %v555_v43, 0 }
 0x22c   : > { %495 = vrot.lane.b32.xlu0 %v491_v30, %s901_s12 }
 0x22d   : > { %549 = vrot.lane.b32.xlu2 %v544_v31, %s894_s30  ;;  %v845_v15 = vld [vmem:[#allocation3] sm:$0xff] }
 0x232   : > { %537 = vrot.lane.b32.xlu1 %v532_v5, %s895_s6 }
 0x234   : > { %523 = vrot.lane.b32.xlu0 %v518_v34, %s898_s9 }
 0x235   : > { %509 = vrot.lane.b32.xlu2 %v504_v35, %s899_s10 }
 0x23a   : > { %467 = vrot.lane.b32.xlu1 %v463_v41, %s900_s11 }
 0x23c   : > { %483 = vrot.lane.b32.xlu0 %v478_v17, %s897_s8 }
 0x23d   : > { %481 = vrot.lane.b32.xlu2 %v477_v42, %s897_s8  ;;  %s837_s8 = sshll.u32 %s1148_s19, 3 }
 0x242   : > { %497 = vrot.lane.b32.xlu1 %v492_v44, %s901_s12 }
 0x244   : > { %561 = vrot.lane.b32.xlu0 %v557_v45, %s896_s7 }
 0x245   : > { %469 = vrot.lane.b32.xlu2 %v464_v47, %s900_s11  ;;  %s221_s11 = scalar_lea.vmem %s1130_s5, %s837_s8 }
 0x24a   : > { %563 = vrot.lane.b32.xlu1 %v558_v49, %s896_s7 }
 0x24c   : > { %598 = vperm.xlu0 %878, %v590_v48  }
 0x24d   : > { %593 = vperm.xlu2 %877, %v589_v46  }
 0x27f   : > { %v522_v50 = vpop.permute.xlu2 %521 }
 0x280   : > { %527 = vst.msk [vmem:[#allocation3 + $0x28] sm:$0xf] %vm255_vm9, %v522_v50 }
 0x287   : > { %v550_v51 = vpop.permute.xlu2 %549 }
 0x288   : > { %554 = vst.msk [vmem:[#allocation3 + $0x3c] sm:$0xf] %vm255_vm9, %v550_v51 }
 0x28f   : > { %v510_v52 = vpop.permute.xlu2 %509 }
 0x290   : > { %514 = vst.msk [vmem:[#allocation3 + $0x24] sm:$0xf] %vm255_vm9, %v510_v52 }
 0x294   : > { %v548_v53 = vpop.permute.xlu1 %547 }
 0x295   : > { %553 = vst.msk [vmem:[#allocation3 + $0x38] sm:$0xf] %vm255_vm9, %v548_v53 }
 0x296   : > { %v536_v55 = vpop.permute.xlu0 %535 }
 0x297   : > { %v482_v54 = vpop.permute.xlu2 %481  ;;  %541 = vst.msk [vmem:[#allocation3 + $0x30] sm:$0xf] %vm255_vm9, %v536_v55 }
 0x298   : > { %487 = vst.msk [vmem:[#allocation3 + $0x10] sm:$0xf] %vm255_vm9, %v482_v54 }
 0x29c   : > { %v508_v37 = vpop.permute.xlu1 %507  ;;  %v852_v56 = vld [vmem:[#allocation3 + $0x38] sm:$0xff] }
 0x29d   : > { %513 = vst.msk [vmem:[#allocation3 + $0x20] sm:$0xf] %vm255_vm9, %v508_v37  ;;  %668 = vmatpush.bf16.msra.mxu1 %v852_v56 }
 0x29e   : > { %v496_v58 = vpop.permute.xlu0 %495 }
 0x29f   : > { %v470_v57 = vpop.permute.xlu2 %469  ;;  %501 = vst.msk [vmem:[#allocation3 + $0x18] sm:$0xf] %vm255_vm9, %v496_v58 }
 0x2a0   : > { %474 = vst.msk [vmem:[#allocation3 + $0xc] sm:$0xf] %vm255_vm9, %v470_v57 }
 0x2a4   : > { %v538_v59 = vpop.permute.xlu1 %537  ;;  %v849_v2 = vld [vmem:[#allocation3 + $0x20] sm:$0xff] }
 0x2a5   : > { %542 = vst.msk [vmem:[#allocation3 + $0x34] sm:$0xf] %vm255_vm9, %v538_v59 }
 0x2a6   : > { %v524_v60 = vpop.permute.xlu0 %523 }
 0x2a7   : > { %528 = vst.msk [vmem:[#allocation3 + $0x2c] sm:$0xf] %vm255_vm9, %v524_v60  ;;  %v594_v18 = vpop.permute.xlu2 %593 }
 0x2ac   : > { %v468_v61 = vpop.permute.xlu1 %467  ;;  %v851_v62 = vld [vmem:[#allocation3 + $0x30] sm:$0xff] }
 0x2ad   : > { %473 = vst.msk [vmem:[#allocation3 + $0x8] sm:$0xf] %vm255_vm9, %v468_v61  ;;  %669 = vmatpush.bf16.msra.mxu1 %v851_v62 }
 0x2ae   : > { %v484_v63 = vpop.permute.xlu0 %483  ;;  %v850_v0 = vld [vmem:[#allocation3 + $0x28] sm:$0xff] }
 0x2af   : > { %488 = vst.msk [vmem:[#allocation3 + $0x14] sm:$0xf] %vm255_vm9, %v484_v63 }
 0x2b1   : > { %670 = vmatpush.bf16.msra.mxu1 %v850_v0 }
 0x2b4   : > { %v498_v1 = vpop.permute.xlu1 %497  ;;  %v846_v10 = vld [vmem:[#allocation3 + $0x8] sm:$0xff] }
 0x2b5   : > { %502 = vst.msk [vmem:[#allocation3 + $0x1c] sm:$0xf] %vm255_vm9, %v498_v1  ;;  %671 = vmatpush.bf16.msra.mxu1 %v849_v2 }
 0x2b6   : > { %v562_v3 = vpop.permute.xlu0 %561  ;;  %v847_v7 = vld [vmem:[#allocation3 + $0x10] sm:$0xff] }
 0x2b7   : > { %567 = vst.msk [vmem:[#allocation3 + $0x40] sm:$0xf] %vm255_vm9, %v562_v3 }
 0x2bc   : > { %v564_v4 = vpop.permute.xlu1 %563  ;;  %v848_v6 = vld [vmem:[#allocation3 + $0x18] sm:$0xff] }
 0x2bd   : > { %568 = vst.msk [vmem:[#allocation3 + $0x44] sm:$0xf] %vm255_vm9, %v564_v4  ;;  %672 = vmatpush.bf16.msra.mxu1 %v848_v6 }
 0x2be   : > { %v599_v25 = vpop.permute.xlu0 %598 }
 0x2c1   : > { %673 = vmatpush.bf16.msra.mxu1 %v847_v7 }
 0x2c4   : > { %v853_v11 = vld [vmem:[#allocation3 + $0x40] sm:$0xff] }
 0x2c5   : > { %674 = vmatpush.bf16.msra.mxu1 %v846_v10  ;;  %689 = vmatpush.bf16.msra.mxu2 %v853_v11 }
 0x2c8   : > { %834 = vmatmul.msk.bf16.vlgmr.msra.gmra.mxu2 %vm664_vm2, %v797_v12 }
 0x2c9   : > { %675 = vmatpush.bf16.msra.mxu1 %v845_v15 }
 0x2cc   : > { %676 = vmatmul.bf16.vlgmr.msra.gmra.mxu1 %v793_v16 }
 0x349   : > { %v677_v19 = vpop.f32.mrf.mxu1 }
 0x34a   : > { %v678_v20 = vadd.f32 %v677_v19, %v594_v18 }
 0x34b   : > { %v691_v21 = vpop.f32.mrf.mxu2 }
 0x34c   : > { %v692_v22 = vadd.f32 %v691_v21, %v678_v20 }
 0x34e   : > { %vm696_vm5 = vcmp.ge.f32.partialorder %v692_v22, 0.0  ;;  %v698_v23 = vmul.f32 0.1, %v692_v22 }
 0x350   : > { %v700_v24 = vsel %vm696_vm5, %v692_v22, %v698_v23 }
 0x351   : > { %v702_v26 = vpack.c.bf16 %v700_v24, %v700_v24  ;;  %v679_v27 = vpop.f32.mrf.mxu1 }
 0x352   : > { %v680_v28 = vadd.f32 %v679_v27, %v599_v25 }
 0x353   : > { %704 = vst.msk [vmem:[%s221_s11] sm:$0xf] %vm255_vm9, %v702_v26  ;;  %v693_v29 = vpop.f32.mrf.mxu2 }
 0x354   : > { %v694_v30 = vadd.f32 %v693_v29, %v680_v28 }
 0x356   : > { %vm697_vm8 = vcmp.ge.f32.partialorder %v694_v30, 0.0  ;;  %v699_v31 = vmul.f32 0.1, %v694_v30 }
 0x358   : > { %v701_v32 = vsel %vm697_vm8, %v694_v30, %v699_v31 }
 0x359   : > { %v703_v33 = vpack.c.bf16 %v701_v32, %v701_v32 }
 0x35b   : > { %705 = vst.msk [vmem:[%s221_s11 + $0x4] sm:$0xf] %vm255_vm9, %v703_v33 }
 0x35c PF: > { %s15_s18 = sadd.s32 1, %s885_s18  }
 0x35d   : > { %p12_p4 = scmp.ge.s32.totalorder %s15_s18, 4  }
 0x35f   :  { %14 = sbr.rel (!%p12_p4) target bundleno = 1 (0x1), region = 70 }

// kernel: unet_forward.10
= control target key start
LH: loop header
LB: loop body
LE: loop exit
PB: predicated region body
PF: predicated region fallthrough
CT: control target
= control target key end

     0   :  { %s1055_s12 = smov 0   ;;  %s1287_s0 = inlined_call_operand.vmem [shape: bf16[2,32,16], index: 0, kind: input, shape index: {}]   ;;  %s1288_s1 = inlined_call_operand.vmem [shape: bf16[32,288], index: 1, kind: input, shape index: {}]   ;;  %s1289_s2 = inlined_call_operand.vmem [shape: f32[32,1], index: 2, kind: input, shape index: {}]   ;;  %s1290_s3 = inlined_call_operand.vmem [shape: bf16[2,32,16], index: 3, kind: output, shape index: {}]  }
   0x1 LB: > { %s843_s13 = sadd.s32 4294967295, %s1018_s12   ;;  %p847_p0 = scmp.ge.s32.totalorder %s1018_s12, 1  ;;  %s1018_s12 = sphi %s1055_s12, %s13_s12  }
   0x2   : > { %p137_p1 = scmp.lt.s32.totalorder %s1018_s12, 3 }
   0x4   : > { %p138_p2 = pnand %p847_p0, %p137_p1 }
   0x5   : > { %p161_p3 = scmp.lt.s32.totalorder (!%p138_p2), %s843_s13, 1  ;;  %s1021_s18 = smov (!%p138_p2), 5  }
   0x6   : > { %141 = sbr.rel (%p138_p2) target bundleno = 513 (0x201), region = 32  ;;  %s1022_s19 = smov (!%p138_p2), 4  }
   0x7   : > { %s1023_s20 = smov (!%p138_p2), 8   ;;  %s1024_s21 = smov (!%p138_p2), 2  }
   0x8   : > { %s1025_s22 = smov (!%p138_p2), 6   ;;  %s1026_s23 = smov (!%p138_p2), 10  }
   0x9   : > { %s1027_s24 = smov (!%p138_p2), 119   ;;  %s1028_s25 = smov (!%p138_p2), 127  }
   0xa   : > { %s1029_s26 = smov (!%p138_p2), 123   ;;  %s1030_s27 = smov (!%p138_p2), 124  }
   0xb   : > { %v204_v0 = vlaneseq  ;;  %v1020_v1 = vmov 0   ;;  %s1304_s13 = smov (!%p161_p3, %s843_s13), 1  ;;  %vm178_vm4 = vcmask 207872   ;;  %vm199_vm5 = vcmask 166952   ;;  %s1031_s28 = smov 120  }
   0xc   : > { %1010 = vset.pattern.permute.xlu0 %v1020_v1  ;;  %1011 = vset.pattern.permute.xlu1 %v1020_v1  ;;  %s952_s14 = sshll.u32 %s1304_s13, 4  ;;  %181 = vst.msk [vmem:[#allocation2 + $0x8] sm:$0xf] %vm178_vm4, %v1020_v1  ;;  %v1077_v21 = vunpack.c.l.b16 %v1020_v1  ;;  %v1079_v22 = vunpack.c.h.b16 %v1020_v1  ;;  %vm231_vm8 = vcmask 125952   ;;  %s1032_s29 = smov 126  }
   0xd   : > { %v205_v2 = vand.u32 127, %v204_v0  ;;  %1009 = vset.pattern.permute.xlu2 %v1020_v1  ;;  %s165_s17 = scalar_lea.vmem %s1287_s0, %s952_s14  ;;  %179 = vst.msk [vmem:[#allocation2] sm:$0xf] %vm178_vm4, %v1020_v1  ;;  %s1033_s30 = smov 122  }
   0xe   : > { %v176_v4 = vld [vmem:[%s165_s17 + $0x8] sm:$0xf]  ;;  %v174_v5 = vld [vmem:[%s165_s17] sm:$0xf]  ;;  %v177_v8 = vld [vmem:[%s165_s17 + $0xc] sm:$0xf] }
   0xf   : > { %v210_v3 = vand.u32 3, %v205_v2  ;;  %191 = vrot.lane.b32.xlu0 %v176_v4, %s1021_s18  ;;  %187 = vrot.lane.b32.xlu1 %v174_v5, %s1021_s18  ;;  %v175_v9 = vld [vmem:[%s165_s17 + $0x4] sm:$0xf]  ;;  %180 = vst.msk [vmem:[#allocation2 + $0x4] sm:$0xf] %vm178_vm4, %v1020_v1  ;;  %s1034_s4 = smov 118  }
  0x10   : > { %182 = vst.msk [vmem:[#allocation2 + $0xc] sm:$0xf] %vm178_vm4, %v1020_v1 }
  0x11   : > { %vm218_vm0 = vcmp.ge.s32.totalorder %v210_v3, 1  ;;  %vm219_vm2 = vcmp.lt.s32.totalorder %v210_v3, 3 }
  0x12   : > { %vm1071_vm1 = vmpackc.low %vm218_vm0, %vm218_vm0 }
  0x13   : > { %v305_v7 = vsel %vm1071_vm1, 65537, %v1020_v1  ;;  %vm266_vm3 = vmpackc.low %vm219_vm2, %vm219_vm2 }
  0x14   : > { %306 = vrot.lane.b32.xlu2 %v305_v7, %s1022_s19  ;;  %v267_v10 = vsel %vm266_vm3, 65537, %v1020_v1 }
  0x17   : > { %193 = vrot.lane.b32.xlu0 %v177_v8, %s1021_s18  ;;  %189 = vrot.lane.b32.xlu1 %v175_v9, %s1021_s18  ;;  %s1274_s18 = scalar_lea.vmem %s1290_s3, %s952_s14 }
  0x1c   : > { %404 = vrot.lane.b32.xlu2 %v305_v7, %s1023_s20 }
  0x1f   : > { %268 = vrot.lane.b32.xlu0 %v267_v10, %s1024_s21  ;;  %367 = vrot.lane.b32.xlu1 %v267_v10, %s1025_s22 }
  0x24   : > { %465 = vrot.lane.b32.xlu2 %v267_v10, %s1026_s23 }
  0x6e   : > { %v307_v17 = vpop.permute.xlu2 %306 }
  0x6f   : > { %v308_v23 = vunpack.c.l.b16 %v307_v17  ;;  %v309_v24 = vunpack.c.h.b16 %v307_v17 }
  0x71   : > { %vm312_vm6 = vcmp.ne.s32.totalorder %v308_v23, %v1077_v21  ;;  %vm313_vm7 = vcmp.ne.s32.totalorder %v309_v24, %v1079_v22 }
  0x72   : > { %vm1090_vm9 = vmpackc.low %vm313_vm7, %vm312_vm6  ;;  %vm704_vm6 = vcmask 261120  }
  0x76   : > { %v405_v28 = vpop.permute.xlu2 %404 }
  0x77   : > { %v406_v31 = vunpack.c.l.b16 %v405_v28  ;;  %v407_v32 = vunpack.c.h.b16 %v405_v28 }
  0x79   : > { %vm410_vm10 = vcmp.ne.s32.totalorder %v406_v31, %v1077_v21  ;;  %vm411_vm11 = vcmp.ne.s32.totalorder %v407_v32, %v1079_v22 }
  0x7a   : > { %vm1107_vm12 = vmpackc.low %vm411_vm11, %vm410_vm10 }
  0x7e   : > { %v466_v2 = vpop.permute.xlu2 %465 }
  0x7f   : > { %v467_v5 = vunpack.c.l.b16 %v466_v2  ;;  %v468_v6 = vunpack.c.h.b16 %v466_v2 }
  0x81   : > { %v192_v11 = vpop.permute.xlu0 %191  ;;  %v188_v12 = vpop.permute.xlu1 %187  ;;  %vm471_vm3 = vcmp.ne.s32.totalorder %v467_v5, %v1077_v21  ;;  %vm472_vm4 = vcmp.ne.s32.totalorder %v468_v6, %v1079_v22 }
  0x82   : > { %202 = vst.msk [vmem:[#allocation2 + $0x8] sm:$0xf] %vm199_vm5, %v192_v11 }
  0x83   : > { %200 = vst.msk [vmem:[#allocation2] sm:$0xf] %vm199_vm5, %v188_v12 }
  0x89   : > { %v194_v13 = vpop.permute.xlu0 %193  ;;  %v190_v14 = vpop.permute.xlu1 %189  ;;  %v439_v15 = vld [vmem:[#allocation2 + $0x8] sm:$0xf] }
  0x8a   : > { %203 = vst.msk [vmem:[#allocation2 + $0xc] sm:$0xf] %vm199_vm5, %v194_v13  ;;  %449 = vrot.lane.b32.xlu0 %v439_v15, %s1027_s24  ;;  %v437_v16 = vld [vmem:[#allocation2] sm:$0xf]  ;;  %v222_v27 = vld [vmem:[#allocation2 + $0x8] sm:$0xf] }
  0x8b   : > { %201 = vst.msk [vmem:[#allocation2 + $0x4] sm:$0xf] %vm199_vm5, %v190_v14  ;;  %445 = vrot.lane.b32.xlu2 %v437_v16, %s1027_s24  ;;  %v220_v25 = vld [vmem:[#allocation2] sm:$0xf]  ;;  %v229_v35 = vsel %vm1071_vm1, %v222_v27, 0  ;;  %vm1157_vm5 = vmpackc.low %vm472_vm4, %vm471_vm3 }
  0x8c   : > { %v227_v29 = vsel %vm1071_vm1, %v220_v25, 0  ;;  %v238_v36 = vld [vmem:[#allocation2 + $0x8] sm:$0xf]  ;;  %234 = vst.msk [vmem:[#allocation3 + $0x8] sm:$0xf] %vm231_vm8, %v229_v35 }
  0x8d   : > { %v341_v39 = vld [vmem:[#allocation2 + $0x8] sm:$0xf]  ;;  %232 = vst.msk [vmem:[#allocation3] sm:$0xf] %vm231_vm8, %v227_v29  ;;  %v301_v43 = vld [vmem:[#allocation2] sm:$0xf] }
  0x8e   : > { %v402_v42 = vld [vmem:[#allocation2 + $0x8] sm:$0xf]  ;;  %v315_v46 = vsel %vm1090_vm9, %v301_v43, 0  ;;  %v236_v55 = vld [vmem:[#allocation2] sm:$0xf] }
  0x8f   : > { %v415_v45 = vsel %vm1107_vm12, %v402_v42, 0  ;;  %v303_v58 = vld [vmem:[#allocation2 + $0x8] sm:$0xf]  ;;  %v400_v11 = vld [vmem:[#allocation2] sm:$0xf] }
  0x90   : > { %v317_v61 = vsel %vm1090_vm9, %v303_v58, 0  ;;  %v262_v62 = vld [vmem:[#allocation2 + $0x8] sm:$0xf]  ;;  %v413_v14 = vsel %vm1107_vm12, %v400_v11, 0  ;;  %v363_v15 = vld [vmem:[#allocation2] sm:$0xf] }
  0x91   : > { %v440_v18 = vld [vmem:[#allocation2 + $0xc] sm:$0xf]  ;;  %v269_v47 = vpop.permute.xlu0 %268  ;;  %v368_v48 = vpop.permute.xlu1 %367  ;;  %v365_v0 = vld [vmem:[#allocation2 + $0x8] sm:$0xf]  ;;  %v260_v25 = vld [vmem:[#allocation2] sm:$0xf] }
  0x92   : > { %v239_v19 = vld [vmem:[#allocation2 + $0xc] sm:$0xf]  ;;  %451 = vrot.lane.b32.xlu1 %v440_v18, %s1027_s24  ;;  %v438_v20 = vld [vmem:[#allocation2 + $0x4] sm:$0xf]  ;;  %v270_v50 = vunpack.c.l.b16 %v269_v47  ;;  %v271_v51 = vunpack.c.h.b16 %v269_v47  ;;  %v369_v53 = vunpack.c.l.b16 %v368_v48  ;;  %v370_v54 = vunpack.c.h.b16 %v368_v48  ;;  %v463_v13 = vld [vmem:[#allocation2 + $0x8] sm:$0xf] }
  0x93   : > { %447 = vrot.lane.b32.xlu0 %v438_v20, %s1027_s24  ;;  %250 = vrot.lane.b32.xlu2 %v239_v19, %s1028_s25  ;;  %v221_v26 = vld [vmem:[#allocation2 + $0x4] sm:$0xf]  ;;  %v223_v30 = vld [vmem:[#allocation2 + $0xc] sm:$0xf]  ;;  %v476_v17 = vsel %vm1157_vm5, %v463_v13, 0 }
  0x94   : > { %v228_v33 = vsel %vm1071_vm1, %v221_v26, 0  ;;  %v304_v34 = vld [vmem:[#allocation2 + $0xc] sm:$0xf]  ;;  %v230_v38 = vsel %vm1071_vm1, %v223_v30, 0  ;;  %v302_v49 = vld [vmem:[#allocation2 + $0x4] sm:$0xf]  ;;  %vm274_vm13 = vcmp.ne.s32.totalorder %v270_v50, %v1077_v21  ;;  %vm275_vm14 = vcmp.ne.s32.totalorder %v271_v51, %v1079_v22 }
  0x95   : > { %v318_v40 = vsel %vm1090_vm9, %v304_v34, 0  ;;  %233 = vst.msk [vmem:[#allocation3 + $0x4] sm:$0xf] %vm231_vm8, %v228_v33  ;;  %v342_v44 = vld [vmem:[#allocation2 + $0xc] sm:$0xf]  ;;  %v316_v56 = vsel %vm1090_vm9, %v302_v49, 0  ;;  %vm373_vm15 = vcmp.ne.s32.totalorder %v369_v53, %v1077_v21  ;;  %vm374_vm0 = vcmp.ne.s32.totalorder %v370_v54, %v1079_v22  ;;  %vm1129_vm1 = vmpackc.low %vm275_vm14, %vm274_vm13 }
  0x96   : > { %235 = vst.msk [vmem:[#allocation3 + $0xc] sm:$0xf] %vm231_vm8, %v230_v38  ;;  %v401_v52 = vld [vmem:[#allocation2 + $0x4] sm:$0xf]  ;;  %vm1133_vm2 = vmpackc.low %vm374_vm0, %vm373_vm15  ;;  %v279_v63 = vsel %vm1129_vm1, %v262_v62, 0  ;;  %v277_v26 = vsel %vm1129_vm1, %v260_v25, 0 }
  0x97   : > { %v414_v57 = vsel %vm1107_vm12, %v401_v52, 0  ;;  %v378_v1 = vsel %vm1133_vm2, %v365_v0, 0  ;;  %v403_v3 = vld [vmem:[#allocation2 + $0xc] sm:$0xf]  ;;  %v261_v4 = vld [vmem:[#allocation2 + $0x4] sm:$0xf] }
  0x98   : > { %v416_v7 = vsel %vm1107_vm12, %v403_v3, 0  ;;  %v366_v8 = vld [vmem:[#allocation2 + $0xc] sm:$0xf]  ;;  %v278_v10 = vsel %vm1129_vm1, %v261_v4, 0  ;;  %v376_v16 = vsel %vm1133_vm2, %v363_v15, 0 }
  0x99   : > { %v379_v9 = vsel %vm1133_vm2, %v366_v8, 0  ;;  %v464_v18 = vld [vmem:[#allocation2 + $0xc] sm:$0xf]  ;;  %v461_v20 = vld [vmem:[#allocation2] sm:$0xf] }
  0x9a   : > { %248 = vrot.lane.b32.xlu1 %v238_v36, %s1028_s25  ;;  %v263_v19 = vld [vmem:[#allocation2 + $0xc] sm:$0xf]  ;;  %v477_v22 = vsel %vm1157_vm5, %v464_v18, 0  ;;  %v474_v23 = vsel %vm1157_vm5, %v461_v20, 0  ;;  %v462_v24 = vld [vmem:[#allocation2 + $0x4] sm:$0xf] }
  0x9b   : > { %351 = vrot.lane.b32.xlu0 %v341_v39, %s1029_s26  ;;  %329 = vrot.lane.b32.xlu2 %v318_v40, %s1030_s27  ;;  %v280_v21 = vsel %vm1129_vm1, %v263_v19, 0  ;;  %v475_v27 = vsel %vm1157_vm5, %v462_v24, 0  ;;  %v237_v28 = vld [vmem:[#allocation2 + $0x4] sm:$0xf]  ;;  %v339_v31 = vld [vmem:[#allocation2] sm:$0xf] }
  0x9c   : > { %v364_v29 = vld [vmem:[#allocation2 + $0x4] sm:$0xf]  ;;  %v543_v15 = vld [vmem:[%s1289_s2 + $0x8] sm:$0xff]  ;;  %v545_v24 = vld [vmem:[%s1289_s2 + $0x18] sm:$0xff] }
  0x9d   : > { %v377_v30 = vsel %vm1133_vm2, %v364_v29, 0  ;;  %v340_v32 = vld [vmem:[#allocation2 + $0x4] sm:$0xf]  ;;  %v955_v25 = vld [vmem:[%s1288_s1 + $0x8] sm:$0xf0] }
  0x9e   : > { %v954_v29 = vld [vmem:[%s1288_s1 + $0x4] sm:$0xf] }
  0xa2   : > { %353 = vrot.lane.b32.xlu1 %v342_v44, %s1029_s26 }
  0xa3   : > { %425 = vrot.lane.b32.xlu0 %v415_v45, %s1031_s28  ;;  %323 = vrot.lane.b32.xlu2 %v315_v46, %s1030_s27 }
  0xaa   : > { %244 = vrot.lane.b32.xlu1 %v236_v55, %s1028_s25 }
  0xab   : > { %325 = vrot.lane.b32.xlu0 %v316_v56, %s1030_s27  ;;  %423 = vrot.lane.b32.xlu2 %v414_v57, %s1031_s28 }
  0xb2   : > { %327 = vrot.lane.b32.xlu1 %v317_v61, %s1030_s27 }
  0xb3   : > { %289 = vrot.lane.b32.xlu0 %v279_v63, %s1032_s29  ;;  %388 = vrot.lane.b32.xlu2 %v378_v1, %s1033_s30 }
  0xba   : > { %427 = vrot.lane.b32.xlu1 %v416_v7, %s1031_s28 }
  0xbb   : > { %390 = vrot.lane.b32.xlu0 %v379_v9, %s1033_s30  ;;  %287 = vrot.lane.b32.xlu2 %v278_v10, %s1032_s29  ;;  %v862_v9 = vld [vmem:[%s1288_s1 + $0x8] sm:$0xf]  ;;  %v956_v10 = vld [vmem:[%s1288_s1 + $0x10] sm:$0xf0] }
  0xbc   : > { %v863_v13 = vor.u32 %v956_v10, %v862_v9 }
  0xc2   : > { %421 = vrot.lane.b32.xlu1 %v413_v14, %s1031_s28 }
  0xc3   : > { %384 = vrot.lane.b32.xlu0 %v376_v16, %s1033_s30  ;;  %486 = vrot.lane.b32.xlu2 %v476_v17, %s1034_s4  ;;  %v544_v16 = vld [vmem:[%s1289_s2 + $0x10] sm:$0xff]  ;;  %v542_v17 = vld [vmem:[%s1289_s2] sm:$0xff] }
  0xca   : > { %291 = vrot.lane.b32.xlu1 %v280_v21, %s1032_s29  ;;  %v961_v21 = vld [vmem:[#allocation3 + $0x8] sm:$0xff] }
  0xcb   : > { %488 = vrot.lane.b32.xlu0 %v477_v22, %s1034_s4  ;;  %482 = vrot.lane.b32.xlu2 %v474_v23, %s1034_s4  ;;  %v854_v23 = vld [vmem:[%s1288_s1] sm:$0xf] }
  0xd2   : > { %285 = vrot.lane.b32.xlu1 %v277_v26, %s1032_s29  ;;  %v866_v26 = vld [vmem:[%s1288_s1 + $0x18] sm:$0xf] }
  0xd3   : > { %484 = vrot.lane.b32.xlu0 %v475_v27, %s1034_s4  ;;  %246 = vrot.lane.b32.xlu2 %v237_v28, %s1028_s25  ;;  %v958_v27 = vld [vmem:[%s1288_s1 + $0x20] sm:$0xf0]  ;;  %v960_v28 = vld [vmem:[#allocation3] sm:$0xff] }
  0xda   : > { %386 = vrot.lane.b32.xlu1 %v377_v30, %s1033_s30  ;;  %v856_v30 = vld [vmem:[%s1288_s1 + $0xc] sm:$0xf0] }
  0xdb   : > { %347 = vrot.lane.b32.xlu0 %v339_v31, %s1029_s26  ;;  %548 = vperm.xlu2 %1009, %v542_v17  }
  0xe2   : > { %349 = vrot.lane.b32.xlu1 %v340_v32, %s1029_s26  ;;  %v874_v32 = vld [vmem:[%s1288_s1 + $0x20] sm:$0xf] }
  0xe3   : > { %553 = vperm.xlu0 %1010, %v543_v15   ;;  %563 = vperm.xlu2 %1009, %v545_v24  }
  0xe5   : > { %v446_v33 = vpop.permute.xlu2 %445 }
  0xe6   : > { %457 = vst.msk [vmem:[#allocation3 + $0x70] sm:$0xf] %vm231_vm8, %v446_v33  ;;  %v959_v33 = vld [vmem:[%s1288_s1 + $0x28] sm:$0xf0] }
  0xea   : > { %558 = vperm.xlu1 %1011, %v544_v16  }
  0xed   : > { %v251_v34 = vpop.permute.xlu2 %250 }
  0xee   : > { %259 = vst.msk [vmem:[#allocation3 + $0x1c] sm:$0xf] %vm231_vm8, %v251_v34  ;;  %v855_v34 = vor.u32 %v955_v25, %v854_v23 }
  0xf5   : > { %v330_v35 = vpop.permute.xlu2 %329 }
  0xf6   : > { %338 = vst.msk [vmem:[#allocation3 + $0x3c] sm:$0xf] %vm231_vm8, %v330_v35  ;;  %v867_v35 = vor.u32 %v958_v27, %v866_v26 }
  0xfc   : > { %v450_v36 = vpop.permute.xlu0 %449 }
  0xfd   : > { %459 = vst.msk [vmem:[#allocation3 + $0x78] sm:$0xf] %vm231_vm8, %v450_v36  ;;  %v324_v37 = vpop.permute.xlu2 %323  ;;  %v859_v36 = vor.u32 %v954_v29, %v856_v30 }
  0xfe   : > { %335 = vst.msk [vmem:[#allocation3 + $0x30] sm:$0xf] %vm231_vm8, %v324_v37  ;;  %v875_v37 = vor.u32 %v959_v33, %v874_v32 }
 0x104   : > { %v452_v38 = vpop.permute.xlu1 %451 }
 0x105   : > { %v448_v39 = vpop.permute.xlu0 %447  ;;  %460 = vst.msk [vmem:[#allocation3 + $0x7c] sm:$0xf] %vm231_vm8, %v452_v38  ;;  %v424_v40 = vpop.permute.xlu2 %423  ;;  %v957_v38 = vld [vmem:[%s1288_s1 + $0x1c] sm:$0xf] }
 0x106   : > { %458 = vst.msk [vmem:[#allocation3 + $0x74] sm:$0xf] %vm231_vm8, %v448_v39  ;;  %v868_v39 = vld [vmem:[%s1288_s1 + $0x24] sm:$0xf0] }
 0x107   : > { %434 = vst.msk [vmem:[#allocation3 + $0x64] sm:$0xf] %vm231_vm8, %v424_v40  ;;  %v871_v40 = vor.u32 %v957_v38, %v868_v39 }
 0x10c   : > { %v249_v41 = vpop.permute.xlu1 %248  ;;  %v975_v42 = vld [vmem:[#allocation3 + $0x78] sm:$0xff] }
 0x10d   : > { %v352_v43 = vpop.permute.xlu0 %351  ;;  %258 = vst.msk [vmem:[#allocation3 + $0x18] sm:$0xf] %vm231_vm8, %v249_v41  ;;  %v389_v44 = vpop.permute.xlu2 %388  ;;  %730 = vmatpush.bf16.msra.mxu1 %v975_v42  ;;  %v974_v45 = vld [vmem:[#allocation3 + $0x70] sm:$0xff] }
 0x10e   : > { %361 = vst.msk [vmem:[#allocation3 + $0x48] sm:$0xf] %vm231_vm8, %v352_v43 }
 0x10f   : > { %398 = vst.msk [vmem:[#allocation3 + $0x58] sm:$0xf] %vm231_vm8, %v389_v44 }
 0x111   : > { %731 = vmatpush.bf16.msra.mxu1 %v974_v45 }
 0x114   : > { %v354_v46 = vpop.permute.xlu1 %353  ;;  %v963_v14 = vld [vmem:[#allocation3 + $0x18] sm:$0xff] }
 0x115   : > { %v426_v47 = vpop.permute.xlu0 %425  ;;  %362 = vst.msk [vmem:[#allocation3 + $0x4c] sm:$0xf] %vm231_vm8, %v354_v46  ;;  %v288_v48 = vpop.permute.xlu2 %287 }
 0x116   : > { %435 = vst.msk [vmem:[#allocation3 + $0x68] sm:$0xf] %vm231_vm8, %v426_v47 }
 0x117   : > { %298 = vst.msk [vmem:[#allocation3 + $0x24] sm:$0xf] %vm231_vm8, %v288_v48 }
 0x11c   : > { %v245_v49 = vpop.permute.xlu1 %244  ;;  %v969_v22 = vld [vmem:[#allocation3 + $0x48] sm:$0xff] }
 0x11d   : > { %v326_v50 = vpop.permute.xlu0 %325  ;;  %256 = vst.msk [vmem:[#allocation3 + $0x10] sm:$0xf] %vm231_vm8, %v245_v49  ;;  %v487_v51 = vpop.permute.xlu2 %486 }
 0x11e   : > { %336 = vst.msk [vmem:[#allocation3 + $0x34] sm:$0xf] %vm231_vm8, %v326_v50 }
 0x11f   : > { %496 = vst.msk [vmem:[#allocation3 + $0x88] sm:$0xf] %vm231_vm8, %v487_v51 }
 0x124   : > { %v328_v52 = vpop.permute.xlu1 %327 }
 0x125   : > { %v290_v53 = vpop.permute.xlu0 %289  ;;  %337 = vst.msk [vmem:[#allocation3 + $0x38] sm:$0xf] %vm231_vm8, %v328_v52  ;;  %v483_v54 = vpop.permute.xlu2 %482  ;;  %v966_v59 = vld [vmem:[#allocation3 + $0x30] sm:$0xff] }
 0x126   : > { %299 = vst.msk [vmem:[#allocation3 + $0x28] sm:$0xf] %vm231_vm8, %v290_v53 }
 0x127   : > { %494 = vst.msk [vmem:[#allocation3 + $0x80] sm:$0xf] %vm231_vm8, %v483_v54 }
 0x12c   : > { %v428_v55 = vpop.permute.xlu1 %427  ;;  %v967_v56 = vld [vmem:[#allocation3 + $0x38] sm:$0xff] }
 0x12d   : > { %v391_v57 = vpop.permute.xlu0 %390  ;;  %436 = vst.msk [vmem:[#allocation3 + $0x6c] sm:$0xf] %vm231_vm8, %v428_v55  ;;  %v247_v58 = vpop.permute.xlu2 %246  ;;  %711 = vmatpush.bf16.msra.mxu0 %v967_v56  ;;  %978 = vmatpush.bf16.msra.mxu3 %v967_v56 }
 0x12e   : > { %399 = vst.msk [vmem:[#allocation3 + $0x5c] sm:$0xf] %vm231_vm8, %v391_v57 }
 0x12f   : > { %257 = vst.msk [vmem:[#allocation3 + $0x14] sm:$0xf] %vm231_vm8, %v247_v58 }
 0x131   : > { %712 = vmatpush.bf16.msra.mxu0 %v966_v59  ;;  %979 = vmatpush.bf16.msra.mxu3 %v966_v59 }
 0x134   : > { %v422_v60 = vpop.permute.xlu1 %421  ;;  %v973_v61 = vld [vmem:[#allocation3 + $0x68] sm:$0xff] }
 0x135   : > { %v385_v62 = vpop.permute.xlu0 %384  ;;  %433 = vst.msk [vmem:[#allocation3 + $0x60] sm:$0xf] %vm231_vm8, %v422_v60  ;;  %732 = vmatpush.bf16.msra.mxu1 %v973_v61  ;;  %v971_v2 = vld [vmem:[#allocation3 + $0x58] sm:$0xff]  ;;  %v549_v42 = vpop.permute.xlu2 %548 }
 0x136   : > { %396 = vst.msk [vmem:[#allocation3 + $0x50] sm:$0xf] %vm231_vm8, %v385_v62  ;;  %v962_v19 = vld [vmem:[#allocation3 + $0x10] sm:$0xff] }
 0x13c   : > { %v292_v63 = vpop.permute.xlu1 %291  ;;  %v972_v0 = vld [vmem:[#allocation3 + $0x60] sm:$0xff] }
 0x13d   : > { %v489_v1 = vpop.permute.xlu0 %488  ;;  %300 = vst.msk [vmem:[#allocation3 + $0x2c] sm:$0xf] %vm231_vm8, %v292_v63  ;;  %733 = vmatpush.bf16.msra.mxu1 %v972_v0 }
 0x13e   : > { %497 = vst.msk [vmem:[#allocation3 + $0x8c] sm:$0xf] %vm231_vm8, %v489_v1 }
 0x141   : > { %734 = vmatpush.bf16.msra.mxu1 %v971_v2 }
 0x144   : > { %v286_v3 = vpop.permute.xlu1 %285  ;;  %v965_v4 = vld [vmem:[#allocation3 + $0x28] sm:$0xff] }
 0x145   : > { %v485_v5 = vpop.permute.xlu0 %484  ;;  %297 = vst.msk [vmem:[#allocation3 + $0x20] sm:$0xf] %vm231_vm8, %v286_v3  ;;  %v977_v6 = vld [vmem:[#allocation3 + $0x88] sm:$0xff]  ;;  %713 = vmatpush.bf16.msra.mxu0 %v965_v4  ;;  %980 = vmatpush.bf16.msra.mxu3 %v965_v4  ;;  %v564_v4 = vpop.permute.xlu2 %563 }
 0x146   : > { %495 = vst.msk [vmem:[#allocation3 + $0x84] sm:$0xf] %vm231_vm8, %v485_v5  ;;  %755 = vmatpush.bf16.msra.mxu2 %v977_v6 }
 0x14c   : > { %v387_v7 = vpop.permute.xlu1 %386  ;;  %v964_v8 = vld [vmem:[#allocation3 + $0x20] sm:$0xff] }
 0x14d   : > { %v348_v11 = vpop.permute.xlu0 %347  ;;  %397 = vst.msk [vmem:[#allocation3 + $0x54] sm:$0xf] %vm231_vm8, %v387_v7  ;;  %v976_v12 = vld [vmem:[#allocation3 + $0x80] sm:$0xff]  ;;  %714 = vmatpush.bf16.msra.mxu0 %v964_v8  ;;  %981 = vmatpush.bf16.msra.mxu3 %v964_v8 }
 0x14e   : > { %359 = vst.msk [vmem:[#allocation3 + $0x40] sm:$0xf] %vm231_vm8, %v348_v11  ;;  %756 = vmatpush.bf16.msra.mxu2 %v976_v12 }
 0x151   : > { %715 = vmatpush.bf16.msra.mxu0 %v963_v14  ;;  %982 = vmatpush.bf16.msra.mxu3 %v963_v14 }
 0x152   : > { %948 = vmatmul.msk.bf16.vlgmr.msra.gmra.mxu2 %vm704_vm6, %v863_v13 }
 0x154   : > { %v350_v18 = vpop.permute.xlu1 %349  ;;  %v970_v20 = vld [vmem:[#allocation3 + $0x50] sm:$0xff] }
 0x155   : > { %360 = vst.msk [vmem:[#allocation3 + $0x44] sm:$0xf] %vm231_vm8, %v350_v18  ;;  %716 = vmatpush.bf16.msra.mxu0 %v962_v19  ;;  %983 = vmatpush.bf16.msra.mxu3 %v962_v19  ;;  %v554_v48 = vpop.permute.xlu0 %553 }
 0x156   : > { %735 = vmatpush.bf16.msra.mxu1 %v970_v20 }
 0x159   : > { %717 = vmatpush.bf16.msra.mxu0 %v961_v21  ;;  %984 = vmatpush.bf16.msra.mxu3 %v961_v21 }
 0x15a   : > { %736 = vmatpush.bf16.msra.mxu1 %v969_v22 }
 0x15c   : > { %v968_v31 = vld [vmem:[#allocation3 + $0x40] sm:$0xff]  ;;  %v559_v58 = vpop.permute.xlu1 %558 }
 0x15d   : > { %718 = vmatpush.bf16.msra.mxu0 %v960_v28  ;;  %985 = vmatpush.bf16.msra.mxu3 %v960_v28 }
 0x15e   : > { %737 = vmatpush.bf16.msra.mxu1 %v968_v31 }
 0x160   : > { %719 = vmatmul.bf16.vlgmr.msra.gmra.mxu0 %v855_v34  ;;  %724 = vmatmul.bf16.vlgmr.msra.gmra.mxu3 %v867_v35 }
 0x161   : > { %738 = vmatmul.bf16.vlgmr.msra.gmra.mxu1 %v859_v36 }
 0x162   : > { %949 = vmatmul.msk.bf16.gmra.mxu2 %vm704_vm6, %v875_v37 }
 0x171   : > { %743 = vmatmul.bf16.gmra.mxu1 %v871_v40 }
 0x1d5   : > { %v758_v41 = vpop.f32.mrf.mxu2 }
 0x1dd   : > { %v720_v43 = vpop.f32.mrf.mxu0  ;;  %v760_v50 = vpop.f32.mrf.mxu2 }
 0x1de   : > { %v721_v44 = vadd.f32 %v720_v43, %v549_v42  ;;  %v739_v45 = vpop.f32.mrf.mxu1 }
 0x1e0   : > { %v740_v46 = vadd.f32 %v739_v45, %v721_v44 }
 0x1e2   : > { %v759_v47 = vadd.f32 %v758_v41, %v740_v46 }
 0x1e3   : > { %v725_v56 = vpop.f32.mrf.mxu3 }
 0x1e4   : > { %vm768_vm7 = vcmp.ge.f32.partialorder %v759_v47, 0.0  ;;  %v772_v49 = vmul.f32 0.1, %v759_v47  ;;  %v726_v60 = vadd.f32 %v725_v56, %v559_v58 }
 0x1e5   : > { %v722_v51 = vpop.f32.mrf.mxu0  ;;  %v763_v63 = vpop.f32.mrf.mxu2 }
 0x1e6   : > { %v776_v52 = vsel %vm768_vm7, %v759_v47, %v772_v49  ;;  %v723_v53 = vadd.f32 %v722_v51, %v554_v48  ;;  %v741_v54 = vpop.f32.mrf.mxu1 }
 0x1e7   : > { %v780_v55 = vpack.c.bf16 %v776_v52, %v776_v52 }
 0x1e8   : > { %v742_v57 = vadd.f32 %v741_v54, %v723_v53 }
 0x1e9   : > { %784 = vst.msk [vmem:[%s1274_s18] sm:$0xf] %vm231_vm8, %v780_v55 }
 0x1ea   : > { %v761_v59 = vadd.f32 %v760_v50, %v742_v57 }
 0x1eb   : > { %v727_v5 = vpop.f32.mrf.mxu3 }
 0x1ec   : > { %vm769_vm9 = vcmp.ge.f32.partialorder %v761_v59, 0.0  ;;  %v773_v61 = vmul.f32 0.1, %v761_v59  ;;  %v728_v7 = vadd.f32 %v727_v5, %v564_v4 }
 0x1ed   : > { %v765_v12 = vpop.f32.mrf.mxu2 }
 0x1ee   : > { %v777_v62 = vsel %vm769_vm9, %v761_v59, %v773_v61  ;;  %v744_v0 = vpop.f32.mrf.mxu1 }
 0x1ef   : > { %v781_v1 = vpack.c.bf16 %v777_v62, %v777_v62  ;;  %v745_v2 = vadd.f32 %v744_v0, %v726_v60 }
 0x1f1   : > { %785 = vst.msk [vmem:[%s1274_s18 + $0x4] sm:$0xf] %vm231_vm8, %v781_v1  ;;  %v764_v3 = vadd.f32 %v763_v63, %v745_v2 }
 0x1f3   : > { %vm770_vm10 = vcmp.ge.f32.partialorder %v764_v3, 0.0  ;;  %v774_v6 = vmul.f32 0.1, %v764_v3 }
 0x1f5   : > { %v778_v8 = vsel %vm770_vm10, %v764_v3, %v774_v6 }
 0x1f6   : > { %v782_v9 = vpack.c.bf16 %v778_v8, %v778_v8  ;;  %v746_v10 = vpop.f32.mrf.mxu1 }
 0x1f7   : > { %v747_v11 = vadd.f32 %v746_v10, %v728_v7 }
 0x1f8   : > { %786 = vst.msk [vmem:[%s1274_s18 + $0x8] sm:$0xf] %vm231_vm8, %v782_v9 }
 0x1f9   : > { %v766_v13 = vadd.f32 %v765_v12, %v747_v11 }
 0x1fb   : > { %vm771_vm11 = vcmp.ge.f32.partialorder %v766_v13, 0.0  ;;  %v775_v14 = vmul.f32 0.1, %v766_v13 }
 0x1fd   : > { %v779_v15 = vsel %vm771_vm11, %v766_v13, %v775_v14 }
 0x1fe   : > { %v783_v16 = vpack.c.bf16 %v779_v15, %v779_v15 }
 0x200   : > { %787 = vst.msk [vmem:[%s1274_s18 + $0xc] sm:$0xf] %vm231_vm8, %v783_v16 }
 0x201 PF: > { %s13_s12 = sadd.s32 1, %s1018_s12  }
 0x202   : > { %p10_p4 = scmp.ge.s32.totalorder %s13_s12, 4  }
 0x204   :  { %12 = sbr.rel (!%p10_p4) target bundleno = 1 (0x1), region = 62 }

// kernel: unet_forward.9
= control target key start
LH: loop header
LB: loop body
LE: loop exit
PB: predicated region body
PF: predicated region fallthrough
CT: control target
= control target key end

     0   :  { %s1479_s18 = smov 0   ;;  %s1839_s0 = inlined_call_operand.vmem [shape: bf16[2,16,16], index: 0, kind: input, shape index: {}]   ;;  %s1840_s1 = inlined_call_operand.vmem [shape: bf16[32,144], index: 1, kind: input, shape index: {}]   ;;  %s1841_s2 = inlined_call_operand.vmem [shape: f32[32,1], index: 2, kind: input, shape index: {}]   ;;  %s1842_s3 = inlined_call_operand.vmem [shape: bf16[32,288], index: 3, kind: input, shape index: {}]   ;;  %s1843_s4 = inlined_call_operand.vmem [shape: f32[32,1], index: 4, kind: input, shape index: {}]   ;;  %s1844_s5 = inlined_call_operand.vmem [shape: bf16[2,32,16], index: 5, kind: output, shape index: {}]  }
   0x1 LB: > { %s1198_s19 = sadd.s32 4294967295, %s1432_s18   ;;  %p1202_p0 = scmp.ge.s32.totalorder %s1432_s18, 1  ;;  %s1432_s18 = sphi %s1479_s18, %s15_s18  }
   0x2   : > { %p187_p1 = scmp.lt.s32.totalorder %s1432_s18, 3 }
   0x4   : > { %p188_p2 = pnand %p1202_p0, %p187_p1 }
   0x5   : > { %p215_p3 = scmp.lt.s32.totalorder (!%p188_p2), %s1198_s19, 1  ;;  %s1435_s24 = smov (!%p188_p2), 5  }
   0x6   : > { %191 = sbr.rel (%p188_p2) target bundleno = 943 (0x3af), region = 40  ;;  %s1436_s25 = smov (!%p188_p2), 8  }
   0x7   : > { %s1437_s26 = smov (!%p188_p2), 4   ;;  %s1438_s27 = smov (!%p188_p2), 6  }
   0x8   : > { %s1439_s28 = smov (!%p188_p2), 2   ;;  %s1440_s29 = smov (!%p188_p2), 10  }
   0x9   : > { %s1441_s30 = smov (!%p188_p2), 119   ;;  %s1442_s6 = smov (!%p188_p2), 120  }
   0xa   : > { %s1443_s7 = smov (!%p188_p2), 122   ;;  %s1444_s8 = smov (!%p188_p2), 123  }
   0xb   : > { %v244_v0 = vlaneseq  ;;  %v1434_v1 = vmov 0   ;;  %s1858_s19 = smov (!%p215_p3, %s1198_s19), 1  ;;  %vm230_vm4 = vcmask 207872   ;;  %vm241_vm5 = vcmask 166952   ;;  %s1445_s9 = smov 124  }
   0xc   : > { %1425 = vset.pattern.permute.xlu1 %v1434_v1  ;;  %1424 = vset.pattern.permute.xlu0 %v1434_v1  ;;  %s1361_s20 = sshll.u32 %s1858_s19, 3  ;;  %231 = vst.msk [vmem:[#allocation2] sm:$0xf] %vm230_vm4, %v1434_v1  ;;  %v1515_v10 = vunpack.c.l.b16 %v1434_v1  ;;  %v1518_v11 = vunpack.c.h.b16 %v1434_v1  ;;  %vm267_vm9 = vcmask 125952   ;;  %s1446_s10 = smov 126  }
   0xd   : > { %v245_v2 = vand.u32 127, %v244_v0  ;;  %1423 = vset.pattern.permute.xlu2 %v1434_v1  ;;  %s219_s23 = scalar_lea.vmem %s1839_s0, %s1361_s20  ;;  %232 = vst.msk [vmem:[#allocation2 + $0x4] sm:$0xf] %vm230_vm4, %v1434_v1  ;;  %s1447_s11 = smov 127  }
   0xe   : > { %v228_v4 = vld [vmem:[%s219_s23] sm:$0xf]  ;;  %v229_v7 = vld [vmem:[%s219_s23 + $0x4] sm:$0xf]  ;;  %603 = vst.msk [vmem:[#allocation2 + $0x8] sm:$0xf] %vm230_vm4, %v1434_v1 }
   0xf   : > { %v250_v3 = vand.u32 3, %v245_v2  ;;  %235 = vrot.lane.b32.xlu0 %v228_v4, %s1435_s24  ;;  %604 = vst.msk [vmem:[#allocation2 + $0xc] sm:$0xf] %vm230_vm4, %v1434_v1  ;;  %s1448_s12 = smov 118  }
  0x11   : > { %vm258_vm0 = vcmp.ge.s32.totalorder %v250_v3, 1  ;;  %vm259_vm2 = vcmp.lt.s32.totalorder %v250_v3, 3 }
  0x12   : > { %vm1497_vm1 = vmpackc.low %vm258_vm0, %vm258_vm0 }
  0x13   : > { %v311_v6 = vsel %vm1497_vm1, 65537, %v1434_v1  ;;  %vm286_vm3 = vmpackc.low %vm259_vm2, %vm259_vm2 }
  0x14   : > { %370 = vrot.lane.b32.xlu1 %v311_v6, %s1436_s25  ;;  %312 = vrot.lane.b32.xlu2 %v311_v6, %s1437_s26  ;;  %v287_v8 = vsel %vm286_vm3, 65537, %v1434_v1  ;;  %s1362_s26 = sshll.u32 %s1858_s19, 4 }
  0x17   : > { %237 = vrot.lane.b32.xlu0 %v229_v7, %s1435_s24 }
  0x1c   : > { %347 = vrot.lane.b32.xlu1 %v287_v8, %s1438_s27  ;;  %288 = vrot.lane.b32.xlu2 %v287_v8, %s1439_s28 }
  0x1f   : > { %405 = vrot.lane.b32.xlu0 %v287_v8, %s1440_s29  ;;  %s1826_s29 = scalar_lea.vmem %s1844_s5, %s1362_s26 }
  0x6e   : > { %v313_v31 = vpop.permute.xlu2 %312 }
  0x6f   : > { %v314_v32 = vunpack.c.l.b16 %v313_v31  ;;  %v315_v33 = vunpack.c.h.b16 %v313_v31 }
  0x71   : > { %vm318_vm13 = vcmp.ne.s32.totalorder %v314_v32, %v1515_v10  ;;  %vm319_vm14 = vcmp.ne.s32.totalorder %v315_v33, %v1518_v11  ;;  %v1363_v32 = vld [vmem:[%s1840_s1 + $0x4] sm:$0xf]  ;;  %v1211_v33 = vld [vmem:[%s1840_s1 + $0x8] sm:$0xf0] }
  0x72   : > { %vm1557_vm15 = vmpackc.low %vm319_vm14, %vm318_vm13 }
  0x76   : > { %v289_v48 = vpop.permute.xlu2 %288 }
  0x77   : > { %v290_v49 = vunpack.c.l.b16 %v289_v48  ;;  %v291_v50 = vunpack.c.h.b16 %v289_v48 }
  0x79   : > { %vm294_vm0 = vcmp.ne.s32.totalorder %v290_v49, %v1515_v10  ;;  %vm295_vm2 = vcmp.ne.s32.totalorder %v291_v50, %v1518_v11 }
  0x7a   : > { %vm1570_vm3 = vmpackc.low %vm295_vm2, %vm294_vm0 }
  0x81   : > { %v236_v9 = vpop.permute.xlu0 %235 }
  0x82   : > { %242 = vst.msk [vmem:[#allocation2] sm:$0xf] %vm241_vm5, %v236_v9 }
  0x86   : > { %v371_v12 = vpop.permute.xlu1 %370 }
  0x87   : > { %v372_v13 = vunpack.c.l.b16 %v371_v12  ;;  %v373_v14 = vunpack.c.h.b16 %v371_v12 }
  0x89   : > { %vm376_vm6 = vcmp.ne.s32.totalorder %v372_v13, %v1515_v10  ;;  %vm377_vm7 = vcmp.ne.s32.totalorder %v373_v14, %v1518_v11  ;;  %v260_v16 = vld [vmem:[#allocation2] sm:$0xf]  ;;  %v238_v17 = vpop.permute.xlu0 %237 }
  0x8a   : > { %vm1523_vm8 = vmpackc.low %vm377_vm7, %vm376_vm6  ;;  %v391_v18 = vld [vmem:[#allocation2] sm:$0xf]  ;;  %243 = vst.msk [vmem:[#allocation2 + $0x4] sm:$0xf] %vm241_vm5, %v238_v17  ;;  %v265_v25 = vsel %vm1497_vm1, %v260_v16, 0 }
  0x8b   : > { %v368_v19 = vld [vmem:[#allocation2] sm:$0xf]  ;;  %395 = vrot.lane.b32.xlu1 %v391_v18, %s1441_s30  ;;  %268 = vst.msk [vmem:[#allocation3] sm:$0xf] %vm267_vm9, %v265_v25 }
  0x8c   : > { %v379_v20 = vsel %vm1523_vm8, %v368_v19, 0  ;;  %v333_v21 = vld [vmem:[#allocation2] sm:$0xf] }
  0x8d   : > { %383 = vrot.lane.b32.xlu0 %v379_v20, %s1442_s6  ;;  %v309_v23 = vld [vmem:[#allocation2] sm:$0xf] }
  0x8e   : > { %v348_v22 = vpop.permute.xlu1 %347  ;;  %v345_v24 = vld [vmem:[#allocation2] sm:$0xf]  ;;  %v321_v51 = vsel %vm1557_vm15, %v309_v23, 0  ;;  %v450_v23 = vld [vmem:[%s1841_s2 + $0x10] sm:$0xff] }
  0x8f   : > { %v349_v26 = vunpack.c.l.b16 %v348_v22  ;;  %v350_v27 = vunpack.c.h.b16 %v348_v22  ;;  %v282_v28 = vld [vmem:[#allocation2] sm:$0xf] }
  0x90   : > { %v270_v29 = vld [vmem:[#allocation2] sm:$0xf]  ;;  %v297_v60 = vsel %vm1570_vm3, %v282_v28, 0  ;;  %v1364_v28 = vld [vmem:[%s1840_s1 + $0x4] sm:$0xf0] }
  0x91   : > { %v403_v30 = vld [vmem:[#allocation2] sm:$0xf]  ;;  %vm353_vm10 = vcmp.ne.s32.totalorder %v349_v26, %v1515_v10  ;;  %vm354_vm11 = vcmp.ne.s32.totalorder %v350_v27, %v1518_v11  ;;  %v261_v34 = vld [vmem:[#allocation2 + $0x4] sm:$0xf]  ;;  %v406_v52 = vpop.permute.xlu0 %405 }
  0x92   : > { %601 = vst.msk [vmem:[#allocation2] sm:$0xf] %vm230_vm4, %v1434_v1  ;;  %v392_v35 = vld [vmem:[#allocation2 + $0x4] sm:$0xf]  ;;  %vm1539_vm12 = vmpackc.low %vm354_vm11, %vm353_vm10  ;;  %v266_v43 = vsel %vm1497_vm1, %v261_v34, 0  ;;  %v407_v53 = vunpack.c.l.b16 %v406_v52  ;;  %v408_v54 = vunpack.c.h.b16 %v406_v52  ;;  %vm544_vm10 = vcmask 130048  }
  0x93   : > { %v369_v36 = vld [vmem:[#allocation2 + $0x4] sm:$0xf]  ;;  %397 = vrot.lane.b32.xlu2 %v392_v35, %s1441_s30  ;;  %269 = vst.msk [vmem:[#allocation3 + $0x4] sm:$0xf] %vm267_vm9, %v266_v43  ;;  %v356_v55 = vsel %vm1539_vm12, %v345_v24, 0  ;;  %v451_v24 = vld [vmem:[%s1841_s2 + $0x18] sm:$0xff]  ;;  %v1214_v35 = vor.u32 %v1363_v32, %v1211_v33 }
  0x94   : > { %v380_v38 = vsel %vm1523_vm8, %v369_v36, 0  ;;  %v346_v39 = vld [vmem:[#allocation2 + $0x4] sm:$0xf]  ;;  %vm412_vm6 = vcmp.ne.s32.totalorder %v408_v54, %v1518_v11  ;;  %v1209_v27 = vld [vmem:[%s1840_s1] sm:$0xf] }
  0x95   : > { %385 = vrot.lane.b32.xlu1 %v380_v38, %s1442_s6  ;;  %v357_v40 = vsel %vm1539_vm12, %v346_v39, 0  ;;  %v334_v41 = vld [vmem:[#allocation2 + $0x4] sm:$0xf]  ;;  %v1210_v31 = vor.u32 %v1364_v28, %v1209_v27  ;;  %v1217_v36 = vld [vmem:[%s1840_s1 + $0x10] sm:$0xf] }
  0x96   : > { %v310_v42 = vld [vmem:[#allocation2 + $0x4] sm:$0xf]  ;;  %362 = vrot.lane.b32.xlu0 %v357_v40, %s1443_s7  ;;  %v1366_v38 = vld [vmem:[%s1840_s1 + $0x14] sm:$0xf0]  ;;  %v1365_v40 = vld [vmem:[%s1840_s1 + $0x14] sm:$0xf] }
  0x97   : > { %v283_v44 = vld [vmem:[#allocation2 + $0x4] sm:$0xf]  ;;  %v322_v57 = vsel %vm1557_vm15, %v310_v42, 0  ;;  %v1218_v39 = vor.u32 %v1366_v38, %v1217_v36 }
  0x98   : > { %v271_v45 = vld [vmem:[#allocation2 + $0x4] sm:$0xf]  ;;  %v298_v58 = vsel %vm1570_vm3, %v283_v44, 0 }
  0x99   : > { %v404_v46 = vld [vmem:[#allocation2 + $0x4] sm:$0xf] }
  0x9a   : > { %602 = vst.msk [vmem:[#allocation2 + $0x4] sm:$0xf] %vm230_vm4, %v1434_v1  ;;  %vm411_vm4 = vcmp.ne.s32.totalorder %v407_v53, %v1515_v10  ;;  %v448_v14 = vld [vmem:[%s1841_s2] sm:$0xff] }
  0x9b   : > { %339 = vrot.lane.b32.xlu2 %v334_v41, %s1444_s8  ;;  %vm1583_vm7 = vmpackc.low %vm412_vm6, %vm411_vm4  ;;  %v1219_v41 = vld [vmem:[%s1840_s1 + $0x18] sm:$0xf0] }
  0x9c   : > { %v414_v61 = vsel %vm1583_vm7, %v403_v30, 0  ;;  %v415_v62 = vsel %vm1583_vm7, %v404_v46, 0  ;;  %v1367_v30 = vld [vmem:[#allocation3] sm:$0xff]  ;;  %v1222_v42 = vor.u32 %v1365_v40, %v1219_v41 }
  0x9d   : > { %337 = vrot.lane.b32.xlu1 %v333_v21, %s1444_s8 }
  0x9e   : > { %325 = vrot.lane.b32.xlu0 %v321_v51, %s1445_s9 }
  0xa3   : > { %360 = vrot.lane.b32.xlu2 %v356_v55, %s1443_s7 }
  0xa5   : > { %327 = vrot.lane.b32.xlu1 %v322_v57, %s1445_s9 }
  0xa6   : > { %303 = vrot.lane.b32.xlu0 %v298_v58, %s1446_s10 }
  0xab   : > { %301 = vrot.lane.b32.xlu2 %v297_v60, %s1446_s10 }
  0xad   : > { %274 = vrot.lane.b32.xlu1 %v270_v29, %s1447_s11  ;;  %v449_v29 = vld [vmem:[%s1841_s2 + $0x8] sm:$0xff] }
  0xae   : > { %418 = vrot.lane.b32.xlu0 %v414_v61, %s1448_s12 }
  0xb3   : > { %276 = vrot.lane.b32.xlu2 %v271_v45, %s1447_s11 }
  0xb5   : > { %420 = vrot.lane.b32.xlu1 %v415_v62, %s1448_s12 }
  0xb6   : > { %469 = vperm.xlu0 %1424, %v451_v24  }
  0xbb   : > { %464 = vperm.xlu2 %1423, %v450_v23  }
  0xbd   : > { %454 = vperm.xlu1 %1425, %v448_v14  }
  0xc3   : > { %459 = vperm.xlu2 %1423, %v449_v29  }
  0xed   : > { %v398_v63 = vpop.permute.xlu2 %397 }
  0xee   : > { %402 = vst.msk [vmem:[#allocation3 + $0x3c] sm:$0xf] %vm267_vm9, %v398_v63 }
  0xf5   : > { %v340_v0 = vpop.permute.xlu2 %339 }
  0xf6   : > { %344 = vst.msk [vmem:[#allocation3 + $0x24] sm:$0xf] %vm267_vm9, %v340_v0 }
  0xfd   : > { %v396_v1 = vpop.permute.xlu1 %395  ;;  %v361_v2 = vpop.permute.xlu2 %360 }
  0xfe   : > { %401 = vst.msk [vmem:[#allocation3 + $0x38] sm:$0xf] %vm267_vm9, %v396_v1 }
  0xff   : > { %v384_v3 = vpop.permute.xlu0 %383  ;;  %366 = vst.msk [vmem:[#allocation3 + $0x28] sm:$0xf] %vm267_vm9, %v361_v2 }
 0x100   : > { %389 = vst.msk [vmem:[#allocation3 + $0x30] sm:$0xf] %vm267_vm9, %v384_v3 }
 0x105   : > { %v302_v4 = vpop.permute.xlu2 %301  ;;  %v1374_v6 = vld [vmem:[#allocation3 + $0x38] sm:$0xff] }
 0x106   : > { %307 = vst.msk [vmem:[#allocation3 + $0x10] sm:$0xf] %vm267_vm9, %v302_v4  ;;  %551 = vmatpush.bf16.msra.mxu0 %v1374_v6 }
 0x107   : > { %v386_v7 = vpop.permute.xlu1 %385 }
 0x108   : > { %390 = vst.msk [vmem:[#allocation3 + $0x34] sm:$0xf] %vm267_vm9, %v386_v7  ;;  %v363_v8 = vpop.permute.xlu0 %362 }
 0x109   : > { %367 = vst.msk [vmem:[#allocation3 + $0x2c] sm:$0xf] %vm267_vm9, %v363_v8 }
 0x10d   : > { %v277_v9 = vpop.permute.xlu2 %276 }
 0x10e   : > { %281 = vst.msk [vmem:[#allocation3 + $0xc] sm:$0xf] %vm267_vm9, %v277_v9 }
 0x10f   : > { %v338_v10 = vpop.permute.xlu1 %337  ;;  %v1373_v11 = vld [vmem:[#allocation3 + $0x30] sm:$0xff] }
 0x110   : > { %343 = vst.msk [vmem:[#allocation3 + $0x20] sm:$0xf] %vm267_vm9, %v338_v10  ;;  %v326_v12 = vpop.permute.xlu0 %325  ;;  %552 = vmatpush.bf16.msra.mxu0 %v1373_v11  ;;  %v1372_v13 = vld [vmem:[#allocation3 + $0x28] sm:$0xff] }
 0x111   : > { %331 = vst.msk [vmem:[#allocation3 + $0x18] sm:$0xf] %vm267_vm9, %v326_v12 }
 0x114   : > { %553 = vmatpush.bf16.msra.mxu0 %v1372_v13 }
 0x115   : > { %v465_v50 = vpop.permute.xlu2 %464 }
 0x117   : > { %v328_v16 = vpop.permute.xlu1 %327  ;;  %v1371_v17 = vld [vmem:[#allocation3 + $0x20] sm:$0xff] }
 0x118   : > { %332 = vst.msk [vmem:[#allocation3 + $0x1c] sm:$0xf] %vm267_vm9, %v328_v16  ;;  %v304_v18 = vpop.permute.xlu0 %303  ;;  %554 = vmatpush.bf16.msra.mxu0 %v1371_v17 }
 0x119   : > { %308 = vst.msk [vmem:[#allocation3 + $0x14] sm:$0xf] %vm267_vm9, %v304_v18 }
 0x11d   : > { %v460_v58 = vpop.permute.xlu2 %459 }
 0x11f   : > { %v275_v19 = vpop.permute.xlu1 %274  ;;  %v1370_v20 = vld [vmem:[#allocation3 + $0x18] sm:$0xff] }
 0x120   : > { %280 = vst.msk [vmem:[#allocation3 + $0x8] sm:$0xf] %vm267_vm9, %v275_v19  ;;  %v419_v21 = vpop.permute.xlu0 %418  ;;  %555 = vmatpush.bf16.msra.mxu0 %v1370_v20  ;;  %v1369_v22 = vld [vmem:[#allocation3 + $0x10] sm:$0xff] }
 0x121   : > { %424 = vst.msk [vmem:[#allocation3 + $0x40] sm:$0xf] %vm267_vm9, %v419_v21 }
 0x124   : > { %556 = vmatpush.bf16.msra.mxu0 %v1369_v22 }
 0x127   : > { %v421_v25 = vpop.permute.xlu1 %420  ;;  %v1368_v26 = vld [vmem:[#allocation3 + $0x8] sm:$0xff] }
 0x128   : > { %425 = vst.msk [vmem:[#allocation3 + $0x44] sm:$0xf] %vm267_vm9, %v421_v25  ;;  %557 = vmatpush.bf16.msra.mxu0 %v1368_v26  ;;  %v470_v2 = vpop.permute.xlu0 %469 }
 0x12c   : > { %558 = vmatpush.bf16.msra.mxu0 %v1367_v30 }
 0x12f   : > { %v1375_v34 = vld [vmem:[#allocation3 + $0x40] sm:$0xff]  ;;  %559 = vmatmul.bf16.vlgmr.msra.gmra.mxu0 %v1210_v31  ;;  %v455_v43 = vpop.permute.xlu1 %454 }
 0x130   : > { %577 = vmatpush.bf16.msra.mxu1 %v1375_v34 }
 0x133   : > { %1259 = vmatmul.msk.bf16.vlgmr.msra.gmra.mxu1 %vm544_vm10, %v1214_v35 }
 0x13f   : > { %564 = vmatmul.bf16.gmra.mxu0 %v1218_v39 }
 0x143   : > { %1260 = vmatmul.msk.bf16.gmra.mxu1 %vm544_vm10, %v1222_v42 }
 0x1ac   : > { %v560_v44 = vpop.f32.mrf.mxu0 }
 0x1ad   : > { %v561_v45 = vadd.f32 %v560_v44, %v455_v43 }
 0x1b0   : > { %v579_v46 = vpop.f32.mrf.mxu1 }
 0x1b1   : > { %v580_v48 = vadd.f32 %v579_v46, %v561_v45 }
 0x1b3   : > { %vm589_vm11 = vcmp.ge.f32.partialorder %v580_v48, 0.0  ;;  %v593_v49 = vmul.f32 0.1, %v580_v48 }
 0x1b4   : > { %v562_v51 = vpop.f32.mrf.mxu0 }
 0x1b5   : > { %v597_v52 = vsel %vm589_vm11, %v580_v48, %v593_v49  ;;  %v563_v61 = vadd.f32 %v562_v51, %v460_v58 }
 0x1b6   : > { %v605_v53 = vpack.c.bf16 %v597_v52, %v597_v52 }
 0x1b8   : > { %v581_v54 = vpop.f32.mrf.mxu1  ;;  %613 = vrot.lane.b32.xlu0 %v605_v53, %s1435_s24 }
 0x1b9   : > { %v582_v63 = vadd.f32 %v581_v54, %v563_v61 }
 0x1bb   : > { %v594_v6 = vmul.f32 0.1, %v582_v63  ;;  %vm590_vm14 = vcmp.ge.f32.partialorder %v582_v63, 0.0 }
 0x1bc   : > { %v565_v55 = vpop.f32.mrf.mxu0 }
 0x1bd   : > { %v566_v57 = vadd.f32 %v565_v55, %v465_v50  ;;  %v598_v11 = vsel %vm590_vm14, %v582_v63, %v594_v6 }
 0x1be   : > { %v606_v13 = vpack.c.bf16 %v598_v11, %v598_v11 }
 0x1c0   : > { %v584_v60 = vpop.f32.mrf.mxu1 }
 0x1c1   : > { %v585_v62 = vadd.f32 %v584_v60, %v566_v57 }
 0x1c3   : > { %vm591_vm13 = vcmp.ge.f32.partialorder %v585_v62, 0.0  ;;  %v595_v0 = vmul.f32 0.1, %v585_v62 }
 0x1c4   : > { %v567_v1 = vpop.f32.mrf.mxu0 }
 0x1c5   : > { %v599_v3 = vsel %vm591_vm13, %v585_v62, %v595_v0  ;;  %v568_v7 = vadd.f32 %v567_v1, %v470_v2 }
 0x1c6   : > { %v607_v4 = vpack.c.bf16 %v599_v3, %v599_v3 }
 0x1c8   : > { %v586_v8 = vpop.f32.mrf.mxu1  ;;  %617 = vrot.lane.b32.xlu1 %v607_v4, %s1435_s24 }
 0x1c9   : > { %v587_v9 = vadd.f32 %v586_v8, %v568_v7 }
 0x1cb   : > { %vm592_vm0 = vcmp.ge.f32.partialorder %v587_v9, 0.0  ;;  %v596_v10 = vmul.f32 0.1, %v587_v9 }
 0x1cd   : > { %v600_v12 = vsel %vm592_vm0, %v587_v9, %v596_v10 }
 0x1ce   : > { %v608_v14 = vpack.c.bf16 %v600_v12, %v600_v12  ;;  %v897_v12 = vld [vmem:[%s1843_s4] sm:$0xff] }
 0x1d0   : > { %615 = vrot.lane.b32.xlu1 %v606_v13, %s1435_s24  ;;  %619 = vrot.lane.b32.xlu2 %v608_v14, %s1435_s24 }
 0x22a   : > { %v620_v16 = vpop.permute.xlu2 %619  ;;  %v614_v17 = vpop.permute.xlu0 %613 }
 0x22b   : > { %628 = vst.msk [vmem:[#allocation2 + $0xc] sm:$0xf] %vm241_vm5, %v620_v16 }
 0x22c   : > { %625 = vst.msk [vmem:[#allocation2] sm:$0xf] %vm241_vm5, %v614_v17 }
 0x232   : > { %v632_v18 = vld [vmem:[#allocation2 + $0xc] sm:$0xf] }
 0x233   : > { %v636_v19 = vsel %vm1497_vm1, %v632_v18, 0  ;;  %v801_v20 = vld [vmem:[#allocation2] sm:$0xf]  ;;  %v804_v54 = vld [vmem:[#allocation2 + $0xc] sm:$0xf] }
 0x234   : > { %v641_v21 = vld [vmem:[#allocation2] sm:$0xf]  ;;  %640 = vst.msk [vmem:[#allocation3 + $0xc] sm:$0xf] %vm267_vm9, %v636_v19  ;;  %809 = vrot.lane.b32.xlu2 %v801_v20, %s1441_s30  ;;  %v644_v55 = vld [vmem:[#allocation2 + $0xc] sm:$0xf] }
 0x235   : > { %649 = vrot.lane.b32.xlu1 %v641_v21, %s1447_s11  ;;  %v693_v22 = vld [vmem:[#allocation2] sm:$0xf]  ;;  %v696_v57 = vld [vmem:[#allocation2 + $0xc] sm:$0xf]  ;;  %v900_v19 = vld [vmem:[%s1843_s4 + $0x18] sm:$0xff] }
 0x236   : > { %v697_v23 = vsel %vm1557_vm15, %v693_v22, 0  ;;  %v665_v24 = vld [vmem:[#allocation2] sm:$0xf]  ;;  %v668_v58 = vld [vmem:[#allocation2 + $0xc] sm:$0xf]  ;;  %v700_v61 = vsel %vm1557_vm15, %v696_v57, 0 }
 0x237   : > { %705 = vrot.lane.b32.xlu0 %v697_v23, %s1445_s9  ;;  %v773_v25 = vld [vmem:[#allocation2] sm:$0xf]  ;;  %v669_v29 = vsel %vm1570_vm3, %v665_v24, 0  ;;  %v776_v60 = vld [vmem:[#allocation2 + $0xc] sm:$0xf]  ;;  %v672_v62 = vsel %vm1570_vm3, %v668_v58, 0 }
 0x238   : > { %v629_v26 = vld [vmem:[#allocation2] sm:$0xf]  ;;  %v777_v30 = vsel %vm1523_vm8, %v773_v25, 0  ;;  %v780_v63 = vsel %vm1523_vm8, %v776_v60, 0  ;;  %v748_v15 = vld [vmem:[#allocation2 + $0xc] sm:$0xf] }
 0x239   : > { %v633_v28 = vsel %vm1497_vm1, %v629_v26, 0  ;;  %v745_v0 = vld [vmem:[#allocation2] sm:$0xf]  ;;  %v752_v56 = vsel %vm1539_vm12, %v748_v15, 0  ;;  %v828_v7 = vld [vmem:[#allocation2 + $0xc] sm:$0xf] }
 0x23a   : > { %v618_v27 = vpop.permute.xlu1 %617  ;;  %637 = vst.msk [vmem:[#allocation3] sm:$0xf] %vm267_vm9, %v633_v28  ;;  %v749_v2 = vsel %vm1539_vm12, %v745_v0, 0  ;;  %v721_v6 = vld [vmem:[#allocation2] sm:$0xf]  ;;  %v832_v10 = vsel %vm1583_vm7, %v828_v7, 0 }
 0x23b   : > { %627 = vst.msk [vmem:[#allocation2 + $0x8] sm:$0xf] %vm241_vm5, %v618_v27  ;;  %v724_v8 = vld [vmem:[#allocation2 + $0xc] sm:$0xf]  ;;  %v825_v11 = vld [vmem:[#allocation2] sm:$0xf] }
 0x23c   : > { %677 = vrot.lane.b32.xlu2 %v669_v29, %s1446_s10  ;;  %v829_v14 = vsel %vm1583_vm7, %v825_v11, 0  ;;  %v898_v18 = vld [vmem:[%s1843_s4 + $0x8] sm:$0xff]  ;;  %v899_v22 = vld [vmem:[%s1843_s4 + $0x10] sm:$0xff] }
 0x23d   : > { %785 = vrot.lane.b32.xlu1 %v777_v30, %s1442_s6  ;;  %v1377_v15 = vld [vmem:[%s1842_s3 + $0x8] sm:$0xf0]  ;;  %v1271_v11 = vld [vmem:[%s1842_s3 + $0x8] sm:$0xf] }
 0x242   : > { %v631_v31 = vld [vmem:[#allocation2 + $0x8] sm:$0xf]  ;;  %v616_v32 = vpop.permute.xlu1 %615 }
 0x243   : > { %v635_v33 = vsel %vm1497_vm1, %v631_v31, 0  ;;  %626 = vst.msk [vmem:[#allocation2 + $0x4] sm:$0xf] %vm241_vm5, %v616_v32  ;;  %v695_v43 = vld [vmem:[#allocation2 + $0x8] sm:$0xf] }
 0x244   : > { %639 = vst.msk [vmem:[#allocation3 + $0x8] sm:$0xf] %vm267_vm9, %v635_v33  ;;  %v699_v45 = vsel %vm1557_vm15, %v695_v43, 0  ;;  %v803_v46 = vld [vmem:[#allocation2 + $0x8] sm:$0xf] }
 0x245   : > { %v747_v48 = vld [vmem:[#allocation2 + $0x8] sm:$0xf] }
 0x246   : > { %v667_v5 = vld [vmem:[#allocation2 + $0x8] sm:$0xf]  ;;  %v751_v50 = vsel %vm1539_vm12, %v747_v48, 0 }
 0x247   : > { %v643_v49 = vld [vmem:[#allocation2 + $0x8] sm:$0xf]  ;;  %v671_v51 = vsel %vm1570_vm3, %v667_v5, 0 }
 0x248   : > { %v775_v52 = vld [vmem:[#allocation2 + $0x8] sm:$0xf] }
 0x249   : > { %v779_v53 = vsel %vm1523_vm8, %v775_v52, 0  ;;  %v723_v4 = vld [vmem:[#allocation2 + $0x8] sm:$0xf] }
 0x24a   : > { %v802_v34 = vld [vmem:[#allocation2 + $0x4] sm:$0xf]  ;;  %v827_v37 = vld [vmem:[#allocation2 + $0x8] sm:$0xf] }
 0x24b   : > { %v774_v35 = vld [vmem:[#allocation2 + $0x4] sm:$0xf]  ;;  %811 = vrot.lane.b32.xlu0 %v802_v34, %s1441_s30  ;;  %v831_v13 = vsel %vm1583_vm7, %v827_v37, 0 }
 0x24c   : > { %v694_v36 = vld [vmem:[#allocation2 + $0x4] sm:$0xf]  ;;  %v778_v38 = vsel %vm1523_vm8, %v774_v35, 0 }
 0x24d   : > { %v698_v39 = vsel %vm1557_vm15, %v694_v36, 0  ;;  %787 = vrot.lane.b32.xlu2 %v778_v38, %s1442_s6  ;;  %v630_v40 = vld [vmem:[#allocation2 + $0x4] sm:$0xf] }
 0x24e   : > { %707 = vrot.lane.b32.xlu1 %v698_v39, %s1445_s9  ;;  %v634_v41 = vsel %vm1497_vm1, %v630_v40, 0  ;;  %v666_v42 = vld [vmem:[#allocation2 + $0x4] sm:$0xf]  ;;  %vm1059_vm1 = vcmask 261120  }
 0x24f   : > { %638 = vst.msk [vmem:[#allocation3 + $0x4] sm:$0xf] %vm267_vm9, %v634_v41  ;;  %v670_v44 = vsel %vm1570_vm3, %v666_v42, 0  ;;  %v746_v1 = vld [vmem:[#allocation2 + $0x4] sm:$0xf] }
 0x250   : > { %v642_v47 = vld [vmem:[#allocation2 + $0x4] sm:$0xf]  ;;  %v750_v3 = vsel %vm1539_vm12, %v746_v1, 0 }
 0x251   : > { %v722_v9 = vld [vmem:[#allocation2 + $0x4] sm:$0xf] }
 0x252   : > { %v826_v17 = vld [vmem:[#allocation2 + $0x4] sm:$0xf] }
 0x253   : > { %679 = vrot.lane.b32.xlu0 %v670_v44, %s1446_s10  ;;  %v830_v20 = vsel %vm1583_vm7, %v826_v17, 0  ;;  %v1380_v17 = vld [vmem:[%s1842_s3 + $0x20] sm:$0xf0] }
 0x255   : > { %709 = vrot.lane.b32.xlu2 %v699_v45, %s1445_s9 }
 0x256   : > { %813 = vrot.lane.b32.xlu1 %v803_v46, %s1441_s30 }
 0x25b   : > { %653 = vrot.lane.b32.xlu0 %v643_v49, %s1447_s11 }
 0x25d   : > { %761 = vrot.lane.b32.xlu2 %v751_v50, %s1443_s7 }
 0x25e   : > { %681 = vrot.lane.b32.xlu1 %v671_v51, %s1446_s10 }
 0x263   : > { %789 = vrot.lane.b32.xlu0 %v779_v53, %s1442_s6 }
 0x265   : > { %815 = vrot.lane.b32.xlu2 %v804_v54, %s1441_s30 }
 0x266   : > { %655 = vrot.lane.b32.xlu1 %v644_v55, %s1447_s11 }
 0x26b   : > { %711 = vrot.lane.b32.xlu0 %v700_v61, %s1445_s9 }
 0x26d   : > { %683 = vrot.lane.b32.xlu2 %v672_v62, %s1446_s10 }
 0x26e   : > { %791 = vrot.lane.b32.xlu1 %v780_v63, %s1442_s6 }
 0x273   : > { %757 = vrot.lane.b32.xlu0 %v749_v2, %s1443_s7  ;;  %v1383_v2 = vld [vmem:[#allocation3 + $0x8] sm:$0xff] }
 0x275   : > { %651 = vrot.lane.b32.xlu2 %v642_v47, %s1447_s11 }
 0x276   : > { %759 = vrot.lane.b32.xlu1 %v750_v3, %s1443_s7  ;;  %v1263_v3 = vld [vmem:[%s1842_s3] sm:$0xf] }
 0x27b   : > { %763 = vrot.lane.b32.xlu0 %v752_v56, %s1443_s7  ;;  %v1376_v56 = vld [vmem:[%s1842_s3 + $0x4] sm:$0xf] }
 0x27d   : > { %733 = vrot.lane.b32.xlu2 %v723_v4, %s1444_s8  ;;  %v1265_v4 = vld [vmem:[%s1842_s3 + $0xc] sm:$0xf0] }
 0x27e   : > { %729 = vrot.lane.b32.xlu1 %v721_v6, %s1444_s8  ;;  %v1382_v6 = vld [vmem:[#allocation3] sm:$0xff] }
 0x283   : > { %735 = vrot.lane.b32.xlu0 %v724_v8, %s1444_s8  ;;  %v1264_v8 = vor.u32 %v1377_v15, %v1263_v3 }
 0x285   : > { %731 = vrot.lane.b32.xlu2 %v722_v9, %s1444_s8  ;;  %v1268_v9 = vor.u32 %v1376_v56, %v1265_v4 }
 0x286   : > { %843 = vrot.lane.b32.xlu1 %v832_v10, %s1448_s12 }
 0x28b   : > { %841 = vrot.lane.b32.xlu0 %v831_v13, %s1448_s12 }
 0x28d   : > { %837 = vrot.lane.b32.xlu2 %v829_v14, %s1448_s12 }
 0x28e   : > { %903 = vperm.xlu1 %1425, %v897_v12   ;;  %v810_v16 = vpop.permute.xlu2 %809  ;;  %v1378_v12 = vld [vmem:[%s1842_s3 + $0x10] sm:$0xf0] }
 0x28f   : > { %821 = vst.msk [vmem:[#allocation3 + $0x70] sm:$0xf] %vm267_vm9, %v810_v16  ;;  %v1272_v14 = vor.u32 %v1378_v12, %v1271_v11  ;;  %v1275_v16 = vld [vmem:[%s1842_s3 + $0x18] sm:$0xf] }
 0x293   : > { %839 = vrot.lane.b32.xlu0 %v830_v20, %s1448_s12  ;;  %v1276_v20 = vor.u32 %v1380_v17, %v1275_v16 }
 0x295   : > { %908 = vperm.xlu2 %1423, %v898_v18   ;;  %v1379_v18 = vld [vmem:[%s1842_s3 + $0x1c] sm:$0xf] }
 0x296   : > { %918 = vperm.xlu1 %1425, %v900_v19   ;;  %v678_v21 = vpop.permute.xlu2 %677  ;;  %v1277_v19 = vld [vmem:[%s1842_s3 + $0x24] sm:$0xf0] }
 0x297   : > { %689 = vst.msk [vmem:[#allocation3 + $0x20] sm:$0xf] %vm267_vm9, %v678_v21  ;;  %v1280_v21 = vor.u32 %v1379_v18, %v1277_v19 }
 0x29b   : > { %913 = vperm.xlu0 %1424, %v899_v22   ;;  %v1283_v22 = vld [vmem:[%s1842_s3 + $0x20] sm:$0xf] }
 0x2a7   : > { %v650_v23 = vpop.permute.xlu1 %649  ;;  %v788_v24 = vpop.permute.xlu2 %787 }
 0x2a8   : > { %661 = vst.msk [vmem:[#allocation3 + $0x10] sm:$0xf] %vm267_vm9, %v650_v23  ;;  %v1381_v23 = vld [vmem:[%s1842_s3 + $0x28] sm:$0xf0] }
 0x2a9   : > { %v706_v25 = vpop.permute.xlu0 %705  ;;  %798 = vst.msk [vmem:[#allocation3 + $0x64] sm:$0xf] %vm267_vm9, %v788_v24  ;;  %v1284_v24 = vor.u32 %v1381_v23, %v1283_v22 }
 0x2aa   : > { %717 = vst.msk [vmem:[#allocation3 + $0x30] sm:$0xf] %vm267_vm9, %v706_v25 }
 0x2af   : > { %v786_v59 = vpop.permute.xlu1 %785  ;;  %v710_v26 = vpop.permute.xlu2 %709 }
 0x2b0   : > { %797 = vst.msk [vmem:[#allocation3 + $0x60] sm:$0xf] %vm267_vm9, %v786_v59 }
 0x2b1   : > { %719 = vst.msk [vmem:[#allocation3 + $0x38] sm:$0xf] %vm267_vm9, %v710_v26 }
 0x2b7   : > { %v762_v27 = vpop.permute.xlu2 %761  ;;  %v1394_v52 = vld [vmem:[#allocation3 + $0x60] sm:$0xff] }
 0x2b8   : > { %771 = vst.msk [vmem:[#allocation3 + $0x58] sm:$0xf] %vm267_vm9, %v762_v27 }
 0x2bd   : > { %v812_v28 = vpop.permute.xlu0 %811 }
 0x2be   : > { %822 = vst.msk [vmem:[#allocation3 + $0x74] sm:$0xf] %vm267_vm9, %v812_v28 }
 0x2bf   : > { %v816_v29 = vpop.permute.xlu2 %815 }
 0x2c0   : > { %v708_v30 = vpop.permute.xlu1 %707  ;;  %824 = vst.msk [vmem:[#allocation3 + $0x7c] sm:$0xf] %vm267_vm9, %v816_v29 }
 0x2c1   : > { %718 = vst.msk [vmem:[#allocation3 + $0x34] sm:$0xf] %vm267_vm9, %v708_v30 }
 0x2c5   : > { %v680_v31 = vpop.permute.xlu0 %679  ;;  %v1396_v39 = vld [vmem:[#allocation3 + $0x70] sm:$0xff] }
 0x2c6   : > { %690 = vst.msk [vmem:[#allocation3 + $0x24] sm:$0xf] %vm267_vm9, %v680_v31 }
 0x2c7   : > { %v684_v32 = vpop.permute.xlu2 %683 }
 0x2c8   : > { %v814_v33 = vpop.permute.xlu1 %813  ;;  %692 = vst.msk [vmem:[#allocation3 + $0x2c] sm:$0xf] %vm267_vm9, %v684_v32  ;;  %v1388_v51 = vld [vmem:[#allocation3 + $0x30] sm:$0xff] }
 0x2c9   : > { %823 = vst.msk [vmem:[#allocation3 + $0x78] sm:$0xf] %vm267_vm9, %v814_v33 }
 0x2cd   : > { %v654_v34 = vpop.permute.xlu0 %653  ;;  %v1386_v57 = vld [vmem:[#allocation3 + $0x20] sm:$0xff] }
 0x2ce   : > { %663 = vst.msk [vmem:[#allocation3 + $0x18] sm:$0xf] %vm267_vm9, %v654_v34 }
 0x2cf   : > { %v652_v35 = vpop.permute.xlu2 %651 }
 0x2d0   : > { %v682_v36 = vpop.permute.xlu1 %681  ;;  %662 = vst.msk [vmem:[#allocation3 + $0x14] sm:$0xf] %vm267_vm9, %v652_v35  ;;  %v1397_v38 = vld [vmem:[#allocation3 + $0x78] sm:$0xff] }
 0x2d1   : > { %691 = vst.msk [vmem:[#allocation3 + $0x28] sm:$0xf] %vm267_vm9, %v682_v36  ;;  %1085 = vmatpush.bf16.msra.mxu3 %v1397_v38 }
 0x2d5   : > { %v790_v40 = vpop.permute.xlu0 %789  ;;  %1086 = vmatpush.bf16.msra.mxu3 %v1396_v39 }
 0x2d6   : > { %799 = vst.msk [vmem:[#allocation3 + $0x68] sm:$0xf] %vm267_vm9, %v790_v40 }
 0x2d7   : > { %v734_v41 = vpop.permute.xlu2 %733  ;;  %v1384_v63 = vld [vmem:[#allocation3 + $0x10] sm:$0xff] }
 0x2d8   : > { %v656_v42 = vpop.permute.xlu1 %655  ;;  %743 = vst.msk [vmem:[#allocation3 + $0x48] sm:$0xf] %vm267_vm9, %v734_v41  ;;  %v1387_v54 = vld [vmem:[#allocation3 + $0x28] sm:$0xff] }
 0x2d9   : > { %664 = vst.msk [vmem:[#allocation3 + $0x1c] sm:$0xf] %vm267_vm9, %v656_v42 }
 0x2dd   : > { %v712_v43 = vpop.permute.xlu0 %711 }
 0x2de   : > { %720 = vst.msk [vmem:[#allocation3 + $0x3c] sm:$0xf] %vm267_vm9, %v712_v43 }
 0x2df   : > { %v732_v44 = vpop.permute.xlu2 %731 }
 0x2e0   : > { %v792_v45 = vpop.permute.xlu1 %791  ;;  %742 = vst.msk [vmem:[#allocation3 + $0x44] sm:$0xf] %vm267_vm9, %v732_v44  ;;  %v1385_v60 = vld [vmem:[#allocation3 + $0x18] sm:$0xff] }
 0x2e1   : > { %800 = vst.msk [vmem:[#allocation3 + $0x6c] sm:$0xf] %vm267_vm9, %v792_v45 }
 0x2e5   : > { %v758_v46 = vpop.permute.xlu0 %757  ;;  %v1389_v48 = vld [vmem:[#allocation3 + $0x38] sm:$0xff] }
 0x2e6   : > { %769 = vst.msk [vmem:[#allocation3 + $0x50] sm:$0xf] %vm267_vm9, %v758_v46  ;;  %1066 = vmatpush.bf16.msra.mxu2 %v1389_v48 }
 0x2e7   : > { %v838_v5 = vpop.permute.xlu2 %837 }
 0x2e8   : > { %v760_v49 = vpop.permute.xlu1 %759  ;;  %849 = vst.msk [vmem:[#allocation3 + $0x80] sm:$0xf] %vm267_vm9, %v838_v5  ;;  %v1395_v50 = vld [vmem:[#allocation3 + $0x68] sm:$0xff] }
 0x2e9   : > { %770 = vst.msk [vmem:[#allocation3 + $0x54] sm:$0xf] %vm267_vm9, %v760_v49  ;;  %1087 = vmatpush.bf16.msra.mxu3 %v1395_v50 }
 0x2ea   : > { %1067 = vmatpush.bf16.msra.mxu2 %v1388_v51 }
 0x2ed   : > { %v764_v53 = vpop.permute.xlu0 %763  ;;  %1088 = vmatpush.bf16.msra.mxu3 %v1394_v52 }
 0x2ee   : > { %772 = vst.msk [vmem:[#allocation3 + $0x5c] sm:$0xf] %vm267_vm9, %v764_v53  ;;  %1068 = vmatpush.bf16.msra.mxu2 %v1387_v54 }
 0x2ef   : > { %v909_v30 = vpop.permute.xlu2 %908 }
 0x2f0   : > { %v730_v55 = vpop.permute.xlu1 %729  ;;  %v1392_v0 = vld [vmem:[#allocation3 + $0x50] sm:$0xff] }
 0x2f1   : > { %741 = vst.msk [vmem:[#allocation3 + $0x40] sm:$0xf] %vm267_vm9, %v730_v55 }
 0x2f2   : > { %1069 = vmatpush.bf16.msra.mxu2 %v1386_v57 }
 0x2f5   : > { %v736_v58 = vpop.permute.xlu0 %735  ;;  %v1393_v61 = vld [vmem:[#allocation3 + $0x58] sm:$0xff] }
 0x2f6   : > { %744 = vst.msk [vmem:[#allocation3 + $0x4c] sm:$0xf] %vm267_vm9, %v736_v58  ;;  %1070 = vmatpush.bf16.msra.mxu2 %v1385_v60  ;;  %1089 = vmatpush.bf16.msra.mxu3 %v1393_v61 }
 0x2f8   : > { %v844_v62 = vpop.permute.xlu1 %843  ;;  %v1390_v7 = vld [vmem:[#allocation3 + $0x40] sm:$0xff] }
 0x2f9   : > { %852 = vst.msk [vmem:[#allocation3 + $0x8c] sm:$0xf] %vm267_vm9, %v844_v62 }
 0x2fa   : > { %1071 = vmatpush.bf16.msra.mxu2 %v1384_v63  ;;  %1090 = vmatpush.bf16.msra.mxu3 %v1392_v0 }
 0x2fd   : > { %v842_v1 = vpop.permute.xlu0 %841  ;;  %v1391_v47 = vld [vmem:[#allocation3 + $0x48] sm:$0xff] }
 0x2fe   : > { %851 = vst.msk [vmem:[#allocation3 + $0x88] sm:$0xf] %vm267_vm9, %v842_v1  ;;  %1072 = vmatpush.bf16.msra.mxu2 %v1383_v2  ;;  %1091 = vmatpush.bf16.msra.mxu3 %v1391_v47 }
 0x300   : > { %v904_v25 = vpop.permute.xlu1 %903 }
 0x302   : > { %1073 = vmatpush.bf16.msra.mxu2 %v1382_v6  ;;  %1092 = vmatpush.bf16.msra.mxu3 %v1390_v7 }
 0x305   : > { %v840_v10 = vpop.permute.xlu0 %839  ;;  %v1399_v37 = vld [vmem:[#allocation3 + $0x88] sm:$0xff]  ;;  %1074 = vmatmul.bf16.vlgmr.msra.gmra.mxu2 %v1264_v8  ;;  %1093 = vmatmul.bf16.vlgmr.msra.gmra.mxu3 %v1268_v9 }
 0x306   : > { %850 = vst.msk [vmem:[#allocation3 + $0x84] sm:$0xf] %vm267_vm9, %v840_v10  ;;  %1110 = vmatpush.bf16.msrb.mxu1 %v1399_v37 }
 0x308   : > { %v919_v52 = vpop.permute.xlu1 %918 }
 0x30d   : > { %v1398_v13 = vld [vmem:[#allocation3 + $0x80] sm:$0xff]  ;;  %v914_v42 = vpop.permute.xlu0 %913 }
 0x30e   : > { %1111 = vmatpush.bf16.msrb.mxu1 %v1398_v13 }
 0x311   : > { %1357 = vmatmul.msk.bf16.vlgmr.msrb.gmra.mxu1 %vm1059_vm1, %v1272_v14 }
 0x315   : > { %1079 = vmatmul.bf16.gmra.mxu2 %v1276_v20  ;;  %1098 = vmatmul.bf16.gmra.mxu3 %v1280_v21 }
 0x321   : > { %1358 = vmatmul.msk.bf16.gmra.mxu1 %vm1059_vm1, %v1284_v24 }
 0x388   : > { %v1075_v59 = vpop.f32.mrf.mxu2  ;;  %v1094_v26 = vpop.f32.mrf.mxu3 }
 0x389   : > { %v1076_v27 = vadd.f32 %v1075_v59, %v904_v25 }
 0x38b   : > { %v1095_v28 = vadd.f32 %v1094_v26, %v1076_v27 }
 0x38e   : > { %v1113_v29 = vpop.f32.mrf.mxu1 }
 0x38f   : > { %v1114_v31 = vadd.f32 %v1113_v29, %v1095_v28 }
 0x390   : > { %v1077_v32 = vpop.f32.mrf.mxu2  ;;  %v1096_v33 = vpop.f32.mrf.mxu3 }
 0x391   : > { %vm1123_vm5 = vcmp.ge.f32.partialorder %v1114_v31, 0.0  ;;  %v1127_v34 = vmul.f32 0.1, %v1114_v31  ;;  %v1078_v35 = vadd.f32 %v1077_v32, %v909_v30 }
 0x393   : > { %v1131_v36 = vsel %vm1123_vm5, %v1114_v31, %v1127_v34  ;;  %v1097_v39 = vadd.f32 %v1096_v33, %v1078_v35 }
 0x394   : > { %v1135_v38 = vpack.c.bf16 %v1131_v36, %v1131_v36 }
 0x396   : > { %1139 = vst.msk [vmem:[%s1826_s29] sm:$0xf] %vm267_vm9, %v1135_v38  ;;  %v1115_v40 = vpop.f32.mrf.mxu1 }
 0x397   : > { %v1116_v41 = vadd.f32 %v1115_v40, %v1097_v39 }
 0x398   : > { %v1080_v43 = vpop.f32.mrf.mxu2  ;;  %v1099_v46 = vpop.f32.mrf.mxu3 }
 0x399   : > { %vm1124_vm8 = vcmp.ge.f32.partialorder %v1116_v41, 0.0  ;;  %v1128_v44 = vmul.f32 0.1, %v1116_v41  ;;  %v1081_v45 = vadd.f32 %v1080_v43, %v914_v42 }
 0x39b   : > { %v1132_v48 = vsel %vm1124_vm8, %v1116_v41, %v1128_v44  ;;  %v1100_v49 = vadd.f32 %v1099_v46, %v1081_v45 }
 0x39c   : > { %v1136_v5 = vpack.c.bf16 %v1132_v48, %v1132_v48 }
 0x39e   : > { %1140 = vst.msk [vmem:[%s1826_s29 + $0x4] sm:$0xf] %vm267_vm9, %v1136_v5  ;;  %v1118_v50 = vpop.f32.mrf.mxu1 }
 0x39f   : > { %v1119_v51 = vadd.f32 %v1118_v50, %v1100_v49 }
 0x3a0   : > { %v1082_v53 = vpop.f32.mrf.mxu2  ;;  %v1101_v60 = vpop.f32.mrf.mxu3 }
 0x3a1   : > { %vm1125_vm12 = vcmp.ge.f32.partialorder %v1119_v51, 0.0  ;;  %v1129_v54 = vmul.f32 0.1, %v1119_v51  ;;  %v1083_v55 = vadd.f32 %v1082_v53, %v919_v52 }
 0x3a3   : > { %v1133_v57 = vsel %vm1125_vm12, %v1119_v51, %v1129_v54  ;;  %v1102_v61 = vadd.f32 %v1101_v60, %v1083_v55 }
 0x3a4   : > { %v1137_v58 = vpack.c.bf16 %v1133_v57, %v1133_v57 }
 0x3a6   : > { %1141 = vst.msk [vmem:[%s1826_s29 + $0x8] sm:$0xf] %vm267_vm9, %v1137_v58  ;;  %v1120_v62 = vpop.f32.mrf.mxu1 }
 0x3a7   : > { %v1121_v63 = vadd.f32 %v1120_v62, %v1102_v61 }
 0x3a9   : > { %vm1126_vm15 = vcmp.ge.f32.partialorder %v1121_v63, 0.0  ;;  %v1130_v0 = vmul.f32 0.1, %v1121_v63 }
 0x3ab   : > { %v1134_v1 = vsel %vm1126_vm15, %v1121_v63, %v1130_v0 }
 0x3ac   : > { %v1138_v2 = vpack.c.bf16 %v1134_v1, %v1134_v1 }
 0x3ae   : > { %1142 = vst.msk [vmem:[%s1826_s29 + $0xc] sm:$0xf] %vm267_vm9, %v1138_v2 }
 0x3af PF: > { %s15_s18 = sadd.s32 1, %s1432_s18  }
 0x3b0   : > { %p12_p4 = scmp.ge.s32.totalorder %s15_s18, 4  }
 0x3b2   :  { %14 = sbr.rel (!%p12_p4) target bundleno = 1 (0x1), region = 70 }

// kernel: unet_forward.11
= control target key start
LH: loop header
LB: loop body
LE: loop exit
PB: predicated region body
PF: predicated region fallthrough
CT: control target
= control target key end

     0   :  { %s2060_s27 = smov 0   ;;  %s2586_s0 = inlined_call_operand.vmem [shape: bf16[2,32,64], index: 0, kind: input, shape index: {}]   ;;  %s2587_s1 = inlined_call_operand.vmem [shape: bf16[2,16,64], index: 1, kind: input, shape index: {}]   ;;  %s2588_s2 = inlined_call_operand.vmem [shape: bf16[16,288], index: 2, kind: input, shape index: {}]   ;;  %s2589_s3 = inlined_call_operand.vmem [shape: f32[16,1], index: 3, kind: input, shape index: {}]   ;;  %s2590_s4 = inlined_call_operand.vmem [shape: bf16[16,288], index: 4, kind: input, shape index: {}]   ;;  %s2591_s5 = inlined_call_operand.vmem [shape: f32[16,1], index: 5, kind: input, shape index: {}]   ;;  %s2592_s6 = inlined_call_operand.vmem [shape: bf16[16,144], index: 6, kind: input, shape index: {}]   ;;  %s2593_s7 = inlined_call_operand.vmem [shape: f32[16,1], index: 7, kind: input, shape index: {}]   ;;  %s2594_s8 = inlined_call_operand.vmem [shape: bf16[2,16,64], index: 8, kind: output, shape index: {}]  }
   0x1 LB: > { %s1682_s28 = sadd.s32 4294967295, %s1998_s27   ;;  %p1686_p0 = scmp.ge.s32.totalorder %s1998_s27, 1  ;;  %s1998_s27 = sphi %s2060_s27, %s18_s27  }
   0x2   : > { %p272_p1 = scmp.lt.s32.totalorder %s1998_s27, 3 }
   0x4   : > { %p273_p2 = pnand %p1686_p0, %p272_p1 }
   0x5   : > { %p311_p3 = scmp.lt.s32.totalorder (!%p273_p2), %s1682_s28, 1  ;;  %s2001_s11 = smov (!%p273_p2), 9  }
   0x6   : > { %276 = sbr.rel (%p273_p2) target bundleno = 1391 (0x56f), region = 52  ;;  %s2002_s12 = smov (!%p273_p2), 8  }
   0x7   : > { %s2003_s13 = smov (!%p273_p2), 2   ;;  %s2004_s14 = smov (!%p273_p2), 16  }
   0x8   : > { %s2005_s15 = smov (!%p273_p2), 10   ;;  %s2006_s16 = smov (!%p273_p2), 18  }
   0x9   : > { %s2007_s17 = smov (!%p273_p2), 111   ;;  %s2008_s18 = smov (!%p273_p2), 127  }
   0xa   : > { %s2009_s19 = smov (!%p273_p2), 119   ;;  %s2010_s20 = smov (!%p273_p2), 120  }
   0xb   : > { %v359_v0 = vlaneseq  ;;  %v2000_v1 = vmov 0   ;;  %s2608_s28 = smov (!%p311_p3, %s1682_s28), 1  ;;  %vm333_vm4 = vcmask 666624   ;;  %vm354_vm5 = vcmask 592968   ;;  %s2011_s21 = smov 126  }
   0xc   : > { %1990 = vset.pattern.permute.xlu0 %v2000_v1  ;;  %1989 = vset.pattern.permute.xlu2 %v2000_v1  ;;  %s1910_s29 = sshll.u32 %s2608_s28, 4  ;;  %336 = vst.msk [vmem:[#allocation2 + $0x8] sm:$0xf] %vm333_vm4, %v2000_v1  ;;  %vm386_vm6 = vcmask 519168   ;;  %v2130_v41 = vunpack.c.l.b16 %v2000_v1  ;;  %v2133_v42 = vunpack.c.h.b16 %v2000_v1  ;;  %s2012_s22 = smov 112  }
   0xd   : > { %v360_v2 = vand.u32 127, %v359_v0  ;;  %1991 = vset.pattern.permute.xlu1 %v2000_v1  ;;  %s315_s10 = scalar_lea.vmem %s2586_s0, %s1910_s29  ;;  %334 = vst.msk [vmem:[#allocation2] sm:$0xf] %vm333_vm4, %v2000_v1  ;;  %s2013_s23 = smov 118  }
   0xe   : > { %v331_v4 = vld [vmem:[%s315_s10 + $0x8] sm:$0xf]  ;;  %v329_v5 = vld [vmem:[%s315_s10] sm:$0xf]  ;;  %v332_v8 = vld [vmem:[%s315_s10 + $0xc] sm:$0xf] }
   0xf   : > { %v365_v3 = vand.u32 7, %v360_v2  ;;  %346 = vrot.lane.b32.xlu0 %v331_v4, %s2001_s11  ;;  %342 = vrot.lane.b32.xlu1 %v329_v5, %s2001_s11  ;;  %v330_v9 = vld [vmem:[%s315_s10 + $0x4] sm:$0xf]  ;;  %335 = vst.msk [vmem:[#allocation2 + $0x4] sm:$0xf] %vm333_vm4, %v2000_v1  ;;  %s2014_s24 = smov 110  }
  0x10   : > { %337 = vst.msk [vmem:[#allocation2 + $0xc] sm:$0xf] %vm333_vm4, %v2000_v1  ;;  %s1911_s10 = sshll.u32 %s2608_s28, 3 }
  0x11   : > { %vm373_vm0 = vcmp.ge.s32.totalorder %v365_v3, 1  ;;  %vm374_vm2 = vcmp.lt.s32.totalorder %v365_v3, 7 }
  0x12   : > { %vm2079_vm1 = vmpackc.low %vm373_vm0, %vm373_vm0 }
  0x13   : > { %v460_v7 = vsel %vm2079_vm1, 65537, %v2000_v1  ;;  %vm421_vm3 = vmpackc.low %vm374_vm2, %vm374_vm2 }
  0x14   : > { %461 = vrot.lane.b32.xlu2 %v460_v7, %s2002_s12  ;;  %v422_v10 = vsel %vm421_vm3, 65537, %v2000_v1 }
  0x17   : > { %348 = vrot.lane.b32.xlu0 %v332_v8, %s2001_s11  ;;  %344 = vrot.lane.b32.xlu1 %v330_v9, %s2001_s11 }
  0x1c   : > { %423 = vrot.lane.b32.xlu2 %v422_v10, %s2003_s13 }
  0x1f   : > { %559 = vrot.lane.b32.xlu0 %v460_v7, %s2004_s14  ;;  %522 = vrot.lane.b32.xlu1 %v422_v10, %s2005_s15  ;;  %s320_s14 = scalar_lea.vmem %s2587_s1, %s1911_s10 }
  0x24   : > { %620 = vrot.lane.b32.xlu2 %v422_v10, %s2006_s16  ;;  %s325_s16 = scalar_lea.vmem %s2594_s8, %s1911_s10 }
  0x6e   : > { %v462_v38 = vpop.permute.xlu2 %461 }
  0x6f   : > { %v463_v43 = vunpack.c.l.b16 %v462_v38  ;;  %v464_v44 = vunpack.c.h.b16 %v462_v38 }
  0x71   : > { %vm467_vm7 = vcmp.ne.s32.totalorder %v463_v43, %v2130_v41  ;;  %vm468_vm8 = vcmp.ne.s32.totalorder %v464_v44, %v2133_v42 }
  0x72   : > { %vm2152_vm9 = vmpackc.low %vm468_vm8, %vm467_vm7 }
  0x76   : > { %v424_v53 = vpop.permute.xlu2 %423 }
  0x77   : > { %v425_v54 = vunpack.c.l.b16 %v424_v53  ;;  %v426_v55 = vunpack.c.h.b16 %v424_v53 }
  0x79   : > { %vm429_vm10 = vcmp.ne.s32.totalorder %v425_v54, %v2130_v41  ;;  %vm430_vm11 = vcmp.ne.s32.totalorder %v426_v55, %v2133_v42 }
  0x7a   : > { %vm2172_vm14 = vmpackc.low %vm430_vm11, %vm429_vm10  ;;  %vm828_vm11 = vcmask 261120  }
  0x81   : > { %v347_v11 = vpop.permute.xlu0 %346  ;;  %v343_v12 = vpop.permute.xlu1 %342 }
  0x82   : > { %357 = vst.msk [vmem:[#allocation2 + $0x8] sm:$0xf] %vm354_vm5, %v347_v11 }
  0x83   : > { %355 = vst.msk [vmem:[#allocation2] sm:$0xf] %vm354_vm5, %v343_v12 }
  0x89   : > { %v349_v13 = vpop.permute.xlu0 %348  ;;  %v345_v14 = vpop.permute.xlu1 %344  ;;  %v594_v15 = vld [vmem:[#allocation2 + $0x8] sm:$0xf] }
  0x8a   : > { %358 = vst.msk [vmem:[#allocation2 + $0xc] sm:$0xf] %vm354_vm5, %v349_v13  ;;  %604 = vrot.lane.b32.xlu2 %v594_v15, %s2007_s17  ;;  %v377_v18 = vld [vmem:[#allocation2 + $0x8] sm:$0xf]  ;;  %v375_v20 = vld [vmem:[#allocation2] sm:$0xf] }
  0x8b   : > { %356 = vst.msk [vmem:[#allocation2 + $0x4] sm:$0xf] %vm354_vm5, %v345_v14  ;;  %v384_v22 = vsel %vm2079_vm1, %v377_v18, 0  ;;  %v592_v23 = vld [vmem:[#allocation2] sm:$0xf]  ;;  %v382_v33 = vsel %vm2079_vm1, %v375_v20, 0  ;;  %v621_v20 = vpop.permute.xlu2 %620 }
  0x8c   : > { %v391_v24 = vld [vmem:[#allocation2] sm:$0xf]  ;;  %v393_v34 = vld [vmem:[#allocation2 + $0x8] sm:$0xf]  ;;  %389 = vst.msk [vmem:[#allocation3 + $0x8] sm:$0xf] %vm386_vm6, %v384_v22  ;;  %v623_v22 = vunpack.c.h.b16 %v621_v20 }
  0x8d   : > { %v456_v25 = vld [vmem:[#allocation2] sm:$0xf]  ;;  %387 = vst.msk [vmem:[#allocation3] sm:$0xf] %vm386_vm6, %v382_v33  ;;  %v496_v50 = vld [vmem:[#allocation2 + $0x8] sm:$0xf] }
  0x8e   : > { %v2107_v26 = vld [vmem:[#allocation2] sm:$0xf]  ;;  %v470_v60 = vsel %vm2152_vm9, %v456_v25, 0  ;;  %v417_v62 = vld [vmem:[#allocation2 + $0x8] sm:$0xf]  ;;  %vm627_vm8 = vcmp.ne.s32.totalorder %v623_v22, %v2133_v42 }
  0x8f   : > { %v2109_v27 = vld [vmem:[#allocation2] sm:$0xf]  ;;  %v458_v63 = vld [vmem:[#allocation2 + $0x8] sm:$0xf]  ;;  %v434_v3 = vsel %vm2172_vm14, %v417_v62, 0 }
  0x90   : > { %v2111_v28 = vld [vmem:[#allocation2] sm:$0xf]  ;;  %v557_v2 = vld [vmem:[#allocation2 + $0x8] sm:$0xf]  ;;  %v472_v4 = vsel %vm2152_vm9, %v458_v63, 0 }
  0x91   : > { %v595_v16 = vld [vmem:[#allocation2 + $0xc] sm:$0xf]  ;;  %v2113_v29 = vld [vmem:[#allocation2] sm:$0xf]  ;;  %v560_v52 = vpop.permute.xlu0 %559  ;;  %v523_v7 = vpop.permute.xlu1 %522 }
  0x92   : > { %v394_v17 = vld [vmem:[#allocation2 + $0xc] sm:$0xf]  ;;  %606 = vrot.lane.b32.xlu0 %v595_v16, %s2007_s17  ;;  %v593_v19 = vld [vmem:[#allocation2 + $0x4] sm:$0xf]  ;;  %v2117_v32 = vld [vmem:[#allocation2] sm:$0xf]  ;;  %v561_v56 = vunpack.c.l.b16 %v560_v52  ;;  %v562_v57 = vunpack.c.h.b16 %v560_v52  ;;  %v524_v9 = vunpack.c.l.b16 %v523_v7  ;;  %v525_v10 = vunpack.c.h.b16 %v523_v7 }
  0x93   : > { %405 = vrot.lane.b32.xlu2 %v394_v17, %s2008_s18  ;;  %602 = vrot.lane.b32.xlu1 %v593_v19, %s2007_s17  ;;  %v378_v21 = vld [vmem:[#allocation2 + $0xc] sm:$0xf]  ;;  %v376_v31 = vld [vmem:[#allocation2 + $0x4] sm:$0xf]  ;;  %874 = vst.msk [vmem:[#allocation2] sm:$0xf] %vm333_vm4, %v2000_v1 }
  0x94   : > { %v385_v30 = vsel %vm2079_vm1, %v378_v21, 0  ;;  %v392_v35 = vld [vmem:[#allocation2 + $0x4] sm:$0xf]  ;;  %v383_v47 = vsel %vm2079_vm1, %v376_v31, 0  ;;  %v459_v48 = vld [vmem:[#allocation2 + $0xc] sm:$0xf]  ;;  %vm565_vm12 = vcmp.ne.s32.totalorder %v561_v56, %v2130_v41  ;;  %vm566_vm13 = vcmp.ne.s32.totalorder %v562_v57, %v2133_v42 }
  0x95   : > { %v457_v36 = vld [vmem:[#allocation2 + $0x4] sm:$0xf]  ;;  %390 = vst.msk [vmem:[#allocation3 + $0xc] sm:$0xf] %vm386_vm6, %v385_v30  ;;  %v473_v51 = vsel %vm2152_vm9, %v459_v48, 0  ;;  %vm2176_vm15 = vmpackc.low %vm566_vm13, %vm565_vm12  ;;  %vm528_vm0 = vcmp.ne.s32.totalorder %v524_v9, %v2130_v41  ;;  %vm529_vm2 = vcmp.ne.s32.totalorder %v525_v10, %v2133_v42  ;;  %v432_v17 = vsel %vm2172_vm14, %v2109_v27, 0 }
  0x96   : > { %v2121_v37 = vld [vmem:[#allocation2 + $0x4] sm:$0xf]  ;;  %388 = vst.msk [vmem:[#allocation3 + $0x4] sm:$0xf] %vm386_vm6, %v383_v47  ;;  %v471_v58 = vsel %vm2152_vm9, %v457_v36, 0  ;;  %v570_v5 = vsel %vm2176_vm15, %v557_v2, 0  ;;  %vm2201_vm3 = vmpackc.low %vm529_vm2, %vm528_vm0  ;;  %v622_v21 = vunpack.c.l.b16 %v621_v20 }
  0x97   : > { %v2123_v39 = vld [vmem:[#allocation2 + $0x4] sm:$0xf]  ;;  %v497_v59 = vld [vmem:[#allocation2 + $0xc] sm:$0xf]  ;;  %v433_v14 = vsel %vm2172_vm14, %v2121_v37, 0  ;;  %v568_v16 = vsel %vm2176_vm15, %v2107_v26, 0 }
  0x98   : > { %v2125_v40 = vld [vmem:[#allocation2 + $0x4] sm:$0xf]  ;;  %v418_v8 = vld [vmem:[#allocation2 + $0xc] sm:$0xf]  ;;  %v531_v25 = vsel %vm2201_vm3, %v2111_v28, 0  ;;  %vm626_vm7 = vcmp.ne.s32.totalorder %v622_v21, %v2130_v41 }
  0x99   : > { %v2137_v45 = vld [vmem:[#allocation2 + $0x4] sm:$0xf]  ;;  %v558_v11 = vld [vmem:[#allocation2 + $0xc] sm:$0xf]  ;;  %v435_v13 = vsel %vm2172_vm14, %v418_v8, 0  ;;  %vm2230_vm10 = vmpackc.low %vm627_vm8, %vm626_vm7 }
  0x9a   : > { %600 = vrot.lane.b32.xlu0 %v592_v23, %s2007_s17  ;;  %v2139_v46 = vld [vmem:[#allocation2 + $0x4] sm:$0xf]  ;;  %v571_v12 = vsel %vm2176_vm15, %v558_v11, 0  ;;  %v521_v18 = vld [vmem:[#allocation2 + $0xc] sm:$0xf]  ;;  %v569_v23 = vsel %vm2176_vm15, %v2123_v39, 0 }
  0x9b   : > { %399 = vrot.lane.b32.xlu2 %v391_v24, %s2008_s18  ;;  %403 = vrot.lane.b32.xlu1 %v393_v34, %s2008_s18  ;;  %875 = vst.msk [vmem:[#allocation2 + $0x4] sm:$0xf] %vm333_vm4, %v2000_v1  ;;  %v534_v19 = vsel %vm2201_vm3, %v521_v18, 0  ;;  %v532_v24 = vsel %vm2201_vm3, %v2125_v40, 0  ;;  %v619_v26 = vld [vmem:[#allocation2 + $0xc] sm:$0xf] }
  0x9c   : > { %v520_v30 = vld [vmem:[#allocation2 + $0x8] sm:$0xf]  ;;  %v630_v33 = vsel %vm2230_vm10, %v2137_v45, 0  ;;  %v632_v28 = vsel %vm2230_vm10, %v619_v26, 0  ;;  %v629_v36 = vsel %vm2230_vm10, %v2113_v29, 0  ;;  %v693_v11 = vld [vmem:[%s2589_s3] sm:$0xff] }
  0x9d   : > { %v533_v31 = vsel %vm2201_vm3, %v520_v30, 0  ;;  %v618_v34 = vld [vmem:[#allocation2 + $0x8] sm:$0xf]  ;;  %v1695_v18 = vld [vmem:[%s2588_s2] sm:$0xf]  ;;  %v1916_v21 = vld [vmem:[#allocation3] sm:$0xff] }
  0x9e   : > { %v694_v10 = vld [vmem:[%s2589_s3 + $0x8] sm:$0xff] }
  0xa2   : > { %401 = vrot.lane.b32.xlu0 %v392_v35, %s2008_s18  ;;  %v631_v35 = vsel %vm2230_vm10, %v618_v34, 0  ;;  %v1915_v34 = vld [vmem:[%s2588_s2 + $0x10] sm:$0xf0] }
  0xa3   : > { %506 = vrot.lane.b32.xlu2 %v496_v50, %s2009_s19  ;;  %484 = vrot.lane.b32.xlu1 %v473_v51, %s2010_s20 }
  0xaa   : > { %508 = vrot.lane.b32.xlu0 %v497_v59, %s2009_s19 }
  0xab   : > { %480 = vrot.lane.b32.xlu2 %v471_v58, %s2010_s20  ;;  %478 = vrot.lane.b32.xlu1 %v470_v60, %s2010_s20 }
  0xb2   : > { %482 = vrot.lane.b32.xlu0 %v472_v4, %s2010_s20 }
  0xb3   : > { %444 = vrot.lane.b32.xlu2 %v434_v3, %s2011_s21  ;;  %580 = vrot.lane.b32.xlu1 %v570_v5, %s2012_s22 }
  0xba   : > { %446 = vrot.lane.b32.xlu0 %v435_v13, %s2011_s21 }
  0xbb   : > { %582 = vrot.lane.b32.xlu2 %v571_v12, %s2012_s22  ;;  %442 = vrot.lane.b32.xlu1 %v433_v14, %s2011_s21 }
  0xc2   : > { %440 = vrot.lane.b32.xlu0 %v432_v17, %s2011_s21  ;;  %v1917_v17 = vld [vmem:[#allocation3 + $0x8] sm:$0xff] }
  0xc3   : > { %576 = vrot.lane.b32.xlu2 %v568_v16, %s2012_s22  ;;  %545 = vrot.lane.b32.xlu1 %v534_v19, %s2013_s23  ;;  %v1914_v19 = vld [vmem:[%s2588_s2 + $0x8] sm:$0xf0] }
  0xca   : > { %578 = vrot.lane.b32.xlu0 %v569_v23, %s2012_s22 }
  0xcb   : > { %541 = vrot.lane.b32.xlu2 %v532_v24, %s2013_s23  ;;  %539 = vrot.lane.b32.xlu1 %v531_v25, %s2013_s23  ;;  %v1696_v24 = vor.u32 %v1914_v19, %v1695_v18 }
  0xd2   : > { %543 = vrot.lane.b32.xlu0 %v533_v31, %s2013_s23 }
  0xd3   : > { %639 = vrot.lane.b32.xlu2 %v630_v33, %s2014_s24  ;;  %643 = vrot.lane.b32.xlu1 %v632_v28, %s2014_s24  ;;  %v1703_v28 = vld [vmem:[%s2588_s2 + $0x8] sm:$0xf] }
  0xda   : > { %641 = vrot.lane.b32.xlu0 %v631_v35, %s2014_s24 }
  0xdb   : > { %637 = vrot.lane.b32.xlu1 %v629_v36, %s2014_s24  ;;  %697 = vperm.xlu2 %1989, %v693_v11   ;;  %v1704_v36 = vor.u32 %v1915_v34, %v1703_v28 }
  0xe2   : > { %502 = vrot.lane.b32.xlu0 %v2117_v32, %s2009_s19 }
  0xe3   : > { %504 = vrot.lane.b32.xlu1 %v2139_v46, %s2009_s19 }
  0xe4   : > { %v605_v37 = vpop.permute.xlu2 %604 }
  0xe5   : > { %614 = vst.msk [vmem:[#allocation3 + $0x78] sm:$0xf] %vm386_vm6, %v605_v37  ;;  %v1913_v37 = vld [vmem:[%s2588_s2 + $0x4] sm:$0xf] }
  0xea   : > { %702 = vperm.xlu0 %1990, %v694_v10  }
  0xed   : > { %v406_v38 = vpop.permute.xlu2 %405 }
  0xee   : > { %414 = vst.msk [vmem:[#allocation3 + $0x1c] sm:$0xf] %vm386_vm6, %v406_v38  ;;  %v1697_v38 = vld [vmem:[%s2588_s2 + $0xc] sm:$0xf0] }
  0xf5   : > { %v400_v39 = vpop.permute.xlu2 %399 }
  0xf6   : > { %411 = vst.msk [vmem:[#allocation3 + $0x10] sm:$0xf] %vm386_vm6, %v400_v39 }
  0xfd   : > { %v507_v40 = vpop.permute.xlu2 %506 }
  0xfe   : > { %516 = vst.msk [vmem:[#allocation3 + $0x48] sm:$0xf] %vm386_vm6, %v507_v40  ;;  %v1700_v40 = vor.u32 %v1913_v37, %v1697_v38 }
 0x104   : > { %v607_v29 = vpop.permute.xlu0 %606 }
 0x105   : > { %v481_v41 = vpop.permute.xlu2 %480  ;;  %615 = vst.msk [vmem:[#allocation3 + $0x7c] sm:$0xf] %vm386_vm6, %v607_v29  ;;  %v603_v32 = vpop.permute.xlu1 %602 }
 0x106   : > { %491 = vst.msk [vmem:[#allocation3 + $0x34] sm:$0xf] %vm386_vm6, %v481_v41 }
 0x107   : > { %613 = vst.msk [vmem:[#allocation3 + $0x74] sm:$0xf] %vm386_vm6, %v603_v32 }
 0x10c   : > { %v601_v42 = vpop.permute.xlu0 %600  ;;  %v1931_v44 = vld [vmem:[#allocation3 + $0x78] sm:$0xff] }
 0x10d   : > { %v445_v43 = vpop.permute.xlu2 %444  ;;  %612 = vst.msk [vmem:[#allocation3 + $0x70] sm:$0xf] %vm386_vm6, %v601_v42  ;;  %v404_v45 = vpop.permute.xlu1 %403  ;;  %846 = vmatpush.bf16.msra.mxu1 %v1931_v44 }
 0x10e   : > { %454 = vst.msk [vmem:[#allocation3 + $0x28] sm:$0xf] %vm386_vm6, %v445_v43 }
 0x10f   : > { %413 = vst.msk [vmem:[#allocation3 + $0x18] sm:$0xf] %vm386_vm6, %v404_v45 }
 0x114   : > { %v402_v47 = vpop.permute.xlu0 %401  ;;  %v1930_v48 = vld [vmem:[#allocation3 + $0x70] sm:$0xff] }
 0x115   : > { %v583_v46 = vpop.permute.xlu2 %582  ;;  %v485_v50 = vpop.permute.xlu1 %484  ;;  %412 = vst.msk [vmem:[#allocation3 + $0x14] sm:$0xf] %vm386_vm6, %v402_v47  ;;  %847 = vmatpush.bf16.msra.mxu1 %v1930_v48 }
 0x116   : > { %591 = vst.msk [vmem:[#allocation3 + $0x6c] sm:$0xf] %vm386_vm6, %v583_v46  ;;  %v1919_v9 = vld [vmem:[#allocation3 + $0x18] sm:$0xff] }
 0x117   : > { %493 = vst.msk [vmem:[#allocation3 + $0x3c] sm:$0xf] %vm386_vm6, %v485_v50 }
 0x11c   : > { %v509_v52 = vpop.permute.xlu0 %508  ;;  %v1918_v13 = vld [vmem:[#allocation3 + $0x10] sm:$0xff] }
 0x11d   : > { %v577_v51 = vpop.permute.xlu2 %576  ;;  %v479_v53 = vpop.permute.xlu1 %478  ;;  %517 = vst.msk [vmem:[#allocation3 + $0x4c] sm:$0xf] %vm386_vm6, %v509_v52 }
 0x11e   : > { %588 = vst.msk [vmem:[#allocation3 + $0x60] sm:$0xf] %vm386_vm6, %v577_v51 }
 0x11f   : > { %490 = vst.msk [vmem:[#allocation3 + $0x30] sm:$0xf] %vm386_vm6, %v479_v53 }
 0x124   : > { %v483_v54 = vpop.permute.xlu0 %482  ;;  %v1925_v30 = vld [vmem:[#allocation3 + $0x48] sm:$0xff] }
 0x125   : > { %v542_v55 = vpop.permute.xlu2 %541  ;;  %492 = vst.msk [vmem:[#allocation3 + $0x38] sm:$0xf] %vm386_vm6, %v483_v54  ;;  %v581_v56 = vpop.permute.xlu1 %580 }
 0x126   : > { %552 = vst.msk [vmem:[#allocation3 + $0x54] sm:$0xf] %vm386_vm6, %v542_v55  ;;  %v1922_v63 = vld [vmem:[#allocation3 + $0x30] sm:$0xff] }
 0x127   : > { %590 = vst.msk [vmem:[#allocation3 + $0x68] sm:$0xf] %vm386_vm6, %v581_v56  ;;  %v1000_v55 = vld [vmem:[%s320_s14] sm:$0xf] }
 0x12c   : > { %v447_v57 = vpop.permute.xlu0 %446  ;;  %v1923_v59 = vld [vmem:[#allocation3 + $0x38] sm:$0xff] }
 0x12d   : > { %v640_v58 = vpop.permute.xlu2 %639  ;;  %455 = vst.msk [vmem:[#allocation3 + $0x2c] sm:$0xf] %vm386_vm6, %v447_v57  ;;  %v443_v60 = vpop.permute.xlu1 %442  ;;  %832 = vmatpush.bf16.msra.mxu0 %v1923_v59  ;;  %v1001_v57 = vld [vmem:[%s320_s14 + $0x4] sm:$0xf] }
 0x12e   : > { %650 = vst.msk [vmem:[#allocation3 + $0x84] sm:$0xf] %vm386_vm6, %v640_v58  ;;  %v1929_v62 = vld [vmem:[#allocation3 + $0x68] sm:$0xff] }
 0x12f   : > { %453 = vst.msk [vmem:[#allocation3 + $0x24] sm:$0xf] %vm386_vm6, %v443_v60  ;;  %848 = vmatpush.bf16.msra.mxu1 %v1929_v62 }
 0x131   : > { %833 = vmatpush.bf16.msra.mxu0 %v1922_v63 }
 0x134   : > { %v441_v2 = vpop.permute.xlu0 %440  ;;  %v1921_v3 = vld [vmem:[#allocation3 + $0x28] sm:$0xff] }
 0x135   : > { %452 = vst.msk [vmem:[#allocation3 + $0x20] sm:$0xf] %vm386_vm6, %v441_v2  ;;  %v546_v4 = vpop.permute.xlu1 %545  ;;  %834 = vmatpush.bf16.msra.mxu0 %v1921_v3  ;;  %v698_v41 = vpop.permute.xlu2 %697 }
 0x136   : > { %554 = vst.msk [vmem:[#allocation3 + $0x5c] sm:$0xf] %vm386_vm6, %v546_v4 }
 0x13c   : > { %v579_v5 = vpop.permute.xlu0 %578  ;;  %v1920_v7 = vld [vmem:[#allocation3 + $0x20] sm:$0xff] }
 0x13d   : > { %589 = vst.msk [vmem:[#allocation3 + $0x64] sm:$0xf] %vm386_vm6, %v579_v5  ;;  %v540_v8 = vpop.permute.xlu1 %539  ;;  %835 = vmatpush.bf16.msra.mxu0 %v1920_v7 }
 0x13e   : > { %551 = vst.msk [vmem:[#allocation3 + $0x50] sm:$0xf] %vm386_vm6, %v540_v8 }
 0x141   : > { %836 = vmatpush.bf16.msra.mxu0 %v1919_v9 }
 0x144   : > { %v544_v12 = vpop.permute.xlu0 %543  ;;  %v1928_v14 = vld [vmem:[#allocation3 + $0x60] sm:$0xff] }
 0x145   : > { %553 = vst.msk [vmem:[#allocation3 + $0x58] sm:$0xf] %vm386_vm6, %v544_v12  ;;  %v644_v16 = vpop.permute.xlu1 %643  ;;  %837 = vmatpush.bf16.msra.mxu0 %v1918_v13  ;;  %849 = vmatpush.bf16.msra.mxu1 %v1928_v14  ;;  %v1926_v25 = vld [vmem:[#allocation3 + $0x50] sm:$0xff] }
 0x146   : > { %652 = vst.msk [vmem:[#allocation3 + $0x8c] sm:$0xf] %vm386_vm6, %v644_v16 }
 0x149   : > { %838 = vmatpush.bf16.msra.mxu0 %v1917_v17 }
 0x14c   : > { %v642_v20 = vpop.permute.xlu0 %641  ;;  %v1927_v22 = vld [vmem:[#allocation3 + $0x58] sm:$0xff] }
 0x14d   : > { %651 = vst.msk [vmem:[#allocation3 + $0x88] sm:$0xf] %vm386_vm6, %v642_v20  ;;  %v638_v23 = vpop.permute.xlu1 %637  ;;  %839 = vmatpush.bf16.msra.mxu0 %v1916_v21  ;;  %850 = vmatpush.bf16.msra.mxu1 %v1927_v22 }
 0x14e   : > { %649 = vst.msk [vmem:[#allocation3 + $0x80] sm:$0xf] %vm386_vm6, %v638_v23 }
 0x150   : > { %840 = vmatmul.bf16.vlgmr.msra.gmra.mxu0 %v1696_v24 }
 0x151   : > { %851 = vmatpush.bf16.msra.mxu1 %v1926_v25 }
 0x154   : > { %v503_v26 = vpop.permute.xlu0 %502  ;;  %v1933_v31 = vld [vmem:[#allocation3 + $0x88] sm:$0xff] }
 0x155   : > { %514 = vst.msk [vmem:[#allocation3 + $0x40] sm:$0xf] %vm386_vm6, %v503_v26  ;;  %v505_v33 = vpop.permute.xlu1 %504  ;;  %852 = vmatpush.bf16.msra.mxu1 %v1925_v30  ;;  %866 = vmatpush.bf16.msra.mxu2 %v1933_v31  ;;  %v1932_v35 = vld [vmem:[#allocation3 + $0x80] sm:$0xff] }
 0x156   : > { %515 = vst.msk [vmem:[#allocation3 + $0x44] sm:$0xf] %vm386_vm6, %v505_v33 }
 0x159   : > { %867 = vmatpush.bf16.msra.mxu2 %v1932_v35 }
 0x15c   : > { %1777 = vmatmul.msk.bf16.vlgmr.msra.gmra.mxu2 %vm828_vm11, %v1704_v36  ;;  %v703_v46 = vpop.permute.xlu0 %702 }
 0x15d   : > { %v1924_v39 = vld [vmem:[#allocation3 + $0x40] sm:$0xff] }
 0x15e   : > { %853 = vmatpush.bf16.msra.mxu1 %v1924_v39 }
 0x161   : > { %854 = vmatmul.bf16.vlgmr.msra.gmra.mxu1 %v1700_v40 }
 0x1cd   : > { %v841_v29 = vpop.f32.mrf.mxu0 }
 0x1ce   : > { %v842_v32 = vadd.f32 %v841_v29, %v698_v41 }
 0x1d5   : > { %v843_v47 = vpop.f32.mrf.mxu0 }
 0x1d6   : > { %v844_v50 = vadd.f32 %v843_v47, %v703_v46 }
 0x1de   : > { %v855_v42 = vpop.f32.mrf.mxu1 }
 0x1df   : > { %v856_v43 = vadd.f32 %v855_v42, %v842_v32  ;;  %v869_v44 = vpop.f32.mrf.mxu2 }
 0x1e1   : > { %v870_v45 = vadd.f32 %v869_v44, %v856_v43 }
 0x1e3   : > { %v876_v48 = vpack.c.bf16 %v870_v45, %v870_v45 }
 0x1e5   : > { %880 = vrot.lane.b32.xlu1 %v876_v48, %s2001_s11 }
 0x1e6   : > { %v857_v51 = vpop.f32.mrf.mxu1 }
 0x1e7   : > { %v858_v52 = vadd.f32 %v857_v51, %v844_v50  ;;  %v871_v53 = vpop.f32.mrf.mxu2 }
 0x1e9   : > { %v872_v54 = vadd.f32 %v871_v53, %v858_v52 }
 0x1eb   : > { %v877_v56 = vpack.c.bf16 %v872_v54, %v872_v54 }
 0x1ed   : > { %882 = vrot.lane.b32.xlu2 %v877_v56, %s2001_s11  ;;  %1006 = vrot.lane.b32.xlu1 %v1000_v55, %s2001_s11 }
 0x1f5   : > { %1008 = vrot.lane.b32.xlu2 %v1001_v57, %s2001_s11 }
 0x247   : > { %v883_v58 = vpop.permute.xlu2 %882 }
 0x248   : > { %887 = vst.msk [vmem:[#allocation2 + $0x4] sm:$0xf] %vm354_vm5, %v883_v58 }
 0x24f   : > { %v889_v59 = vld [vmem:[#allocation2 + $0x4] sm:$0xf]  ;;  %v1009_v4 = vpop.permute.xlu2 %1008 }
 0x250   : > { %v2323_v60 = vld [vmem:[#allocation2 + $0x4] sm:$0xf]  ;;  %v891_v9 = vsel %vm2079_vm1, %v889_v59, 0 }
 0x251   : > { %v2325_v62 = vld [vmem:[#allocation2 + $0x4] sm:$0xf]  ;;  %893 = vst.msk [vmem:[#allocation3 + $0x4] sm:$0xf] %vm386_vm6, %v891_v9 }
 0x252   : > { %v2327_v63 = vld [vmem:[#allocation2 + $0x4] sm:$0xf]  ;;  %v909_v56 = vsel %vm2172_vm14, %v2325_v62, 0 }
 0x253   : > { %v947_v2 = vld [vmem:[#allocation2 + $0x4] sm:$0xf] }
 0x254   : > { %v975_v3 = vld [vmem:[#allocation2 + $0x4] sm:$0xf]  ;;  %v949_v41 = vsel %vm2201_vm3, %v947_v2, 0  ;;  %v989_v2 = vsel %vm2230_vm10, %v2327_v63, 0  ;;  %v1167_v63 = vld [vmem:[%s2591_s5 + $0x8] sm:$0xff] }
 0x255   : > { %v961_v5 = vld [vmem:[#allocation2 + $0x4] sm:$0xf] }
 0x256   : > { %v2329_v7 = vld [vmem:[#allocation2 + $0x4] sm:$0xf]  ;;  %v963_v32 = vsel %vm2176_vm15, %v961_v5, 0 }
 0x257   : > { %v2331_v8 = vld [vmem:[#allocation2 + $0x4] sm:$0xf]  ;;  %v881_v10 = vpop.permute.xlu1 %880 }
 0x258   : > { %1003 = vst.msk [vmem:[#allocation2 + $0x4] sm:$0xf] %vm333_vm4, %v2000_v1  ;;  %v923_v52 = vsel %vm2152_vm9, %v2331_v8, 0 }
 0x259   : > { %1013 = vst.msk [vmem:[#allocation2 + $0x4] sm:$0xf] %vm354_vm5, %v1009_v4 }
 0x25a   : > { %886 = vst.msk [vmem:[#allocation2] sm:$0xf] %vm354_vm5, %v881_v10 }
 0x25f   : > { %v1007_v18 = vpop.permute.xlu1 %1006 }
 0x260   : > { %v1015_v25 = vld [vmem:[#allocation2 + $0x4] sm:$0xf] }
 0x261   : > { %v888_v11 = vld [vmem:[#allocation2] sm:$0xf]  ;;  %v1017_v31 = vsel %vm2079_vm1, %v1015_v25, 0  ;;  %v1087_v42 = vld [vmem:[#allocation2 + $0x4] sm:$0xf] }
 0x262   : > { %v2340_v12 = vld [vmem:[#allocation2] sm:$0xf]  ;;  %v890_v24 = vsel %vm2079_vm1, %v888_v11, 0  ;;  %1019 = vst.msk [vmem:[#allocation3 + $0x4c] sm:$0xf] %vm386_vm6, %v1017_v31 }
 0x263   : > { %v2342_v13 = vld [vmem:[#allocation2] sm:$0xf]  ;;  %892 = vst.msk [vmem:[#allocation3] sm:$0xf] %vm386_vm6, %v890_v24  ;;  %v1073_v43 = vld [vmem:[#allocation2 + $0x4] sm:$0xf] }
 0x264   : > { %v974_v14 = vld [vmem:[#allocation2] sm:$0xf]  ;;  %v1047_v44 = vld [vmem:[#allocation2 + $0x4] sm:$0xf]  ;;  %v1075_v57 = vsel %vm2201_vm3, %v1073_v43, 0  ;;  %v988_v62 = vsel %vm2230_vm10, %v2342_v13, 0 }
 0x265   : > { %v960_v16 = vld [vmem:[#allocation2] sm:$0xf]  ;;  %978 = vrot.lane.b32.xlu0 %v974_v14, %s2007_s17  ;;  %v1033_v46 = vld [vmem:[#allocation2 + $0x4] sm:$0xf]  ;;  %v1049_v58 = vsel %vm2152_vm9, %v1047_v44, 0 }
 0x266   : > { %v946_v17 = vld [vmem:[#allocation2] sm:$0xf]  ;;  %v962_v19 = vsel %vm2176_vm15, %v960_v16, 0  ;;  %v1113_v47 = vld [vmem:[#allocation2 + $0x4] sm:$0xf]  ;;  %v1035_v59 = vsel %vm2172_vm14, %v1033_v46, 0 }
 0x267   : > { %v948_v20 = vsel %vm2201_vm3, %v946_v17, 0  ;;  %v934_v21 = vld [vmem:[#allocation2] sm:$0xf]  ;;  %966 = vrot.lane.b32.xlu1 %v962_v19, %s2012_s22  ;;  %v1061_v48 = vld [vmem:[#allocation2 + $0x4] sm:$0xf] }
 0x268   : > { %v920_v22 = vld [vmem:[#allocation2] sm:$0xf]  ;;  %952 = vrot.lane.b32.xlu2 %v948_v20, %s2013_s23  ;;  %v1021_v50 = vld [vmem:[#allocation2 + $0x4] sm:$0xf] }
 0x269   : > { %v906_v23 = vld [vmem:[#allocation2] sm:$0xf]  ;;  %v922_v26 = vsel %vm2152_vm9, %v920_v22, 0  ;;  %v1101_v51 = vld [vmem:[#allocation2 + $0x4] sm:$0xf] }
 0x26a   : > { %1002 = vst.msk [vmem:[#allocation2] sm:$0xf] %vm333_vm4, %v2000_v1  ;;  %v908_v30 = vsel %vm2172_vm14, %v906_v23, 0 }
 0x26b   : > { %1012 = vst.msk [vmem:[#allocation2] sm:$0xf] %vm354_vm5, %v1007_v18 }
 0x26c   : > { %1353 = vst.msk [vmem:[#allocation2 + $0x4] sm:$0xf] %vm333_vm4, %v2000_v1 }
 0x26d   : > { %938 = vrot.lane.b32.xlu0 %v934_v21, %s2009_s19 }
 0x26f   : > { %926 = vrot.lane.b32.xlu1 %v922_v26, %s2010_s20 }
 0x270   : > { %912 = vrot.lane.b32.xlu2 %v908_v30, %s2011_s21 }
 0x272   : > { %v1072_v33 = vld [vmem:[#allocation2] sm:$0xf] }
 0x273   : > { %v1032_v28 = vld [vmem:[#allocation2] sm:$0xf]  ;;  %v1074_v45 = vsel %vm2201_vm3, %v1072_v33, 0 }
 0x274   : > { %v1086_v34 = vld [vmem:[#allocation2] sm:$0xf]  ;;  %v1034_v53 = vsel %vm2172_vm14, %v1032_v28, 0 }
 0x275   : > { %v1060_v35 = vld [vmem:[#allocation2] sm:$0xf]  ;;  %954 = vrot.lane.b32.xlu0 %v949_v41, %s2013_s23  ;;  %v1088_v54 = vsel %vm2176_vm15, %v1086_v34, 0 }
 0x276   : > { %v1046_v36 = vld [vmem:[#allocation2] sm:$0xf] }
 0x277   : > { %v1020_v37 = vld [vmem:[#allocation2] sm:$0xf]  ;;  %980 = vrot.lane.b32.xlu1 %v975_v3, %s2007_s17  ;;  %v1048_v55 = vsel %vm2152_vm9, %v1046_v36, 0  ;;  %v1115_v3 = vsel %vm2230_vm10, %v1113_v47, 0 }
 0x278   : > { %v1112_v38 = vld [vmem:[#allocation2] sm:$0xf]  ;;  %968 = vrot.lane.b32.xlu2 %v963_v32, %s2012_s22 }
 0x279   : > { %v1100_v39 = vld [vmem:[#allocation2] sm:$0xf]  ;;  %v1114_v4 = vsel %vm2230_vm10, %v1112_v38, 0 }
 0x27a   : > { %v1014_v40 = vld [vmem:[#allocation2] sm:$0xf] }
 0x27b   : > { %v1016_v29 = vsel %vm2079_vm1, %v1014_v40, 0  ;;  %1352 = vst.msk [vmem:[#allocation2] sm:$0xf] %vm333_vm4, %v2000_v1  ;;  %v1089_v1 = vsel %vm2176_vm15, %v1087_v42, 0 }
 0x27c   : > { %1018 = vst.msk [vmem:[#allocation3 + $0x48] sm:$0xf] %vm386_vm6, %v1016_v29 }
 0x27d   : > { %1078 = vrot.lane.b32.xlu0 %v1074_v45, %s2013_s23 }
 0x27f   : > { %940 = vrot.lane.b32.xlu1 %v2329_v7, %s2009_s19 }
 0x280   : > { %928 = vrot.lane.b32.xlu2 %v923_v52, %s2010_s20  ;;  %v1780_v52 = vld [vmem:[%s2590_s4] sm:$0xf] }
 0x285   : > { %1038 = vrot.lane.b32.xlu0 %v1034_v53, %s2011_s21  ;;  %v1935_v53 = vld [vmem:[%s2590_s4 + $0x8] sm:$0xf0] }
 0x287   : > { %1064 = vrot.lane.b32.xlu1 %v1060_v35, %s2009_s19 }
 0x288   : > { %1092 = vrot.lane.b32.xlu2 %v1088_v54, %s2012_s22  ;;  %v1937_v54 = vld [vmem:[#allocation3] sm:$0xff] }
 0x28d   : > { %1094 = vrot.lane.b32.xlu0 %v1089_v1, %s2012_s22  ;;  %v1946_v1 = vld [vmem:[#allocation3 + $0x48] sm:$0xff] }
 0x28f   : > { %1024 = vrot.lane.b32.xlu1 %v1020_v37, %s2008_s18 }
 0x290   : > { %1052 = vrot.lane.b32.xlu2 %v1048_v55, %s2010_s20  ;;  %v1781_v55 = vor.u32 %v1935_v53, %v1780_v52 }
 0x295   : > { %914 = vrot.lane.b32.xlu0 %v909_v56, %s2011_s21 }
 0x297   : > { %1080 = vrot.lane.b32.xlu1 %v1075_v57, %s2013_s23 }
 0x298   : > { %1066 = vrot.lane.b32.xlu2 %v1061_v48, %s2009_s19 }
 0x29d   : > { %1054 = vrot.lane.b32.xlu0 %v1049_v58, %s2010_s20  ;;  %v1934_v58 = vld [vmem:[%s2590_s4 + $0x4] sm:$0xf] }
 0x29f   : > { %1040 = vrot.lane.b32.xlu1 %v1035_v59, %s2011_s21  ;;  %v1782_v59 = vld [vmem:[%s2590_s4 + $0xc] sm:$0xf0] }
 0x2a0   : > { %1026 = vrot.lane.b32.xlu2 %v1021_v50, %s2008_s18 }
 0x2a5   : > { %898 = vrot.lane.b32.xlu0 %v2340_v12, %s2008_s18 }
 0x2a7   : > { %900 = vrot.lane.b32.xlu1 %v2323_v60, %s2008_s18  ;;  %v1166_v60 = vld [vmem:[%s2591_s5] sm:$0xff] }
 0x2a8   : > { %992 = vrot.lane.b32.xlu2 %v988_v62, %s2014_s24 }
 0x2ad   : > { %994 = vrot.lane.b32.xlu0 %v989_v2, %s2014_s24 }
 0x2af   : > { %1118 = vrot.lane.b32.xlu1 %v1114_v4, %s2014_s24  ;;  %v1788_v4 = vld [vmem:[%s2590_s4 + $0x8] sm:$0xf] }
 0x2b0   : > { %1120 = vrot.lane.b32.xlu2 %v1115_v3, %s2014_s24  ;;  %v1785_v3 = vor.u32 %v1934_v58, %v1782_v59 }
 0x2b5   : > { %1104 = vrot.lane.b32.xlu0 %v1100_v39, %s2007_s17 }
 0x2b7   : > { %1106 = vrot.lane.b32.xlu1 %v1101_v51, %s2007_s17 }
 0x2b8   : > { %1170 = vperm.xlu2 %1989, %v1166_v60   ;;  %v1936_v60 = vld [vmem:[%s2590_s4 + $0x10] sm:$0xf0] }
 0x2bd   : > { %1175 = vperm.xlu0 %1990, %v1167_v63  }
 0x2c2   : > { %v953_v5 = vpop.permute.xlu2 %952 }
 0x2c3   : > { %958 = vst.msk [vmem:[#allocation3 + $0x28] sm:$0xf] %vm386_vm6, %v953_v5  ;;  %v1789_v5 = vor.u32 %v1936_v60, %v1788_v4 }
 0x2ca   : > { %v913_v7 = vpop.permute.xlu2 %912 }
 0x2cb   : > { %918 = vst.msk [vmem:[#allocation3 + $0x10] sm:$0xf] %vm386_vm6, %v913_v7 }
 0x2d2   : > { %v969_v8 = vpop.permute.xlu2 %968 }
 0x2d3   : > { %973 = vst.msk [vmem:[#allocation3 + $0x34] sm:$0xf] %vm386_vm6, %v969_v8 }
 0x2d7   : > { %v979_v9 = vpop.permute.xlu0 %978 }
 0x2d8   : > { %984 = vst.msk [vmem:[#allocation3 + $0x38] sm:$0xf] %vm386_vm6, %v979_v9 }
 0x2d9   : > { %v967_v11 = vpop.permute.xlu1 %966 }
 0x2da   : > { %v929_v10 = vpop.permute.xlu2 %928  ;;  %972 = vst.msk [vmem:[#allocation3 + $0x30] sm:$0xf] %vm386_vm6, %v967_v11 }
 0x2db   : > { %933 = vst.msk [vmem:[#allocation3 + $0x1c] sm:$0xf] %vm386_vm6, %v929_v10 }
 0x2df   : > { %v939_v12 = vpop.permute.xlu0 %938 }
 0x2e0   : > { %944 = vst.msk [vmem:[#allocation3 + $0x20] sm:$0xf] %vm386_vm6, %v939_v12 }
 0x2e1   : > { %v927_v14 = vpop.permute.xlu1 %926  ;;  %v1943_v23 = vld [vmem:[#allocation3 + $0x30] sm:$0xff] }
 0x2e2   : > { %v1093_v13 = vpop.permute.xlu2 %1092  ;;  %932 = vst.msk [vmem:[#allocation3 + $0x18] sm:$0xf] %vm386_vm6, %v927_v14 }
 0x2e3   : > { %1098 = vst.msk [vmem:[#allocation3 + $0x78] sm:$0xf] %vm386_vm6, %v1093_v13 }
 0x2e7   : > { %v955_v16 = vpop.permute.xlu0 %954 }
 0x2e8   : > { %959 = vst.msk [vmem:[#allocation3 + $0x2c] sm:$0xf] %vm386_vm6, %v955_v16 }
 0x2e9   : > { %v981_v18 = vpop.permute.xlu1 %980  ;;  %v1940_v35 = vld [vmem:[#allocation3 + $0x18] sm:$0xff] }
 0x2ea   : > { %v1053_v17 = vpop.permute.xlu2 %1052  ;;  %985 = vst.msk [vmem:[#allocation3 + $0x3c] sm:$0xf] %vm386_vm6, %v981_v18 }
 0x2eb   : > { %1058 = vst.msk [vmem:[#allocation3 + $0x60] sm:$0xf] %vm386_vm6, %v1053_v17 }
 0x2ef   : > { %v1079_v19 = vpop.permute.xlu0 %1078  ;;  %v1942_v30 = vld [vmem:[#allocation3 + $0x28] sm:$0xff] }
 0x2f0   : > { %1084 = vst.msk [vmem:[#allocation3 + $0x70] sm:$0xf] %vm386_vm6, %v1079_v19 }
 0x2f1   : > { %v941_v21 = vpop.permute.xlu1 %940  ;;  %v1944_v22 = vld [vmem:[#allocation3 + $0x38] sm:$0xff] }
 0x2f2   : > { %v1067_v20 = vpop.permute.xlu2 %1066  ;;  %945 = vst.msk [vmem:[#allocation3 + $0x24] sm:$0xf] %vm386_vm6, %v941_v21  ;;  %1304 = vmatpush.bf16.msra.mxu3 %v1944_v22 }
 0x2f3   : > { %1071 = vst.msk [vmem:[#allocation3 + $0x6c] sm:$0xf] %vm386_vm6, %v1067_v20 }
 0x2f6   : > { %1305 = vmatpush.bf16.msra.mxu3 %v1943_v23 }
 0x2f7   : > { %v1039_v24 = vpop.permute.xlu0 %1038 }
 0x2f8   : > { %1044 = vst.msk [vmem:[#allocation3 + $0x58] sm:$0xf] %vm386_vm6, %v1039_v24 }
 0x2f9   : > { %v1065_v26 = vpop.permute.xlu1 %1064  ;;  %v1941_v31 = vld [vmem:[#allocation3 + $0x20] sm:$0xff] }
 0x2fa   : > { %v1027_v25 = vpop.permute.xlu2 %1026  ;;  %1070 = vst.msk [vmem:[#allocation3 + $0x68] sm:$0xf] %vm386_vm6, %v1065_v26  ;;  %1306 = vmatpush.bf16.msra.mxu3 %v1942_v30 }
 0x2fb   : > { %1031 = vst.msk [vmem:[#allocation3 + $0x54] sm:$0xf] %vm386_vm6, %v1027_v25 }
 0x2fe   : > { %1307 = vmatpush.bf16.msra.mxu3 %v1941_v31 }
 0x2ff   : > { %v1095_v33 = vpop.permute.xlu0 %1094 }
 0x300   : > { %1099 = vst.msk [vmem:[#allocation3 + $0x7c] sm:$0xf] %vm386_vm6, %v1095_v33 }
 0x301   : > { %v1025_v34 = vpop.permute.xlu1 %1024  ;;  %v1950_v42 = vld [vmem:[#allocation3 + $0x68] sm:$0xff] }
 0x302   : > { %v993_v28 = vpop.permute.xlu2 %992  ;;  %1030 = vst.msk [vmem:[#allocation3 + $0x50] sm:$0xf] %vm386_vm6, %v1025_v34  ;;  %1308 = vmatpush.bf16.msra.mxu3 %v1940_v35 }
 0x303   : > { %998 = vst.msk [vmem:[#allocation3 + $0x40] sm:$0xf] %vm386_vm6, %v993_v28 }
 0x307   : > { %v915_v36 = vpop.permute.xlu0 %914  ;;  %v1952_v37 = vld [vmem:[#allocation3 + $0x78] sm:$0xff] }
 0x308   : > { %919 = vst.msk [vmem:[#allocation3 + $0x14] sm:$0xf] %vm386_vm6, %v915_v36  ;;  %1318 = vmatpush.bf16.msrb.mxu2 %v1952_v37 }
 0x309   : > { %v1081_v39 = vpop.permute.xlu1 %1080  ;;  %v1947_v51 = vld [vmem:[#allocation3 + $0x50] sm:$0xff] }
 0x30a   : > { %v1121_v38 = vpop.permute.xlu2 %1120  ;;  %1085 = vst.msk [vmem:[#allocation3 + $0x74] sm:$0xf] %vm386_vm6, %v1081_v39 }
 0x30b   : > { %1125 = vst.msk [vmem:[#allocation3 + $0x8c] sm:$0xf] %vm386_vm6, %v1121_v38 }
 0x30f   : > { %v1055_v40 = vpop.permute.xlu0 %1054  ;;  %v1939_v29 = vld [vmem:[#allocation3 + $0x10] sm:$0xff] }
 0x310   : > { %1059 = vst.msk [vmem:[#allocation3 + $0x64] sm:$0xf] %vm386_vm6, %v1055_v40  ;;  %1309 = vmatpush.bf16.msra.mxu3 %v1939_v29 }
 0x311   : > { %v1041_v41 = vpop.permute.xlu1 %1040  ;;  %v1951_v32 = vld [vmem:[#allocation3 + $0x70] sm:$0xff] }
 0x312   : > { %1045 = vst.msk [vmem:[#allocation3 + $0x5c] sm:$0xf] %vm386_vm6, %v1041_v41  ;;  %1319 = vmatpush.bf16.msrb.mxu2 %v1951_v32  ;;  %v1171_v8 = vpop.permute.xlu2 %1170 }
 0x316   : > { %1320 = vmatpush.bf16.msrb.mxu2 %v1950_v42 }
 0x317   : > { %v899_v43 = vpop.permute.xlu0 %898  ;;  %v1949_v44 = vld [vmem:[#allocation3 + $0x60] sm:$0xff] }
 0x318   : > { %904 = vst.msk [vmem:[#allocation3 + $0x8] sm:$0xf] %vm386_vm6, %v899_v43 }
 0x319   : > { %v901_v45 = vpop.permute.xlu1 %900  ;;  %v1948_v46 = vld [vmem:[#allocation3 + $0x58] sm:$0xff] }
 0x31a   : > { %905 = vst.msk [vmem:[#allocation3 + $0xc] sm:$0xf] %vm386_vm6, %v901_v45  ;;  %1321 = vmatpush.bf16.msrb.mxu2 %v1949_v44 }
 0x31e   : > { %1322 = vmatpush.bf16.msrb.mxu2 %v1948_v46 }
 0x31f   : > { %v995_v47 = vpop.permute.xlu0 %994 }
 0x320   : > { %999 = vst.msk [vmem:[#allocation3 + $0x44] sm:$0xf] %vm386_vm6, %v995_v47 }
 0x321   : > { %v1119_v48 = vpop.permute.xlu1 %1118  ;;  %v1938_v50 = vld [vmem:[#allocation3 + $0x8] sm:$0xff] }
 0x322   : > { %1124 = vst.msk [vmem:[#allocation3 + $0x88] sm:$0xf] %vm386_vm6, %v1119_v48  ;;  %1310 = vmatpush.bf16.msra.mxu3 %v1938_v50  ;;  %1323 = vmatpush.bf16.msrb.mxu2 %v1947_v51 }
 0x326   : > { %1311 = vmatpush.bf16.msra.mxu3 %v1937_v54  ;;  %1324 = vmatpush.bf16.msrb.mxu2 %v1946_v1 }
 0x327   : > { %v1105_v56 = vpop.permute.xlu0 %1104  ;;  %v1945_v57 = vld [vmem:[#allocation3 + $0x40] sm:$0xff] }
 0x328   : > { %1110 = vst.msk [vmem:[#allocation3 + $0x80] sm:$0xf] %vm386_vm6, %v1105_v56  ;;  %v1499_v56 = vld [vmem:[%s2593_s7 + $0x8] sm:$0xff] }
 0x329   : > { %v1107_v62 = vpop.permute.xlu1 %1106  ;;  %v1954_v2 = vld [vmem:[#allocation3 + $0x88] sm:$0xff]  ;;  %1312 = vmatmul.bf16.vlgmr.msra.gmra.mxu3 %v1781_v55 }
 0x32a   : > { %1111 = vst.msk [vmem:[#allocation3 + $0x84] sm:$0xf] %vm386_vm6, %v1107_v62  ;;  %1338 = vmatpush.bf16.msrb.mxu0 %v1954_v2  ;;  %1325 = vmatpush.bf16.msrb.mxu2 %v1945_v57 }
 0x32d   : > { %1326 = vmatmul.bf16.vlgmr.msrb.gmra.mxu2 %v1785_v3 }
 0x32f   : > { %v1176_v17 = vpop.permute.xlu0 %1175 }
 0x331   : > { %v1953_v63 = vld [vmem:[#allocation3 + $0x80] sm:$0xff] }
 0x332   : > { %1339 = vmatpush.bf16.msrb.mxu0 %v1953_v63 }
 0x335   : > { %1862 = vmatmul.msk.bf16.vlgmr.msrb.gmra.mxu0 %vm828_vm11, %v1789_v5 }
 0x3ac   : > { %v1313_v7 = vpop.f32.mrf.mxu3 }
 0x3ad   : > { %v1314_v9 = vadd.f32 %v1313_v7, %v1171_v8 }
 0x3b0   : > { %v1327_v10 = vpop.f32.mrf.mxu2 }
 0x3b1   : > { %v1328_v11 = vadd.f32 %v1327_v10, %v1314_v9 }
 0x3b2   : > { %v1341_v12 = vpop.f32.mrf.mxu0 }
 0x3b3   : > { %v1342_v13 = vadd.f32 %v1341_v12, %v1328_v11  ;;  %v1498_v11 = vld [vmem:[%s2593_s7] sm:$0xff] }
 0x3b4   : > { %v1315_v14 = vpop.f32.mrf.mxu3 }
 0x3b5   : > { %vm1346_vm4 = vcmp.ge.f32.partialorder %v1342_v13, 0.0  ;;  %v1348_v16 = vmul.f32 0.1, %v1342_v13  ;;  %v1316_v18 = vadd.f32 %v1315_v14, %v1176_v17 }
 0x3b7   : > { %v1350_v19 = vsel %vm1346_vm4, %v1342_v13, %v1348_v16 }
 0x3b8   : > { %v1329_v20 = vpop.f32.mrf.mxu2  ;;  %v1354_v21 = vpack.c.bf16 %v1350_v19, %v1350_v19 }
 0x3b9   : > { %v1330_v22 = vadd.f32 %v1329_v20, %v1316_v18  ;;  %v1955_v20 = vld [vmem:[%s2592_s6 + $0x4] sm:$0xf] }
 0x3ba   : > { %v1343_v23 = vpop.f32.mrf.mxu0  ;;  %1358 = vrot.lane.b32.xlu1 %v1354_v21, %s2001_s11  ;;  %v1867_v21 = vld [vmem:[%s2592_s6 + $0x8] sm:$0xf0] }
 0x3bb   : > { %v1344_v24 = vadd.f32 %v1343_v23, %v1330_v22 }
 0x3bd   : > { %vm1347_vm12 = vcmp.ge.f32.partialorder %v1344_v24, 0.0  ;;  %v1349_v25 = vmul.f32 0.1, %v1344_v24 }
 0x3bf   : > { %v1351_v26 = vsel %vm1347_vm12, %v1344_v24, %v1349_v25  ;;  %v1870_v24 = vor.u32 %v1955_v20, %v1867_v21  ;;  %v1865_v25 = vld [vmem:[%s2592_s6] sm:$0xf] }
 0x3c0   : > { %v1355_v30 = vpack.c.bf16 %v1351_v26, %v1351_v26  ;;  %v1956_v26 = vld [vmem:[%s2592_s6 + $0x4] sm:$0xf0] }
 0x3c2   : > { %1360 = vrot.lane.b32.xlu2 %v1355_v30, %s2001_s11 }
 0x41c   : > { %v1361_v31 = vpop.permute.xlu2 %1360 }
 0x41d   : > { %1365 = vst.msk [vmem:[#allocation2 + $0x4] sm:$0xf] %vm354_vm5, %v1361_v31  ;;  %v1866_v31 = vor.u32 %v1956_v26, %v1865_v25 }
 0x424   : > { %v1367_v33 = vld [vmem:[#allocation2 + $0x4] sm:$0xf] }
 0x425   : > { %v1369_v28 = vsel %vm2079_vm1, %v1367_v33, 0  ;;  %v1453_v42 = vld [vmem:[#allocation2 + $0x4] sm:$0xf] }
 0x426   : > { %1371 = vst.msk [vmem:[#allocation3 + $0x4] sm:$0xf] %vm386_vm6, %v1369_v28  ;;  %v1439_v44 = vld [vmem:[#allocation2 + $0x4] sm:$0xf] }
 0x427   : > { %v1425_v45 = vld [vmem:[#allocation2 + $0x4] sm:$0xf]  ;;  %v1441_v6 = vsel %vm2176_vm15, %v1439_v44, 0 }
 0x428   : > { %v1413_v46 = vld [vmem:[#allocation2 + $0x4] sm:$0xf]  ;;  %v1427_v47 = vsel %vm2201_vm3, %v1425_v45, 0 }
 0x429   : > { %v1385_v48 = vld [vmem:[#allocation2 + $0x4] sm:$0xf] }
 0x42a   : > { %v1387_v52 = vsel %vm2172_vm14, %v1385_v48, 0  ;;  %v1399_v15 = vld [vmem:[#allocation2 + $0x4] sm:$0xf] }
 0x42b   : > { %v1401_v54 = vsel %vm2152_vm9, %v1399_v15, 0  ;;  %v1373_v55 = vld [vmem:[#allocation2 + $0x4] sm:$0xf] }
 0x42c   : > { %v1359_v34 = vpop.permute.xlu1 %1358  ;;  %v1465_v61 = vld [vmem:[#allocation2 + $0x4] sm:$0xf] }
 0x42d   : > { %1364 = vst.msk [vmem:[#allocation2] sm:$0xf] %vm354_vm5, %v1359_v34  ;;  %v1467_v57 = vsel %vm2230_vm10, %v1465_v61, 0 }
 0x434   : > { %v1452_v35 = vld [vmem:[#allocation2] sm:$0xf] }
 0x435   : > { %v1438_v36 = vld [vmem:[#allocation2] sm:$0xf]  ;;  %1456 = vrot.lane.b32.xlu0 %v1452_v35, %s2007_s17 }
 0x436   : > { %v1424_v37 = vld [vmem:[#allocation2] sm:$0xf]  ;;  %v1440_v38 = vsel %vm2176_vm15, %v1438_v36, 0 }
 0x437   : > { %v1426_v39 = vsel %vm2201_vm3, %v1424_v37, 0  ;;  %1444 = vrot.lane.b32.xlu2 %v1440_v38, %s2012_s22  ;;  %v1366_v40 = vld [vmem:[#allocation2] sm:$0xf] }
 0x438   : > { %1430 = vrot.lane.b32.xlu1 %v1426_v39, %s2013_s23  ;;  %v1368_v29 = vsel %vm2079_vm1, %v1366_v40, 0  ;;  %v1398_v41 = vld [vmem:[#allocation2] sm:$0xf]  ;;  %vm1573_vm1 = vcmask 130048  }
 0x439   : > { %1370 = vst.msk [vmem:[#allocation3] sm:$0xf] %vm386_vm6, %v1368_v29  ;;  %v1412_v32 = vld [vmem:[#allocation2] sm:$0xf]  ;;  %v1400_v43 = vsel %vm2152_vm9, %v1398_v41, 0 }
 0x43a   : > { %v1384_v50 = vld [vmem:[#allocation2] sm:$0xf] }
 0x43b   : > { %v1372_v51 = vld [vmem:[#allocation2] sm:$0xf]  ;;  %v1386_v0 = vsel %vm2172_vm14, %v1384_v50, 0 }
 0x43c   : > { %v1464_v53 = vld [vmem:[#allocation2] sm:$0xf] }
 0x43d   : > { %1416 = vrot.lane.b32.xlu0 %v1412_v32, %s2009_s19  ;;  %v1466_v1 = vsel %vm2230_vm10, %v1464_v53, 0 }
 0x43f   : > { %1404 = vrot.lane.b32.xlu2 %v1400_v43, %s2010_s20 }
 0x440   : > { %1458 = vrot.lane.b32.xlu1 %v1453_v42, %s2007_s17  ;;  %v1957_v30 = vld [vmem:[#allocation3] sm:$0xff] }
 0x445   : > { %1446 = vrot.lane.b32.xlu0 %v1441_v6, %s2012_s22 }
 0x447   : > { %1432 = vrot.lane.b32.xlu2 %v1427_v47, %s2013_s23 }
 0x448   : > { %1418 = vrot.lane.b32.xlu1 %v1413_v46, %s2009_s19 }
 0x44d   : > { %1376 = vrot.lane.b32.xlu0 %v1372_v51, %s2008_s18 }
 0x44f   : > { %1392 = vrot.lane.b32.xlu2 %v1387_v52, %s2011_s21 }
 0x450   : > { %1390 = vrot.lane.b32.xlu1 %v1386_v0, %s2011_s21 }
 0x455   : > { %1406 = vrot.lane.b32.xlu0 %v1401_v54, %s2010_s20 }
 0x457   : > { %1470 = vrot.lane.b32.xlu2 %v1466_v1, %s2014_s24 }
 0x458   : > { %1378 = vrot.lane.b32.xlu1 %v1373_v55, %s2008_s18 }
 0x45d   : > { %1472 = vrot.lane.b32.xlu0 %v1467_v57, %s2014_s24 }
 0x45f   : > { %1507 = vperm.xlu2 %1989, %v1499_v56  }
 0x460   : > { %1502 = vperm.xlu1 %1991, %v1498_v11  }
 0x491   : > { %v1445_v49 = vpop.permute.xlu2 %1444 }
 0x492   : > { %1450 = vst.msk [vmem:[#allocation3 + $0x30] sm:$0xf] %vm386_vm6, %v1445_v49 }
 0x499   : > { %v1405_v58 = vpop.permute.xlu2 %1404 }
 0x49a   : > { %1410 = vst.msk [vmem:[#allocation3 + $0x18] sm:$0xf] %vm386_vm6, %v1405_v58 }
 0x4a1   : > { %v1433_v59 = vpop.permute.xlu2 %1432 }
 0x4a2   : > { %1437 = vst.msk [vmem:[#allocation3 + $0x2c] sm:$0xf] %vm386_vm6, %v1433_v59 }
 0x4a7   : > { %v1457_v62 = vpop.permute.xlu0 %1456 }
 0x4a8   : > { %1462 = vst.msk [vmem:[#allocation3 + $0x38] sm:$0xf] %vm386_vm6, %v1457_v62 }
 0x4a9   : > { %v1393_v3 = vpop.permute.xlu2 %1392 }
 0x4aa   : > { %v1431_v2 = vpop.permute.xlu1 %1430  ;;  %1397 = vst.msk [vmem:[#allocation3 + $0x14] sm:$0xf] %vm386_vm6, %v1393_v3 }
 0x4ab   : > { %1436 = vst.msk [vmem:[#allocation3 + $0x28] sm:$0xf] %vm386_vm6, %v1431_v2 }
 0x4af   : > { %v1417_v27 = vpop.permute.xlu0 %1416 }
 0x4b0   : > { %1422 = vst.msk [vmem:[#allocation3 + $0x20] sm:$0xf] %vm386_vm6, %v1417_v27 }
 0x4b1   : > { %v1471_v60 = vpop.permute.xlu2 %1470 }
 0x4b2   : > { %v1459_v4 = vpop.permute.xlu1 %1458  ;;  %1476 = vst.msk [vmem:[#allocation3 + $0x40] sm:$0xf] %vm386_vm6, %v1471_v60  ;;  %v1962_v12 = vld [vmem:[#allocation3 + $0x28] sm:$0xff] }
 0x4b3   : > { %1463 = vst.msk [vmem:[#allocation3 + $0x3c] sm:$0xf] %vm386_vm6, %v1459_v4 }
 0x4b7   : > { %v1447_v63 = vpop.permute.xlu0 %1446 }
 0x4b8   : > { %1451 = vst.msk [vmem:[#allocation3 + $0x34] sm:$0xf] %vm386_vm6, %v1447_v63 }
 0x4b9   : > { %v1508_v39 = vpop.permute.xlu2 %1507 }
 0x4ba   : > { %v1419_v5 = vpop.permute.xlu1 %1418  ;;  %v1964_v7 = vld [vmem:[#allocation3 + $0x38] sm:$0xff] }
 0x4bb   : > { %1423 = vst.msk [vmem:[#allocation3 + $0x24] sm:$0xf] %vm386_vm6, %v1419_v5  ;;  %1577 = vmatpush.bf16.msrb.mxu1 %v1964_v7 }
 0x4bf   : > { %v1377_v8 = vpop.permute.xlu0 %1376  ;;  %v1963_v9 = vld [vmem:[#allocation3 + $0x30] sm:$0xff] }
 0x4c0   : > { %1382 = vst.msk [vmem:[#allocation3 + $0x8] sm:$0xf] %vm386_vm6, %v1377_v8  ;;  %1578 = vmatpush.bf16.msrb.mxu1 %v1963_v9 }
 0x4c2   : > { %v1391_v10 = vpop.permute.xlu1 %1390  ;;  %v1961_v14 = vld [vmem:[#allocation3 + $0x20] sm:$0xff] }
 0x4c3   : > { %1396 = vst.msk [vmem:[#allocation3 + $0x10] sm:$0xf] %vm386_vm6, %v1391_v10 }
 0x4c4   : > { %1579 = vmatpush.bf16.msrb.mxu1 %v1962_v12 }
 0x4c7   : > { %v1407_v13 = vpop.permute.xlu0 %1406 }
 0x4c8   : > { %1411 = vst.msk [vmem:[#allocation3 + $0x1c] sm:$0xf] %vm386_vm6, %v1407_v13  ;;  %1580 = vmatpush.bf16.msrb.mxu1 %v1961_v14 }
 0x4ca   : > { %v1379_v16 = vpop.permute.xlu1 %1378  ;;  %v1959_v19 = vld [vmem:[#allocation3 + $0x10] sm:$0xff] }
 0x4cb   : > { %1383 = vst.msk [vmem:[#allocation3 + $0xc] sm:$0xf] %vm386_vm6, %v1379_v16 }
 0x4cf   : > { %v1473_v17 = vpop.permute.xlu0 %1472  ;;  %v1960_v18 = vld [vmem:[#allocation3 + $0x18] sm:$0xff] }
 0x4d0   : > { %1477 = vst.msk [vmem:[#allocation3 + $0x44] sm:$0xf] %vm386_vm6, %v1473_v17  ;;  %1581 = vmatpush.bf16.msrb.mxu1 %v1960_v18 }
 0x4d2   : > { %v1958_v22 = vld [vmem:[#allocation3 + $0x8] sm:$0xff]  ;;  %v1503_v33 = vpop.permute.xlu1 %1502 }
 0x4d4   : > { %1582 = vmatpush.bf16.msrb.mxu1 %v1959_v19 }
 0x4d7   : > { %v1965_v23 = vld [vmem:[#allocation3 + $0x40] sm:$0xff] }
 0x4d8   : > { %1583 = vmatpush.bf16.msrb.mxu1 %v1958_v22  ;;  %1598 = vmatpush.bf16.msrb.mxu3 %v1965_v23 }
 0x4db   : > { %1907 = vmatmul.msk.bf16.vlgmr.msrb.gmra.mxu3 %vm1573_vm1, %v1870_v24 }
 0x4dc   : > { %1584 = vmatpush.bf16.msrb.mxu1 %v1957_v30 }
 0x4df   : > { %1585 = vmatmul.bf16.vlgmr.msrb.gmra.mxu1 %v1866_v31 }
 0x55c   : > { %v1586_v28 = vpop.f32.mrf.mxu1 }
 0x55d   : > { %v1587_v34 = vadd.f32 %v1586_v28, %v1503_v33 }
 0x55e   : > { %v1600_v35 = vpop.f32.mrf.mxu3 }
 0x55f   : > { %v1601_v36 = vadd.f32 %v1600_v35, %v1587_v34 }
 0x561   : > { %vm1605_vm5 = vcmp.ge.f32.partialorder %v1601_v36, 0.0  ;;  %v1607_v37 = vmul.f32 0.1, %v1601_v36 }
 0x563   : > { %v1609_v38 = vsel %vm1605_vm5, %v1601_v36, %v1607_v37 }
 0x564   : > { %v1588_v40 = vpop.f32.mrf.mxu1  ;;  %v1611_v29 = vpack.c.bf16 %v1609_v38, %v1609_v38 }
 0x565   : > { %v1589_v41 = vadd.f32 %v1588_v40, %v1508_v39 }
 0x566   : > { %v1602_v32 = vpop.f32.mrf.mxu3  ;;  %1613 = vst.msk [vmem:[%s325_s16] sm:$0xf] %vm386_vm6, %v1611_v29 }
 0x567   : > { %v1603_v42 = vadd.f32 %v1602_v32, %v1589_v41 }
 0x569   : > { %vm1606_vm9 = vcmp.ge.f32.partialorder %v1603_v42, 0.0  ;;  %v1608_v43 = vmul.f32 0.1, %v1603_v42 }
 0x56b   : > { %v1610_v44 = vsel %vm1606_vm9, %v1603_v42, %v1608_v43 }
 0x56c   : > { %v1612_v45 = vpack.c.bf16 %v1610_v44, %v1610_v44 }
 0x56e   : > { %1614 = vst.msk [vmem:[%s325_s16 + $0x4] sm:$0xf] %vm386_vm6, %v1612_v45 }
 0x56f PF: > { %s18_s27 = sadd.s32 1, %s1998_s27  }
 0x570   : > { %p15_p4 = scmp.ge.s32.totalorder %s18_s27, 4  }
 0x572   :  { %17 = sbr.rel (!%p15_p4) target bundleno = 1 (0x1), region = 85 }

// kernel: unet_forward.13
= control target key start
LH: loop header
LB: loop body
LE: loop exit
PB: predicated region body
PF: predicated region fallthrough
CT: control target
= control target key end

     0   :  { %s747_s12 = smov 0   ;;  %s912_s0 = inlined_call_operand.vmem [shape: bf16[2,8,256], index: 0, kind: input, shape index: {}]   ;;  %s913_s1 = inlined_call_operand.vmem [shape: bf16[2,72], index: 1, kind: input, shape index: {}]   ;;  %s914_s2 = inlined_call_operand.vmem [shape: f32[2,1], index: 2, kind: input, shape index: {}]   ;;  %s915_s3 = inlined_call_operand.vmem [shape: f32[2,2,256], index: 3, kind: output, shape index: {}]  }
   0x1 LB: > { %s624_s13 = sadd.s32 4294967295, %s710_s12   ;;  %p628_p0 = scmp.ge.s32.totalorder %s710_s12, 1  ;;  %s710_s12 = sphi %s747_s12, %s13_s12  }
   0x2   : > { %p137_p1 = scmp.lt.s32.totalorder %s710_s12, 3 }
   0x4   : > { %p138_p2 = pnand %p628_p0, %p137_p1 }
   0x5   : > { %p161_p3 = scmp.lt.s32.totalorder (!%p138_p2), %s624_s13, 1  ;;  %s713_s18 = smov (!%p138_p2), 17  }
   0x6   : > { %141 = sbr.rel (%p138_p2) target bundleno = 450 (0x1c2), region = 32  ;;  %s714_s19 = smov (!%p138_p2), 32  }
   0x7   : > { %s715_s20 = smov (!%p138_p2), 2   ;;  %s716_s21 = smov (!%p138_p2), 34  }
   0x8   : > { %s717_s22 = smov (!%p138_p2), 18   ;;  %s718_s23 = smov (!%p138_p2), 16  }
   0x9   : > { %s719_s24 = smov (!%p138_p2), 95   ;;  %s720_s25 = smov (!%p138_p2), 111  }
   0xa   : > { %s721_s26 = smov (!%p138_p2), 96   ;;  %s722_s27 = smov (!%p138_p2), 126  }
   0xb   : > { %v192_v0 = vlaneseq  ;;  %v712_v1 = vmov 0   ;;  %s941_s13 = smov (!%p161_p3, %s624_s13), 1  ;;  %vm176_vm6 = vcmask 273408   ;;  %vm186_vm7 = vcmask 1043592   ;;  %s723_s28 = smov 94  }
   0xc   : > { %175 = vst [vmem:[#allocation2] sm:$0xff] %v712_v1  ;;  %702 = vset.pattern.permute.xlu1 %v712_v1  ;;  %703 = vset.pattern.permute.xlu0 %v712_v1  ;;  %s669_s14 = sshll.u32 %s941_s13, 3  ;;  %vm187_vm8 = vcmask 1047556   ;;  %vm182_vm9 = vcmask 138240   ;;  %vm190_vm10 = vcmask 134144   ;;  %v778_v17 = vunpack.c.l.b16 %v712_v1  ;;  %s724_s29 = smov 110  }
   0xd   : > { %v193_v2 = vand.u32 127, %v192_v0  ;;  %s165_s17 = scalar_lea.vmem %s912_s0, %s669_s14  ;;  %177 = vst.msk [vmem:[#allocation2 + $0x8] sm:$0xf] %vm176_vm6, %v712_v1  ;;  %vm188_vm11 = vmor %vm187_vm8, %vm186_vm7  ;;  %v780_v18 = vunpack.c.h.b16 %v712_v1  ;;  %vm382_vm12 = vcmask 261120   ;;  %s725_s30 = smov 127  }
   0xe   : > { %v174_v5 = vld [vmem:[%s165_s17] sm:$0xff]  ;;  %s726_s4 = smov 112   ;;  %s670_s9 = sshll.u32 %s941_s13, 2 }
   0xf   : > { %v194_v3 = vadd.s32 128, %v193_v2  ;;  %v199_v4 = vand.u32 15, %v193_v2  ;;  %179 = vrot.lane.b32.xlu0 %v174_v5, %s713_s18  ;;  %s170_s14 = scalar_lea.vmem %s915_s3, %s670_s9 }
  0x11   : > { %v206_v6 = vand.u32 15, %v194_v3  ;;  %vm761_vm0 = vcmp.ge.s32.totalorder %v199_v4, 1  ;;  %vm221_vm1 = vcmp.lt.s32.totalorder %v199_v4, 15 }
  0x13   : > { %vm765_vm2 = vcmp.ge.s32.totalorder %v206_v6, 1  ;;  %vm222_vm3 = vcmp.lt.s32.totalorder %v206_v6, 15 }
  0x14   : > { %vm228_vm4 = vmpackc.low %vm765_vm2, %vm761_vm0 }
  0x15   : > { %v291_v9 = vsel %vm228_vm4, 65537, %v712_v1  ;;  %vm253_vm5 = vmpackc.low %vm222_vm3, %vm221_vm1 }
  0x16   : > { %379 = vrot.lane.b32.xlu1 %v291_v9, %s714_s19  ;;  %v254_v10 = vsel %vm253_vm5, 65537, %v712_v1  ;;  %vm433_vm5 = vcmask 277504  }
  0x17   : > { %255 = vrot.lane.b32.xlu2 %v254_v10, %s715_s20  ;;  %430 = vrot.lane.b32.xlu0 %v254_v10, %s716_s21 }
  0x1e   : > { %343 = vrot.lane.b32.xlu1 %v254_v10, %s717_s22 }
  0x1f   : > { %292 = vrot.lane.b32.xlu2 %v291_v9, %s718_s23 }
  0x71   : > { %v256_v13 = vpop.permute.xlu2 %255 }
  0x72   : > { %v257_v14 = vrot.slane %v256_v13, 4 }
  0x74   : > { %v267_v22 = vunpack.c.l.b16 %v257_v14  ;;  %v268_v23 = vunpack.c.h.b16 %v257_v14 }
  0x76   : > { %vm793_vm1 = vcmp.ne.s32.totalorder %v267_v22, %v778_v17  ;;  %vm798_vm3 = vcmp.ne.s32.totalorder %v268_v23, %v780_v18 }
  0x77   : > { %vm273_vm8 = vmpackc.low %vm798_vm3, %vm793_vm1  ;;  %vm295_vm3 = vcmask 130048  }
  0x79   : > { %v293_v57 = vpop.permute.xlu2 %292 }
  0x7a   : > { %v294_v63 = vrot.slane %v293_v57, 4 }
  0x7c   : > { %v296_v4 = vsel %vm295_vm3, %v294_v63, %v293_v57  ;;  %v304_v5 = vunpack.c.l.b16 %v294_v63  ;;  %v305_v6 = vunpack.c.h.b16 %v294_v63  ;;  %vm337_vm3 = vcmask 908288  }
  0x7d   : > { %v297_v7 = vunpack.c.l.b16 %v296_v4  ;;  %v298_v8 = vunpack.c.h.b16 %v296_v4 }
  0x81   : > { %v180_v11 = vpop.permute.xlu0 %179 }
  0x82   : > { %v181_v12 = vrot.slane %v180_v11, 4 }
  0x84   : > { %v183_v15 = vsel %vm182_vm9, %v181_v12, %v180_v11  ;;  %191 = vst.msk [vmem:[#allocation2 + $0x8] sm:$0xf] %vm190_vm10, %v181_v12  ;;  %vm258_vm10 = vcmask 15360  }
  0x85   : > { %189 = vst.msk [vmem:[#allocation2] sm:$0xff] %vm188_vm11, %v183_v15  ;;  %vm346_vm11 = vcmask 146432   ;;  %v259_v51 = vsel %vm258_vm10, %v257_v14, %v256_v13 }
  0x86   : > { %v260_v55 = vunpack.c.l.b16 %v259_v51  ;;  %v261_v56 = vunpack.c.h.b16 %v259_v51 }
  0x88   : > { %v380_v16 = vpop.permute.xlu1 %379  ;;  %vm860_vm1 = vcmp.ne.s32.totalorder %v261_v56, %v780_v18 }
  0x89   : > { %v381_v19 = vrot.slane %v380_v16, 4  ;;  %v431_v24 = vpop.permute.xlu0 %430 }
  0x8a   : > { %v432_v25 = vrot.slane %v431_v24, 4 }
  0x8b   : > { %v391_v20 = vunpack.c.l.b16 %v381_v19  ;;  %v392_v21 = vunpack.c.h.b16 %v381_v19  ;;  %v414_v27 = vld [vmem:[#allocation2 + $0x8] sm:$0xf]  ;;  %v383_v35 = vsel %vm382_vm12, %v381_v19, %v380_v16 }
  0x8c   : > { %v327_v28 = vld [vmem:[#allocation2 + $0x8] sm:$0xf]  ;;  %419 = vrot.lane.b32.xlu2 %v414_v27, %s719_s24  ;;  %v442_v32 = vunpack.c.l.b16 %v432_v25  ;;  %v443_v33 = vunpack.c.h.b16 %v432_v25  ;;  %v818_v39 = vld [vmem:[#allocation2] sm:$0xff]  ;;  %v434_v40 = vsel %vm433_vm5, %v432_v25, %v431_v24  ;;  %v384_v42 = vunpack.c.l.b16 %v383_v35 }
  0x8d   : > { %vm783_vm13 = vcmp.ne.s32.totalorder %v391_v20, %v778_v17  ;;  %vm396_vm14 = vcmp.ne.s32.totalorder %v392_v21, %v780_v18  ;;  %v378_v29 = vld [vmem:[#allocation2 + $0x8] sm:$0xf]  ;;  %332 = vrot.lane.b32.xlu1 %v327_v28, %s720_s25  ;;  %v385_v43 = vunpack.c.h.b16 %v383_v35  ;;  %v229_v46 = vsel %vm228_vm4, %v818_v39, 0 }
  0x8e   : > { %vm397_vm15 = vmpackc.low %vm396_vm14, %vm783_vm13  ;;  %vm805_vm6 = vcmp.ne.s32.totalorder %v442_v32, %v778_v17  ;;  %vm810_vm7 = vcmp.ne.s32.totalorder %v443_v33, %v780_v18  ;;  %v248_v41 = vld [vmem:[#allocation2 + $0x8] sm:$0xf]  ;;  %v435_v47 = vunpack.c.l.b16 %v434_v40  ;;  %v436_v48 = vunpack.c.h.b16 %v434_v40  ;;  %230 = vst [vmem:[#allocation3] sm:$0xff] %v229_v46 }
  0x8f   : > { %v399_v34 = vsel %vm397_vm15, %v378_v29, 0  ;;  %vm448_vm9 = vmpackc.low %vm810_vm7, %vm805_vm6  ;;  %v429_v45 = vld [vmem:[#allocation2 + $0x8] sm:$0xf]  ;;  %v275_v49 = vsel %vm273_vm8, %v248_v41, 0  ;;  %vm388_vm12 = vcmp.ne.s32.totalorder %v384_v42, %v778_v17  ;;  %vm389_vm13 = vcmp.ne.s32.totalorder %v385_v43, %v780_v18 }
  0x90   : > { %404 = vrot.lane.b32.xlu0 %v399_v34, %s721_s26  ;;  %v344_v38 = vpop.permute.xlu1 %343  ;;  %v450_v50 = vsel %vm448_vm9, %v429_v45, 0  ;;  %vm837_vm0 = vcmp.ne.s32.totalorder %v435_v47, %v778_v17  ;;  %vm842_vm2 = vcmp.ne.s32.totalorder %v436_v48, %v780_v18  ;;  %vm390_vm4 = vmpackc.low %vm389_vm13, %vm388_vm12  ;;  %vm855_vm15 = vcmp.ne.s32.totalorder %v260_v55, %v778_v17  ;;  %v342_v11 = vld [vmem:[#allocation2 + $0x8] sm:$0xf] }
  0x91   : > { %v345_v44 = vrot.slane %v344_v38, 4  ;;  %vm441_vm14 = vmpackc.low %vm842_vm2, %vm837_vm0  ;;  %v398_v60 = vsel %vm390_vm4, %v818_v39, 0  ;;  %vm308_vm12 = vcmp.ne.s32.totalorder %v304_v5, %v778_v17  ;;  %vm309_vm13 = vcmp.ne.s32.totalorder %v305_v6, %v780_v18  ;;  %v290_v13 = vld [vmem:[#allocation2 + $0x8] sm:$0xf] }
  0x92   : > { %v449_v2 = vsel %vm441_vm14, %v818_v39, 0  ;;  %vm266_vm7 = vmpackc.low %vm860_vm1, %vm855_vm15  ;;  %vm301_vm0 = vcmp.ne.s32.totalorder %v297_v7, %v778_v17  ;;  %vm302_vm2 = vcmp.ne.s32.totalorder %v298_v8, %v780_v18  ;;  %v232_v16 = vld [vmem:[#allocation2 + $0x8] sm:$0xf]  ;;  %vm241_vm15 = vcmask 1043456  }
  0x93   : > { %v347_v52 = vsel %vm346_vm11, %v345_v44, %v344_v38  ;;  %v355_v61 = vunpack.c.l.b16 %v345_v44  ;;  %v356_v62 = vunpack.c.h.b16 %v345_v44  ;;  %v274_v10 = vsel %vm266_vm7, %v818_v39, 0  ;;  %vm310_vm4 = vmpackc.low %vm309_vm13, %vm308_vm12 }
  0x94   : > { %280 = vrot.lane.b32.xlu2 %v275_v49, %s722_s27  ;;  %v348_v58 = vunpack.c.l.b16 %v347_v52  ;;  %v349_v59 = vunpack.c.h.b16 %v347_v52  ;;  %vm303_vm14 = vmpackc.low %vm302_vm2, %vm301_vm0  ;;  %v312_v14 = vsel %vm310_vm4, %v290_v13, 0  ;;  %vm409_vm1 = vcmask 785408  }
  0x95   : > { %455 = vrot.lane.b32.xlu1 %v450_v50, %s723_s28  ;;  %vm872_vm8 = vcmp.ne.s32.totalorder %v355_v61, %v778_v17  ;;  %vm360_vm9 = vcmp.ne.s32.totalorder %v356_v62, %v780_v18  ;;  %v311_v15 = vsel %vm303_vm14, %v818_v39, 0  ;;  %vm285_vm7 = vcmask 1031168   ;;  %v474_v61 = vld [vmem:[%s914_s2] sm:$0x3] }
  0x96   : > { %vm352_vm5 = vcmp.ne.s32.totalorder %v348_v58, %v778_v17  ;;  %vm353_vm6 = vcmp.ne.s32.totalorder %v349_v59, %v780_v18  ;;  %vm361_vm11 = vmpackc.low %vm360_vm9, %vm872_vm8  ;;  %vm373_vm8 = vcmask 900096   ;;  %vm322_vm9 = vcmask 916480  }
  0x97   : > { %vm354_vm10 = vmpackc.low %vm353_vm6, %vm352_vm5  ;;  %v363_v12 = vsel %vm361_vm11, %v342_v11, 0  ;;  %vm424_vm5 = vcmask 777216   ;;  %vm460_vm6 = vcmask 769024   ;;  %vm525_vm11 = vcmask 588800  }
  0x98   : > { %330 = vrot.lane.b32.xlu0 %v818_v39, %s720_s25  ;;  %v362_v9 = vsel %vm354_vm10, %v818_v39, 0  ;;  %vm243_vm10 = vcmask 1039360   ;;  %vm565_vm12 = vcmask 1041408  }
  0x9c   : > { %402 = vrot.lane.b32.xlu2 %v398_v60, %s721_s26 }
  0x9d   : > { %417 = vrot.lane.b32.xlu1 %v818_v39, %s719_s24 }
  0xa0   : > { %453 = vrot.lane.b32.xlu0 %v449_v2, %s723_s28 }
  0xa4   : > { %366 = vrot.lane.b32.xlu2 %v362_v9, %s724_s29 }
  0xa5   : > { %278 = vrot.lane.b32.xlu1 %v274_v10, %s722_s27 }
  0xa8   : > { %368 = vrot.lane.b32.xlu0 %v363_v12, %s724_s29 }
  0xac   : > { %235 = vrot.lane.b32.xlu2 %v818_v39, %s725_s30 }
  0xad   : > { %317 = vrot.lane.b32.xlu1 %v312_v14, %s726_s4 }
  0xb0   : > { %315 = vrot.lane.b32.xlu0 %v311_v15, %s726_s4 }
  0xb5   : > { %477 = vperm.xlu1 %702, %v474_v61  }
  0xb8   : > { %237 = vrot.lane.b32.xlu0 %v232_v16, %s725_s30 }
  0xe6   : > { %v420_v19 = vpop.permute.xlu2 %419 }
  0xe7   : > { %v422_v33 = vrot.slane %v420_v19, 4 }
  0xee   : > { %v281_v20 = vpop.permute.xlu2 %280 }
  0xef   : > { %v283_v45 = vrot.slane %v281_v20, 4 }
  0xf6   : > { %v403_v21 = vpop.permute.xlu2 %402 }
  0xf7   : > { %v406_v22 = vrot.slane %v403_v21, 4 }
  0xfe   : > { %v367_v42 = vpop.permute.xlu2 %366 }
  0xff   : > { %v333_v17 = vpop.permute.xlu1 %332  ;;  %v370_v50 = vrot.slane %v367_v42, 4 }
 0x100   : > { %v335_v28 = vrot.slane %v333_v17, 4 }
 0x102   : > { %v405_v18 = vpop.permute.xlu0 %404 }
 0x103   : > { %v407_v23 = vrot.slane %v405_v18, 4 }
 0x105   : > { %v408_v24 = vsel %vm241_vm15, %v406_v22, %v407_v23 }
 0x106   : > { %v410_v25 = vsel %vm409_vm1, %v403_v21, %v408_v24  ;;  %v236_v14 = vpop.permute.xlu2 %235 }
 0x107   : > { %412 = vst [vmem:[#allocation3 + $0x30] sm:$0xff] %v410_v25  ;;  %v456_v26 = vpop.permute.xlu1 %455  ;;  %v239_v16 = vrot.slane %v236_v14, 4 }
 0x108   : > { %v458_v36 = vrot.slane %v456_v26, 4  ;;  %v635_v26 = vld [vmem:[#allocation3] sm:$0xf] }
 0x10a   : > { %v331_v27 = vpop.permute.xlu0 %330 }
 0x10b   : > { %v334_v29 = vrot.slane %v331_v27, 4 }
 0x10d   : > { %v336_v30 = vsel %vm241_vm15, %v334_v29, %v335_v28  ;;  %v671_v28 = vld [vmem:[#allocation3 + $0x4] sm:$0xf] }
 0x10e   : > { %v338_v31 = vsel %vm337_vm3, %v331_v27, %v336_v30  ;;  %v659_v52 = vld [vmem:[#allocation3 + $0x30] sm:$0xf]  ;;  %v677_v57 = vld [vmem:[#allocation3 + $0x34] sm:$0xf] }
 0x10f   : > { %340 = vst [vmem:[#allocation3 + $0x20] sm:$0xff] %v338_v31  ;;  %v418_v32 = vpop.permute.xlu1 %417 }
 0x110   : > { %v421_v34 = vrot.slane %v418_v32, 4 }
 0x112   : > { %v454_v35 = vpop.permute.xlu0 %453  ;;  %v423_v37 = vsel %vm241_vm15, %v421_v34, %v422_v33 }
 0x113   : > { %v457_v38 = vrot.slane %v454_v35, 4  ;;  %v425_v39 = vsel %vm424_vm5, %v418_v32, %v423_v37  ;;  %v464_v32 = vld [vmem:[%s913_s1] sm:$0x1] }
 0x114   : > { %427 = vst [vmem:[#allocation3 + $0x38] sm:$0xff] %v425_v39 }
 0x115   : > { %v459_v40 = vsel %vm241_vm15, %v457_v38, %v458_v36 }
 0x116   : > { %v461_v41 = vsel %vm460_vm6, %v454_v35, %v459_v40  ;;  %v651_v7 = vld [vmem:[#allocation3 + $0x20] sm:$0xf]  ;;  %v675_v10 = vld [vmem:[#allocation3 + $0x24] sm:$0xf] }
 0x117   : > { %v505_v43 = vunpack.c.l.b16 %v461_v41  ;;  %v506_v44 = vunpack.c.h.b16 %v461_v41  ;;  %v279_v46 = vpop.permute.xlu1 %278 }
 0x118   : > { %v282_v47 = vrot.slane %v279_v46, 4 }
 0x119   : > { %v515_v48 = vpack.c.b16 %v505_v43, %v505_v43  ;;  %v516_v49 = vpack.c.b16 %v506_v44, %v506_v44 }
 0x11a   : > { %v369_v51 = vpop.permute.xlu0 %368  ;;  %v284_v53 = vsel %vm241_vm15, %v282_v47, %v283_v45 }
 0x11b   : > { %v371_v54 = vrot.slane %v369_v51, 4  ;;  %v531_v55 = vsel %vm241_vm15, %v515_v48, 0  ;;  %v534_v56 = vsel %vm241_vm15, %v516_v49, 0  ;;  %v286_v58 = vsel %vm285_vm7, %v279_v46, %v284_v53  ;;  %v678_v59 = vld [vmem:[#allocation3 + $0x34] sm:$0xf0] }
 0x11c   : > { %539 = vmatpush.bf16.msra.mxu0 %v531_v55  ;;  %552 = vmatpush.bf16.msra.mxu1 %v534_v56  ;;  %v661_v60 = vld [vmem:[#allocation3 + $0x38] sm:$0xf0]  ;;  %288 = vst [vmem:[#allocation3 + $0x10] sm:$0xff] %v286_v58  ;;  %v660_v63 = vor.u32 %v678_v59, %v659_v52 }
 0x11d   : > { %v372_v62 = vsel %vm241_vm15, %v370_v50, %v371_v54  ;;  %v664_v0 = vor.u32 %v677_v57, %v661_v60 }
 0x11e   : > { %v374_v1 = vsel %vm373_vm8, %v367_v42, %v372_v62 }
 0x11f   : > { %376 = vst [vmem:[#allocation3 + $0x28] sm:$0xff] %v374_v1  ;;  %v318_v2 = vpop.permute.xlu1 %317 }
 0x120   : > { %540 = vmatpush.bf16.msra.mxu0 %v660_v63  ;;  %553 = vmatpush.bf16.msra.mxu1 %v664_v0  ;;  %v320_v3 = vrot.slane %v318_v2, 4 }
 0x122   : > { %v316_v4 = vpop.permute.xlu0 %315 }
 0x123   : > { %v319_v5 = vrot.slane %v316_v4, 4  ;;  %v643_v21 = vld [vmem:[#allocation3 + $0x10] sm:$0xf]  ;;  %v673_v22 = vld [vmem:[#allocation3 + $0x14] sm:$0xf] }
 0x125   : > { %v321_v6 = vsel %vm241_vm15, %v319_v5, %v320_v3 }
 0x126   : > { %v323_v8 = vsel %vm322_vm9, %v316_v4, %v321_v6  ;;  %v676_v9 = vld [vmem:[#allocation3 + $0x24] sm:$0xf0]  ;;  %v653_v11 = vld [vmem:[#allocation3 + $0x28] sm:$0xf0] }
 0x127   : > { %325 = vst [vmem:[#allocation3 + $0x18] sm:$0xff] %v323_v8  ;;  %v652_v12 = vor.u32 %v676_v9, %v651_v7  ;;  %v656_v13 = vor.u32 %v675_v10, %v653_v11  ;;  %v478_v33 = vpop.permute.xlu1 %477 }
 0x129   : > { %541 = vmatpush.bf16.msra.mxu0 %v652_v12  ;;  %554 = vmatpush.bf16.msra.mxu1 %v656_v13 }
 0x12a   : > { %v238_v15 = vpop.permute.xlu0 %237 }
 0x12b   : > { %v240_v19 = vrot.slane %v238_v15, 4 }
 0x12d   : > { %v242_v20 = vsel %vm241_vm15, %v239_v16, %v240_v19 }
 0x12e   : > { %v244_v17 = vsel %vm243_vm10, %v236_v14, %v242_v20  ;;  %v674_v18 = vld [vmem:[#allocation3 + $0x14] sm:$0xf0]  ;;  %v645_v23 = vld [vmem:[#allocation3 + $0x18] sm:$0xf0] }
 0x12f   : > { %246 = vst [vmem:[#allocation3 + $0x8] sm:$0xff] %v244_v17  ;;  %v644_v24 = vor.u32 %v674_v18, %v643_v21  ;;  %v648_v25 = vor.u32 %v673_v22, %v645_v23 }
 0x131   : > { %542 = vmatpush.bf16.msra.mxu0 %v644_v24  ;;  %555 = vmatpush.bf16.msra.mxu1 %v648_v25 }
 0x136   : > { %v672_v27 = vld [vmem:[#allocation3 + $0x4] sm:$0xf0]  ;;  %v637_v29 = vld [vmem:[#allocation3 + $0x8] sm:$0xf0] }
 0x137   : > { %v636_v30 = vor.u32 %v672_v27, %v635_v26  ;;  %v640_v31 = vor.u32 %v671_v28, %v637_v29 }
 0x139   : > { %543 = vmatpush.bf16.msra.mxu0 %v636_v30  ;;  %556 = vmatpush.bf16.msra.mxu1 %v640_v31 }
 0x13c   : > { %665 = vmatmul.msk.bf16.vlgmr.msra.gmra.mxu0 %vm525_vm11, %v464_v32  ;;  %666 = vmatmul.msk.bf16.vlgmr.msra.gmra.mxu1 %vm525_vm11, %v464_v32 }
 0x1b9   : > { %v545_v34 = vpop.f32.mrf.mxu0  ;;  %v558_v35 = vpop.f32.mrf.mxu1 }
 0x1ba   : > { %v559_v36 = vadd.f32 %v558_v35, %v478_v33  ;;  %v546_v37 = vadd.f32 %v545_v34, %v478_v33 }
 0x1bc   : > { %v564_v38 = vrot.slane %v559_v36, 6 }
 0x1be   : > { %v566_v39 = vsel %vm565_vm12, %v546_v37, %v564_v38 }
 0x1bf   : > { %568 = vst [vmem:[%s170_s14] sm:$0xf] %v566_v39 }
 0x1c1   : > { %v547_v40 = vpop.f32.mrf.mxu0  ;;  %v560_v41 = vpop.f32.mrf.mxu1 }
 0x1c2 PF: > { %s13_s12 = sadd.s32 1, %s710_s12  }
 0x1c3   : > { %p10_p4 = scmp.ge.s32.totalorder %s13_s12, 4  }
 0x1c5   :  { %12 = sbr.rel (!%p10_p4) target bundleno = 1 (0x1), region = 62 }

// kernel: unet_forward.12
= control target key start
LH: loop header
LB: loop body
LE: loop exit
PB: predicated region body
PF: predicated region fallthrough
CT: control target
= control target key end

     0   :  { %s2033_s27 = smov 0   ;;  %s2578_s0 = inlined_call_operand.vmem [shape: bf16[2,16,256], index: 0, kind: input, shape index: {}]   ;;  %s2579_s1 = inlined_call_operand.vmem [shape: bf16[2,8,256], index: 1, kind: input, shape index: {}]   ;;  %s2580_s2 = inlined_call_operand.vmem [shape: bf16[8,144], index: 2, kind: input, shape index: {}]   ;;  %s2581_s3 = inlined_call_operand.vmem [shape: f32[8,1], index: 3, kind: input, shape index: {}]   ;;  %s2582_s4 = inlined_call_operand.vmem [shape: bf16[8,144], index: 4, kind: input, shape index: {}]   ;;  %s2583_s5 = inlined_call_operand.vmem [shape: f32[8,1], index: 5, kind: input, shape index: {}]   ;;  %s2584_s6 = inlined_call_operand.vmem [shape: bf16[8,72], index: 6, kind: input, shape index: {}]   ;;  %s2585_s7 = inlined_call_operand.vmem [shape: f32[8,1], index: 7, kind: input, shape index: {}]   ;;  %s2586_s8 = inlined_call_operand.vmem [shape: bf16[2,8,256], index: 8, kind: output, shape index: {}]  }
   0x1 LB: > { %s1699_s28 = sadd.s32 4294967295, %s1971_s27   ;;  %p1703_p0 = scmp.ge.s32.totalorder %s1971_s27, 1  ;;  %s1971_s27 = sphi %s2033_s27, %s18_s27  }
   0x2   : > { %p272_p1 = scmp.lt.s32.totalorder %s1971_s27, 3 }
   0x4   : > { %p273_p2 = pnand %p1703_p0, %p272_p1 }
   0x5   : > { %p311_p3 = scmp.lt.s32.totalorder (!%p273_p2), %s1699_s28, 1  ;;  %s1974_s11 = smov (!%p273_p2), 17  }
   0x6   : > { %276 = sbr.rel (%p273_p2) target bundleno = 1413 (0x585), region = 52  ;;  %s1975_s12 = smov (!%p273_p2), 32  }
   0x7   : > { %s1976_s13 = smov (!%p273_p2), 16   ;;  %s1977_s14 = smov (!%p273_p2), 18  }
   0x8   : > { %s1978_s15 = smov (!%p273_p2), 2   ;;  %s1979_s16 = smov (!%p273_p2), 34  }
   0x9   : > { %s1980_s17 = smov (!%p273_p2), 95   ;;  %s1981_s18 = smov (!%p273_p2), 111  }
   0xa   : > { %s1982_s19 = smov (!%p273_p2), 96   ;;  %s1983_s20 = smov (!%p273_p2), 112  }
   0xb   : > { %v359_v0 = vlaneseq  ;;  %v1973_v1 = vmov 0   ;;  %s2665_s28 = smov (!%p311_p3, %s1699_s28), 1  ;;  %vm2587_vm6 = vcmask 273408   ;;  %vm351_vm7 = vcmask 1043592   ;;  %s1984_s21 = smov 110   ;;  %v1536_v60 = vld [vmem:[%s2585_s7] sm:$0xff] }
   0xc   : > { %331 = vst [vmem:[#allocation2] sm:$0xff] %v1973_v1  ;;  %1964 = vset.pattern.permute.xlu0 %v1973_v1  ;;  %s1894_s29 = sshll.u32 %s2665_s28, 4  ;;  %vm352_vm8 = vcmask 1047556   ;;  %vm2589_vm9 = vcmask 138240   ;;  %vm2588_vm10 = vcmask 134144   ;;  %v2095_v30 = vunpack.c.l.b16 %v1973_v1  ;;  %s1985_s22 = smov 127  }
   0xd   : > { %v360_v2 = vand.u32 127, %v359_v0  ;;  %334 = vst [vmem:[#allocation2 + $0xc] sm:$0xff] %v1973_v1  ;;  %s315_s10 = scalar_lea.vmem %s2578_s0, %s1894_s29  ;;  %vm2064_vm11 = vmor %vm352_vm8, %vm351_vm7  ;;  %v2100_v33 = vunpack.c.h.b16 %v1973_v1  ;;  %s1986_s23 = smov 126  }
   0xe   : > { %v329_v5 = vld [vmem:[%s315_s10] sm:$0xff]  ;;  %v330_v9 = vld [vmem:[%s315_s10 + $0x8] sm:$0xff]  ;;  %333 = vst.msk [vmem:[#allocation2 + $0x8] sm:$0xf] %vm2587_vm6, %v1973_v1  ;;  %s1987_s24 = smov 94   ;;  %s1895_s9 = sshll.u32 %s2665_s28, 3 }
   0xf   : > { %v361_v3 = vadd.s32 128, %v360_v2  ;;  %v366_v4 = vand.u32 15, %v360_v2  ;;  %338 = vrot.lane.b32.xlu0 %v329_v5, %s1974_s11  ;;  %335 = vst.msk [vmem:[#allocation2 + $0x14] sm:$0xf] %vm2587_vm6, %v1973_v1 }
  0x11   : > { %v373_v6 = vand.u32 15, %v361_v3  ;;  %vm386_vm0 = vcmp.ge.s32.totalorder %v366_v4, 1  ;;  %vm388_vm3 = vcmp.lt.s32.totalorder %v366_v4, 15 }
  0x13   : > { %vm387_vm1 = vcmp.ge.s32.totalorder %v373_v6, 1  ;;  %vm389_vm4 = vcmp.lt.s32.totalorder %v373_v6, 15 }
  0x14   : > { %vm2051_vm2 = vmpackc.low %vm387_vm1, %vm386_vm0 }
  0x15   : > { %v493_v8 = vsel %vm2051_vm2, 65537, %v1973_v1  ;;  %vm439_vm5 = vmpackc.low %vm389_vm4, %vm388_vm3  ;;  %vm630_vm3 = vcmask 261120  }
  0x16   : > { %627 = vrot.lane.b32.xlu1 %v493_v8, %s1975_s12  ;;  %494 = vrot.lane.b32.xlu2 %v493_v8, %s1976_s13  ;;  %v440_v10 = vsel %vm439_vm5, 65537, %v1973_v1  ;;  %s320_s13 = scalar_lea.vmem %s2579_s1, %s1895_s9 }
  0x17   : > { %340 = vrot.lane.b32.xlu0 %v330_v9, %s1974_s11 }
  0x1e   : > { %575 = vrot.lane.b32.xlu1 %v440_v10, %s1977_s14  ;;  %441 = vrot.lane.b32.xlu2 %v440_v10, %s1978_s15 }
  0x1f   : > { %708 = vrot.lane.b32.xlu0 %v440_v10, %s1979_s16 }
  0x70   : > { %v2117_v41 = vpop.permute.xlu2 %494 }
  0x71   : > { %v2124_v43 = vrot.slane %v2117_v41, 4 }
  0x73   : > { %v506_v50 = vunpack.c.l.b16 %v2124_v43  ;;  %v507_v51 = vunpack.c.h.b16 %v2124_v43 }
  0x75   : > { %vm510_vm7 = vcmp.ne.s32.totalorder %v506_v50, %v2095_v30  ;;  %vm511_vm8 = vcmp.ne.s32.totalorder %v507_v51, %v2100_v33 }
  0x78   : > { %v442_v2 = vpop.permute.xlu2 %441 }
  0x79   : > { %v443_v5 = vrot.slane %v442_v2, 4 }
  0x7b   : > { %v453_v8 = vunpack.c.l.b16 %v443_v5  ;;  %v454_v9 = vunpack.c.h.b16 %v443_v5 }
  0x81   : > { %v339_v11 = vpop.permute.xlu0 %338 }
  0x82   : > { %v342_v13 = vrot.slane %v339_v11, 4 }
  0x84   : > { %v345_v14 = vsel %vm2589_vm9, %v342_v13, %v339_v11  ;;  %356 = vst.msk [vmem:[#allocation2 + $0x8] sm:$0xf] %vm2588_vm10, %v342_v13 }
  0x85   : > { %354 = vst.msk [vmem:[#allocation2] sm:$0xff] %vm2064_vm11, %v345_v14 }
  0x88   : > { %v628_v15 = vpop.permute.xlu1 %627 }
  0x89   : > { %v341_v16 = vpop.permute.xlu0 %340  ;;  %v629_v21 = vrot.slane %v628_v15, 4 }
  0x8a   : > { %v343_v17 = vrot.slane %v341_v16, 4 }
  0x8b   : > { %v676_v18 = vld [vmem:[#allocation2 + $0x8] sm:$0xf]  ;;  %v639_v31 = vunpack.c.l.b16 %v629_v21  ;;  %v640_v34 = vunpack.c.h.b16 %v629_v21  ;;  %v631_v55 = vsel %vm630_vm3, %v629_v21, %v628_v15 }
  0x8c   : > { %v346_v19 = vsel %vm2589_vm9, %v343_v17, %v341_v16  ;;  %358 = vst.msk [vmem:[#allocation2 + $0x14] sm:$0xf] %vm2588_vm10, %v343_v17  ;;  %685 = vrot.lane.b32.xlu2 %v676_v18, %s1980_s17  ;;  %v2075_v20 = vld [vmem:[#allocation2] sm:$0xff]  ;;  %v543_v22 = vld [vmem:[#allocation2 + $0x8] sm:$0xf]  ;;  %v632_v57 = vunpack.c.l.b16 %v631_v55  ;;  %v633_v58 = vunpack.c.h.b16 %v631_v55  ;;  %vm444_vm10 = vcmask 15360  }
  0x8d   : > { %357 = vst.msk [vmem:[#allocation2 + $0xc] sm:$0xff] %vm2064_vm11, %v346_v19  ;;  %v624_v23 = vld [vmem:[#allocation2 + $0x8] sm:$0xf]  ;;  %v397_v29 = vsel %vm2051_vm2, %v2075_v20, 0  ;;  %vm643_vm12 = vcmp.ne.s32.totalorder %v639_v31, %v2095_v30  ;;  %vm644_vm13 = vcmp.ne.s32.totalorder %v640_v34, %v2100_v33  ;;  %vm2591_vm9 = vcmask 785408  }
  0x8e   : > { %v2079_v24 = vld [vmem:[#allocation2 + $0x8] sm:$0xf]  ;;  %399 = vst [vmem:[#allocation3] sm:$0xff] %v397_v29  ;;  %vm2130_vm1 = vmpackc.low %vm644_vm13, %vm643_vm12 }
  0x8f   : > { %v2081_v25 = vld [vmem:[#allocation2 + $0x8] sm:$0xf]  ;;  %933 = vst [vmem:[#allocation2] sm:$0xff] %v1973_v1  ;;  %v647_v54 = vsel %vm2130_vm1, %v624_v23, 0  ;;  %vm2154_vm13 = vmpackc.low %vm511_vm8, %vm510_vm7  ;;  %vm457_vm7 = vcmp.ne.s32.totalorder %v453_v8, %v2095_v30  ;;  %vm458_vm8 = vcmp.ne.s32.totalorder %v454_v9, %v2100_v33 }
  0x90   : > { %v2083_v26 = vld [vmem:[#allocation2 + $0x8] sm:$0xf]  ;;  %v2106_v36 = vpop.permute.xlu1 %575 }
  0x91   : > { %v2085_v27 = vld [vmem:[#allocation2 + $0x8] sm:$0xf]  ;;  %v2097_v32 = vpop.permute.xlu0 %708  ;;  %v577_v42 = vrot.slane %v2106_v36, 4  ;;  %v514_v13 = vsel %vm2154_vm13, %v2083_v26, 0 }
  0x92   : > { %v2087_v28 = vld [vmem:[#allocation2 + $0x8] sm:$0xf]  ;;  %v2103_v35 = vrot.slane %v2097_v32, 4 }
  0x93   : > { %934 = vst.msk [vmem:[#allocation2 + $0x8] sm:$0xf] %vm2587_vm6, %v1973_v1  ;;  %v678_v37 = vld [vmem:[#allocation2 + $0x14] sm:$0xf]  ;;  %v587_v48 = vunpack.c.l.b16 %v577_v42  ;;  %v588_v49 = vunpack.c.h.b16 %v577_v42 }
  0x94   : > { %v720_v38 = vunpack.c.l.b16 %v2103_v35  ;;  %v721_v39 = vunpack.c.h.b16 %v2103_v35  ;;  %552 = vrot.lane.b32.xlu2 %v543_v22, %s1981_s18  ;;  %689 = vrot.lane.b32.xlu1 %v678_v37, %s1980_s17  ;;  %v2112_v40 = vld [vmem:[#allocation2 + $0xc] sm:$0xff]  ;;  %v626_v45 = vld [vmem:[#allocation2 + $0x14] sm:$0xf] }
  0x95   : > { %687 = vrot.lane.b32.xlu0 %v2112_v40, %s1980_s17  ;;  %v398_v47 = vsel %vm2051_vm2, %v2112_v40, 0  ;;  %v649_v52 = vsel %vm2130_vm1, %v626_v45, 0  ;;  %v545_v53 = vld [vmem:[#allocation2 + $0x14] sm:$0xf]  ;;  %vm591_vm4 = vcmp.ne.s32.totalorder %v587_v48, %v2095_v30  ;;  %vm592_vm5 = vcmp.ne.s32.totalorder %v588_v49, %v2100_v33 }
  0x96   : > { %vm724_vm14 = vcmp.ne.s32.totalorder %v720_v38, %v2095_v30  ;;  %vm725_vm15 = vcmp.ne.s32.totalorder %v721_v39, %v2100_v33  ;;  %400 = vst [vmem:[#allocation3 + $0x8] sm:$0xff] %v398_v47  ;;  %v492_v56 = vld [vmem:[#allocation2 + $0x14] sm:$0xf]  ;;  %vm2150_vm12 = vmpackc.low %vm592_vm5, %vm591_vm4  ;;  %vm578_vm4 = vcmask 146432   ;;  %vm2590_vm5 = vcmask 130048  }
  0x97   : > { %vm2126_vm0 = vmpackc.low %vm725_vm15, %vm724_vm14  ;;  %v574_v59 = vld [vmem:[#allocation2 + $0x14] sm:$0xf]  ;;  %v516_v62 = vsel %vm2154_vm13, %v492_v56, 0  ;;  %vm636_vm14 = vcmp.ne.s32.totalorder %v632_v57, %v2095_v30  ;;  %vm637_vm15 = vcmp.ne.s32.totalorder %v633_v58, %v2100_v33  ;;  %v595_v3 = vsel %vm2150_vm12, %v2079_v24, 0 }
  0x98   : > { %v597_v63 = vsel %vm2150_vm12, %v574_v59, 0  ;;  %vm2168_vm3 = vmpackc.low %vm637_vm15, %vm636_vm14  ;;  %v579_v6 = vsel %vm578_vm4, %v577_v42, %v2106_v36  ;;  %v498_v14 = vsel %vm2590_vm5, %v2124_v43, %v2117_v41  ;;  %v434_v19 = vld [vmem:[#allocation2 + $0x14] sm:$0xf]  ;;  %v445_v24 = vsel %vm444_vm10, %v443_v5, %v442_v2 }
  0x99   : > { %v646_v4 = vsel %vm2168_vm3, %v2075_v20, 0  ;;  %v580_v10 = vunpack.c.l.b16 %v579_v6  ;;  %v581_v11 = vunpack.c.h.b16 %v579_v6  ;;  %vm2198_vm4 = vmpackc.low %vm458_vm8, %vm457_vm7  ;;  %v499_v17 = vunpack.c.l.b16 %v498_v14 }
  0x9a   : > { %v500_v18 = vunpack.c.h.b16 %v498_v14  ;;  %v461_v21 = vsel %vm2198_vm4, %v2085_v27, 0  ;;  %v463_v23 = vsel %vm2198_vm4, %v434_v19, 0  ;;  %v446_v26 = vunpack.c.l.b16 %v445_v24 }
  0x9b   : > { %vm584_vm14 = vcmp.ne.s32.totalorder %v580_v10, %v2095_v30  ;;  %vm585_vm15 = vcmp.ne.s32.totalorder %v581_v11, %v2100_v33  ;;  %vm503_vm7 = vcmp.ne.s32.totalorder %v499_v17, %v2095_v30  ;;  %v447_v27 = vunpack.c.h.b16 %v445_v24 }
  0x9c   : > { %660 = vrot.lane.b32.xlu2 %v649_v52, %s1982_s19  ;;  %556 = vrot.lane.b32.xlu1 %v545_v53, %s1981_s18  ;;  %vm2202_vm6 = vmpackc.low %vm585_vm15, %vm584_vm14  ;;  %vm504_vm8 = vcmp.ne.s32.totalorder %v500_v18, %v2100_v33  ;;  %vm711_vm15 = vcmask 277504   ;;  %v648_v29 = vsel %vm2168_vm3, %v2112_v40, 0  ;;  %vm450_vm10 = vcmp.ne.s32.totalorder %v446_v26, %v2095_v30 }
  0x9d   : > { %656 = vrot.lane.b32.xlu0 %v647_v54, %s1982_s19  ;;  %v596_v22 = vsel %vm2202_vm6, %v2112_v40, 0  ;;  %vm2219_vm14 = vmpackc.low %vm504_vm8, %vm503_vm7  ;;  %v594_v34 = vsel %vm2202_vm6, %v2075_v20, 0  ;;  %vm451_vm7 = vcmp.ne.s32.totalorder %v447_v27, %v2100_v33  ;;  %v712_v36 = vsel %vm711_vm15, %v2103_v35, %v2097_v32 }
  0x9e   : > { %v513_v31 = vsel %vm2219_vm14, %v2075_v20, 0  ;;  %vm2239_vm8 = vmpackc.low %vm451_vm7, %vm450_vm10  ;;  %v713_v38 = vunpack.c.l.b16 %v712_v36  ;;  %v714_v39 = vunpack.c.h.b16 %v712_v36  ;;  %v515_v35 = vsel %vm2219_vm14, %v2112_v40, 0 }
  0x9f   : > { %v462_v41 = vsel %vm2239_vm8, %v2112_v40, 0  ;;  %v460_v42 = vsel %vm2239_vm8, %v2075_v20, 0  ;;  %vm2593_vm5 = vcmask 900096  }
  0xa0   : > { %vm717_vm15 = vcmp.ne.s32.totalorder %v713_v38, %v2095_v30  ;;  %vm718_vm10 = vcmp.ne.s32.totalorder %v714_v39, %v2100_v33  ;;  %v707_v30 = vld [vmem:[#allocation2 + $0x14] sm:$0xf] }
  0xa1   : > { %vm2255_vm7 = vmpackc.low %vm718_vm10, %vm717_vm15  ;;  %v404_v33 = vld [vmem:[#allocation2 + $0x14] sm:$0xf]  ;;  %v730_v45 = vsel %vm2126_vm0, %v707_v30, 0  ;;  %vm421_vm15 = vcmask 1043456   ;;  %vm2592_vm10 = vcmask 777216  }
  0xa2   : > { %v727_v43 = vsel %vm2255_vm7, %v2075_v20, 0  ;;  %v729_v47 = vsel %vm2255_vm7, %v2112_v40, 0 }
  0xa4   : > { %683 = vrot.lane.b32.xlu1 %v2075_v20, %s1980_s17  ;;  %527 = vrot.lane.b32.xlu2 %v516_v62, %s1983_s20 }
  0xa5   : > { %608 = vrot.lane.b32.xlu0 %v597_v63, %s1984_s21 }
  0xac   : > { %604 = vrot.lane.b32.xlu1 %v595_v3, %s1984_s21  ;;  %654 = vrot.lane.b32.xlu2 %v646_v4, %s1982_s19 }
  0xad   : > { %554 = vrot.lane.b32.xlu0 %v2112_v40, %s1981_s18 }
  0xb4   : > { %550 = vrot.lane.b32.xlu1 %v2075_v20, %s1981_s18  ;;  %411 = vrot.lane.b32.xlu2 %v2081_v25, %s1985_s22  ;;  %v2618_v25 = vmov 0 }
  0xb5   : > { %523 = vrot.lane.b32.xlu0 %v514_v13, %s1983_s20  ;;  %v2619_v25 = vsel %vm2219_vm14, 4294967295, %v2618_v25 }
  0xbc   : > { %470 = vrot.lane.b32.xlu1 %v461_v21, %s1986_s23  ;;  %606 = vrot.lane.b32.xlu2 %v596_v22, %s1984_s21 }
  0xbd   : > { %474 = vrot.lane.b32.xlu0 %v463_v23, %s1986_s23 }
  0xc4   : > { %658 = vrot.lane.b32.xlu1 %v648_v29, %s1982_s19  ;;  %521 = vrot.lane.b32.xlu2 %v513_v31, %s1983_s20 }
  0xc5   : > { %602 = vrot.lane.b32.xlu0 %v594_v34, %s1984_s21 }
  0xcc   : > { %409 = vrot.lane.b32.xlu1 %v2075_v20, %s1985_s22  ;;  %472 = vrot.lane.b32.xlu2 %v462_v41, %s1986_s23  ;;  %v728_v20 = vsel %vm2126_vm0, %v2087_v28, 0 }
  0xcd   : > { %468 = vrot.lane.b32.xlu0 %v460_v42, %s1986_s23 }
  0xd4   : > { %525 = vrot.lane.b32.xlu1 %v515_v35, %s1983_s20  ;;  %735 = vrot.lane.b32.xlu2 %v727_v43, %s1987_s24 }
  0xd5   : > { %413 = vrot.lane.b32.xlu0 %v2112_v40, %s1985_s22 }
  0xdc   : > { %415 = vrot.lane.b32.xlu1 %v404_v33, %s1985_s22  ;;  %741 = vrot.lane.b32.xlu2 %v730_v45, %s1987_s24 }
  0xdd   : > { %737 = vrot.lane.b32.xlu0 %v728_v20, %s1987_s24 }
  0xe4   : > { %739 = vrot.lane.b32.xlu1 %v729_v47, %s1987_s24 }
  0xe6   : > { %v686_v48 = vpop.permute.xlu2 %685 }
  0xe7   : > { %v692_v6 = vrot.slane %v686_v48, 4 }
  0xee   : > { %v553_v49 = vpop.permute.xlu2 %552 }
  0xef   : > { %v559_v42 = vrot.slane %v553_v49, 4 }
  0xf6   : > { %v2281_v50 = vpop.permute.xlu2 %660 }
  0xfe   : > { %v2283_v51 = vpop.permute.xlu2 %527 }
 0x106   : > { %v690_v52 = vpop.permute.xlu1 %689  ;;  %v655_v53 = vpop.permute.xlu2 %654 }
 0x107   : > { %v694_v54 = vrot.slane %v690_v52, 4  ;;  %v688_v55 = vpop.permute.xlu0 %687  ;;  %v662_v62 = vrot.slane %v655_v53, 4 }
 0x108   : > { %v693_v28 = vrot.slane %v688_v55, 4 }
 0x10a   : > { %v698_v56 = vsel %vm421_vm15, %v693_v28, %v694_v54 }
 0x10b   : > { %v699_v57 = vsel %vm2592_vm10, %v688_v55, %v698_v56 }
 0x10c   : > { %703 = vst [vmem:[#allocation3 + $0x78] sm:$0xff] %v699_v57 }
 0x10e   : > { %v557_v40 = vpop.permute.xlu1 %556  ;;  %v2287_v58 = vpop.permute.xlu2 %411 }
 0x10f   : > { %v657_v59 = vpop.permute.xlu0 %656  ;;  %v561_v22 = vrot.slane %v557_v40, 4  ;;  %v665_v40 = vrot.slane %v2281_v50, 4 }
 0x110   : > { %v663_v63 = vrot.slane %v657_v59, 4 }
 0x112   : > { %v666_v2 = vsel %vm421_vm15, %v662_v62, %v663_v63 }
 0x113   : > { %v668_v3 = vsel %vm2591_vm9, %v655_v53, %v666_v2  ;;  %vm2594_vm9 = vcmask 908288   ;;  %v1912_v24 = vld [vmem:[#allocation3 + $0x74] sm:$0xf0]  ;;  %v1770_v31 = vld [vmem:[#allocation3 + $0x78] sm:$0xf0] }
 0x114   : > { %673 = vst [vmem:[#allocation3 + $0x60] sm:$0xff] %v668_v3 }
 0x116   : > { %v684_v4 = vpop.permute.xlu1 %683  ;;  %v607_v5 = vpop.permute.xlu2 %606 }
 0x117   : > { %v691_v8 = vrot.slane %v684_v4, 4  ;;  %v612_v9 = vrot.slane %v607_v5, 4  ;;  %v609_v10 = vpop.permute.xlu0 %608 }
 0x118   : > { %v613_v11 = vrot.slane %v609_v10, 4 }
 0x119   : > { %v695_v13 = vsel %vm421_vm15, %v691_v8, %v692_v6 }
 0x11a   : > { %v697_v14 = vsel %vm2592_vm10, %v684_v4, %v695_v13  ;;  %v617_v17 = vsel %vm421_vm15, %v612_v9, %v613_v11  ;;  %vm2595_vm10 = vcmask 916480   ;;  %v418_v9 = vrot.slane %v2287_v58, 4 }
 0x11b   : > { %702 = vst [vmem:[#allocation3 + $0x70] sm:$0xff] %v697_v14  ;;  %v618_v18 = vsel %vm2593_vm5, %v607_v5, %v617_v17  ;;  %vm2596_vm5 = vcmask 1031168   ;;  %v1760_v17 = vld [vmem:[#allocation3 + $0x60] sm:$0xf] }
 0x11c   : > { %622 = vst [vmem:[#allocation3 + $0x58] sm:$0xff] %v618_v18 }
 0x11e   : > { %v605_v19 = vpop.permute.xlu1 %604  ;;  %v522_v34 = vpop.permute.xlu2 %521 }
 0x11f   : > { %v555_v21 = vpop.permute.xlu0 %554  ;;  %v529_v30 = vrot.slane %v522_v34, 4  ;;  %v611_v63 = vrot.slane %v605_v19, 4 }
 0x120   : > { %v560_v23 = vrot.slane %v555_v21, 4 }
 0x122   : > { %v565_v26 = vsel %vm421_vm15, %v560_v23, %v561_v22  ;;  %v1768_v27 = vld [vmem:[#allocation3 + $0x70] sm:$0xf]  ;;  %v1911_v29 = vld [vmem:[#allocation3 + $0x74] sm:$0xf]  ;;  %v1909_v22 = vld [vmem:[#allocation3 + $0x64] sm:$0xf] }
 0x123   : > { %v566_v36 = vsel %vm2594_vm9, %v555_v21, %v565_v26  ;;  %v1769_v38 = vor.u32 %v1912_v24, %v1768_v27  ;;  %v1773_v39 = vor.u32 %v1911_v29, %v1770_v31 }
 0x124   : > { %570 = vst [vmem:[#allocation3 + $0x48] sm:$0xff] %v566_v36  ;;  %v1754_v36 = vld [vmem:[#allocation3 + $0x58] sm:$0xf0] }
 0x125   : > { %881 = vmatpush.bf16.msra.mxu0 %v1769_v38  ;;  %907 = vmatpush.bf16.msra.mxu2 %v1773_v39  ;;  %v532_v38 = vrot.slane %v2283_v51, 4 }
 0x126   : > { %v551_v41 = vpop.permute.xlu1 %550  ;;  %v473_v52 = vpop.permute.xlu2 %472 }
 0x127   : > { %v558_v35 = vrot.slane %v551_v41, 4  ;;  %v524_v43 = vpop.permute.xlu0 %523  ;;  %v478_v55 = vrot.slane %v473_v52, 4 }
 0x128   : > { %v530_v33 = vrot.slane %v524_v43, 4 }
 0x129   : > { %v562_v45 = vsel %vm421_vm15, %v558_v35, %v559_v42 }
 0x12a   : > { %v564_v20 = vsel %vm2594_vm9, %v551_v41, %v562_v45  ;;  %v533_v47 = vsel %vm421_vm15, %v529_v30, %v530_v33  ;;  %vm2624_vm9 = vcmask 785408   ;;  %v775_v33 = vld [vmem:[%s2581_s3] sm:$0xff] }
 0x12b   : > { %569 = vst [vmem:[#allocation3 + $0x40] sm:$0xff] %v564_v20  ;;  %v535_v48 = vsel %vm2595_vm10, %v522_v34, %v533_v47  ;;  %vm2625_vm10 = vcmask 900096   ;;  %v1908_v34 = vld [vmem:[#allocation3 + $0x54] sm:$0xf0]  ;;  %778 = vperm.xlu0 %1964, %v775_v33  }
 0x12c   : > { %540 = vst [vmem:[#allocation3 + $0x30] sm:$0xff] %v535_v48  ;;  %v1906_v48 = vld [vmem:[#allocation3 + $0x44] sm:$0xf0] }
 0x12e   : > { %v471_v53 = vpop.permute.xlu1 %470  ;;  %v736_v20 = vpop.permute.xlu2 %735 }
 0x12f   : > { %v475_v54 = vpop.permute.xlu0 %474  ;;  %v477_v11 = vrot.slane %v471_v53, 4 }
 0x130   : > { %v479_v49 = vrot.slane %v475_v54, 4 }
 0x132   : > { %v483_v28 = vsel %vm421_vm15, %v478_v55, %v479_v49  ;;  %v1744_v43 = vld [vmem:[#allocation3 + $0x40] sm:$0xf]  ;;  %v1905_v30 = vld [vmem:[#allocation3 + $0x44] sm:$0xf] }
 0x133   : > { %v484_v56 = vsel %vm2596_vm5, %v473_v52, %v483_v28  ;;  %vm2597_vm5 = vcmask 1039360   ;;  %v1746_v52 = vld [vmem:[#allocation3 + $0x48] sm:$0xf0]  ;;  %v1745_v51 = vor.u32 %v1906_v48, %v1744_v43 }
 0x134   : > { %488 = vst [vmem:[#allocation3 + $0x28] sm:$0xff] %v484_v56  ;;  %v1749_v53 = vor.u32 %v1905_v30, %v1746_v52  ;;  %v743_v56 = vrot.slane %v736_v20, 4 }
 0x136   : > { %v659_v57 = vpop.permute.xlu1 %658 }
 0x137   : > { %v664_v59 = vrot.slane %v659_v57, 4  ;;  %v603_v62 = vpop.permute.xlu0 %602 }
 0x138   : > { %v610_v2 = vrot.slane %v603_v62, 4 }
 0x139   : > { %v669_v3 = vsel %vm421_vm15, %v664_v59, %v665_v40  ;;  %v1736_v59 = vld [vmem:[#allocation3 + $0x30] sm:$0xf] }
 0x13a   : > { %v670_v4 = vsel %vm2624_vm9, %v659_v57, %v669_v3  ;;  %v614_v5 = vsel %vm421_vm15, %v610_v2, %v611_v63  ;;  %vm2626_vm9 = vcmask 1031168   ;;  %v1903_v3 = vld [vmem:[#allocation3 + $0x34] sm:$0xf] }
 0x13b   : > { %674 = vst [vmem:[#allocation3 + $0x68] sm:$0xff] %v670_v4  ;;  %v616_v6 = vsel %vm2625_vm10, %v603_v62, %v614_v5  ;;  %vm2627_vm10 = vcmask 916480  }
 0x13c   : > { %621 = vst [vmem:[#allocation3 + $0x50] sm:$0xff] %v616_v6 }
 0x13e   : > { %v410_v8 = vpop.permute.xlu1 %409 }
 0x13f   : > { %v417_v10 = vrot.slane %v410_v8, 4  ;;  %v469_v50 = vpop.permute.xlu0 %468 }
 0x140   : > { %v476_v13 = vrot.slane %v469_v50, 4 }
 0x141   : > { %v422_v14 = vsel %vm421_vm15, %v417_v10, %v418_v9  ;;  %v742_v9 = vpop.permute.xlu2 %741 }
 0x142   : > { %v424_v18 = vsel %vm2597_vm5, %v410_v8, %v422_v14  ;;  %v480_v19 = vsel %vm421_vm15, %v476_v13, %v477_v11  ;;  %v1910_v21 = vld [vmem:[#allocation3 + $0x64] sm:$0xf0]  ;;  %v1762_v23 = vld [vmem:[#allocation3 + $0x68] sm:$0xf0] }
 0x143   : > { %429 = vst [vmem:[#allocation3 + $0x10] sm:$0xff] %v424_v18  ;;  %v482_v24 = vsel %vm2626_vm9, %v469_v50, %v480_v19  ;;  %v1761_v26 = vor.u32 %v1910_v21, %v1760_v17  ;;  %v1765_v58 = vor.u32 %v1909_v22, %v1762_v23  ;;  %v1752_v27 = vld [vmem:[#allocation3 + $0x50] sm:$0xf]  ;;  %v1907_v29 = vld [vmem:[#allocation3 + $0x54] sm:$0xf]  ;;  %vm2598_vm9 = vcmask 769024  }
 0x144   : > { %487 = vst [vmem:[#allocation3 + $0x20] sm:$0xff] %v482_v24  ;;  %v1753_v42 = vor.u32 %v1908_v34, %v1752_v27  ;;  %v1757_v35 = vor.u32 %v1907_v29, %v1754_v36  ;;  %v1902_v13 = vld [vmem:[#allocation3 + $0x24] sm:$0xf0]  ;;  %v1730_v14 = vld [vmem:[#allocation3 + $0x28] sm:$0xf0]  ;;  %v746_v17 = vrot.slane %v742_v9, 4 }
 0x145   : > { %882 = vmatpush.bf16.msra.mxu0 %v1761_v26  ;;  %908 = vmatpush.bf16.msra.mxu2 %v1765_v58  ;;  %v756_v24 = vld [vmem:[%s2580_s2] sm:$0xff] }
 0x146   : > { %v526_v31 = vpop.permute.xlu1 %525  ;;  %v1898_v36 = vld [vmem:[#allocation3 + $0x4] sm:$0xf0]  ;;  %v783_v30 = vunpack.c.h.b16 %v756_v24 }
 0x147   : > { %v531_v39 = vrot.slane %v526_v31, 4  ;;  %v414_v41 = vpop.permute.xlu0 %413 }
 0x148   : > { %v419_v55 = vrot.slane %v414_v41, 4 }
 0x149   : > { %v536_v45 = vsel %vm421_vm15, %v531_v39, %v532_v38  ;;  %883 = vmatpush.bf16.msra.mxu0 %v1753_v42  ;;  %909 = vmatpush.bf16.msra.mxu2 %v1757_v35  ;;  %v1714_v38 = vld [vmem:[#allocation3 + $0x8] sm:$0xf0]  ;;  %v782_v39 = vunpack.c.l.b16 %v756_v24  ;;  %v1897_v42 = vld [vmem:[#allocation3 + $0x4] sm:$0xf] }
 0x14a   : > { %v537_v47 = vsel %vm2627_vm10, %v526_v31, %v536_v45  ;;  %v1720_v23 = vld [vmem:[#allocation3 + $0x10] sm:$0xf]  ;;  %v1899_v27 = vld [vmem:[#allocation3 + $0x14] sm:$0xf]  ;;  %v1717_v43 = vor.u32 %v1897_v42, %v1714_v38  ;;  %vm2628_vm10 = vcmask 130048  }
 0x14b   : > { %541 = vst [vmem:[#allocation3 + $0x38] sm:$0xff] %v537_v47  ;;  %v1728_v10 = vld [vmem:[#allocation3 + $0x20] sm:$0xf]  ;;  %v1901_v50 = vld [vmem:[#allocation3 + $0x24] sm:$0xf]  ;;  %v784_v33 = vpack.c.b16 %v782_v39, %v782_v39 }
 0x14c   : > { %v1729_v19 = vor.u32 %v1902_v13, %v1728_v10  ;;  %v1733_v21 = vor.u32 %v1901_v50, %v1730_v14 }
 0x14d   : > { %884 = vmatpush.bf16.msra.mxu0 %v1745_v51  ;;  %910 = vmatpush.bf16.msra.mxu2 %v1749_v53  ;;  %v785_v53 = vpack.c.b16 %v783_v30, %v783_v30 }
 0x14e   : > { %v416_v54 = vpop.permute.xlu1 %415 }
 0x14f   : > { %v420_v49 = vrot.slane %v416_v54, 4  ;;  %v738_v28 = vpop.permute.xlu0 %737  ;;  %v1070_v54 = vld [vmem:[%s320_s13] sm:$0xff] }
 0x150   : > { %v744_v57 = vrot.slane %v738_v28, 4  ;;  %1074 = vrot.lane.b32.xlu2 %v1070_v54, %s1974_s11 }
 0x151   : > { %v425_v40 = vsel %vm421_vm15, %v419_v55, %v420_v49 }
 0x152   : > { %v426_v62 = vsel %vm2597_vm5, %v414_v41, %v425_v40  ;;  %v747_v63 = vsel %vm421_vm15, %v743_v56, %v744_v57  ;;  %v1904_v2 = vld [vmem:[#allocation3 + $0x34] sm:$0xf0]  ;;  %v1738_v4 = vld [vmem:[#allocation3 + $0x38] sm:$0xf0]  ;;  %v1712_v41 = vld [vmem:[#allocation3] sm:$0xf] }
 0x153   : > { %430 = vst [vmem:[#allocation3 + $0x18] sm:$0xff] %v426_v62  ;;  %v749_v5 = vsel %vm2598_vm9, %v736_v20, %v747_v63  ;;  %v1737_v6 = vor.u32 %v1904_v2, %v1736_v59  ;;  %v1741_v8 = vor.u32 %v1903_v3, %v1738_v4  ;;  %v1713_v35 = vor.u32 %v1898_v36, %v1712_v41  ;;  %vm2629_vm5 = vmmov %vm2628_vm10 }
 0x154   : > { %754 = vst [vmem:[#allocation3 + $0x80] sm:$0xff] %v749_v5 }
 0x155   : > { %885 = vmatpush.bf16.msra.mxu0 %v1737_v6  ;;  %911 = vmatpush.bf16.msra.mxu2 %v1741_v8 }
 0x156   : > { %v740_v11 = vpop.permute.xlu1 %739 }
 0x157   : > { %v745_v18 = vrot.slane %v740_v11, 4 }
 0x159   : > { %v750_v22 = vsel %vm421_vm15, %v745_v18, %v746_v17  ;;  %886 = vmatpush.bf16.msra.mxu0 %v1729_v19  ;;  %912 = vmatpush.bf16.msra.mxu2 %v1733_v21 }
 0x15a   : > { %v751_v26 = vsel %vm2598_vm9, %v740_v11, %v750_v22  ;;  %v1900_v58 = vld [vmem:[#allocation3 + $0x14] sm:$0xf0]  ;;  %v1722_v29 = vld [vmem:[#allocation3 + $0x18] sm:$0xf0]  ;;  %vm2633_vm9 = vcmask 134144  }
 0x15b   : > { %755 = vst [vmem:[#allocation3 + $0x88] sm:$0xff] %v751_v26  ;;  %v1721_v31 = vor.u32 %v1900_v58, %v1720_v23  ;;  %v1725_v34 = vor.u32 %v1899_v27, %v1722_v29  ;;  %v1776_v45 = vld [vmem:[#allocation3 + $0x80] sm:$0xf]  ;;  %v1913_v47 = vld [vmem:[#allocation3 + $0x84] sm:$0xf] }
 0x15d   : > { %887 = vmatpush.bf16.msra.mxu0 %v1721_v31  ;;  %913 = vmatpush.bf16.msra.mxu2 %v1725_v34 }
 0x161   : > { %888 = vmatpush.bf16.msra.mxu0 %v1713_v35  ;;  %914 = vmatpush.bf16.msra.mxu2 %v1717_v43 }
 0x162   : > { %v1914_v20 = vld [vmem:[#allocation3 + $0x84] sm:$0xf0]  ;;  %v1778_v48 = vld [vmem:[#allocation3 + $0x88] sm:$0xf0] }
 0x163   : > { %v1777_v52 = vor.u32 %v1914_v20, %v1776_v45  ;;  %v1781_v51 = vor.u32 %v1913_v47, %v1778_v48 }
 0x164   : > { %889 = vmatmul.bf16.vlgmr.msra.gmra.mxu0 %v784_v33  ;;  %915 = vmatmul.bf16.vlgmr.msra.gmra.mxu2 %v784_v33 }
 0x165   : > { %901 = vmatpush.bf16.msra.mxu1 %v1777_v52  ;;  %927 = vmatpush.bf16.msra.mxu3 %v1781_v51 }
 0x168   : > { %1782 = vmatmul.msk.bf16.vlgmr.msra.gmra.mxu1 %vm2628_vm10, %v785_v53  ;;  %1783 = vmatmul.msk.bf16.vlgmr.msra.gmra.mxu3 %vm2629_vm5, %v785_v53  ;;  %vm2630_vm5 = vcmask 138240   ;;  %vm2631_vm10 = vcmask 134144  }
 0x19d   : > { %v779_v49 = vpop.permute.xlu0 %778 }
 0x1aa   : > { %v1075_v50 = vpop.permute.xlu2 %1074 }
 0x1ab   : > { %v1076_v11 = vrot.slane %v1075_v50, 4 }
 0x1ad   : > { %v1077_v29 = vsel %vm2630_vm5, %v1076_v11, %v1075_v50 }
 0x1e1   : > { %v890_v55 = vpop.f32.mrf.mxu0 }
 0x1e2   : > { %v891_v56 = vadd.f32 %v890_v55, %v779_v49 }
 0x1e5   : > { %v903_v28 = vpop.f32.mrf.mxu1 }
 0x1e6   : > { %v904_v62 = vadd.f32 %v903_v28, %v891_v56 }
 0x1e7   : > { %v916_v57 = vpop.f32.mrf.mxu2 }
 0x1e8   : > { %v917_v40 = vadd.f32 %v916_v57, %v779_v49 }
 0x1e9   : > { %v892_v59 = vpop.f32.mrf.mxu0 }
 0x1eb   : > { %v929_v63 = vpop.f32.mrf.mxu3 }
 0x1ec   : > { %v930_v2 = vadd.f32 %v929_v63, %v917_v40  ;;  %v1226_v63 = vld [vmem:[%s2583_s5] sm:$0xff] }
 0x1ed   : > { %v905_v3 = vpop.f32.mrf.mxu1 }
 0x1ee   : > { %v935_v4 = vpack.c.bf16 %v930_v2, %v904_v62 }
 0x1ef   : > { %v918_v5 = vpop.f32.mrf.mxu2 }
 0x1f0   : > { %937 = vrot.lane.b32.xlu1 %v935_v4, %s1974_s11 }
 0x1f3   : > { %v931_v6 = vpop.f32.mrf.mxu3 }
 0x262   : > { %v938_v8 = vpop.permute.xlu1 %937 }
 0x263   : > { %v939_v9 = vrot.slane %v938_v8, 4 }
 0x265   : > { %v940_v10 = vsel %vm2630_vm5, %v939_v9, %v938_v8  ;;  %944 = vst.msk [vmem:[#allocation2 + $0x8] sm:$0xf] %vm2631_vm10, %v939_v9  ;;  %vm2632_vm10 = vcmask 273408   ;;  %vm2635_vm5 = vcmask 769024  }
 0x266   : > { %943 = vst.msk [vmem:[#allocation2] sm:$0xff] %vm2064_vm11, %v940_v10 }
 0x26c   : > { %v2342_v13 = vld [vmem:[#allocation2 + $0x8] sm:$0xf] }
 0x26d   : > { %v2344_v14 = vld [vmem:[#allocation2 + $0x8] sm:$0xf]  ;;  %v2348_v18 = vld [vmem:[#allocation2] sm:$0xff] }
 0x26e   : > { %v2346_v17 = vld [vmem:[#allocation2 + $0x8] sm:$0xf]  ;;  %v946_v22 = vsel %vm2051_vm2, %v2348_v18, 0  ;;  %1044 = vrot.lane.b32.xlu0 %v2348_v18, %s1980_s17  ;;  %v1056_v26 = vsel %vm2255_vm7, %v2348_v18, 0  ;;  %1071 = vst [vmem:[#allocation2] sm:$0xff] %v1973_v1  ;;  %v1026_v31 = vsel %vm2168_vm3, %v2348_v18, 0 }
 0x26f   : > { %v995_v19 = vld [vmem:[#allocation2 + $0x8] sm:$0xf]  ;;  %947 = vst [vmem:[#allocation3] sm:$0xff] %v946_v22  ;;  %1060 = vrot.lane.b32.xlu1 %v1056_v26, %s1987_s24  ;;  %v1010_v28 = vsel %vm2202_vm6, %v2348_v18, 0  ;;  %v964_v57 = vsel %vm2239_vm8, %v2348_v18, 0  ;;  %v965_v40 = vsel %vm2198_vm4, %v2344_v14, 0 }
 0x270   : > { %v1009_v21 = vld [vmem:[#allocation2 + $0x8] sm:$0xf]  ;;  %1080 = vst.msk [vmem:[#allocation2] sm:$0xff] %vm2064_vm11, %v1077_v29  ;;  %v980_v59 = vsel %vm2219_vm14, %v2348_v18, 0  ;;  %v981_v62 = vsel %vm2154_vm13, %v2346_v17, 0 }
 0x271   : > { %v1041_v23 = vld [vmem:[#allocation2 + $0x8] sm:$0xf]  ;;  %v1011_v52 = vsel %vm2150_vm12, %v1009_v21, 0 }
 0x272   : > { %v1055_v24 = vld [vmem:[#allocation2 + $0x8] sm:$0xf] }
 0x273   : > { %v1057_v58 = vsel %vm2126_vm0, %v1055_v24, 0  ;;  %v1025_v27 = vld [vmem:[#allocation2 + $0x8] sm:$0xf] }
 0x274   : > { %1062 = vrot.lane.b32.xlu2 %v1057_v58, %s1987_s24  ;;  %1072 = vst.msk [vmem:[#allocation2 + $0x8] sm:$0xf] %vm2632_vm10, %v1973_v1  ;;  %v1027_v34 = vsel %vm2130_vm1, %v1025_v27, 0 }
 0x275   : > { %1081 = vst.msk [vmem:[#allocation2 + $0x8] sm:$0xf] %vm2633_vm9, %v1076_v11  ;;  %vm2634_vm9 = vmmov %vm2632_vm10  ;;  %vm2636_vm10 = vcmask 785408  }
 0x277   : > { %1030 = vrot.lane.b32.xlu1 %v1026_v31, %s1982_s19  ;;  %v1085_v45 = vld [vmem:[#allocation2] sm:$0xff] }
 0x278   : > { %v1083_v20 = vsel %vm2051_vm2, %v1085_v45, 0  ;;  %1389 = vst [vmem:[#allocation2] sm:$0xff] %v1973_v1  ;;  %v1147_v53 = vsel %vm2202_vm6, %v1085_v45, 0  ;;  %v1117_v54 = vsel %vm2219_vm14, %v1085_v45, 0  ;;  %v1163_v55 = vsel %vm2168_vm3, %v1085_v45, 0 }
 0x279   : > { %1084 = vst [vmem:[#allocation3 + $0x48] sm:$0xff] %v1083_v20  ;;  %v1101_v49 = vsel %vm2239_vm8, %v1085_v45, 0  ;;  %v1193_v56 = vsel %vm2255_vm7, %v1085_v45, 0  ;;  %vm2648_vm14 = vcmask 908288  }
 0x27c   : > { %1032 = vrot.lane.b32.xlu2 %v1027_v34, %s1982_s19  ;;  %v1116_v36 = vld [vmem:[#allocation2 + $0x8] sm:$0xf] }
 0x27d   : > { %v1118_v38 = vsel %vm2154_vm13, %v1116_v36, 0  ;;  %v1132_v39 = vld [vmem:[#allocation2 + $0x8] sm:$0xf] }
 0x27e   : > { %1123 = vrot.lane.b32.xlu0 %v1118_v38, %s1983_s20  ;;  %v1086_v41 = vld [vmem:[#allocation2 + $0x8] sm:$0xf] }
 0x27f   : > { %v1146_v42 = vld [vmem:[#allocation2 + $0x8] sm:$0xf]  ;;  %1091 = vrot.lane.b32.xlu1 %v1086_v41, %s1985_s22 }
 0x280   : > { %v1178_v35 = vld [vmem:[#allocation2 + $0x8] sm:$0xf]  ;;  %v1148_v47 = vsel %vm2150_vm12, %v1146_v42, 0 }
 0x281   : > { %v1100_v43 = vld [vmem:[#allocation2 + $0x8] sm:$0xf] }
 0x282   : > { %v1162_v30 = vld [vmem:[#allocation2 + $0x8] sm:$0xf]  ;;  %v1102_v48 = vsel %vm2198_vm4, %v1100_v43, 0 }
 0x283   : > { %v1192_v33 = vld [vmem:[#allocation2 + $0x8] sm:$0xf] }
 0x284   : > { %1390 = vst.msk [vmem:[#allocation2 + $0x8] sm:$0xf] %vm2634_vm9, %v1973_v1  ;;  %1137 = vrot.lane.b32.xlu2 %v1132_v39, %s1981_s18  ;;  %v1164_v1 = vsel %vm2130_vm1, %v1162_v30, 0  ;;  %v1194_v51 = vsel %vm2126_vm0, %v1192_v33, 0  ;;  %vm2637_vm9 = vcmask 1039360  }
 0x286   : > { %1089 = vrot.lane.b32.xlu0 %v1085_v45, %s1985_s22 }
 0x287   : > { %1183 = vrot.lane.b32.xlu1 %v1178_v35, %s1980_s17 }
 0x28c   : > { %1153 = vrot.lane.b32.xlu2 %v1148_v47, %s1984_s21 }
 0x28e   : > { %1107 = vrot.lane.b32.xlu0 %v1102_v48, %s1986_s23 }
 0x28f   : > { %1169 = vrot.lane.b32.xlu1 %v1164_v1, %s1982_s19 }
 0x294   : > { %998 = vrot.lane.b32.xlu2 %v2348_v18, %s1981_s18 }
 0x296   : > { %1181 = vrot.lane.b32.xlu0 %v1085_v45, %s1980_s17 }
 0x297   : > { %1135 = vrot.lane.b32.xlu1 %v1085_v45, %s1981_s18 }
 0x29c   : > { %1016 = vrot.lane.b32.xlu2 %v1011_v52, %s1984_s21 }
 0x29e   : > { %1199 = vrot.lane.b32.xlu0 %v1194_v51, %s1987_s24 }
 0x29f   : > { %1151 = vrot.lane.b32.xlu1 %v1147_v53, %s1984_s21 }
 0x2a4   : > { %1121 = vrot.lane.b32.xlu2 %v1117_v54, %s1983_s20 }
 0x2a6   : > { %1167 = vrot.lane.b32.xlu0 %v1163_v55, %s1982_s19 }
 0x2a7   : > { %1046 = vrot.lane.b32.xlu1 %v1041_v23, %s1980_s17 }
 0x2ac   : > { %1105 = vrot.lane.b32.xlu2 %v1101_v49, %s1986_s23 }
 0x2ae   : > { %1000 = vrot.lane.b32.xlu0 %v995_v19, %s1981_s18 }
 0x2af   : > { %1014 = vrot.lane.b32.xlu1 %v1010_v28, %s1984_s21 }
 0x2b4   : > { %1197 = vrot.lane.b32.xlu2 %v1193_v56, %s1987_s24 }
 0x2b6   : > { %968 = vrot.lane.b32.xlu0 %v964_v57, %s1986_s23 }
 0x2b7   : > { %970 = vrot.lane.b32.xlu1 %v965_v40, %s1986_s23 }
 0x2bc   : > { %984 = vrot.lane.b32.xlu2 %v980_v59, %s1983_s20 }
 0x2be   : > { %986 = vrot.lane.b32.xlu0 %v981_v62, %s1983_s20 }
 0x2bf   : > { %952 = vrot.lane.b32.xlu1 %v2348_v18, %s1985_s22 }
 0x2c4   : > { %954 = vrot.lane.b32.xlu2 %v2342_v13, %s1985_s22 }
 0x2c6   : > { %1229 = vperm.xlu0 %1964, %v1226_v63  }
 0x2ce   : > { %v1063_v2 = vpop.permute.xlu2 %1062 }
 0x2cf   : > { %v1065_v6 = vrot.slane %v1063_v2, 4 }
 0x2d6   : > { %v1033_v3 = vpop.permute.xlu2 %1032 }
 0x2d7   : > { %v1035_v17 = vrot.slane %v1033_v3, 4 }
 0x2de   : > { %v1138_v4 = vpop.permute.xlu2 %1137 }
 0x2df   : > { %v1140_v55 = vrot.slane %v1138_v4, 4  ;;  %v2476_v4 = vld [vmem:[%s2582_s4] sm:$0xff] }
 0x2e0   : > { %v2451_v9 = vpop.permute.xlu0 %1044 }
 0x2e1   : > { %v1061_v5 = vpop.permute.xlu1 %1060 }
 0x2e2   : > { %v1064_v10 = vrot.slane %v1061_v5, 4 }
 0x2e4   : > { %v1066_v50 = vsel %vm421_vm15, %v1064_v10, %v1065_v6 }
 0x2e5   : > { %v1067_v11 = vsel %vm2635_vm5, %v1061_v5, %v1066_v50  ;;  %vm2638_vm5 = vcmask 916480  }
 0x2e6   : > { %v1154_v8 = vpop.permute.xlu2 %1153  ;;  %1069 = vst [vmem:[#allocation3 + $0x40] sm:$0xff] %v1067_v11 }
 0x2e7   : > { %v1156_v5 = vrot.slane %v1154_v8, 4 }
 0x2e9   : > { %v1031_v14 = vpop.permute.xlu1 %1030 }
 0x2ea   : > { %v1034_v13 = vrot.slane %v1031_v14, 4 }
 0x2ec   : > { %v1036_v21 = vsel %vm421_vm15, %v1034_v13, %v1035_v17  ;;  %v1234_v13 = vunpack.c.h.b16 %v2476_v4 }
 0x2ed   : > { %v1037_v22 = vsel %vm2636_vm10, %v1031_v14, %v1036_v21  ;;  %vm2639_vm10 = vcmask 1031168  }
 0x2ee   : > { %v2455_v18 = vpop.permute.xlu2 %998  ;;  %1039 = vst [vmem:[#allocation3 + $0x30] sm:$0xff] %v1037_v22 }
 0x2f0   : > { %v1124_v19 = vpop.permute.xlu0 %1123 }
 0x2f1   : > { %v1092_v23 = vpop.permute.xlu1 %1091  ;;  %v1126_v38 = vrot.slane %v1124_v19, 4 }
 0x2f2   : > { %v1094_v26 = vrot.slane %v1092_v23, 4 }
 0x2f6   : > { %v2459_v24 = vpop.permute.xlu2 %1016 }
 0x2f8   : > { %v1090_v58 = vpop.permute.xlu0 %1089 }
 0x2f9   : > { %v1093_v27 = vrot.slane %v1090_v58, 4  ;;  %v1184_v34 = vpop.permute.xlu1 %1183 }
 0x2fa   : > { %v1186_v47 = vrot.slane %v1184_v34, 4 }
 0x2fb   : > { %v1095_v29 = vsel %vm421_vm15, %v1093_v27, %v1094_v26 }
 0x2fc   : > { %v1096_v31 = vsel %vm2637_vm9, %v1090_v58, %v1095_v29  ;;  %vm2640_vm9 = vcmask 777216  }
 0x2fd   : > { %1098 = vst [vmem:[#allocation3 + $0x50] sm:$0xff] %v1096_v31  ;;  %v1048_v31 = vrot.slane %v2451_v9, 4 }
 0x2fe   : > { %v1122_v36 = vpop.permute.xlu2 %1121 }
 0x2ff   : > { %v1125_v39 = vrot.slane %v1122_v36, 4 }
 0x300   : > { %v1108_v41 = vpop.permute.xlu0 %1107 }
 0x301   : > { %v1127_v42 = vsel %vm421_vm15, %v1125_v39, %v1126_v38  ;;  %v1170_v43 = vpop.permute.xlu1 %1169  ;;  %v1110_v33 = vrot.slane %v1108_v41, 4  ;;  %v1002_v41 = vrot.slane %v2455_v18, 4 }
 0x302   : > { %v1128_v35 = vsel %vm2638_vm5, %v1122_v36, %v1127_v42  ;;  %vm2641_vm5 = vcmask 908288   ;;  %v1172_v11 = vrot.slane %v1170_v43, 4  ;;  %v1236_v36 = vpack.c.b16 %v1234_v13, %v1234_v13 }
 0x303   : > { %1130 = vst [vmem:[#allocation3 + $0x60] sm:$0xff] %v1128_v35 }
 0x306   : > { %v1106_v30 = vpop.permute.xlu2 %1105 }
 0x307   : > { %v1109_v45 = vrot.slane %v1106_v30, 4 }
 0x308   : > { %v1182_v20 = vpop.permute.xlu0 %1181 }
 0x309   : > { %v1111_v48 = vsel %vm421_vm15, %v1109_v45, %v1110_v33  ;;  %v1185_v1 = vrot.slane %v1182_v20, 4  ;;  %v1136_v54 = vpop.permute.xlu1 %1135 }
 0x30a   : > { %v1112_v52 = vsel %vm2639_vm10, %v1106_v30, %v1111_v48  ;;  %v1139_v28 = vrot.slane %v1136_v54, 4  ;;  %vm2642_vm10 = vcmask 769024  }
 0x30b   : > { %1114 = vst [vmem:[#allocation3 + $0x58] sm:$0xff] %v1112_v52  ;;  %v1187_v51 = vsel %vm421_vm15, %v1185_v1, %v1186_v47 }
 0x30c   : > { %v1188_v53 = vsel %vm2640_vm9, %v1182_v20, %v1187_v51  ;;  %v1141_v57 = vsel %vm421_vm15, %v1139_v28, %v1140_v55  ;;  %vm2643_vm9 = vcmask 900096   ;;  %v1834_v28 = vld [vmem:[#allocation3 + $0x60] sm:$0xf] }
 0x30d   : > { %1190 = vst [vmem:[#allocation3 + $0x80] sm:$0xff] %v1188_v53  ;;  %v1142_v59 = vsel %vm2641_vm5, %v1136_v54, %v1141_v57  ;;  %vm2644_vm5 = vcmask 785408  }
 0x30e   : > { %v1198_v49 = vpop.permute.xlu2 %1197  ;;  %1144 = vst [vmem:[#allocation3 + $0x68] sm:$0xff] %v1142_v59 }
 0x30f   : > { %v1201_v56 = vrot.slane %v1198_v49, 4 }
 0x310   : > { %v1200_v40 = vpop.permute.xlu0 %1199 }
 0x311   : > { %v1202_v62 = vrot.slane %v1200_v40, 4  ;;  %v1152_v3 = vpop.permute.xlu1 %1151 }
 0x312   : > { %v1155_v6 = vrot.slane %v1152_v3, 4 }
 0x313   : > { %v1203_v63 = vsel %vm421_vm15, %v1201_v56, %v1202_v62  ;;  %v1927_v56 = vld [vmem:[#allocation3 + $0x64] sm:$0xf]  ;;  %v1926_v62 = vld [vmem:[#allocation3 + $0x54] sm:$0xf0] }
 0x314   : > { %v1204_v2 = vsel %vm2642_vm10, %v1198_v49, %v1203_v63  ;;  %v1157_v10 = vsel %vm421_vm15, %v1155_v6, %v1156_v5  ;;  %v1850_v21 = vld [vmem:[#allocation3 + $0x80] sm:$0xf]  ;;  %v1931_v23 = vld [vmem:[#allocation3 + $0x84] sm:$0xf]  ;;  %vm2645_vm10 = vcmask 777216  }
 0x315   : > { %1206 = vst [vmem:[#allocation3 + $0x88] sm:$0xff] %v1204_v2  ;;  %v1158_v14 = vsel %vm2643_vm9, %v1152_v3, %v1157_v10  ;;  %vm2646_vm9 = vcmask 130048   ;;  %v1928_v53 = vld [vmem:[#allocation3 + $0x64] sm:$0xf0]  ;;  %v1836_v54 = vld [vmem:[#allocation3 + $0x68] sm:$0xf0] }
 0x316   : > { %1160 = vst [vmem:[#allocation3 + $0x70] sm:$0xff] %v1158_v14  ;;  %v985_v57 = vpop.permute.xlu2 %984  ;;  %v1835_v40 = vor.u32 %v1928_v53, %v1834_v28  ;;  %v1839_v59 = vor.u32 %v1927_v56, %v1836_v54  ;;  %v1828_v63 = vld [vmem:[#allocation3 + $0x58] sm:$0xf0]  ;;  %v1925_v2 = vld [vmem:[#allocation3 + $0x54] sm:$0xf]  ;;  %v1233_v56 = vunpack.c.l.b16 %v2476_v4 }
 0x317   : > { %v1831_v5 = vor.u32 %v1925_v2, %v1828_v63  ;;  %v1818_v10 = vld [vmem:[#allocation3 + $0x40] sm:$0xf]  ;;  %v1923_v14 = vld [vmem:[#allocation3 + $0x44] sm:$0xf] }
 0x318   : > { %v1168_v50 = vpop.permute.xlu0 %1167 }
 0x319   : > { %v1171_v17 = vrot.slane %v1168_v50, 4  ;;  %v1047_v29 = vpop.permute.xlu1 %1046 }
 0x31a   : > { %v1049_v34 = vrot.slane %v1047_v29, 4 }
 0x31b   : > { %v1173_v19 = vsel %vm421_vm15, %v1171_v17, %v1172_v11  ;;  %v1924_v17 = vld [vmem:[#allocation3 + $0x44] sm:$0xf0] }
 0x31c   : > { %v1174_v8 = vsel %vm2644_vm5, %v1168_v50, %v1173_v19  ;;  %v1932_v22 = vld [vmem:[#allocation3 + $0x84] sm:$0xf0]  ;;  %v1852_v26 = vld [vmem:[#allocation3 + $0x88] sm:$0xf0]  ;;  %v1050_v38 = vsel %vm421_vm15, %v1048_v31, %v1049_v34  ;;  %vm2647_vm5 = vmmov %vm2646_vm9 }
 0x31d   : > { %1176 = vst [vmem:[#allocation3 + $0x78] sm:$0xff] %v1174_v8  ;;  %v1851_v58 = vor.u32 %v1932_v22, %v1850_v21  ;;  %v1855_v27 = vor.u32 %v1931_v23, %v1852_v26  ;;  %v1051_v42 = vsel %vm2645_vm10, %v2451_v9, %v1050_v38  ;;  %v1842_v43 = vld [vmem:[#allocation3 + $0x70] sm:$0xf]  ;;  %v1929_v30 = vld [vmem:[#allocation3 + $0x74] sm:$0xf]  ;;  %v1019_v9 = vrot.slane %v2459_v24, 4 }
 0x31e   : > { %1053 = vst [vmem:[#allocation3 + $0x38] sm:$0xff] %v1051_v42  ;;  %v1826_v24 = vld [vmem:[#allocation3 + $0x50] sm:$0xf]  ;;  %v1819_v21 = vor.u32 %v1924_v17, %v1818_v10  ;;  %v1820_v8 = vld [vmem:[#allocation3 + $0x48] sm:$0xf0]  ;;  %v988_v22 = vrot.slane %v985_v57, 4  ;;  %v955_v31 = vpop.permute.xlu2 %954 }
 0x31f   : > { %1351 = vmatpush.bf16.msrb.mxu3 %v1851_v58  ;;  %1377 = vmatpush.bf16.msrb.mxu0 %v1855_v27  ;;  %v1827_v3 = vor.u32 %v1926_v62, %v1826_v24  ;;  %vm2650_vm10 = vcmask 1031168   ;;  %v1823_v58 = vor.u32 %v1923_v14, %v1820_v8  ;;  %v1810_v38 = vld [vmem:[#allocation3 + $0x30] sm:$0xf]  ;;  %v1235_v24 = vpack.c.b16 %v1233_v56, %v1233_v56 }
 0x320   : > { %v1001_v39 = vpop.permute.xlu0 %1000 }
 0x321   : > { %v1003_v35 = vrot.slane %v1001_v39, 4  ;;  %v1015_v52 = vpop.permute.xlu1 %1014  ;;  %v1921_v39 = vld [vmem:[#allocation3 + $0x34] sm:$0xf] }
 0x322   : > { %1856 = vmatmul.msk.bf16.vlgmr.msrb.gmra.mxu3 %vm2646_vm9, %v1236_v36  ;;  %1857 = vmatmul.msk.bf16.vlgmr.msrb.gmra.mxu0 %vm2647_vm5, %v1236_v36  ;;  %v1018_v51 = vrot.slane %v1015_v52, 4  ;;  %vm2651_vm9 = vcmask 916480   ;;  %vm2652_vm5 = vcmask 1039360  }
 0x323   : > { %v1004_v33 = vsel %vm421_vm15, %v1002_v41, %v1003_v35 }
 0x324   : > { %v1005_v45 = vsel %vm2648_vm14, %v2455_v18, %v1004_v33  ;;  %v1930_v20 = vld [vmem:[#allocation3 + $0x74] sm:$0xf0]  ;;  %v1844_v47 = vld [vmem:[#allocation3 + $0x78] sm:$0xf0]  ;;  %v1020_v55 = vsel %vm421_vm15, %v1018_v51, %v1019_v9  ;;  %vm2649_vm14 = vcmask 900096  }
 0x325   : > { %1007 = vst [vmem:[#allocation3 + $0x20] sm:$0xff] %v1005_v45  ;;  %v1843_v48 = vor.u32 %v1930_v20, %v1842_v43  ;;  %v1847_v1 = vor.u32 %v1929_v30, %v1844_v47  ;;  %v1021_v18 = vsel %vm2649_vm14, %v1015_v52, %v1020_v55  ;;  %v1922_v27 = vld [vmem:[#allocation3 + $0x34] sm:$0xf0]  ;;  %v1812_v29 = vld [vmem:[#allocation3 + $0x38] sm:$0xf0]  ;;  %v957_v43 = vrot.slane %v955_v31, 4 }
 0x326   : > { %1023 = vst [vmem:[#allocation3 + $0x28] sm:$0xff] %v1021_v18  ;;  %v1811_v41 = vor.u32 %v1922_v27, %v1810_v38  ;;  %v1815_v42 = vor.u32 %v1921_v39, %v1812_v29 }
 0x327   : > { %1331 = vmatpush.bf16.msrb.mxu1 %v1843_v48  ;;  %1357 = vmatpush.bf16.msra.mxu3 %v1847_v1 }
 0x328   : > { %v969_v49 = vpop.permute.xlu0 %968 }
 0x329   : > { %v971_v6 = vpop.permute.xlu1 %970  ;;  %v972_v50 = vrot.slane %v969_v49, 4 }
 0x32a   : > { %v973_v11 = vrot.slane %v971_v6, 4 }
 0x32b   : > { %1332 = vmatpush.bf16.msrb.mxu1 %v1835_v40  ;;  %1358 = vmatpush.bf16.msra.mxu3 %v1839_v59  ;;  %v1915_v40 = vld [vmem:[#allocation3 + $0x4] sm:$0xf] }
 0x32c   : > { %v974_v13 = vsel %vm421_vm15, %v972_v50, %v973_v11  ;;  %v1802_v47 = vld [vmem:[#allocation3 + $0x20] sm:$0xf]  ;;  %v1919_v48 = vld [vmem:[#allocation3 + $0x24] sm:$0xf] }
 0x32d   : > { %v975_v23 = vsel %vm2650_vm10, %v969_v49, %v974_v13  ;;  %v1920_v33 = vld [vmem:[#allocation3 + $0x24] sm:$0xf0]  ;;  %v1804_v45 = vld [vmem:[#allocation3 + $0x28] sm:$0xf0] }
 0x32e   : > { %977 = vst [vmem:[#allocation3 + $0x10] sm:$0xff] %v975_v23  ;;  %v1803_v52 = vor.u32 %v1920_v33, %v1802_v47  ;;  %v1807_v9 = vor.u32 %v1919_v48, %v1804_v45 }
 0x32f   : > { %1333 = vmatpush.bf16.msrb.mxu1 %v1827_v3  ;;  %1359 = vmatpush.bf16.msra.mxu3 %v1831_v5 }
 0x330   : > { %v987_v19 = vpop.permute.xlu0 %986 }
 0x331   : > { %v989_v26 = vrot.slane %v987_v19, 4  ;;  %v953_v35 = vpop.permute.xlu1 %952 }
 0x332   : > { %v956_v30 = vrot.slane %v953_v35, 4 }
 0x333   : > { %v990_v34 = vsel %vm421_vm15, %v988_v22, %v989_v26  ;;  %1334 = vmatpush.bf16.msrb.mxu1 %v1819_v21  ;;  %1360 = vmatpush.bf16.msra.mxu3 %v1823_v58 }
 0x334   : > { %v991_v36 = vsel %vm2651_vm9, %v985_v57, %v990_v34  ;;  %v958_v20 = vsel %vm421_vm15, %v956_v30, %v957_v43  ;;  %v1786_v57 = vld [vmem:[#allocation3] sm:$0xf]  ;;  %vm2653_vm9 = vcmask 138240  }
 0x335   : > { %993 = vst [vmem:[#allocation3 + $0x18] sm:$0xff] %v991_v36  ;;  %v959_v1 = vsel %vm2652_vm5, %v953_v35, %v958_v20  ;;  %v1794_v51 = vld [vmem:[#allocation3 + $0x10] sm:$0xf]  ;;  %v1917_v53 = vld [vmem:[#allocation3 + $0x14] sm:$0xf]  ;;  %vm2654_vm5 = vcmask 134144  }
 0x336   : > { %961 = vst [vmem:[#allocation3 + $0x8] sm:$0xff] %v959_v1 }
 0x337   : > { %1335 = vmatpush.bf16.msrb.mxu1 %v1811_v41  ;;  %1361 = vmatpush.bf16.msra.mxu3 %v1815_v42 }
 0x338   : > { %v1230_v10 = vpop.permute.xlu0 %1229 }
 0x33b   : > { %1336 = vmatpush.bf16.msrb.mxu1 %v1803_v52  ;;  %1362 = vmatpush.bf16.msra.mxu3 %v1807_v9 }
 0x33c   : > { %v1918_v54 = vld [vmem:[#allocation3 + $0x14] sm:$0xf0]  ;;  %v1796_v55 = vld [vmem:[#allocation3 + $0x18] sm:$0xf0] }
 0x33d   : > { %v1795_v49 = vor.u32 %v1918_v54, %v1794_v51  ;;  %v1799_v28 = vor.u32 %v1917_v53, %v1796_v55  ;;  %v1916_v18 = vld [vmem:[#allocation3 + $0x4] sm:$0xf0]  ;;  %v1788_v59 = vld [vmem:[#allocation3 + $0x8] sm:$0xf0] }
 0x33e   : > { %v1787_v62 = vor.u32 %v1916_v18, %v1786_v57  ;;  %v1791_v63 = vor.u32 %v1915_v40, %v1788_v59 }
 0x33f   : > { %1337 = vmatpush.bf16.msrb.mxu1 %v1795_v49  ;;  %1363 = vmatpush.bf16.msra.mxu3 %v1799_v28 }
 0x343   : > { %1338 = vmatpush.bf16.msrb.mxu1 %v1787_v62  ;;  %1364 = vmatpush.bf16.msra.mxu3 %v1791_v63 }
 0x346   : > { %1339 = vmatmul.bf16.vlgmr.msrb.gmra.mxu1 %v1235_v24  ;;  %1365 = vmatmul.bf16.vlgmr.msra.gmra.mxu3 %v1235_v24 }
 0x39f   : > { %v1379_v3 = vpop.f32.mrf.mxu0 }
 0x3a5   : > { %v1353_v2 = vpop.f32.mrf.mxu3 }
 0x3a7   : > { %v1381_v6 = vpop.f32.mrf.mxu0 }
 0x3ad   : > { %v1355_v5 = vpop.f32.mrf.mxu3 }
 0x3c3   : > { %v1340_v50 = vpop.f32.mrf.mxu1 }
 0x3c4   : > { %v1341_v11 = vadd.f32 %v1340_v50, %v1230_v10 }
 0x3c6   : > { %v1354_v14 = vadd.f32 %v1353_v2, %v1341_v11 }
 0x3c8   : > { %v1385_v19 = vmul.f32 0.1, %v1354_v14  ;;  %vm1383_vm14 = vcmp.ge.f32.partialorder %v1354_v14, 0.0 }
 0x3c9   : > { %v1366_v4 = vpop.f32.mrf.mxu3 }
 0x3ca   : > { %v1367_v17 = vadd.f32 %v1366_v4, %v1230_v10  ;;  %v1387_v22 = vsel %vm1383_vm14, %v1354_v14, %v1385_v19 }
 0x3cb   : > { %v1342_v13 = vpop.f32.mrf.mxu1 }
 0x3cc   : > { %v1380_v21 = vadd.f32 %v1379_v3, %v1367_v17 }
 0x3ce   : > { %vm1384_vm10 = vcmp.ge.f32.partialorder %v1380_v21, 0.0  ;;  %v1386_v8 = vmul.f32 0.1, %v1380_v21 }
 0x3d0   : > { %v1388_v23 = vsel %vm1384_vm10, %v1380_v21, %v1386_v8 }
 0x3d1   : > { %v1368_v26 = vpop.f32.mrf.mxu3  ;;  %v1391_v58 = vpack.c.bf16 %v1388_v23, %v1387_v22 }
 0x3d3   : > { %1393 = vrot.lane.b32.xlu1 %v1391_v58, %s1974_s11 }
 0x445   : > { %v1394_v27 = vpop.permute.xlu1 %1393 }
 0x446   : > { %v1395_v29 = vrot.slane %v1394_v27, 4 }
 0x448   : > { %v1396_v31 = vsel %vm2653_vm9, %v1395_v29, %v1394_v27  ;;  %1400 = vst.msk [vmem:[#allocation2 + $0x8] sm:$0xf] %vm2654_vm5, %v1395_v29 }
 0x449   : > { %1399 = vst.msk [vmem:[#allocation2] sm:$0xff] %vm2064_vm11, %v1396_v31  ;;  %vm2657_vm11 = vcmask 769024  }
 0x44f   : > { %v1497_v34 = vld [vmem:[#allocation2 + $0x8] sm:$0xf] }
 0x450   : > { %v1451_v36 = vld [vmem:[#allocation2 + $0x8] sm:$0xf]  ;;  %v1401_v39 = vld [vmem:[#allocation2] sm:$0xff]  ;;  %1502 = vrot.lane.b32.xlu1 %v1497_v34, %s1980_s17 }
 0x451   : > { %v1481_v38 = vld [vmem:[#allocation2 + $0x8] sm:$0xf]  ;;  %1456 = vrot.lane.b32.xlu0 %v1451_v36, %s1981_s18  ;;  %v1402_v42 = vsel %vm2051_vm2, %v1401_v39, 0  ;;  %v1482_v7 = vsel %vm2168_vm3, %v1401_v39, 0  ;;  %v1512_v44 = vsel %vm2255_vm7, %v1401_v39, 0  ;;  %v1466_v15 = vsel %vm2202_vm6, %v1401_v39, 0 }
 0x452   : > { %v1483_v41 = vsel %vm2130_vm1, %v1481_v38, 0  ;;  %1403 = vst [vmem:[#allocation3] sm:$0xff] %v1402_v42  ;;  %v1511_v35 = vld [vmem:[#allocation2 + $0x8] sm:$0xf]  ;;  %v1420_v33 = vsel %vm2239_vm8, %v1401_v39, 0  ;;  %vm2655_vm2 = vnez %v2619_v25  ;;  %vm2656_vm6 = vcmask 908288  }
 0x453   : > { %1488 = vrot.lane.b32.xlu2 %v1483_v41, %s1982_s19  ;;  %v1419_v12 = vld [vmem:[#allocation2 + $0x8] sm:$0xf]  ;;  %v1513_v43 = vsel %vm2126_vm0, %v1511_v35, 0  ;;  %v1436_v16 = vsel %vm2655_vm2, %v1401_v39, 0  ;;  %vm2658_vm0 = vcmask 777216   ;;  %vm2659_vm1 = vcmask 785408  }
 0x454   : > { %v1421_v30 = vsel %vm2198_vm4, %v1419_v12, 0  ;;  %v1465_v46 = vld [vmem:[#allocation2 + $0x8] sm:$0xf]  ;;  %vm2662_vm3 = vcmask 916480   ;;  %vm2663_vm4 = vcmask 1039360   ;;  %vm1587_vm8 = vcmask 588800  }
 0x455   : > { %v1467_v0 = vsel %vm2150_vm12, %v1465_v46, 0  ;;  %v1435_v32 = vld [vmem:[#allocation2 + $0x8] sm:$0xf]  ;;  %vm2660_vm12 = vcmask 900096  }
 0x456   : > { %v1437_v45 = vsel %vm2154_vm13, %v1435_v32, 0  ;;  %v1405_v37 = vld [vmem:[#allocation2 + $0x8] sm:$0xf]  ;;  %vm2661_vm13 = vcmask 1031168  }
 0x458   : > { %1426 = vrot.lane.b32.xlu1 %v1421_v30, %s1986_s23 }
 0x459   : > { %1518 = vrot.lane.b32.xlu0 %v1513_v43, %s1987_s24 }
 0x45b   : > { %1454 = vrot.lane.b32.xlu2 %v1401_v39, %s1981_s18 }
 0x460   : > { %1486 = vrot.lane.b32.xlu1 %v1482_v7, %s1982_s19 }
 0x461   : > { %1500 = vrot.lane.b32.xlu0 %v1401_v39, %s1980_s17 }
 0x463   : > { %1516 = vrot.lane.b32.xlu2 %v1512_v44, %s1987_s24 }
 0x468   : > { %1470 = vrot.lane.b32.xlu1 %v1466_v15, %s1984_s21 }
 0x469   : > { %1424 = vrot.lane.b32.xlu0 %v1420_v33, %s1986_s23 }
 0x46b   : > { %1472 = vrot.lane.b32.xlu2 %v1467_v0, %s1984_s21 }
 0x470   : > { %1408 = vrot.lane.b32.xlu1 %v1401_v39, %s1985_s22 }
 0x471   : > { %1442 = vrot.lane.b32.xlu0 %v1437_v45, %s1983_s20 }
 0x473   : > { %1440 = vrot.lane.b32.xlu2 %v1436_v16, %s1983_s20 }
 0x479   : > { %1539 = vperm.xlu0 %1964, %v1536_v60  }
 0x47b   : > { %1410 = vrot.lane.b32.xlu2 %v1405_v37, %s1985_s22  ;;  %s325_s22 = scalar_lea.vmem %s2586_s8, %s1895_s9 }
 0x4ad   : > { %v1489_v20 = vpop.permute.xlu2 %1488 }
 0x4ae   : > { %v1491_v63 = vrot.slane %v1489_v20, 4 }
 0x4b5   : > { %v1455_v61 = vpop.permute.xlu2 %1454 }
 0x4b6   : > { %v1458_v52 = vrot.slane %v1455_v61, 4 }
 0x4bd   : > { %v1517_v47 = vpop.permute.xlu2 %1516 }
 0x4be   : > { %v1520_v55 = vrot.slane %v1517_v47, 4 }
 0x4c2   : > { %v1503_v48 = vpop.permute.xlu1 %1502 }
 0x4c3   : > { %v1457_v1 = vpop.permute.xlu0 %1456  ;;  %v1505_v24 = vrot.slane %v1503_v48, 4 }
 0x4c4   : > { %v1459_v9 = vrot.slane %v1457_v1, 4 }
 0x4c5   : > { %v1473_v28 = vpop.permute.xlu2 %1472 }
 0x4c6   : > { %v1460_v25 = vsel %vm421_vm15, %v1458_v52, %v1459_v9  ;;  %v1475_v8 = vrot.slane %v1473_v28, 4 }
 0x4c7   : > { %v1461_v51 = vsel %vm2656_vm6, %v1455_v61, %v1460_v25 }
 0x4c8   : > { %1463 = vst [vmem:[#allocation3 + $0x20] sm:$0xff] %v1461_v51 }
 0x4ca   : > { %v1427_v54 = vpop.permute.xlu1 %1426 }
 0x4cb   : > { %v1519_v53 = vpop.permute.xlu0 %1518  ;;  %v1429_v22 = vrot.slane %v1427_v54, 4  ;;  %v1860_v54 = vld [vmem:[#allocation3] sm:$0xf] }
 0x4cc   : > { %v1521_v49 = vrot.slane %v1519_v53, 4 }
 0x4cd   : > { %v1441_v4 = vpop.permute.xlu2 %1440 }
 0x4ce   : > { %v1522_v56 = vsel %vm421_vm15, %v1520_v55, %v1521_v49  ;;  %v1444_v30 = vrot.slane %v1441_v4, 4  ;;  %v1933_v55 = vld [vmem:[#allocation3 + $0x4] sm:$0xf] }
 0x4cf   : > { %v1523_v57 = vsel %vm2657_vm11, %v1517_v47, %v1522_v56  ;;  %v1876_v0 = vld [vmem:[#allocation3 + $0x20] sm:$0xf]  ;;  %v1937_v60 = vld [vmem:[#allocation3 + $0x24] sm:$0xf]  ;;  %v1526_v56 = vld [vmem:[%s2584_s6] sm:$0xf] }
 0x4d0   : > { %1525 = vst [vmem:[#allocation3 + $0x40] sm:$0xff] %v1523_v57  ;;  %v1567_v18 = vunpack.c.l.b16 %v1523_v57  ;;  %v1568_v40 = vunpack.c.h.b16 %v1523_v57 }
 0x4d2   : > { %v1577_v59 = vpack.c.b16 %v1567_v18, %v1567_v18  ;;  %v1578_v62 = vpack.c.b16 %v1568_v40, %v1568_v40  ;;  %v1487_v3 = vpop.permute.xlu1 %1486 }
 0x4d3   : > { %v1501_v2 = vpop.permute.xlu0 %1500  ;;  %v1490_v6 = vrot.slane %v1487_v3, 4 }
 0x4d4   : > { %v1504_v5 = vrot.slane %v1501_v2, 4  ;;  %v1593_v10 = vsel %vm421_vm15, %v1577_v59, 0  ;;  %v1596_v50 = vsel %vm421_vm15, %v1578_v62, 0 }
 0x4d5   : > { %1601 = vmatpush.bf16.msrb.mxu2 %v1593_v10  ;;  %1614 = vmatpush.bf16.msra.mxu1 %v1596_v50  ;;  %v1492_v14 = vsel %vm421_vm15, %v1490_v6, %v1491_v63  ;;  %v1411_v41 = vpop.permute.xlu2 %1410 }
 0x4d6   : > { %v1506_v11 = vsel %vm421_vm15, %v1504_v5, %v1505_v24  ;;  %v1493_v13 = vsel %vm2659_vm1, %v1487_v3, %v1492_v14  ;;  %v1413_v7 = vrot.slane %v1411_v41, 4 }
 0x4d7   : > { %v1507_v17 = vsel %vm2658_vm0, %v1501_v2, %v1506_v11  ;;  %1495 = vst [vmem:[#allocation3 + $0x30] sm:$0xff] %v1493_v13 }
 0x4d8   : > { %1509 = vst [vmem:[#allocation3 + $0x38] sm:$0xff] %v1507_v17 }
 0x4da   : > { %v1471_v19 = vpop.permute.xlu1 %1470 }
 0x4db   : > { %v1425_v21 = vpop.permute.xlu0 %1424  ;;  %v1474_v23 = vrot.slane %v1471_v19, 4 }
 0x4dc   : > { %v1428_v26 = vrot.slane %v1425_v21, 4 }
 0x4dd   : > { %v1476_v58 = vsel %vm421_vm15, %v1474_v23, %v1475_v8 }
 0x4de   : > { %v1430_v27 = vsel %vm421_vm15, %v1428_v26, %v1429_v22  ;;  %v1477_v29 = vsel %vm2660_vm12, %v1471_v19, %v1476_v58  ;;  %v1884_v38 = vld [vmem:[#allocation3 + $0x30] sm:$0xf]  ;;  %v1939_v39 = vld [vmem:[#allocation3 + $0x34] sm:$0xf] }
 0x4df   : > { %v1431_v31 = vsel %vm2661_vm13, %v1425_v21, %v1430_v27  ;;  %v1940_v34 = vld [vmem:[#allocation3 + $0x34] sm:$0xf0]  ;;  %v1886_v36 = vld [vmem:[#allocation3 + $0x38] sm:$0xf0]  ;;  %1479 = vst [vmem:[#allocation3 + $0x28] sm:$0xff] %v1477_v29 }
 0x4e0   : > { %1433 = vst [vmem:[#allocation3 + $0x10] sm:$0xff] %v1431_v31  ;;  %v1885_v42 = vor.u32 %v1940_v34, %v1884_v38  ;;  %v1889_v35 = vor.u32 %v1939_v39, %v1886_v36 }
 0x4e2   : > { %1602 = vmatpush.bf16.msrb.mxu2 %v1885_v42  ;;  %1615 = vmatpush.bf16.msra.mxu1 %v1889_v35  ;;  %v1409_v43 = vpop.permute.xlu1 %1408 }
 0x4e3   : > { %v1443_v12 = vpop.permute.xlu0 %1442  ;;  %v1412_v46 = vrot.slane %v1409_v43, 4 }
 0x4e4   : > { %v1445_v44 = vrot.slane %v1443_v12, 4 }
 0x4e5   : > { %v1414_v33 = vsel %vm421_vm15, %v1412_v46, %v1413_v7 }
 0x4e6   : > { %v1446_v15 = vsel %vm421_vm15, %v1444_v30, %v1445_v44  ;;  %v1415_v45 = vsel %vm2663_vm4, %v1409_v43, %v1414_v33  ;;  %v1938_v16 = vld [vmem:[#allocation3 + $0x24] sm:$0xf0]  ;;  %v1878_v37 = vld [vmem:[#allocation3 + $0x28] sm:$0xf0] }
 0x4e7   : > { %v1447_v32 = vsel %vm2662_vm3, %v1441_v4, %v1446_v15  ;;  %v1877_v20 = vor.u32 %v1938_v16, %v1876_v0  ;;  %v1881_v61 = vor.u32 %v1937_v60, %v1878_v37  ;;  %1417 = vst [vmem:[#allocation3 + $0x8] sm:$0xff] %v1415_v45  ;;  %v1868_v47 = vld [vmem:[#allocation3 + $0x10] sm:$0xf]  ;;  %v1935_v1 = vld [vmem:[#allocation3 + $0x14] sm:$0xf] }
 0x4e8   : > { %1449 = vst [vmem:[#allocation3 + $0x18] sm:$0xff] %v1447_v32 }
 0x4e9   : > { %1603 = vmatpush.bf16.msrb.mxu2 %v1877_v20  ;;  %1616 = vmatpush.bf16.msra.mxu1 %v1881_v61 }
 0x4eb   : > { %v1540_v18 = vpop.permute.xlu0 %1539 }
 0x4ee   : > { %v1934_v51 = vld [vmem:[#allocation3 + $0x4] sm:$0xf0]  ;;  %v1862_v53 = vld [vmem:[#allocation3 + $0x8] sm:$0xf0] }
 0x4ef   : > { %v1936_v48 = vld [vmem:[#allocation3 + $0x14] sm:$0xf0]  ;;  %v1870_v52 = vld [vmem:[#allocation3 + $0x18] sm:$0xf0]  ;;  %v1861_v49 = vor.u32 %v1934_v51, %v1860_v54  ;;  %v1865_v28 = vor.u32 %v1933_v55, %v1862_v53 }
 0x4f0   : > { %v1869_v9 = vor.u32 %v1936_v48, %v1868_v47  ;;  %v1873_v25 = vor.u32 %v1935_v1, %v1870_v52 }
 0x4f2   : > { %1604 = vmatpush.bf16.msrb.mxu2 %v1869_v9  ;;  %1617 = vmatpush.bf16.msra.mxu1 %v1873_v25 }
 0x4f6   : > { %1605 = vmatpush.bf16.msrb.mxu2 %v1861_v49  ;;  %1618 = vmatpush.bf16.msra.mxu1 %v1865_v28 }
 0x4f9   : > { %1890 = vmatmul.msk.bf16.vlgmr.msrb.gmra.mxu2 %vm1587_vm8, %v1526_v56  ;;  %1891 = vmatmul.msk.bf16.vlgmr.msra.gmra.mxu1 %vm1587_vm8, %v1526_v56 }
 0x576   : > { %v1620_v57 = vpop.f32.mrf.mxu1 }
 0x577   : > { %v1621_v40 = vadd.f32 %v1620_v57, %v1540_v18 }
 0x579   : > { %v1627_v62 = vmul.f32 0.1, %v1621_v40  ;;  %vm1625_vm7 = vcmp.ge.f32.partialorder %v1621_v40, 0.0 }
 0x57b   : > { %v1629_v3 = vsel %vm1625_vm7, %v1621_v40, %v1627_v62 }
 0x57c   : > { %v1607_v59 = vpop.f32.mrf.mxu2 }
 0x57d   : > { %v1608_v63 = vadd.f32 %v1607_v59, %v1540_v18 }
 0x57e   : > { %v1622_v24 = vpop.f32.mrf.mxu1 }
 0x57f   : > { %vm1624_vm15 = vcmp.ge.f32.partialorder %v1608_v63, 0.0  ;;  %v1626_v2 = vmul.f32 0.1, %v1608_v63 }
 0x581   : > { %v1628_v5 = vsel %vm1624_vm15, %v1608_v63, %v1626_v2 }
 0x582   : > { %v1630_v6 = vpack.c.bf16 %v1629_v3, %v1628_v5 }
 0x584   : > { %1631 = vst [vmem:[%s325_s22] sm:$0xff] %v1630_v6  ;;  %v1609_v10 = vpop.f32.mrf.mxu2 }
 0x585 PF: > { %s18_s27 = sadd.s32 1, %s1971_s27  }
 0x586   : > { %p15_p4 = scmp.ge.s32.totalorder %s18_s27, 4  }
 0x588   :  { %17 = sbr.rel (!%p15_p4) target bundleno = 1 (0x1), region = 85 }

</bundles_post_ra>
